<compile_context>
chip_gen: v5e
topology: v5e:2x2
jax: 0.10.0
libtpu: 0.0.40
codegen_flags: <defaults>
</compile_context>

<pallas_src>
import functools

import jax
import jax.numpy as jnp
from jax.experimental import pallas as pl
from jax.experimental.pallas import tpu as pltpu

IN_DIM = 1800
IN_PAD = 1920            # 15 * 128 : lane-aligned contraction dim
HID = 1024
OUT_DIM = 2
OUT_PAD = 128            # lane-dense padded head / output
NEG_BIG = -1e30          # bias pad so padded classes softmax to exactly 0
MAX_TM = 128             # batch tile (rows per grid step)


def _round_up(x, m):
    return ((x + m - 1) // m) * m


def discriminator_kernel(x_ref, w1_ref, b1_ref, w2_ref, b2_ref, w3_ref, b3_ref,
                         o_ref):
    # ReverseLayerF is identity in the forward pass -> nothing to do.
    h1 = jnp.dot(x_ref[...], w1_ref[...], preferred_element_type=jnp.float32)
    h1 = jnp.maximum(h1 + b1_ref[...], 0.0)

    h2 = jnp.dot(h1.astype(w2_ref.dtype), w2_ref[...],
                 preferred_element_type=jnp.float32)
    h2 = jnp.maximum(h2 + b2_ref[...], 0.0)

    # Padded head: columns >= 2 have zero weights and bias = -1e30, so
    # exp(logit - max) underflows to 0 and the softmax over 128 lanes equals
    # the softmax over the 2 real classes.
    logits = jnp.dot(h2.astype(w3_ref.dtype), w3_ref[...],
                     preferred_element_type=jnp.float32) + b3_ref[...]
    m = jnp.max(logits, axis=1, keepdims=True)
    e = jnp.exp(logits - m)
    denom = jnp.sum(e, axis=1, keepdims=True)
    o_ref[...] = (e / denom).astype(o_ref.dtype)   # exact divide (cheap here)


def prepare_params(params):
    """One-time host-side prep: pad ragged dims, cast big operands to bf16.

    Call this once and reuse the result across forward calls so the pad/cast
    HBM traffic is not paid on every inference.
    """
    w1, b1, w2, b2, w3, b3 = params
    w1p = jnp.pad(w1, ((0, IN_PAD - IN_DIM), (0, 0))).astype(jnp.bfloat16)
    w2p = w2.astype(jnp.bfloat16)
    w3p = jnp.pad(w3, ((0, 0), (0, OUT_PAD - OUT_DIM))).astype(jnp.bfloat16)
    b1p = b1.reshape(1, HID).astype(jnp.float32)
    b2p = b2.reshape(1, HID).astype(jnp.float32)
    b3p = jnp.pad(b3.reshape(1, OUT_DIM), ((0, 0), (0, OUT_PAD - OUT_DIM)),
                  constant_values=NEG_BIG).astype(jnp.float32)
    return (w1p, b1p, w2p, b2p, w3p, b3p)


@functools.partial(jax.jit, static_argnames=("alpha",))
def discriminator_forward(feat, alpha, prepared):
    """feat: (B, 1800) float32.  `prepared` comes from prepare_params().
    alpha only scales gradients (ReverseLayerF), so it is unused here."""
    del alpha
    w1p, b1p, w2p, b2p, w3p, b3p = prepared
    B = feat.shape[0]

    # Batch tiling: pad rows to a sublane multiple; tile at <= 128 rows.
    b_pad8 = _round_up(B, 8)
    if b_pad8 <= MAX_TM:
        tm = b_pad8
        b_pad = b_pad8
    else:
        tm = MAX_TM
        b_pad = _round_up(B, MAX_TM)
    num_m = b_pad // tm

    x = jnp.pad(feat, ((0, b_pad - B), (0, IN_PAD - IN_DIM))).astype(jnp.bfloat16)

    flops = 2 * b_pad * (IN_PAD * HID + HID * HID + HID * OUT_PAD)
    bytes_accessed = (
        x.size * 2 + w1p.size * 2 + w2p.size * 2 + w3p.size * 2
        + (b1p.size + b2p.size + b3p.size) * 4 + b_pad * OUT_PAD * 4)

    out_pad = pl.pallas_call(
        discriminator_kernel,
        out_shape=jax.ShapeDtypeStruct((b_pad, OUT_PAD), jnp.float32),
        grid_spec=pltpu.PrefetchScalarGridSpec(
            num_scalar_prefetch=0,
            grid=(num_m,),
            in_specs=[
                pl.BlockSpec((tm, IN_PAD), lambda i: (i, 0)),     # x    (batch tile)
                pl.BlockSpec((IN_PAD, HID), lambda i: (0, 0)),    # w1   (resident)
                pl.BlockSpec((1, HID), lambda i: (0, 0)),         # b1   (resident)
                pl.BlockSpec((HID, HID), lambda i: (0, 0)),       # w2   (resident)
                pl.BlockSpec((1, HID), lambda i: (0, 0)),         # b2   (resident)
                pl.BlockSpec((HID, OUT_PAD), lambda i: (0, 0)),   # w3   (resident)
                pl.BlockSpec((1, OUT_PAD), lambda i: (0, 0)),     # b3   (resident)
            ],
            out_specs=pl.BlockSpec((tm, OUT_PAD), lambda i: (i, 0)),
        ),
        compiler_params=pltpu.CompilerParams(
            # Pure batch parallelism -> megacore can shard rows (v7x 2 TCs).
            dimension_semantics=("parallel",),
            # Resident bf16 weights ~6 MiB (~13 MiB double-buffered); safe on
            # v5e/v6e (128 MiB physical) and v7x (64 MiB physical).
            vmem_limit_bytes=32 << 20,
        ),
        cost_estimate=pl.CostEstimate(
            flops=flops,
            transcendentals=b_pad * OUT_PAD,
            bytes_accessed=bytes_accessed,
        ),
    )(x, w1p, b1p, w2p, b2p, w3p, b3p)

    return out_pad[:B, :OUT_DIM]


def make_params(key):
    """Synthetic init mirroring real_init_weights for nn.Linear:
    weights ~ N(0, 0.01); biases small.  Stored as (in, out) for y = x @ W + b."""
    k1, k2, k3, k4, k5, k6 = jax.random.split(key, 6)
    w1 = 0.01 * jax.random.normal(k1, (IN_DIM, HID), dtype=jnp.float32)
    w2 = 0.01 * jax.random.normal(k2, (HID, HID), dtype=jnp.float32)
    w3 = 0.01 * jax.random.normal(k3, (HID, OUT_DIM), dtype=jnp.float32)
    b1 = 0.01 * jax.random.normal(k4, (HID,), dtype=jnp.float32)
    b2 = 0.01 * jax.random.normal(k5, (HID,), dtype=jnp.float32)
    b3 = 0.01 * jax.random.normal(k6, (OUT_DIM,), dtype=jnp.float32)
    return (w1, b1, w2, b2, w3, b3)


def reference_forward(feat, params):
    """Pure-JAX reference in f32 using the same bf16-rounded weights/input the
    kernel consumes, so only bf16-activation / ordering error remains."""
    w1, b1, w2, b2, w3, b3 = params
    xb = feat.astype(jnp.bfloat16).astype(jnp.float32)
    w1b = w1.astype(jnp.bfloat16).astype(jnp.float32)
    w2b = w2.astype(jnp.bfloat16).astype(jnp.float32)
    w3b = w3.astype(jnp.bfloat16).astype(jnp.float32)
    h1 = jnp.maximum(xb @ w1b + b1, 0.0)
    h2 = jnp.maximum(h1 @ w2b + b2, 0.0)
    logits = h2 @ w3b + b3
    return jax.nn.softmax(logits, axis=1)


if __name__ == "__main__":
    key = jax.random.PRNGKey(0)
    k_feat, k_params = jax.random.split(key)

    B = 8
    feat = jax.random.normal(k_feat, (B, IN_DIM), dtype=jnp.float32)
    alpha = 0.5  # gradient-reversal coefficient; unused in forward
    params = make_params(k_params)

    # One-time weight prep (cached across calls in real use).
    prepared = tuple(jax.block_until_ready(p) for p in prepare_params(params))

    out = discriminator_forward(feat, alpha, prepared)
    out = jax.block_until_ready(out)

    ref = reference_forward(feat, params)
    assert out.shape == (B, OUT_DIM)
    # bf16 weights + bf16 intermediate activations -> loosened tolerance.
    assert jnp.allclose(out, ref, atol=1e-2, rtol=1e-2)
    # Exact divide in the softmax epilogue -> rows sum to 1 tightly.
    assert jnp.allclose(jnp.sum(out, axis=1), jnp.ones((B,)), atol=1e-5)

    print("KERNEL_OK")
</pallas_src>

<mosaic_0001>
module attributes {stable_mosaic.version = 11 : i64} {
  func.func @discriminator_kernel(%arg0: i32, %arg1: memref<8x1920xbf16, #tpu.memory_space<vmem>>, %arg2: memref<1920x1024xbf16, #tpu.memory_space<vmem>>, %arg3: memref<1x1024xf32, #tpu.memory_space<vmem>>, %arg4: memref<1024x1024xbf16, #tpu.memory_space<vmem>>, %arg5: memref<1x1024xf32, #tpu.memory_space<vmem>>, %arg6: memref<1024x128xbf16, #tpu.memory_space<vmem>>, %arg7: memref<1x128xf32, #tpu.memory_space<vmem>>, %arg8: memref<8x128xf32, #tpu.memory_space<vmem>>) attributes {dimension_semantics = [#tpu.dimension_semantics<parallel>], iteration_bounds = array<i64: 1>, scalar_prefetch = 0 : i64, scratch_operands = 0 : i64, tpu.core_type = #tpu.core_type<tc>, window_params = [{transform_indices = @transform_0, window_bounds = array<i64: 8, 1920>}, {pipeline_mode = #tpu.pipeline_mode<synchronous>, transform_indices = @transform_1, window_bounds = array<i64: 1920, 1024>}, {pipeline_mode = #tpu.pipeline_mode<synchronous>, transform_indices = @transform_2, window_bounds = array<i64: 1, 1024>}, {pipeline_mode = #tpu.pipeline_mode<synchronous>, transform_indices = @transform_3, window_bounds = array<i64: 1024, 1024>}, {pipeline_mode = #tpu.pipeline_mode<synchronous>, transform_indices = @transform_4, window_bounds = array<i64: 1, 1024>}, {pipeline_mode = #tpu.pipeline_mode<synchronous>, transform_indices = @transform_5, window_bounds = array<i64: 1024, 128>}, {pipeline_mode = #tpu.pipeline_mode<synchronous>, transform_indices = @transform_6, window_bounds = array<i64: 1, 128>}, {transform_indices = @transform_7, window_bounds = array<i64: 8, 128>}]} {
    %c0 = arith.constant 0 : index
    %c0_0 = arith.constant 0 : index
    %0 = vector.load %arg1[%c0, %c0_0] : memref<8x1920xbf16, #tpu.memory_space<vmem>>, vector<8x1920xbf16>
    %c0_1 = arith.constant 0 : index
    %c0_2 = arith.constant 0 : index
    %1 = vector.load %arg2[%c0_1, %c0_2] : memref<1920x1024xbf16, #tpu.memory_space<vmem>>, vector<1920x1024xbf16>
    %cst = arith.constant dense<0.000000e+00> : vector<8x1024xf32>
    %2 = tpu.matmul %0, %1, %cst {dimension_numbers = #tpu.dot_dimension_numbers<[1], [0], [0], [1], [0, 0, 1, 1], [], []>} : vector<8x1920xbf16>, vector<1920x1024xbf16>, vector<8x1024xf32> -> vector<8x1024xf32>
    %c0_3 = arith.constant 0 : index
    %c0_4 = arith.constant 0 : index
    %3 = vector.load %arg3[%c0_3, %c0_4] : memref<1x1024xf32, #tpu.memory_space<vmem>>, vector<1x1024xf32>
    %4 = vector.broadcast %3 : vector<1x1024xf32> to vector<8x1024xf32>
    %5 = arith.addf %2, %4 : vector<8x1024xf32>
    %cst_5 = arith.constant 0.000000e+00 : f32
    %6 = vector.broadcast %cst_5 : f32 to vector<8x1024xf32>
    %7 = arith.maximumf %5, %6 : vector<8x1024xf32>
    %8 = arith.truncf %7 : vector<8x1024xf32> to vector<8x1024xbf16>
    %c0_6 = arith.constant 0 : index
    %c0_7 = arith.constant 0 : index
    %9 = vector.load %arg4[%c0_6, %c0_7] : memref<1024x1024xbf16, #tpu.memory_space<vmem>>, vector<1024x1024xbf16>
    %cst_8 = arith.constant dense<0.000000e+00> : vector<8x1024xf32>
    %10 = tpu.matmul %8, %9, %cst_8 {dimension_numbers = #tpu.dot_dimension_numbers<[1], [0], [0], [1], [0, 0, 1, 1], [], []>} : vector<8x1024xbf16>, vector<1024x1024xbf16>, vector<8x1024xf32> -> vector<8x1024xf32>
    %c0_9 = arith.constant 0 : index
    %c0_10 = arith.constant 0 : index
    %11 = vector.load %arg5[%c0_9, %c0_10] : memref<1x1024xf32, #tpu.memory_space<vmem>>, vector<1x1024xf32>
    %12 = vector.broadcast %11 : vector<1x1024xf32> to vector<8x1024xf32>
    %13 = arith.addf %10, %12 : vector<8x1024xf32>
    %cst_11 = arith.constant 0.000000e+00 : f32
    %14 = vector.broadcast %cst_11 : f32 to vector<8x1024xf32>
    %15 = arith.maximumf %13, %14 : vector<8x1024xf32>
    %16 = arith.truncf %15 : vector<8x1024xf32> to vector<8x1024xbf16>
    %c0_12 = arith.constant 0 : index
    %c0_13 = arith.constant 0 : index
    %17 = vector.load %arg6[%c0_12, %c0_13] : memref<1024x128xbf16, #tpu.memory_space<vmem>>, vector<1024x128xbf16>
    %cst_14 = arith.constant dense<0.000000e+00> : vector<8x128xf32>
    %18 = tpu.matmul %16, %17, %cst_14 {dimension_numbers = #tpu.dot_dimension_numbers<[1], [0], [0], [1], [0, 0, 1, 1], [], []>} : vector<8x1024xbf16>, vector<1024x128xbf16>, vector<8x128xf32> -> vector<8x128xf32>
    %c0_15 = arith.constant 0 : index
    %c0_16 = arith.constant 0 : index
    %19 = vector.load %arg7[%c0_15, %c0_16] : memref<1x128xf32, #tpu.memory_space<vmem>>, vector<1x128xf32>
    %20 = vector.broadcast %19 : vector<1x128xf32> to vector<8x128xf32>
    %21 = arith.addf %18, %20 : vector<8x128xf32>
    %cst_17 = arith.constant dense<0xFF800000> : vector<8xf32>
    %22 = vector.multi_reduction <maximumf>, %21, %cst_17 [1] : vector<8x128xf32> to vector<8xf32>
    %23 = vector.shape_cast %22 : vector<8xf32> to vector<8x1xf32>
    %24 = vector.broadcast %23 : vector<8x1xf32> to vector<8x128xf32>
    %25 = arith.subf %21, %24 : vector<8x128xf32>
    %26 = math.exp %25 : vector<8x128xf32>
    %cst_18 = arith.constant dense<0.000000e+00> : vector<8xf32>
    %27 = vector.multi_reduction <add>, %26, %cst_18 [1] : vector<8x128xf32> to vector<8xf32>
    %28 = vector.shape_cast %27 : vector<8xf32> to vector<8x1xf32>
    %29 = vector.broadcast %28 : vector<8x1xf32> to vector<8x128xf32>
    %30 = arith.divf %26, %29 : vector<8x128xf32>
    %c0_19 = arith.constant 0 : index
    %c0_20 = arith.constant 0 : index
    %31 = vector.load %arg8[%c0_19, %c0_20] : memref<8x128xf32, #tpu.memory_space<vmem>>, vector<8x128xf32>
    tpu.vector_store %arg8[%c0_19, %c0_20], %30 {strides = array<i32>} : memref<8x128xf32, #tpu.memory_space<vmem>>, vector<8x128xf32>,
    return
  }
  func.func @transform_0(%arg0: i32) -> (i32, i32) {
    %c0_i32 = arith.constant 0 : i32
    %c0_i32_0 = arith.constant 0 : i32
    return %arg0, %c0_i32 : i32, i32
  }
  func.func @transform_1(%arg0: i32) -> (i32, i32) {
    %c0_i32 = arith.constant 0 : i32
    %c0_i32_0 = arith.constant 0 : i32
    %c0_i32_1 = arith.constant 0 : i32
    return %c0_i32, %c0_i32_0 : i32, i32
  }
  func.func @transform_2(%arg0: i32) -> (i32, i32) {
    %c0_i32 = arith.constant 0 : i32
    %c0_i32_0 = arith.constant 0 : i32
    %c0_i32_1 = arith.constant 0 : i32
    return %c0_i32, %c0_i32_0 : i32, i32
  }
  func.func @transform_3(%arg0: i32) -> (i32, i32) {
    %c0_i32 = arith.constant 0 : i32
    %c0_i32_0 = arith.constant 0 : i32
    %c0_i32_1 = arith.constant 0 : i32
    return %c0_i32, %c0_i32_0 : i32, i32
  }
  func.func @transform_4(%arg0: i32) -> (i32, i32) {
    %c0_i32 = arith.constant 0 : i32
    %c0_i32_0 = arith.constant 0 : i32
    %c0_i32_1 = arith.constant 0 : i32
    return %c0_i32, %c0_i32_0 : i32, i32
  }
  func.func @transform_5(%arg0: i32) -> (i32, i32) {
    %c0_i32 = arith.constant 0 : i32
    %c0_i32_0 = arith.constant 0 : i32
    %c0_i32_1 = arith.constant 0 : i32
    return %c0_i32, %c0_i32_0 : i32, i32
  }
  func.func @transform_6(%arg0: i32) -> (i32, i32) {
    %c0_i32 = arith.constant 0 : i32
    %c0_i32_0 = arith.constant 0 : i32
    %c0_i32_1 = arith.constant 0 : i32
    return %c0_i32, %c0_i32_0 : i32, i32
  }
  func.func @transform_7(%arg0: i32) -> (i32, i32) {
    %c0_i32 = arith.constant 0 : i32
    %c0_i32_0 = arith.constant 0 : i32
    return %arg0, %c0_i32 : i32, i32
  }
}

</mosaic_0001>

<bundles_post_ra>
// kernel: discriminator_forward.1
= control target key start
LH: loop header
LB: loop body
LE: loop exit
PB: predicated region body
PF: predicated region fallthrough
CT: control target
= control target key end

     0   :  { %12 = vsyncpa [#allocation3], 0  ;;  %s20556_s0 = inlined_call_operand.vmem [shape: bf16[8,1920], index: 0, kind: input, shape index: {}]   ;;  %s20557_s1 = inlined_call_operand.hbm [shape: bf16[1920,1024], index: 1, kind: input, shape index: {}]   ;;  %s20558_s2 = inlined_call_operand.hbm [shape: f32[1,1024], index: 2, kind: input, shape index: {}]   ;;  %s20559_s3 = inlined_call_operand.hbm [shape: bf16[1024,1024], index: 3, kind: input, shape index: {}]   ;;  %s20560_s4 = inlined_call_operand.hbm [shape: f32[1,1024], index: 4, kind: input, shape index: {}]   ;;  %s20561_s5 = inlined_call_operand.hbm [shape: bf16[1024,128], index: 5, kind: input, shape index: {}]   ;;  %s20562_s6 = inlined_call_operand.hbm [shape: f32[1,128], index: 6, kind: input, shape index: {}]   ;;  %s20563_s7 = inlined_call_operand.vmem [shape: f32[8,128], index: 7, kind: output, shape index: {}]  }
   0x1   :  { %13 = vsyncpa [#allocation5], 0 }
   0x2   :  { %14 = vsyncpa [#allocation8], 0  ;;  %s36_s26 = sshll.u32 %s20558_s2, 4  ;;  %s37_s26 = int_to_ptr.hbm [resolvable:$true] %s36_s26 }
   0x3   :  { %15 = vsyncpa [#allocation11], 0  ;;  %s19973_s27 = smov [#allocation4]   ;;  %s60_s8 = sshll.u32 %s20560_s4, 4  ;;  %s61_s8 = int_to_ptr.hbm [resolvable:$true] %s60_s8 }
   0x4   :  { %s38_s28 = sshll.u32 %s19973_s27, 4  ;;  %s19974_s9 = smov [#allocation7]   ;;  %s39_s28 = int_to_ptr.vmem [resolvable:$true] %s38_s28 }
   0x5   :  { %41 = dma.hbm_to_vmem [thread:$0]  %s37_s26, 128, %s39_s28, [#allocation5]  }
   0x6   :  { %s62_s10 = sshll.u32 %s19974_s9, 4  ;;  %s22_s13 = sshll.u32 %s20557_s1, 4  ;;  %s63_s10 = int_to_ptr.vmem [resolvable:$true] %s62_s10  ;;  %s23_s13 = int_to_ptr.hbm [resolvable:$true] %s22_s13 }
   0x7   :  { %65 = dma.hbm_to_vmem [thread:$0]  %s61_s8, 128, %s63_s10, [#allocation8]  }
   0x8   :  { %s19975_s2 = smov [#allocation2]   ;;  %s46_s17 = sshll.u32 %s20559_s3, 4  ;;  %s47_s17 = int_to_ptr.hbm [resolvable:$true] %s46_s17 }
   0x9   :  { %s24_s14 = sshll.u32 %s19975_s2, 4  ;;  %s19976_s18 = smov 512   ;;  %s25_s14 = int_to_ptr.vmem [resolvable:$true] %s24_s14 }
   0xa   :  { %s19977_s4 = smov 32   ;;  %s19978_s19 = smov [#allocation6]  }
   0xb   :  { %30 = dma.hbm_to_vmem [thread:$0]  %s23_s13, 122880, %s25_s14, [#allocation3], %s19976_s18, %s19976_s18, %s19977_s4  }
   0xc   :  { %s48_s20 = sshll.u32 %s19978_s19, 4  ;;  %s70_s1 = sshll.u32 %s20561_s5, 4  ;;  %s49_s20 = int_to_ptr.vmem [resolvable:$true] %s48_s20  ;;  %s71_s1 = int_to_ptr.hbm [resolvable:$true] %s70_s1 }
   0xd   :  { %54 = dma.hbm_to_vmem [thread:$0]  %s47_s17, 65536, %s49_s20, [#allocation5], %s19976_s18, %s19976_s18, %s19977_s4  }
   0xe   :  { %s19979_s23 = smov [#allocation9]   ;;  %s84_s3 = sshll.u32 %s20562_s6, 4  ;;  %s85_s3 = int_to_ptr.hbm [resolvable:$true] %s84_s3 }
   0xf   :  { %s72_s24 = sshll.u32 %s19979_s23, 4  ;;  %s19980_s27 = smov 64   ;;  %s73_s24 = int_to_ptr.vmem [resolvable:$true] %s72_s24 }
  0x10   :  { %s19981_s28 = smov 4   ;;  %s19982_s29 = smov [#allocation10]  }
  0x11   :  { %78 = dma.hbm_to_vmem [thread:$0]  %s71_s1, 8192, %s73_s24, [#allocation8], %s19980_s27, %s19980_s27, %s19981_s28  }
  0x12   :  { %s86_s30 = sshll.u32 %s19982_s29, 4  ;;  %s87_s30 = int_to_ptr.vmem [resolvable:$true] %s86_s30 }
  0x13   :  { %89 = dma.hbm_to_vmem [thread:$0]  %s85_s3, 16, %s87_s30, [#allocation11]  }
  0x14   :  { %19965 = dma.done.wait [#allocation3], 122880  }
  0x15   :  { %19966 = vsyncadd [#allocation3], 4294844416 }
  0x16   :  { %19967 = dma.done.wait [#allocation5], 65664  }
  0x17   :  { %19968 = vsyncadd [#allocation5], 4294901632 }
  0x18   :  { %19969 = dma.done.wait [#allocation8], 8320  }
  0x19   :  { %19970 = vsyncadd [#allocation8], 4294958976 }
  0x1a   :  { %19971 = dma.done.wait [#allocation11], 16  }
  0x1b   :  { %19972 = vsyncadd [#allocation11], 4294967280  ;;  %v12344_v0 = vld [vmem:[#allocation2 + $0x1c0] sm:$0xf] }
  0x1c   :  { %v18322_v1 = vld [vmem:[#allocation2 + $0x1dc] sm:$0xf0] }
  0x1d   :  { %v12600_v2 = vld [vmem:[#allocation2 + $0x3c0] sm:$0xf]  ;;  %v12345_v3 = vor.u32 %v18322_v1, %v12344_v0 }
  0x1e   :  { %v18386_v4 = vld [vmem:[#allocation2 + $0x3dc] sm:$0xf0] }
  0x1f   :  { %v12856_v5 = vld [vmem:[#allocation2 + $0x5c0] sm:$0xf]  ;;  %v12601_v7 = vor.u32 %v18386_v4, %v12600_v2  ;;  %5953 = vmatpush.bf16.msra.mxu0 %v12345_v3 }
  0x20   :  { %v18450_v6 = vld [vmem:[#allocation2 + $0x5dc] sm:$0xf0] }
  0x21   :  { %v12857_v8 = vor.u32 %v18450_v6, %v12856_v5  ;;  %v13112_v9 = vld [vmem:[#allocation2 + $0x7c0] sm:$0xf]  ;;  %5966 = vmatpush.bf16.msra.mxu1 %v12601_v7 }
  0x22   :  { %v18514_v10 = vld [vmem:[#allocation2 + $0x7dc] sm:$0xf0] }
  0x23   :  { %v12312_v11 = vld [vmem:[#allocation2 + $0x180] sm:$0xf]  ;;  %v13113_v12 = vor.u32 %v18514_v10, %v13112_v9  ;;  %5979 = vmatpush.bf16.msra.mxu2 %v12857_v8 }
  0x24   :  { %v18314_v13 = vld [vmem:[#allocation2 + $0x19c] sm:$0xf0] }
  0x25   :  { %v12568_v14 = vld [vmem:[#allocation2 + $0x380] sm:$0xf]  ;;  %v12313_v16 = vor.u32 %v18314_v13, %v12312_v11  ;;  %5992 = vmatpush.bf16.msra.mxu3 %v13113_v12 }
  0x26   :  { %v18378_v15 = vld [vmem:[#allocation2 + $0x39c] sm:$0xf0] }
  0x27   :  { %v12569_v17 = vor.u32 %v18378_v15, %v12568_v14  ;;  %v12824_v18 = vld [vmem:[#allocation2 + $0x580] sm:$0xf]  ;;  %5954 = vmatpush.bf16.msra.mxu0 %v12313_v16 }
  0x28   :  { %v18442_v19 = vld [vmem:[#allocation2 + $0x59c] sm:$0xf0] }
  0x29   :  { %v13080_v20 = vld [vmem:[#allocation2 + $0x780] sm:$0xf]  ;;  %v12825_v21 = vor.u32 %v18442_v19, %v12824_v18  ;;  %5967 = vmatpush.bf16.msra.mxu1 %v12569_v17 }
  0x2a   :  { %v18506_v22 = vld [vmem:[#allocation2 + $0x79c] sm:$0xf0] }
  0x2b   :  { %v12280_v23 = vld [vmem:[#allocation2 + $0x140] sm:$0xf]  ;;  %v13081_v25 = vor.u32 %v18506_v22, %v13080_v20  ;;  %5980 = vmatpush.bf16.msra.mxu2 %v12825_v21 }
  0x2c   :  { %v18306_v24 = vld [vmem:[#allocation2 + $0x15c] sm:$0xf0] }
  0x2d   :  { %v12536_v26 = vld [vmem:[#allocation2 + $0x340] sm:$0xf]  ;;  %v12281_v29 = vor.u32 %v18306_v24, %v12280_v23  ;;  %5993 = vmatpush.bf16.msra.mxu3 %v13081_v25 }
  0x2e   :  { %v18370_v27 = vld [vmem:[#allocation2 + $0x35c] sm:$0xf0] }
  0x2f   :  { %v12792_v28 = vld [vmem:[#allocation2 + $0x540] sm:$0xf]  ;;  %v12537_v33 = vor.u32 %v18370_v27, %v12536_v26  ;;  %5955 = vmatpush.bf16.msra.mxu0 %v12281_v29 }
  0x30   :  { %v18434_v30 = vld [vmem:[#allocation2 + $0x55c] sm:$0xf0] }
  0x31   :  { %v13048_v31 = vld [vmem:[#allocation2 + $0x740] sm:$0xf]  ;;  %v12793_v34 = vor.u32 %v18434_v30, %v12792_v28  ;;  %5968 = vmatpush.bf16.msra.mxu1 %v12537_v33 }
  0x32   :  { %v18498_v32 = vld [vmem:[#allocation2 + $0x75c] sm:$0xf0] }
  0x33   :  { %v12248_v35 = vld [vmem:[#allocation2 + $0x100] sm:$0xf]  ;;  %v13049_v38 = vor.u32 %v18498_v32, %v13048_v31  ;;  %5981 = vmatpush.bf16.msra.mxu2 %v12793_v34 }
  0x34   :  { %v18298_v36 = vld [vmem:[#allocation2 + $0x11c] sm:$0xf0] }
  0x35   :  { %v12504_v37 = vld [vmem:[#allocation2 + $0x300] sm:$0xf]  ;;  %v12249_v44 = vor.u32 %v18298_v36, %v12248_v35  ;;  %5994 = vmatpush.bf16.msra.mxu3 %v13049_v38 }
  0x36   :  { %v18362_v39 = vld [vmem:[#allocation2 + $0x31c] sm:$0xf0] }
  0x37   :  { %v12760_v40 = vld [vmem:[#allocation2 + $0x500] sm:$0xf]  ;;  %v12505_v45 = vor.u32 %v18362_v39, %v12504_v37  ;;  %5956 = vmatpush.bf16.msra.mxu0 %v12249_v44 }
  0x38   :  { %v18426_v41 = vld [vmem:[#allocation2 + $0x51c] sm:$0xf0] }
  0x39   :  { %v13016_v42 = vld [vmem:[#allocation2 + $0x700] sm:$0xf]  ;;  %v12761_v46 = vor.u32 %v18426_v41, %v12760_v40  ;;  %5969 = vmatpush.bf16.msra.mxu1 %v12505_v45 }
  0x3a   :  { %v18490_v43 = vld [vmem:[#allocation2 + $0x71c] sm:$0xf0] }
  0x3b   :  { %v12216_v47 = vld [vmem:[#allocation2 + $0xc0] sm:$0xf]  ;;  %v13017_v50 = vor.u32 %v18490_v43, %v13016_v42  ;;  %5982 = vmatpush.bf16.msra.mxu2 %v12761_v46 }
  0x3c   :  { %v18290_v48 = vld [vmem:[#allocation2 + $0xdc] sm:$0xf0] }
  0x3d   :  { %v12472_v49 = vld [vmem:[#allocation2 + $0x2c0] sm:$0xf]  ;;  %v12217_v56 = vor.u32 %v18290_v48, %v12216_v47  ;;  %5995 = vmatpush.bf16.msra.mxu3 %v13017_v50 }
  0x3e   :  { %v18354_v51 = vld [vmem:[#allocation2 + $0x2dc] sm:$0xf0] }
  0x3f   :  { %v12728_v52 = vld [vmem:[#allocation2 + $0x4c0] sm:$0xf]  ;;  %v12473_v57 = vor.u32 %v18354_v51, %v12472_v49  ;;  %5957 = vmatpush.bf16.msra.mxu0 %v12217_v56 }
  0x40   :  { %v18418_v53 = vld [vmem:[#allocation2 + $0x4dc] sm:$0xf0] }
  0x41   :  { %v12984_v54 = vld [vmem:[#allocation2 + $0x6c0] sm:$0xf]  ;;  %v12729_v58 = vor.u32 %v18418_v53, %v12728_v52  ;;  %5970 = vmatpush.bf16.msra.mxu1 %v12473_v57 }
  0x42   :  { %v18482_v55 = vld [vmem:[#allocation2 + $0x6dc] sm:$0xf0] }
  0x43   :  { %v12184_v59 = vld [vmem:[#allocation2 + $0x80] sm:$0xf]  ;;  %v12985_v62 = vor.u32 %v18482_v55, %v12984_v54  ;;  %5983 = vmatpush.bf16.msra.mxu2 %v12729_v58 }
  0x44   :  { %v18282_v60 = vld [vmem:[#allocation2 + $0x9c] sm:$0xf0] }
  0x45   :  { %v12440_v61 = vld [vmem:[#allocation2 + $0x280] sm:$0xf]  ;;  %v12185_v4 = vor.u32 %v18282_v60, %v12184_v59  ;;  %5996 = vmatpush.bf16.msra.mxu3 %v12985_v62 }
  0x46   :  { %v18346_v63 = vld [vmem:[#allocation2 + $0x29c] sm:$0xf0] }
  0x47   :  { %v12696_v0 = vld [vmem:[#allocation2 + $0x480] sm:$0xf]  ;;  %v12441_v5 = vor.u32 %v18346_v63, %v12440_v61  ;;  %5958 = vmatpush.bf16.msra.mxu0 %v12185_v4 }
  0x48   :  { %v18410_v1 = vld [vmem:[#allocation2 + $0x49c] sm:$0xf0] }
  0x49   :  { %v12952_v2 = vld [vmem:[#allocation2 + $0x680] sm:$0xf]  ;;  %v12697_v6 = vor.u32 %v18410_v1, %v12696_v0  ;;  %5971 = vmatpush.bf16.msra.mxu1 %v12441_v5 }
  0x4a   :  { %v18474_v3 = vld [vmem:[#allocation2 + $0x69c] sm:$0xf0] }
  0x4b   :  { %v12152_v7 = vld [vmem:[#allocation2 + $0x40] sm:$0xf]  ;;  %v12953_v10 = vor.u32 %v18474_v3, %v12952_v2  ;;  %5984 = vmatpush.bf16.msra.mxu2 %v12697_v6  ;;  %v115_v2 = vld [vmem:[%s20556_s0 + $0x8] sm:$0xff] }
  0x4c   :  { %v18274_v8 = vld [vmem:[#allocation2 + $0x5c] sm:$0xf0] }
  0x4d   :  { %v12408_v9 = vld [vmem:[#allocation2 + $0x240] sm:$0xf]  ;;  %v12153_v16 = vor.u32 %v18274_v8, %v12152_v7  ;;  %5997 = vmatpush.bf16.msra.mxu3 %v12953_v10  ;;  %v1110_v8 = vunpack.c.l.b16 %v115_v2  ;;  %v1111_v10 = vunpack.c.h.b16 %v115_v2 }
  0x4e   :  { %v18338_v11 = vld [vmem:[#allocation2 + $0x25c] sm:$0xf0] }
  0x4f   :  { %v12664_v12 = vld [vmem:[#allocation2 + $0x440] sm:$0xf]  ;;  %v12409_v19 = vor.u32 %v18338_v11, %v12408_v9  ;;  %5959 = vmatpush.bf16.msra.mxu0 %v12153_v16 }
  0x50   :  { %v18402_v13 = vld [vmem:[#allocation2 + $0x45c] sm:$0xf0] }
  0x51   :  { %v12920_v14 = vld [vmem:[#allocation2 + $0x640] sm:$0xf]  ;;  %v12665_v20 = vor.u32 %v18402_v13, %v12664_v12  ;;  %5972 = vmatpush.bf16.msra.mxu1 %v12409_v19 }
  0x52   :  { %v18466_v15 = vld [vmem:[#allocation2 + $0x65c] sm:$0xf0] }
  0x53   :  { %v12120_v17 = vld [vmem:[#allocation2] sm:$0xf]  ;;  %v12921_v24 = vor.u32 %v18466_v15, %v12920_v14  ;;  %5985 = vmatpush.bf16.msra.mxu2 %v12665_v20  ;;  %v20051_v20 = vpack.c.b16 %v1111_v10, %v1111_v10 }
  0x54   :  { %v18266_v18 = vld [vmem:[#allocation2 + $0x1c] sm:$0xf0] }
  0x55   :  { %v12376_v21 = vld [vmem:[#allocation2 + $0x200] sm:$0xf]  ;;  %v12121_v31 = vor.u32 %v18266_v18, %v12120_v17  ;;  %5998 = vmatpush.bf16.msra.mxu3 %v12921_v24  ;;  %v20047_v18 = vpack.c.b16 %v1110_v8, %v1110_v8 }
  0x56   :  { %v18330_v22 = vld [vmem:[#allocation2 + $0x21c] sm:$0xf0] }
  0x57   :  { %v12632_v23 = vld [vmem:[#allocation2 + $0x400] sm:$0xf]  ;;  %v12377_v35 = vor.u32 %v18330_v22, %v12376_v21  ;;  %5960 = vmatpush.bf16.msra.mxu0 %v12121_v31 }
  0x58   :  { %v18394_v25 = vld [vmem:[#allocation2 + $0x41c] sm:$0xf0] }
  0x59   :  { %v12888_v26 = vld [vmem:[#allocation2 + $0x600] sm:$0xf]  ;;  %v12633_v36 = vor.u32 %v18394_v25, %v12632_v23  ;;  %5973 = vmatpush.bf16.msra.mxu1 %v12377_v35 }
  0x5a   :  { %v18458_v27 = vld [vmem:[#allocation2 + $0x61c] sm:$0xf0] }
  0x5b   :  { %v13368_v28 = vld [vmem:[#allocation2 + $0x9c0] sm:$0xf]  ;;  %v12889_v39 = vor.u32 %v18458_v27, %v12888_v26  ;;  %5986 = vmatpush.bf16.msra.mxu2 %v12633_v36 }
  0x5c   :  { %v18578_v29 = vld [vmem:[#allocation2 + $0x9dc] sm:$0xf0] }
  0x5d   :  { %v13624_v30 = vld [vmem:[#allocation2 + $0xbc0] sm:$0xf]  ;;  %v13369_v40 = vor.u32 %v18578_v29, %v13368_v28  ;;  %5999 = vmatpush.bf16.msra.mxu3 %v12889_v39 }
  0x5e   :  { %v18642_v32 = vld [vmem:[#allocation2 + $0xbdc] sm:$0xf0]  ;;  %5987 = vmatmul.bf16.vlgmr.msra.gmra.mxu2 %v20047_v18 }
  0x5f   :  { %v13880_v33 = vld [vmem:[#allocation2 + $0xdc0] sm:$0xf]  ;;  %v13625_v41 = vor.u32 %v18642_v32, %v13624_v30  ;;  %6005 = vmatpush.bf16.msrb.mxu0 %v13369_v40 }
  0x60   :  { %v18706_v34 = vld [vmem:[#allocation2 + $0xddc] sm:$0xf0]  ;;  %6000 = vmatmul.bf16.vlgmr.msra.gmra.mxu3 %v20051_v20 }
  0x61   :  { %v14136_v37 = vld [vmem:[#allocation2 + $0xfc0] sm:$0xf]  ;;  %v13881_v42 = vor.u32 %v18706_v34, %v13880_v33  ;;  %6018 = vmatpush.bf16.msrb.mxu1 %v13625_v41 }
  0x62   :  { %v18770_v38 = vld [vmem:[#allocation2 + $0xfdc] sm:$0xf0] }
  0x63   :  { %v13336_v43 = vld [vmem:[#allocation2 + $0x980] sm:$0xf]  ;;  %v14137_v46 = vor.u32 %v18770_v38, %v14136_v37  ;;  %6031 = vmatpush.bf16.msrb.mxu2 %v13881_v42 }
  0x64   :  { %v18570_v44 = vld [vmem:[#allocation2 + $0x99c] sm:$0xf0] }
  0x65   :  { %v13592_v45 = vld [vmem:[#allocation2 + $0xb80] sm:$0xf]  ;;  %v13337_v52 = vor.u32 %v18570_v44, %v13336_v43  ;;  %6044 = vmatpush.bf16.msrb.mxu3 %v14137_v46 }
  0x66   :  { %v18634_v47 = vld [vmem:[#allocation2 + $0xb9c] sm:$0xf0] }
  0x67   :  { %v13848_v48 = vld [vmem:[#allocation2 + $0xd80] sm:$0xf]  ;;  %v13593_v54 = vor.u32 %v18634_v47, %v13592_v45  ;;  %6006 = vmatpush.bf16.msrb.mxu0 %v13337_v52 }
  0x68   :  { %v18698_v49 = vld [vmem:[#allocation2 + $0xd9c] sm:$0xf0] }
  0x69   :  { %v14104_v50 = vld [vmem:[#allocation2 + $0xf80] sm:$0xf]  ;;  %v13849_v55 = vor.u32 %v18698_v49, %v13848_v48  ;;  %6019 = vmatpush.bf16.msrb.mxu1 %v13593_v54 }
  0x6a   :  { %v18762_v51 = vld [vmem:[#allocation2 + $0xf9c] sm:$0xf0] }
  0x6b   :  { %v13304_v53 = vld [vmem:[#allocation2 + $0x940] sm:$0xf]  ;;  %v14105_v59 = vor.u32 %v18762_v51, %v14104_v50  ;;  %6032 = vmatpush.bf16.msrb.mxu2 %v13849_v55 }
  0x6c   :  { %v18562_v56 = vld [vmem:[#allocation2 + $0x95c] sm:$0xf0] }
  0x6d   :  { %v13560_v57 = vld [vmem:[#allocation2 + $0xb40] sm:$0xf]  ;;  %v13305_v0 = vor.u32 %v18562_v56, %v13304_v53  ;;  %6045 = vmatpush.bf16.msrb.mxu3 %v14105_v59 }
  0x6e   :  { %v18626_v58 = vld [vmem:[#allocation2 + $0xb5c] sm:$0xf0] }
  0x6f   :  { %v13816_v60 = vld [vmem:[#allocation2 + $0xd40] sm:$0xf]  ;;  %v13561_v1 = vor.u32 %v18626_v58, %v13560_v57  ;;  %6007 = vmatpush.bf16.msrb.mxu0 %v13305_v0 }
  0x70   :  { %v18690_v61 = vld [vmem:[#allocation2 + $0xd5c] sm:$0xf0] }
  0x71   :  { %v14072_v62 = vld [vmem:[#allocation2 + $0xf40] sm:$0xf]  ;;  %v13817_v4 = vor.u32 %v18690_v61, %v13816_v60  ;;  %6020 = vmatpush.bf16.msrb.mxu1 %v13561_v1 }
  0x72   :  { %v18754_v63 = vld [vmem:[#allocation2 + $0xf5c] sm:$0xf0] }
  0x73   :  { %v114_v3 = vld [vmem:[%s20556_s0] sm:$0xff]  ;;  %v14073_v11 = vor.u32 %v18754_v63, %v14072_v62  ;;  %6033 = vmatpush.bf16.msrb.mxu2 %v13817_v4 }
  0x74   :  { %v13272_v5 = vld [vmem:[#allocation2 + $0x900] sm:$0xf]  ;;  %v1108_v9 = vunpack.c.l.b16 %v114_v3  ;;  %v1109_v15 = vunpack.c.h.b16 %v114_v3  ;;  %v117_v3 = vld [vmem:[%s20556_s0 + $0x18] sm:$0xff] }
  0x75   :  { %v18554_v6 = vld [vmem:[#allocation2 + $0x91c] sm:$0xf0]  ;;  %6046 = vmatpush.bf16.msrb.mxu3 %v14073_v11 }
  0x76   :  { %v13528_v7 = vld [vmem:[#allocation2 + $0xb00] sm:$0xf]  ;;  %v20049_v19 = vpack.c.b16 %v1108_v9, %v1108_v9  ;;  %v13273_v21 = vor.u32 %v18554_v6, %v13272_v5  ;;  %v20053_v22 = vpack.c.b16 %v1109_v15, %v1109_v15  ;;  %v1114_v15 = vunpack.c.l.b16 %v117_v3 }
  0x77   :  { %v18618_v12 = vld [vmem:[#allocation2 + $0xb1c] sm:$0xf0] }
  0x78   :  { %v13784_v13 = vld [vmem:[#allocation2 + $0xd00] sm:$0xf]  ;;  %v13529_v23 = vor.u32 %v18618_v12, %v13528_v7  ;;  %5961 = vmatmul.bf16.vlgmr.msra.gmra.mxu0 %v20049_v19  ;;  %5974 = vmatmul.bf16.vlgmr.msra.gmra.mxu1 %v20053_v22  ;;  %v116_v7 = vld [vmem:[%s20556_s0 + $0x10] sm:$0xff] }
  0x79   :  { %v18682_v14 = vld [vmem:[#allocation2 + $0xd1c] sm:$0xf0]  ;;  %6008 = vmatpush.bf16.msrb.mxu0 %v13273_v21 }
  0x7a   :  { %v14040_v16 = vld [vmem:[#allocation2 + $0xf00] sm:$0xf]  ;;  %v13785_v24 = vor.u32 %v18682_v14, %v13784_v13  ;;  %6021 = vmatpush.bf16.msrb.mxu1 %v13529_v23 }
  0x7b   :  { %v18746_v17 = vld [vmem:[#allocation2 + $0xf1c] sm:$0xf0] }
  0x7c   :  { %v13240_v25 = vld [vmem:[#allocation2 + $0x8c0] sm:$0xf]  ;;  %v14041_v28 = vor.u32 %v18746_v17, %v14040_v16  ;;  %6034 = vmatpush.bf16.msrb.mxu2 %v13785_v24  ;;  %v1112_v24 = vunpack.c.l.b16 %v116_v7 }
  0x7d   :  { %v18546_v26 = vld [vmem:[#allocation2 + $0x8dc] sm:$0xf0] }
  0x7e   :  { %v13496_v27 = vld [vmem:[#allocation2 + $0xac0] sm:$0xf]  ;;  %v13241_v34 = vor.u32 %v18546_v26, %v13240_v25  ;;  %6047 = vmatpush.bf16.msrb.mxu3 %v14041_v28  ;;  %v1115_v25 = vunpack.c.h.b16 %v117_v3  ;;  %v1113_v28 = vunpack.c.h.b16 %v116_v7 }
  0x7f   :  { %v18610_v29 = vld [vmem:[#allocation2 + $0xadc] sm:$0xf0] }
  0x80   :  { %v13752_v30 = vld [vmem:[#allocation2 + $0xcc0] sm:$0xf]  ;;  %v13497_v35 = vor.u32 %v18610_v29, %v13496_v27  ;;  %6009 = vmatpush.bf16.msrb.mxu0 %v13241_v34 }
  0x81   :  { %v18674_v31 = vld [vmem:[#allocation2 + $0xcdc] sm:$0xf0] }
  0x82   :  { %v14008_v32 = vld [vmem:[#allocation2 + $0xec0] sm:$0xf]  ;;  %v13753_v36 = vor.u32 %v18674_v31, %v13752_v30  ;;  %6022 = vmatpush.bf16.msrb.mxu1 %v13497_v35 }
  0x83   :  { %v18738_v33 = vld [vmem:[#allocation2 + $0xedc] sm:$0xf0] }
  0x84   :  { %v13208_v37 = vld [vmem:[#allocation2 + $0x880] sm:$0xf]  ;;  %v14009_v40 = vor.u32 %v18738_v33, %v14008_v32  ;;  %6035 = vmatpush.bf16.msrb.mxu2 %v13753_v36 }
  0x85   :  { %v18538_v38 = vld [vmem:[#allocation2 + $0x89c] sm:$0xf0] }
  0x86   :  { %v13464_v39 = vld [vmem:[#allocation2 + $0xa80] sm:$0xf]  ;;  %v13209_v46 = vor.u32 %v18538_v38, %v13208_v37  ;;  %6048 = vmatpush.bf16.msrb.mxu3 %v14009_v40  ;;  %v20065_v38 = vpack.c.b16 %v1114_v15, %v1114_v15 }
  0x87   :  { %v18602_v41 = vld [vmem:[#allocation2 + $0xa9c] sm:$0xf0] }
  0x88   :  { %v13720_v42 = vld [vmem:[#allocation2 + $0xc80] sm:$0xf]  ;;  %v13465_v47 = vor.u32 %v18602_v41, %v13464_v39  ;;  %6010 = vmatpush.bf16.msrb.mxu0 %v13209_v46  ;;  %v20067_v41 = vpack.c.b16 %v1112_v24, %v1112_v24 }
  0x89   :  { %v18666_v43 = vld [vmem:[#allocation2 + $0xc9c] sm:$0xf0] }
  0x8a   :  { %v13976_v44 = vld [vmem:[#allocation2 + $0xe80] sm:$0xf]  ;;  %v13721_v48 = vor.u32 %v18666_v43, %v13720_v42  ;;  %6023 = vmatpush.bf16.msrb.mxu1 %v13465_v47  ;;  %v20069_v42 = vpack.c.b16 %v1115_v25, %v1115_v25 }
  0x8b   :  { %v18730_v45 = vld [vmem:[#allocation2 + $0xe9c] sm:$0xf0] }
  0x8c   :  { %v13176_v49 = vld [vmem:[#allocation2 + $0x840] sm:$0xf]  ;;  %v13977_v52 = vor.u32 %v18730_v45, %v13976_v44  ;;  %6036 = vmatpush.bf16.msrb.mxu2 %v13721_v48  ;;  %v20071_v44 = vpack.c.b16 %v1113_v28, %v1113_v28 }
  0x8d   :  { %v18530_v50 = vld [vmem:[#allocation2 + $0x85c] sm:$0xf0] }
  0x8e   :  { %v13432_v51 = vld [vmem:[#allocation2 + $0xa40] sm:$0xf]  ;;  %v13177_v59 = vor.u32 %v18530_v50, %v13176_v49  ;;  %6049 = vmatpush.bf16.msrb.mxu3 %v13977_v52 }
  0x8f   :  { %v18594_v53 = vld [vmem:[#allocation2 + $0xa5c] sm:$0xf0] }
  0x90   :  { %v13688_v54 = vld [vmem:[#allocation2 + $0xc40] sm:$0xf]  ;;  %v13433_v63 = vor.u32 %v18594_v53, %v13432_v51  ;;  %6011 = vmatpush.bf16.msrb.mxu0 %v13177_v59 }
  0x91   :  { %v18658_v55 = vld [vmem:[#allocation2 + $0xc5c] sm:$0xf0] }
  0x92   :  { %v13944_v56 = vld [vmem:[#allocation2 + $0xe40] sm:$0xf]  ;;  %v13689_v0 = vor.u32 %v18658_v55, %v13688_v54  ;;  %6024 = vmatpush.bf16.msrb.mxu1 %v13433_v63 }
  0x93   :  { %v18722_v57 = vld [vmem:[#allocation2 + $0xe5c] sm:$0xf0] }
  0x94   :  { %v13144_v58 = vld [vmem:[#allocation2 + $0x800] sm:$0xf]  ;;  %v13945_v4 = vor.u32 %v18722_v57, %v13944_v56  ;;  %6037 = vmatpush.bf16.msrb.mxu2 %v13689_v0 }
  0x95   :  { %v18522_v60 = vld [vmem:[#allocation2 + $0x81c] sm:$0xf0] }
  0x96   :  { %v13400_v61 = vld [vmem:[#allocation2 + $0xa00] sm:$0xf]  ;;  %v13145_v11 = vor.u32 %v18522_v60, %v13144_v58  ;;  %6050 = vmatpush.bf16.msrb.mxu3 %v13945_v4 }
  0x97   :  { %v18586_v62 = vld [vmem:[#allocation2 + $0xa1c] sm:$0xf0] }
  0x98   :  { %v13656_v1 = vld [vmem:[#allocation2 + $0xc00] sm:$0xf]  ;;  %v13401_v16 = vor.u32 %v18586_v62, %v13400_v61  ;;  %6012 = vmatpush.bf16.msrb.mxu0 %v13145_v11 }
  0x99   :  { %v18650_v2 = vld [vmem:[#allocation2 + $0xc1c] sm:$0xf0] }
  0x9a   :  { %v13912_v5 = vld [vmem:[#allocation2 + $0xe00] sm:$0xf]  ;;  %v13657_v17 = vor.u32 %v18650_v2, %v13656_v1  ;;  %6025 = vmatpush.bf16.msrb.mxu1 %v13401_v16 }
  0x9b   :  { %v18714_v6 = vld [vmem:[#allocation2 + $0xe1c] sm:$0xf0]  ;;  %6013 = vmatmul.bf16.vlgmr.msrb.gmra.mxu0 %v20067_v41 }
  0x9c   :  { %v14392_v8 = vld [vmem:[#allocation2 + $0x11c0] sm:$0xf]  ;;  %v13913_v26 = vor.u32 %v18714_v6, %v13912_v5  ;;  %6038 = vmatpush.bf16.msrb.mxu2 %v13657_v17 }
  0x9d   :  { %v18834_v9 = vld [vmem:[#allocation2 + $0x11dc] sm:$0xf0]  ;;  %6026 = vmatmul.bf16.vlgmr.msrb.gmra.mxu1 %v20071_v44 }
  0x9e   :  { %v14648_v10 = vld [vmem:[#allocation2 + $0x13c0] sm:$0xf]  ;;  %v14393_v27 = vor.u32 %v18834_v9, %v14392_v8  ;;  %6051 = vmatpush.bf16.msrb.mxu3 %v13913_v26 }
  0x9f   :  { %v18898_v12 = vld [vmem:[#allocation2 + $0x13dc] sm:$0xf0]  ;;  %6039 = vmatmul.bf16.vlgmr.msrb.gmra.mxu2 %v20065_v38 }
  0xa0   :  { %v14904_v13 = vld [vmem:[#allocation2 + $0x15c0] sm:$0xf]  ;;  %v14649_v29 = vor.u32 %v18898_v12, %v14648_v10  ;;  %6057 = vmatpush.bf16.msra.mxu0 %v14393_v27 }
  0xa1   :  { %v18962_v14 = vld [vmem:[#allocation2 + $0x15dc] sm:$0xf0]  ;;  %6052 = vmatmul.bf16.vlgmr.msrb.gmra.mxu3 %v20069_v42 }
  0xa2   :  { %v15160_v21 = vld [vmem:[#allocation2 + $0x17c0] sm:$0xf]  ;;  %v14905_v30 = vor.u32 %v18962_v14, %v14904_v13  ;;  %6070 = vmatpush.bf16.msra.mxu1 %v14649_v29 }
  0xa3   :  { %v19026_v23 = vld [vmem:[#allocation2 + $0x17dc] sm:$0xf0] }
  0xa4   :  { %v14360_v31 = vld [vmem:[#allocation2 + $0x1180] sm:$0xf]  ;;  %v15161_v34 = vor.u32 %v19026_v23, %v15160_v21  ;;  %6083 = vmatpush.bf16.msra.mxu2 %v14905_v30 }
  0xa5   :  { %v18826_v32 = vld [vmem:[#allocation2 + $0x119c] sm:$0xf0] }
  0xa6   :  { %v14616_v33 = vld [vmem:[#allocation2 + $0x1380] sm:$0xf]  ;;  %v14361_v43 = vor.u32 %v18826_v32, %v14360_v31  ;;  %6096 = vmatpush.bf16.msra.mxu3 %v15161_v34 }
  0xa7   :  { %v18890_v35 = vld [vmem:[#allocation2 + $0x139c] sm:$0xf0] }
  0xa8   :  { %v14872_v36 = vld [vmem:[#allocation2 + $0x1580] sm:$0xf]  ;;  %v14617_v45 = vor.u32 %v18890_v35, %v14616_v33  ;;  %6058 = vmatpush.bf16.msra.mxu0 %v14361_v43 }
  0xa9   :  { %v18954_v37 = vld [vmem:[#allocation2 + $0x159c] sm:$0xf0] }
  0xaa   :  { %v15128_v39 = vld [vmem:[#allocation2 + $0x1780] sm:$0xf]  ;;  %v14873_v46 = vor.u32 %v18954_v37, %v14872_v36  ;;  %6071 = vmatpush.bf16.msra.mxu1 %v14617_v45 }
  0xab   :  { %v19018_v40 = vld [vmem:[#allocation2 + $0x179c] sm:$0xf0] }
  0xac   :  { %v14328_v47 = vld [vmem:[#allocation2 + $0x1140] sm:$0xf]  ;;  %v15129_v50 = vor.u32 %v19018_v40, %v15128_v39  ;;  %6084 = vmatpush.bf16.msra.mxu2 %v14873_v46 }
  0xad   :  { %v18818_v48 = vld [vmem:[#allocation2 + $0x115c] sm:$0xf0] }
  0xae   :  { %v14584_v49 = vld [vmem:[#allocation2 + $0x1340] sm:$0xf]  ;;  %v14329_v56 = vor.u32 %v18818_v48, %v14328_v47  ;;  %6097 = vmatpush.bf16.msra.mxu3 %v15129_v50 }
  0xaf   :  { %v18882_v51 = vld [vmem:[#allocation2 + $0x135c] sm:$0xf0] }
  0xb0   :  { %v14840_v52 = vld [vmem:[#allocation2 + $0x1540] sm:$0xf]  ;;  %v14585_v57 = vor.u32 %v18882_v51, %v14584_v49  ;;  %6059 = vmatpush.bf16.msra.mxu0 %v14329_v56 }
  0xb1   :  { %v18946_v53 = vld [vmem:[#allocation2 + $0x155c] sm:$0xf0] }
  0xb2   :  { %v15096_v54 = vld [vmem:[#allocation2 + $0x1740] sm:$0xf]  ;;  %v14841_v58 = vor.u32 %v18946_v53, %v14840_v52  ;;  %6072 = vmatpush.bf16.msra.mxu1 %v14585_v57 }
  0xb3   :  { %v19010_v55 = vld [vmem:[#allocation2 + $0x175c] sm:$0xf0] }
  0xb4   :  { %v14296_v59 = vld [vmem:[#allocation2 + $0x1100] sm:$0xf]  ;;  %v15097_v62 = vor.u32 %v19010_v55, %v15096_v54  ;;  %6085 = vmatpush.bf16.msra.mxu2 %v14841_v58 }
  0xb5   :  { %v18810_v60 = vld [vmem:[#allocation2 + $0x111c] sm:$0xf0] }
  0xb6   :  { %v14552_v61 = vld [vmem:[#allocation2 + $0x1300] sm:$0xf]  ;;  %v14297_v4 = vor.u32 %v18810_v60, %v14296_v59  ;;  %6098 = vmatpush.bf16.msra.mxu3 %v15097_v62 }
  0xb7   :  { %v18874_v63 = vld [vmem:[#allocation2 + $0x131c] sm:$0xf0] }
  0xb8   :  { %v14808_v0 = vld [vmem:[#allocation2 + $0x1500] sm:$0xf]  ;;  %v14553_v5 = vor.u32 %v18874_v63, %v14552_v61  ;;  %6060 = vmatpush.bf16.msra.mxu0 %v14297_v4  ;;  %v119_v61 = vld [vmem:[%s20556_s0 + $0x28] sm:$0xff] }
  0xb9   :  { %v18938_v1 = vld [vmem:[#allocation2 + $0x151c] sm:$0xf0] }
  0xba   :  { %v15064_v2 = vld [vmem:[#allocation2 + $0x1700] sm:$0xf]  ;;  %v14809_v6 = vor.u32 %v18938_v1, %v14808_v0  ;;  %6073 = vmatpush.bf16.msra.mxu1 %v14553_v5 }
  0xbb   :  { %v19002_v3 = vld [vmem:[#allocation2 + $0x171c] sm:$0xf0] }
  0xbc   :  { %v14264_v7 = vld [vmem:[#allocation2 + $0x10c0] sm:$0xf]  ;;  %v15065_v10 = vor.u32 %v19002_v3, %v15064_v2  ;;  %6086 = vmatpush.bf16.msra.mxu2 %v14809_v6 }
  0xbd   :  { %v18802_v8 = vld [vmem:[#allocation2 + $0x10dc] sm:$0xf0] }
  0xbe   :  { %v14520_v9 = vld [vmem:[#allocation2 + $0x12c0] sm:$0xf]  ;;  %v14265_v16 = vor.u32 %v18802_v8, %v14264_v7  ;;  %6099 = vmatpush.bf16.msra.mxu3 %v15065_v10  ;;  %v18318_v8 = vld [vmem:[#allocation2 + $0x1c4] sm:$0xf]  ;;  %v1118_v10 = vunpack.c.l.b16 %v119_v61 }
  0xbf   :  { %v18866_v11 = vld [vmem:[#allocation2 + $0x12dc] sm:$0xf0] }
  0xc0   :  { %v14776_v12 = vld [vmem:[#allocation2 + $0x14c0] sm:$0xf]  ;;  %v14521_v17 = vor.u32 %v18866_v11, %v14520_v9  ;;  %6061 = vmatpush.bf16.msra.mxu0 %v14265_v16  ;;  %v12346_v9 = vld [vmem:[#allocation2 + $0x1e0] sm:$0xf0] }
  0xc1   :  { %v18930_v13 = vld [vmem:[#allocation2 + $0x14dc] sm:$0xf0] }
  0xc2   :  { %v15032_v14 = vld [vmem:[#allocation2 + $0x16c0] sm:$0xf]  ;;  %v14777_v21 = vor.u32 %v18930_v13, %v14776_v12  ;;  %6074 = vmatpush.bf16.msra.mxu1 %v14521_v17 }
  0xc3   :  { %v18994_v15 = vld [vmem:[#allocation2 + $0x16dc] sm:$0xf0] }
  0xc4   :  { %v14232_v23 = vld [vmem:[#allocation2 + $0x1080] sm:$0xf]  ;;  %v15033_v26 = vor.u32 %v18994_v15, %v15032_v14  ;;  %6087 = vmatpush.bf16.msra.mxu2 %v14777_v21  ;;  %v1119_v14 = vunpack.c.h.b16 %v119_v61  ;;  %v12250_v61 = vld [vmem:[#allocation2 + $0x120] sm:$0xf0] }
  0xc5   :  { %v18794_v24 = vld [vmem:[#allocation2 + $0x109c] sm:$0xf0] }
  0xc6   :  { %v14488_v25 = vld [vmem:[#allocation2 + $0x1280] sm:$0xf]  ;;  %v14233_v32 = vor.u32 %v18794_v24, %v14232_v23  ;;  %6100 = vmatpush.bf16.msra.mxu3 %v15033_v26  ;;  %v12349_v24 = vor.u32 %v18318_v8, %v12346_v9  ;;  %v18286_v8 = vld [vmem:[#allocation2 + $0xc4] sm:$0xf] }
  0xc7   :  { %v18858_v27 = vld [vmem:[#allocation2 + $0x129c] sm:$0xf0]  ;;  %v12218_v9 = vld [vmem:[#allocation2 + $0xe0] sm:$0xf0] }
  0xc8   :  { %v14744_v28 = vld [vmem:[#allocation2 + $0x1480] sm:$0xf]  ;;  %v14489_v34 = vor.u32 %v18858_v27, %v14488_v25  ;;  %6062 = vmatpush.bf16.msra.mxu0 %v14233_v32  ;;  %v12314_v32 = vld [vmem:[#allocation2 + $0x1a0] sm:$0xf0] }
  0xc9   :  { %v18922_v29 = vld [vmem:[#allocation2 + $0x149c] sm:$0xf0] }
  0xca   :  { %v15000_v30 = vld [vmem:[#allocation2 + $0x1680] sm:$0xf]  ;;  %v14745_v35 = vor.u32 %v18922_v29, %v14744_v28  ;;  %6075 = vmatpush.bf16.msra.mxu1 %v14489_v34  ;;  %v20085_v29 = vpack.c.b16 %v1118_v10, %v1118_v10 }
  0xcb   :  { %v18986_v31 = vld [vmem:[#allocation2 + $0x169c] sm:$0xf0] }
  0xcc   :  { %v14200_v33 = vld [vmem:[#allocation2 + $0x1040] sm:$0xf]  ;;  %v15001_v40 = vor.u32 %v18986_v31, %v15000_v30  ;;  %6088 = vmatpush.bf16.msra.mxu2 %v14745_v35  ;;  %v18310_v31 = vld [vmem:[#allocation2 + $0x184] sm:$0xf] }
  0xcd   :  { %v18786_v36 = vld [vmem:[#allocation2 + $0x105c] sm:$0xf0] }
  0xce   :  { %v14456_v37 = vld [vmem:[#allocation2 + $0x1240] sm:$0xf]  ;;  %v14201_v49 = vor.u32 %v18786_v36, %v14200_v33  ;;  %6101 = vmatpush.bf16.msra.mxu3 %v15001_v40  ;;  %v20089_v33 = vpack.c.b16 %v1119_v14, %v1119_v14 }
  0xcf   :  { %v18850_v39 = vld [vmem:[#allocation2 + $0x125c] sm:$0xf0] }
  0xd0   :  { %v14712_v43 = vld [vmem:[#allocation2 + $0x1440] sm:$0xf]  ;;  %v14457_v53 = vor.u32 %v18850_v39, %v14456_v37  ;;  %6063 = vmatpush.bf16.msra.mxu0 %v14201_v49  ;;  %v12282_v49 = vld [vmem:[#allocation2 + $0x160] sm:$0xf0] }
  0xd1   :  { %v18914_v45 = vld [vmem:[#allocation2 + $0x145c] sm:$0xf0] }
  0xd2   :  { %v14968_v46 = vld [vmem:[#allocation2 + $0x1640] sm:$0xf]  ;;  %v14713_v54 = vor.u32 %v18914_v45, %v14712_v43  ;;  %6076 = vmatpush.bf16.msra.mxu1 %v14457_v53  ;;  %v12317_v43 = vor.u32 %v18310_v31, %v12314_v32 }
  0xd3   :  { %v18978_v47 = vld [vmem:[#allocation2 + $0x165c] sm:$0xf0] }
  0xd4   :  { %v14168_v48 = vld [vmem:[#allocation2 + $0x1000] sm:$0xf]  ;;  %v14969_v58 = vor.u32 %v18978_v47, %v14968_v46  ;;  %6089 = vmatpush.bf16.msra.mxu2 %v14713_v54 }
  0xd5   :  { %v18778_v50 = vld [vmem:[#allocation2 + $0x101c] sm:$0xf0] }
  0xd6   :  { %v14424_v51 = vld [vmem:[#allocation2 + $0x1200] sm:$0xf]  ;;  %v14169_v1 = vor.u32 %v18778_v50, %v14168_v48  ;;  %6102 = vmatpush.bf16.msra.mxu3 %v14969_v58  ;;  %v18302_v48 = vld [vmem:[#allocation2 + $0x144] sm:$0xf] }
  0xd7   :  { %v18842_v52 = vld [vmem:[#allocation2 + $0x121c] sm:$0xf0] }
  0xd8   :  { %v14680_v55 = vld [vmem:[#allocation2 + $0x1400] sm:$0xf]  ;;  %v14425_v6 = vor.u32 %v18842_v52, %v14424_v51  ;;  %6064 = vmatpush.bf16.msra.mxu0 %v14169_v1 }
  0xd9   :  { %v18906_v56 = vld [vmem:[#allocation2 + $0x141c] sm:$0xf0] }
  0xda   :  { %v118_v57 = vld [vmem:[%s20556_s0 + $0x20] sm:$0xff]  ;;  %v14681_v7 = vor.u32 %v18906_v56, %v14680_v55  ;;  %6077 = vmatpush.bf16.msra.mxu1 %v14425_v6  ;;  %v12285_v56 = vor.u32 %v18302_v48, %v12282_v49 }
  0xdb   :  { %v14936_v59 = vld [vmem:[#allocation2 + $0x1600] sm:$0xf]  ;;  %v1116_v5 = vunpack.c.l.b16 %v118_v57  ;;  %v1117_v11 = vunpack.c.h.b16 %v118_v57 }
  0xdc   :  { %v18970_v60 = vld [vmem:[#allocation2 + $0x161c] sm:$0xf0]  ;;  %6090 = vmatpush.bf16.msra.mxu2 %v14681_v7 }
  0xdd   :  { %v15416_v62 = vld [vmem:[#allocation2 + $0x19c0] sm:$0xf]  ;;  %v14937_v12 = vor.u32 %v18970_v60, %v14936_v59  ;;  %v20083_v25 = vpack.c.b16 %v1116_v5, %v1116_v5  ;;  %v20087_v30 = vpack.c.b16 %v1117_v11, %v1117_v11  ;;  %v18294_v60 = vld [vmem:[#allocation2 + $0x104] sm:$0xf] }
  0xde   :  { %v19090_v63 = vld [vmem:[#allocation2 + $0x19dc] sm:$0xf0] }
  0xdf   :  { %v15672_v0 = vld [vmem:[#allocation2 + $0x1bc0] sm:$0xf]  ;;  %v15417_v13 = vor.u32 %v19090_v63, %v15416_v62  ;;  %6103 = vmatpush.bf16.msra.mxu3 %v14937_v12  ;;  %6065 = vmatmul.bf16.vlgmr.msra.gmra.mxu0 %v20083_v25 }
  0xe0   :  { %v19154_v2 = vld [vmem:[#allocation2 + $0x1bdc] sm:$0xf0]  ;;  %6091 = vmatmul.bf16.vlgmr.msra.gmra.mxu2 %v20085_v29  ;;  %6078 = vmatmul.bf16.vlgmr.msra.gmra.mxu1 %v20087_v30 }
  0xe1   :  { %v15928_v3 = vld [vmem:[#allocation2 + $0x1dc0] sm:$0xf]  ;;  %v15673_v15 = vor.u32 %v19154_v2, %v15672_v0  ;;  %6109 = vmatpush.bf16.msrb.mxu0 %v15417_v13 }
  0xe2   :  { %v19218_v4 = vld [vmem:[#allocation2 + $0x1ddc] sm:$0xf0]  ;;  %6104 = vmatmul.bf16.vlgmr.msra.gmra.mxu3 %v20089_v33 }
  0xe3   :  { %v15929_v16 = vor.u32 %v19218_v4, %v15928_v3  ;;  %v15384_v17 = vld [vmem:[#allocation2 + $0x1980] sm:$0xf]  ;;  %6122 = vmatpush.bf16.msrb.mxu1 %v15673_v15  ;;  %6148 = vmatpush.bf16.msrb.mxu3 %v12349_v24  ;;  %v12253_v4 = vor.u32 %v18294_v60, %v12250_v61  ;;  %v18278_v24 = vld [vmem:[#allocation2 + $0x84] sm:$0xf] }
  0xe4   :  { %v19082_v21 = vld [vmem:[#allocation2 + $0x199c] sm:$0xf0]  ;;  %v18382_v60 = vld [vmem:[#allocation2 + $0x3c4] sm:$0xf] }
  0xe5   :  { %v15640_v23 = vld [vmem:[#allocation2 + $0x1b80] sm:$0xf]  ;;  %v15385_v34 = vor.u32 %v19082_v21, %v15384_v17  ;;  %6135 = vmatpush.bf16.msrb.mxu2 %v15929_v16  ;;  %v12221_v16 = vor.u32 %v18286_v8, %v12218_v9  ;;  %v12602_v61 = vld [vmem:[#allocation2 + $0x3e0] sm:$0xf0] }
  0xe6   :  { %v19146_v26 = vld [vmem:[#allocation2 + $0x1b9c] sm:$0xf0] }
  0xe7   :  { %v15896_v27 = vld [vmem:[#allocation2 + $0x1d80] sm:$0xf]  ;;  %v15641_v35 = vor.u32 %v19146_v26, %v15640_v23  ;;  %6110 = vmatpush.bf16.msrb.mxu0 %v15385_v34  ;;  %6149 = vmatpush.bf16.msrb.mxu3 %v12317_v43  ;;  %v12186_v26 = vld [vmem:[#allocation2 + $0xa0] sm:$0xf0] }
  0xe8   :  { %v19210_v28 = vld [vmem:[#allocation2 + $0x1d9c] sm:$0xf0]  ;;  %v18270_v43 = vld [vmem:[#allocation2 + $0x44] sm:$0xf] }
  0xe9   :  { %v15897_v36 = vor.u32 %v19210_v28, %v15896_v27  ;;  %v15352_v37 = vld [vmem:[#allocation2 + $0x1940] sm:$0xf]  ;;  %6123 = vmatpush.bf16.msrb.mxu1 %v15641_v35 }
  0xea   :  { %v19074_v39 = vld [vmem:[#allocation2 + $0x195c] sm:$0xf0] }
  0xeb   :  { %v15608_v40 = vld [vmem:[#allocation2 + $0x1b40] sm:$0xf]  ;;  %v15353_v50 = vor.u32 %v19074_v39, %v15352_v37  ;;  %6136 = vmatpush.bf16.msrb.mxu2 %v15897_v36  ;;  %6150 = vmatpush.bf16.msrb.mxu3 %v12285_v56  ;;  %v12189_v36 = vor.u32 %v18278_v24, %v12186_v26  ;;  %v18502_v24 = vld [vmem:[#allocation2 + $0x784] sm:$0xf] }
  0xec   :  { %v19138_v45 = vld [vmem:[#allocation2 + $0x1b5c] sm:$0xf0]  ;;  %v13082_v26 = vld [vmem:[#allocation2 + $0x7a0] sm:$0xf0] }
  0xed   :  { %v15864_v46 = vld [vmem:[#allocation2 + $0x1d40] sm:$0xf]  ;;  %v15609_v51 = vor.u32 %v19138_v45, %v15608_v40  ;;  %6111 = vmatpush.bf16.msrb.mxu0 %v15353_v50  ;;  %v12154_v45 = vld [vmem:[#allocation2 + $0x60] sm:$0xf0] }
  0xee   :  { %v19202_v47 = vld [vmem:[#allocation2 + $0x1d5c] sm:$0xf0]  ;;  %v12157_v56 = vor.u32 %v18270_v43, %v12154_v45  ;;  %v12794_v45 = vld [vmem:[#allocation2 + $0x560] sm:$0xf0] }
  0xef   :  { %v15865_v52 = vor.u32 %v19202_v47, %v15864_v46  ;;  %v15320_v53 = vld [vmem:[#allocation2 + $0x1900] sm:$0xf]  ;;  %6124 = vmatpush.bf16.msrb.mxu1 %v15609_v51  ;;  %6151 = vmatpush.bf16.msrb.mxu3 %v12253_v4 }
  0xf0   :  { %v19066_v54 = vld [vmem:[#allocation2 + $0x191c] sm:$0xf0] }
  0xf1   :  { %v15576_v55 = vld [vmem:[#allocation2 + $0x1b00] sm:$0xf]  ;;  %v15321_v62 = vor.u32 %v19066_v54, %v15320_v53  ;;  %6137 = vmatpush.bf16.msrb.mxu2 %v15865_v52 }
  0xf2   :  { %v19130_v57 = vld [vmem:[#allocation2 + $0x1b1c] sm:$0xf0] }
  0xf3   :  { %v15832_v58 = vld [vmem:[#allocation2 + $0x1d00] sm:$0xf]  ;;  %v15577_v63 = vor.u32 %v19130_v57, %v15576_v55  ;;  %6112 = vmatpush.bf16.msrb.mxu0 %v15321_v62  ;;  %6152 = vmatpush.bf16.msrb.mxu3 %v12221_v16  ;;  %v120_v55 = vld [vmem:[%s20556_s0 + $0x30] sm:$0xff]  ;;  %v18262_v57 = vld [vmem:[#allocation2 + $0x4] sm:$0xf] }
  0xf4   :  { %v19194_v59 = vld [vmem:[#allocation2 + $0x1d1c] sm:$0xf0]  ;;  %v18446_v62 = vld [vmem:[#allocation2 + $0x5c4] sm:$0xf]  ;;  %v1121_v9 = vunpack.c.h.b16 %v120_v55 }
  0xf5   :  { %v15833_v0 = vor.u32 %v19194_v59, %v15832_v58  ;;  %v15288_v1 = vld [vmem:[#allocation2 + $0x18c0] sm:$0xf]  ;;  %6125 = vmatpush.bf16.msrb.mxu1 %v15577_v63  ;;  %v12122_v58 = vld [vmem:[#allocation2 + $0x20] sm:$0xf0]  ;;  %v121_v59 = vld [vmem:[%s20556_s0 + $0x38] sm:$0xf] }
  0xf6   :  { %v19058_v2 = vld [vmem:[#allocation2 + $0x18dc] sm:$0xf0]  ;;  %v1122_v8 = vunpack.c.l.b16 %v121_v59  ;;  %v18438_v16 = vld [vmem:[#allocation2 + $0x584] sm:$0xf] }
  0xf7   :  { %v15544_v3 = vld [vmem:[#allocation2 + $0x1ac0] sm:$0xf]  ;;  %v15289_v10 = vor.u32 %v19058_v2, %v15288_v1  ;;  %6138 = vmatpush.bf16.msrb.mxu2 %v15833_v0  ;;  %6153 = vmatpush.bf16.msrb.mxu3 %v12189_v36  ;;  %v12858_v0 = vld [vmem:[#allocation2 + $0x5e0] sm:$0xf0]  ;;  %v13085_v36 = vor.u32 %v18502_v24, %v13082_v26 }
  0xf8   :  { %v19122_v5 = vld [vmem:[#allocation2 + $0x1adc] sm:$0xf0]  ;;  %v18510_v1 = vld [vmem:[#allocation2 + $0x7c4] sm:$0xf] }
  0xf9   :  { %v15800_v6 = vld [vmem:[#allocation2 + $0x1cc0] sm:$0xf]  ;;  %v15545_v11 = vor.u32 %v19122_v5, %v15544_v3  ;;  %6113 = vmatpush.bf16.msrb.mxu0 %v15289_v10  ;;  %v13114_v2 = vld [vmem:[#allocation2 + $0x7e0] sm:$0xf0]  ;;  %v1120_v3 = vunpack.c.l.b16 %v120_v55  ;;  %v12125_v10 = vor.u32 %v18262_v57, %v12122_v58 }
  0xfa   :  { %v19186_v7 = vld [vmem:[#allocation2 + $0x1cdc] sm:$0xf0]  ;;  %v18422_v55 = vld [vmem:[#allocation2 + $0x504] sm:$0xf] }
  0xfb   :  { %v15801_v12 = vor.u32 %v19186_v7, %v15800_v6  ;;  %v15256_v13 = vld [vmem:[#allocation2 + $0x1880] sm:$0xf]  ;;  %6126 = vmatpush.bf16.msrb.mxu1 %v15545_v11  ;;  %v18574_v6 = vld [vmem:[#allocation2 + $0x9c4] sm:$0xf]  ;;  %6154 = vmatpush.bf16.msrb.mxu3 %v12157_v56  ;;  %v12605_v11 = vor.u32 %v18382_v60, %v12602_v61 }
  0xfc   :  { %v19050_v14 = vld [vmem:[#allocation2 + $0x189c] sm:$0xf0]  ;;  %v13370_v7 = vld [vmem:[#allocation2 + $0x9e0] sm:$0xf0] }
  0xfd   :  { %v15512_v15 = vld [vmem:[#allocation2 + $0x1a80] sm:$0xf]  ;;  %v15257_v27 = vor.u32 %v19050_v14, %v15256_v13  ;;  %6139 = vmatpush.bf16.msrb.mxu2 %v15801_v12  ;;  %v12861_v12 = vor.u32 %v18446_v62, %v12858_v0  ;;  %v13117_v13 = vor.u32 %v18510_v1, %v13114_v2  ;;  %v18374_v14 = vld [vmem:[#allocation2 + $0x384] sm:$0xf] }
  0xfe   :  { %v19114_v17 = vld [vmem:[#allocation2 + $0x1a9c] sm:$0xf0]  ;;  %v12762_v57 = vld [vmem:[#allocation2 + $0x520] sm:$0xf0] }
  0xff   :  { %v15768_v21 = vld [vmem:[#allocation2 + $0x1c80] sm:$0xf]  ;;  %v15513_v28 = vor.u32 %v19114_v17, %v15512_v15  ;;  %6114 = vmatpush.bf16.msrb.mxu0 %v15257_v27  ;;  %v12570_v15 = vld [vmem:[#allocation2 + $0x3a0] sm:$0xf0]  ;;  %v13373_v17 = vor.u32 %v18574_v6, %v13370_v7  ;;  %v20103_v27 = vpack.c.b16 %v1122_v8, %v1122_v8  ;;  %6155 = vmatpush.bf16.msrb.mxu3 %v12125_v10 }
 0x100   :  { %v19178_v23 = vld [vmem:[#allocation2 + $0x1c9c] sm:$0xf0]  ;;  %v18486_v58 = vld [vmem:[#allocation2 + $0x704] sm:$0xf] }
 0x101   :  { %v15769_v31 = vor.u32 %v19178_v23, %v15768_v21  ;;  %v15224_v32 = vld [vmem:[#allocation2 + $0x1840] sm:$0xf]  ;;  %6127 = vmatpush.bf16.msrb.mxu1 %v15513_v28  ;;  %v20101_v21 = vpack.c.b16 %v1120_v3, %v1120_v3  ;;  %v12826_v23 = vld [vmem:[#allocation2 + $0x5a0] sm:$0xf0]  ;;  %v20105_v28 = vpack.c.b16 %v1121_v9, %v1121_v9 }
 0x102   :  { %v19042_v34 = vld [vmem:[#allocation2 + $0x185c] sm:$0xf0]  ;;  %6156 = vmatmul.bf16.vlgmr.msrb.gmra.mxu3 %v20049_v19  ;;  %v13018_v59 = vld [vmem:[#allocation2 + $0x720] sm:$0xf0] }
 0x103   :  { %v15480_v35 = vld [vmem:[#allocation2 + $0x1a40] sm:$0xf]  ;;  %v15225_v47 = vor.u32 %v19042_v34, %v15224_v32  ;;  %6140 = vmatpush.bf16.msrb.mxu2 %v15769_v31  ;;  %v18566_v31 = vld [vmem:[#allocation2 + $0x984] sm:$0xf]  ;;  %v12573_v34 = vor.u32 %v18374_v14, %v12570_v15  ;;  %6200 = vmatpush.bf16.msra.mxu3 %v13373_v17  ;;  %v13021_v0 = vor.u32 %v18486_v58, %v13018_v59 }
 0x104   :  { %v19106_v37 = vld [vmem:[#allocation2 + $0x1a5c] sm:$0xf0]  ;;  %v13338_v32 = vld [vmem:[#allocation2 + $0x9a0] sm:$0xf0] }
 0x105   :  { %v15736_v39 = vld [vmem:[#allocation2 + $0x1c40] sm:$0xf]  ;;  %v15481_v51 = vor.u32 %v19106_v37, %v15480_v35  ;;  %6115 = vmatpush.bf16.msrb.mxu0 %v15225_v47  ;;  %v12829_v35 = vor.u32 %v18438_v16, %v12826_v23  ;;  %v18366_v37 = vld [vmem:[#allocation2 + $0x344] sm:$0xf]  ;;  %v13341_v43 = vor.u32 %v18566_v31, %v13338_v32 }
 0x106   :  { %v19170_v40 = vld [vmem:[#allocation2 + $0x1c5c] sm:$0xf0]  ;;  %v13050_v47 = vld [vmem:[#allocation2 + $0x760] sm:$0xf0] }
 0x107   :  { %v15192_v46 = vld [vmem:[#allocation2 + $0x1800] sm:$0xf]  ;;  %v15737_v52 = vor.u32 %v19170_v40, %v15736_v39  ;;  %6128 = vmatpush.bf16.msrb.mxu1 %v15481_v51  ;;  %v12538_v39 = vld [vmem:[#allocation2 + $0x360] sm:$0xf0]  ;;  %6201 = vmatpush.bf16.msra.mxu3 %v13341_v43 }
 0x108   :  { %v19034_v48 = vld [vmem:[#allocation2 + $0x181c] sm:$0xf0]  ;;  %v18430_v40 = vld [vmem:[#allocation2 + $0x544] sm:$0xf] }
 0x109   :  { %v15448_v49 = vld [vmem:[#allocation2 + $0x1a00] sm:$0xf]  ;;  %v15193_v63 = vor.u32 %v19034_v48, %v15192_v46  ;;  %6141 = vmatpush.bf16.msrb.mxu2 %v15737_v52  ;;  %v18494_v46 = vld [vmem:[#allocation2 + $0x744] sm:$0xf]  ;;  %v12797_v51 = vor.u32 %v18430_v40, %v12794_v45 }
 0x10a   :  { %v19098_v50 = vld [vmem:[#allocation2 + $0x1a1c] sm:$0xf0]  ;;  %v18558_v48 = vld [vmem:[#allocation2 + $0x944] sm:$0xf]  ;;  %v13053_v52 = vor.u32 %v18494_v46, %v13050_v47 }
 0x10b   :  { %v15704_v53 = vld [vmem:[#allocation2 + $0x1c00] sm:$0xf]  ;;  %v15449_v4 = vor.u32 %v19098_v50, %v15448_v49  ;;  %6116 = vmatpush.bf16.msrb.mxu0 %v15193_v63  ;;  %v13306_v49 = vld [vmem:[#allocation2 + $0x960] sm:$0xf0]  ;;  %v12541_v50 = vor.u32 %v18366_v37, %v12538_v39  ;;  %v12765_v63 = vor.u32 %v18422_v55, %v12762_v57 }
 0x10c   :  { %v19162_v54 = vld [vmem:[#allocation2 + $0x1c1c] sm:$0xf0]  ;;  %v13309_v56 = vor.u32 %v18558_v48, %v13306_v49  ;;  %v18550_v60 = vld [vmem:[#allocation2 + $0x904] sm:$0xf] }
 0x10d   :  { %v15705_v5 = vor.u32 %v19162_v54, %v15704_v53  ;;  %6129 = vmatpush.bf16.msrb.mxu1 %v15449_v4  ;;  %v18358_v53 = vld [vmem:[#allocation2 + $0x304] sm:$0xf] }
 0x10e   :  { %6117 = vmatmul.bf16.vlgmr.msrb.gmra.mxu0 %v20101_v21  ;;  %v12506_v54 = vld [vmem:[#allocation2 + $0x320] sm:$0xf0]  ;;  %6202 = vmatpush.bf16.msra.mxu3 %v13309_v56 }
 0x10f   :  { %6142 = vmatpush.bf16.msrb.mxu2 %v15705_v5  ;;  %6161 = vmatpush.bf16.msra.mxu0 %v12605_v11  ;;  %v13274_v61 = vld [vmem:[#allocation2 + $0x920] sm:$0xf0]  ;;  %v12509_v62 = vor.u32 %v18358_v53, %v12506_v54 }
 0x110   :  { %6130 = vmatmul.bf16.vlgmr.msrb.gmra.mxu1 %v20105_v28  ;;  %v18350_v1 = vld [vmem:[#allocation2 + $0x2c4] sm:$0xf]  ;;  %v13277_v4 = vor.u32 %v18550_v60, %v13274_v61 }
 0x111   :  { %6174 = vmatpush.bf16.msra.mxu1 %v12861_v12  ;;  %v12474_v2 = vld [vmem:[#allocation2 + $0x2e0] sm:$0xf0] }
 0x112   :  { %6143 = vmatmul.bf16.vlgmr.msrb.gmra.mxu2 %v20103_v27  ;;  %v18414_v3 = vld [vmem:[#allocation2 + $0x4c4] sm:$0xf]  ;;  %v12477_v10 = vor.u32 %v18350_v1, %v12474_v2  ;;  %6203 = vmatpush.bf16.msra.mxu3 %v13277_v4 }
 0x113   :  { %6187 = vmatpush.bf16.msra.mxu2 %v13117_v13  ;;  %6162 = vmatpush.bf16.msra.mxu0 %v12573_v34  ;;  %v12730_v5 = vld [vmem:[#allocation2 + $0x4e0] sm:$0xf0] }
 0x114   :  { %v18478_v6 = vld [vmem:[#allocation2 + $0x6c4] sm:$0xf]  ;;  %v12733_v11 = vor.u32 %v18414_v3, %v12730_v5 }
 0x115   :  { %6175 = vmatpush.bf16.msra.mxu1 %v12829_v35  ;;  %v12986_v7 = vld [vmem:[#allocation2 + $0x6e0] sm:$0xf0] }
 0x116   :  { %v18542_v8 = vld [vmem:[#allocation2 + $0x8c4] sm:$0xf]  ;;  %v12989_v12 = vor.u32 %v18478_v6, %v12986_v7 }
 0x117   :  { %6188 = vmatpush.bf16.msra.mxu2 %v13085_v36  ;;  %6163 = vmatpush.bf16.msra.mxu0 %v12541_v50  ;;  %v13242_v9 = vld [vmem:[#allocation2 + $0x8e0] sm:$0xf0] }
 0x118   :  { %v18342_v13 = vld [vmem:[#allocation2 + $0x284] sm:$0xf]  ;;  %v13245_v16 = vor.u32 %v18542_v8, %v13242_v9 }
 0x119   :  { %6176 = vmatpush.bf16.msra.mxu1 %v12797_v51  ;;  %v12442_v14 = vld [vmem:[#allocation2 + $0x2a0] sm:$0xf0] }
 0x11a   :  { %v18406_v15 = vld [vmem:[#allocation2 + $0x484] sm:$0xf]  ;;  %v12445_v32 = vor.u32 %v18342_v13, %v12442_v14  ;;  %6204 = vmatpush.bf16.msra.mxu3 %v13245_v16 }
 0x11b   :  { %6189 = vmatpush.bf16.msra.mxu2 %v13053_v52  ;;  %6164 = vmatpush.bf16.msra.mxu0 %v12509_v62  ;;  %v12698_v17 = vld [vmem:[#allocation2 + $0x4a0] sm:$0xf0] }
 0x11c   :  { %v18470_v23 = vld [vmem:[#allocation2 + $0x684] sm:$0xf]  ;;  %v12701_v34 = vor.u32 %v18406_v15, %v12698_v17 }
 0x11d   :  { %6177 = vmatpush.bf16.msra.mxu1 %v12765_v63  ;;  %v12954_v24 = vld [vmem:[#allocation2 + $0x6a0] sm:$0xf0] }
 0x11e   :  { %v18534_v26 = vld [vmem:[#allocation2 + $0x884] sm:$0xf]  ;;  %v12957_v35 = vor.u32 %v18470_v23, %v12954_v24 }
 0x11f   :  { %6190 = vmatpush.bf16.msra.mxu2 %v13021_v0  ;;  %v13210_v31 = vld [vmem:[#allocation2 + $0x8a0] sm:$0xf0]  ;;  %6165 = vmatpush.bf16.msra.mxu0 %v12477_v10 }
 0x120   :  { %v18334_v36 = vld [vmem:[#allocation2 + $0x244] sm:$0xf]  ;;  %v13213_v40 = vor.u32 %v18534_v26, %v13210_v31 }
 0x121   :  { %6178 = vmatpush.bf16.msra.mxu1 %v12733_v11  ;;  %v12410_v37 = vld [vmem:[#allocation2 + $0x260] sm:$0xf0] }
 0x122   :  { %v18398_v39 = vld [vmem:[#allocation2 + $0x444] sm:$0xf]  ;;  %v12413_v49 = vor.u32 %v18334_v36, %v12410_v37  ;;  %6205 = vmatpush.bf16.msra.mxu3 %v13213_v40 }
 0x123   :  { %6191 = vmatpush.bf16.msra.mxu2 %v12989_v12  ;;  %v12666_v43 = vld [vmem:[#allocation2 + $0x460] sm:$0xf0]  ;;  %6166 = vmatpush.bf16.msra.mxu0 %v12445_v32 }
 0x124   :  { %v18462_v45 = vld [vmem:[#allocation2 + $0x644] sm:$0xf]  ;;  %v12669_v52 = vor.u32 %v18398_v39, %v12666_v43 }
 0x125   :  { %v12922_v46 = vld [vmem:[#allocation2 + $0x660] sm:$0xf0]  ;;  %6179 = vmatpush.bf16.msra.mxu1 %v12701_v34 }
 0x126   :  { %v18526_v47 = vld [vmem:[#allocation2 + $0x844] sm:$0xf]  ;;  %v12925_v53 = vor.u32 %v18462_v45, %v12922_v46 }
 0x127   :  { %v13178_v48 = vld [vmem:[#allocation2 + $0x860] sm:$0xf0]  ;;  %6192 = vmatpush.bf16.msra.mxu2 %v12957_v35  ;;  %6167 = vmatpush.bf16.msra.mxu0 %v12413_v49 }
 0x128   :  { %v18326_v50 = vld [vmem:[#allocation2 + $0x204] sm:$0xf]  ;;  %v13181_v57 = vor.u32 %v18526_v47, %v13178_v48 }
 0x129   :  { %v12378_v51 = vld [vmem:[#allocation2 + $0x220] sm:$0xf0]  ;;  %6180 = vmatpush.bf16.msra.mxu1 %v12669_v52 }
 0x12a   :  { %v18390_v54 = vld [vmem:[#allocation2 + $0x404] sm:$0xf]  ;;  %v12381_v0 = vor.u32 %v18326_v50, %v12378_v51  ;;  %6206 = vmatpush.bf16.msra.mxu3 %v13181_v57 }
 0x12b   :  { %v12634_v55 = vld [vmem:[#allocation2 + $0x420] sm:$0xf0]  ;;  %6193 = vmatpush.bf16.msra.mxu2 %v12925_v53 }
 0x12c   :  { %v18454_v56 = vld [vmem:[#allocation2 + $0x604] sm:$0xf]  ;;  %v12637_v4 = vor.u32 %v18390_v54, %v12634_v55  ;;  %6168 = vmatpush.bf16.msra.mxu0 %v12381_v0 }
 0x12d   :  { %v12890_v58 = vld [vmem:[#allocation2 + $0x620] sm:$0xf0] }
 0x12e   :  { %v18518_v59 = vld [vmem:[#allocation2 + $0x804] sm:$0xf]  ;;  %v12893_v5 = vor.u32 %v18454_v56, %v12890_v58  ;;  %6181 = vmatpush.bf16.msra.mxu1 %v12637_v4 }
 0x12f   :  { %v13146_v60 = vld [vmem:[#allocation2 + $0x820] sm:$0xf0]  ;;  %6169 = vmatmul.bf16.vlgmr.msra.gmra.mxu0 %v20053_v22 }
 0x130   :  { %v18638_v61 = vld [vmem:[#allocation2 + $0xbc4] sm:$0xf]  ;;  %v13149_v8 = vor.u32 %v18518_v59, %v13146_v60  ;;  %6194 = vmatpush.bf16.msra.mxu2 %v12893_v5 }
 0x131   :  { %v13626_v62 = vld [vmem:[#allocation2 + $0xbe0] sm:$0xf0]  ;;  %6182 = vmatmul.bf16.vlgmr.msra.gmra.mxu1 %v20047_v18 }
 0x132   :  { %v18702_v63 = vld [vmem:[#allocation2 + $0xdc4] sm:$0xf]  ;;  %v13629_v9 = vor.u32 %v18638_v61, %v13626_v62  ;;  %6207 = vmatpush.bf16.msra.mxu3 %v13149_v8 }
 0x133   :  { %v13882_v1 = vld [vmem:[#allocation2 + $0xde0] sm:$0xf0]  ;;  %6195 = vmatmul.bf16.vlgmr.msra.gmra.mxu2 %v20051_v20 }
 0x134   :  { %v18766_v2 = vld [vmem:[#allocation2 + $0xfc4] sm:$0xf]  ;;  %v13885_v10 = vor.u32 %v18702_v63, %v13882_v1  ;;  %6213 = vmatpush.bf16.msrb.mxu0 %v13629_v9 }
 0x135   :  { %v14138_v3 = vld [vmem:[#allocation2 + $0xfe0] sm:$0xf0]  ;;  %6208 = vmatmul.bf16.vlgmr.msra.gmra.mxu3 %v20067_v41 }
 0x136   :  { %v18830_v6 = vld [vmem:[#allocation2 + $0x11c4] sm:$0xf]  ;;  %v14141_v11 = vor.u32 %v18766_v2, %v14138_v3  ;;  %6226 = vmatpush.bf16.msrb.mxu1 %v13885_v10 }
 0x137   :  { %v14394_v7 = vld [vmem:[#allocation2 + $0x11e0] sm:$0xf0] }
 0x138   :  { %v18630_v12 = vld [vmem:[#allocation2 + $0xb84] sm:$0xf]  ;;  %v14397_v15 = vor.u32 %v18830_v6, %v14394_v7  ;;  %6239 = vmatpush.bf16.msrb.mxu2 %v14141_v11 }
 0x139   :  { %v13594_v13 = vld [vmem:[#allocation2 + $0xba0] sm:$0xf0] }
 0x13a   :  { %v18694_v14 = vld [vmem:[#allocation2 + $0xd84] sm:$0xf]  ;;  %v13597_v31 = vor.u32 %v18630_v12, %v13594_v13  ;;  %6252 = vmatpush.bf16.msrb.mxu3 %v14397_v15 }
 0x13b   :  { %v13850_v16 = vld [vmem:[#allocation2 + $0xda0] sm:$0xf0] }
 0x13c   :  { %v18758_v17 = vld [vmem:[#allocation2 + $0xf84] sm:$0xf]  ;;  %v13853_v32 = vor.u32 %v18694_v14, %v13850_v16  ;;  %6214 = vmatpush.bf16.msrb.mxu0 %v13597_v31 }
 0x13d   :  { %v14106_v23 = vld [vmem:[#allocation2 + $0xfa0] sm:$0xf0] }
 0x13e   :  { %v18822_v24 = vld [vmem:[#allocation2 + $0x1184] sm:$0xf]  ;;  %v14109_v34 = vor.u32 %v18758_v17, %v14106_v23  ;;  %6227 = vmatpush.bf16.msrb.mxu1 %v13853_v32 }
 0x13f   :  { %v14362_v26 = vld [vmem:[#allocation2 + $0x11a0] sm:$0xf0] }
 0x140   :  { %v18622_v35 = vld [vmem:[#allocation2 + $0xb44] sm:$0xf]  ;;  %v14365_v39 = vor.u32 %v18822_v24, %v14362_v26  ;;  %6240 = vmatpush.bf16.msrb.mxu2 %v14109_v34  ;;  %v5962_v34 = vpop.f32.mrf.mxu0 }
 0x141   :  { %v13562_v36 = vld [vmem:[#allocation2 + $0xb60] sm:$0xf0] }
 0x142   :  { %v18686_v37 = vld [vmem:[#allocation2 + $0xd44] sm:$0xf]  ;;  %v13565_v48 = vor.u32 %v18622_v35, %v13562_v36  ;;  %6253 = vmatpush.bf16.msrb.mxu3 %v14365_v39 }
 0x143   :  { %v13818_v40 = vld [vmem:[#allocation2 + $0xd60] sm:$0xf0] }
 0x144   :  { %v18750_v43 = vld [vmem:[#allocation2 + $0xf44] sm:$0xf]  ;;  %v13821_v49 = vor.u32 %v18686_v37, %v13818_v40  ;;  %6215 = vmatpush.bf16.msrb.mxu0 %v13565_v48 }
 0x145   :  { %v14074_v45 = vld [vmem:[#allocation2 + $0xf60] sm:$0xf0] }
 0x146   :  { %v18814_v46 = vld [vmem:[#allocation2 + $0x1144] sm:$0xf]  ;;  %v14077_v50 = vor.u32 %v18750_v43, %v14074_v45  ;;  %6228 = vmatpush.bf16.msrb.mxu1 %v13821_v49  ;;  %v5975_v45 = vpop.f32.mrf.mxu1 }
 0x147   :  { %v14330_v47 = vld [vmem:[#allocation2 + $0x1160] sm:$0xf0] }
 0x148   :  { %v18614_v51 = vld [vmem:[#allocation2 + $0xb04] sm:$0xf]  ;;  %v14333_v54 = vor.u32 %v18814_v46, %v14330_v47  ;;  %6241 = vmatpush.bf16.msrb.mxu2 %v14077_v50 }
 0x149   :  { %v13530_v52 = vld [vmem:[#allocation2 + $0xb20] sm:$0xf0] }
 0x14a   :  { %v18678_v53 = vld [vmem:[#allocation2 + $0xd04] sm:$0xf]  ;;  %v13533_v60 = vor.u32 %v18614_v51, %v13530_v52  ;;  %6254 = vmatpush.bf16.msrb.mxu3 %v14333_v54 }
 0x14b   :  { %v13786_v55 = vld [vmem:[#allocation2 + $0xd20] sm:$0xf0] }
 0x14c   :  { %v18742_v56 = vld [vmem:[#allocation2 + $0xf04] sm:$0xf]  ;;  %v13789_v62 = vor.u32 %v18678_v53, %v13786_v55  ;;  %6216 = vmatpush.bf16.msrb.mxu0 %v13533_v60 }
 0x14d   :  { %v14042_v57 = vld [vmem:[#allocation2 + $0xf20] sm:$0xf0] }
 0x14e   :  { %v18806_v58 = vld [vmem:[#allocation2 + $0x1104] sm:$0xf]  ;;  %v14045_v63 = vor.u32 %v18742_v56, %v14042_v57  ;;  %6229 = vmatpush.bf16.msrb.mxu1 %v13789_v62 }
 0x14f   :  { %v14298_v59 = vld [vmem:[#allocation2 + $0x1120] sm:$0xf0] }
 0x150   :  { %v18606_v61 = vld [vmem:[#allocation2 + $0xac4] sm:$0xf]  ;;  %v14301_v3 = vor.u32 %v18806_v58, %v14298_v59  ;;  %6242 = vmatpush.bf16.msrb.mxu2 %v14045_v63 }
 0x151   :  { %v13498_v0 = vld [vmem:[#allocation2 + $0xae0] sm:$0xf0] }
 0x152   :  { %v18670_v1 = vld [vmem:[#allocation2 + $0xcc4] sm:$0xf]  ;;  %v13501_v9 = vor.u32 %v18606_v61, %v13498_v0  ;;  %6255 = vmatpush.bf16.msrb.mxu3 %v14301_v3  ;;  %v5988_v61 = vpop.f32.mrf.mxu2  ;;  %v6001_v3 = vpop.f32.mrf.mxu3 }
 0x153   :  { %v13754_v2 = vld [vmem:[#allocation2 + $0xce0] sm:$0xf0] }
 0x154   :  { %v18734_v4 = vld [vmem:[#allocation2 + $0xec4] sm:$0xf]  ;;  %v13757_v11 = vor.u32 %v18670_v1, %v13754_v2  ;;  %6217 = vmatpush.bf16.msrb.mxu0 %v13501_v9 }
 0x155   :  { %v14010_v5 = vld [vmem:[#allocation2 + $0xee0] sm:$0xf0] }
 0x156   :  { %v1082_v6 = vld [vmem:[#allocation4] sm:$0xff]  ;;  %v14013_v12 = vor.u32 %v18734_v4, %v14010_v5  ;;  %6230 = vmatpush.bf16.msrb.mxu1 %v13757_v11 }
 0x157   :  { %v18798_v7 = vld [vmem:[#allocation2 + $0x10c4] sm:$0xf]  ;;  %v1084_v15 = vperm.slane %v1082_v6, 0 }
 0x158   :  { %v14266_v8 = vld [vmem:[#allocation2 + $0x10e0] sm:$0xf0]  ;;  %6243 = vmatpush.bf16.msrb.mxu2 %v14013_v12  ;;  %v5964_v12 = vpop.f32.mrf.mxu0 }
 0x159   :  { %v18598_v10 = vld [vmem:[#allocation2 + $0xa84] sm:$0xf]  ;;  %v14269_v16 = vor.u32 %v18798_v7, %v14266_v8  ;;  %v5963_v43 = vadd.f32 %v5962_v34, %v1084_v15 }
 0x15a   :  { %v13466_v13 = vld [vmem:[#allocation2 + $0xaa0] sm:$0xf0] }
 0x15b   :  { %v18662_v14 = vld [vmem:[#allocation2 + $0xc84] sm:$0xf]  ;;  %v13469_v32 = vor.u32 %v18598_v10, %v13466_v13  ;;  %6256 = vmatpush.bf16.msrb.mxu3 %v14269_v16  ;;  %v5976_v52 = vadd.f32 %v5975_v45, %v5963_v43 }
 0x15c   :  { %v13722_v17 = vld [vmem:[#allocation2 + $0xca0] sm:$0xf0] }
 0x15d   :  { %v18726_v23 = vld [vmem:[#allocation2 + $0xe84] sm:$0xf]  ;;  %v13725_v35 = vor.u32 %v18662_v14, %v13722_v17  ;;  %6218 = vmatpush.bf16.msrb.mxu0 %v13469_v32  ;;  %v5989_v2 = vadd.f32 %v5988_v61, %v5976_v52  ;;  %v5977_v17 = vpop.f32.mrf.mxu1 }
 0x15e   :  { %v13978_v24 = vld [vmem:[#allocation2 + $0xea0] sm:$0xf0] }
 0x15f   :  { %v18790_v26 = vld [vmem:[#allocation2 + $0x1084] sm:$0xf]  ;;  %v13981_v36 = vor.u32 %v18726_v23, %v13978_v24  ;;  %6231 = vmatpush.bf16.msrb.mxu1 %v13725_v35  ;;  %v20115_v11 = vadd.f32 %v6001_v3, %v5989_v2 }
 0x160   :  { %v14234_v31 = vld [vmem:[#allocation2 + $0x10a0] sm:$0xf0] }
 0x161   :  { %v18590_v37 = vld [vmem:[#allocation2 + $0xa44] sm:$0xf]  ;;  %v14237_v46 = vor.u32 %v18790_v26, %v14234_v31  ;;  %6244 = vmatpush.bf16.msrb.mxu2 %v13981_v36 }
 0x162   :  { %v13434_v39 = vld [vmem:[#allocation2 + $0xa60] sm:$0xf0] }
 0x163   :  { %v18654_v40 = vld [vmem:[#allocation2 + $0xc44] sm:$0xf]  ;;  %v13437_v53 = vor.u32 %v18590_v37, %v13434_v39  ;;  %6257 = vmatpush.bf16.msrb.mxu3 %v14237_v46  ;;  %v5990_v46 = vpop.f32.mrf.mxu2 }
 0x164   :  { %v13690_v47 = vld [vmem:[#allocation2 + $0xc60] sm:$0xf0] }
 0x165   :  { %v18718_v48 = vld [vmem:[#allocation2 + $0xe44] sm:$0xf]  ;;  %v13693_v56 = vor.u32 %v18654_v40, %v13690_v47  ;;  %6219 = vmatpush.bf16.msrb.mxu0 %v13437_v53  ;;  %v6027_v17 = vpop.f32.mrf.mxu1 }
 0x166   :  { %v13946_v49 = vld [vmem:[#allocation2 + $0xe60] sm:$0xf0] }
 0x167   :  { %v18782_v50 = vld [vmem:[#allocation2 + $0x1044] sm:$0xf]  ;;  %v13949_v57 = vor.u32 %v18718_v48, %v13946_v49  ;;  %6232 = vmatpush.bf16.msrb.mxu1 %v13693_v56  ;;  %v6003_v48 = vpop.f32.mrf.mxu3 }
 0x168   :  { %v14202_v51 = vld [vmem:[#allocation2 + $0x1060] sm:$0xf0] }
 0x169   :  { %v18582_v54 = vld [vmem:[#allocation2 + $0xa04] sm:$0xf]  ;;  %v14205_v62 = vor.u32 %v18782_v50, %v14202_v51  ;;  %6245 = vmatpush.bf16.msrb.mxu2 %v13949_v57 }
 0x16a   :  { %v13402_v55 = vld [vmem:[#allocation2 + $0xa20] sm:$0xf0] }
 0x16b   :  { %v18646_v58 = vld [vmem:[#allocation2 + $0xc04] sm:$0xf]  ;;  %v13405_v7 = vor.u32 %v18582_v54, %v13402_v55  ;;  %6258 = vmatpush.bf16.msrb.mxu3 %v14205_v62  ;;  %v6040_v46 = vpop.f32.mrf.mxu2 }
 0x16c   :  { %v13658_v59 = vld [vmem:[#allocation2 + $0xc20] sm:$0xf0] }
 0x16d   :  { %v18710_v60 = vld [vmem:[#allocation2 + $0xe04] sm:$0xf]  ;;  %v13661_v13 = vor.u32 %v18646_v58, %v13658_v59  ;;  %6220 = vmatpush.bf16.msrb.mxu0 %v13405_v7 }
 0x16e   :  { %v13914_v63 = vld [vmem:[#allocation2 + $0xe20] sm:$0xf0] }
 0x16f   :  { %v18774_v0 = vld [vmem:[#allocation2 + $0x1004] sm:$0xf]  ;;  %v13917_v14 = vor.u32 %v18710_v60, %v13914_v63  ;;  %6233 = vmatpush.bf16.msrb.mxu1 %v13661_v13 }
 0x170   :  { %v14170_v1 = vld [vmem:[#allocation2 + $0x1020] sm:$0xf0]  ;;  %6221 = vmatmul.bf16.vlgmr.msrb.gmra.mxu0 %v20071_v44 }
 0x171   :  { %v18894_v4 = vld [vmem:[#allocation2 + $0x13c4] sm:$0xf]  ;;  %v14173_v23 = vor.u32 %v18774_v0, %v14170_v1  ;;  %6246 = vmatpush.bf16.msrb.mxu2 %v13917_v14 }
 0x172   :  { %v14650_v5 = vld [vmem:[#allocation2 + $0x13e0] sm:$0xf0]  ;;  %6234 = vmatmul.bf16.vlgmr.msrb.gmra.mxu1 %v20065_v38 }
 0x173   :  { %v18958_v6 = vld [vmem:[#allocation2 + $0x15c4] sm:$0xf]  ;;  %v14653_v24 = vor.u32 %v18894_v4, %v14650_v5  ;;  %6259 = vmatpush.bf16.msrb.mxu3 %v14173_v23 }
 0x174   :  { %v14906_v8 = vld [vmem:[#allocation2 + $0x15e0] sm:$0xf0]  ;;  %6247 = vmatmul.bf16.vlgmr.msrb.gmra.mxu2 %v20069_v42 }
 0x175   :  { %v19022_v9 = vld [vmem:[#allocation2 + $0x17c4] sm:$0xf]  ;;  %v14909_v26 = vor.u32 %v18958_v6, %v14906_v8  ;;  %6265 = vmatpush.bf16.msra.mxu0 %v14653_v24 }
 0x176   :  { %v15162_v10 = vld [vmem:[#allocation2 + $0x17e0] sm:$0xf0]  ;;  %6260 = vmatmul.bf16.vlgmr.msrb.gmra.mxu3 %v20083_v25 }
 0x177   :  { %v19086_v15 = vld [vmem:[#allocation2 + $0x19c4] sm:$0xf]  ;;  %v15165_v31 = vor.u32 %v19022_v9, %v15162_v10  ;;  %6278 = vmatpush.bf16.msra.mxu1 %v14909_v26  ;;  %v6014_v9 = vpop.f32.mrf.mxu0 }
 0x178   :  { %v15418_v16 = vld [vmem:[#allocation2 + $0x19e0] sm:$0xf0] }
 0x179   :  { %v18886_v32 = vld [vmem:[#allocation2 + $0x1384] sm:$0xf]  ;;  %v15421_v36 = vor.u32 %v19086_v15, %v15418_v16  ;;  %6291 = vmatpush.bf16.msra.mxu2 %v15165_v31  ;;  %v6015_v16 = vadd.f32 %v6014_v9, %v20115_v11 }
 0x17a   :  { %v14618_v34 = vld [vmem:[#allocation2 + $0x13a0] sm:$0xf0] }
 0x17b   :  { %v18950_v35 = vld [vmem:[#allocation2 + $0x1584] sm:$0xf]  ;;  %v14621_v47 = vor.u32 %v18886_v32, %v14618_v34  ;;  %6304 = vmatpush.bf16.msra.mxu3 %v15421_v36 }
 0x17c   :  { %v14874_v37 = vld [vmem:[#allocation2 + $0x15a0] sm:$0xf0] }
 0x17d   :  { %v19014_v39 = vld [vmem:[#allocation2 + $0x1784] sm:$0xf]  ;;  %v14877_v49 = vor.u32 %v18950_v35, %v14874_v37  ;;  %6266 = vmatpush.bf16.msra.mxu0 %v14621_v47  ;;  %v6028_v35 = vadd.f32 %v6027_v17, %v6015_v16 }
 0x17e   :  { %v15130_v40 = vld [vmem:[#allocation2 + $0x17a0] sm:$0xf0] }
 0x17f   :  { %v19078_v43 = vld [vmem:[#allocation2 + $0x1984] sm:$0xf]  ;;  %v15133_v50 = vor.u32 %v19014_v39, %v15130_v40  ;;  %6279 = vmatpush.bf16.msra.mxu1 %v14877_v49 }
 0x180   :  { %v15386_v45 = vld [vmem:[#allocation2 + $0x19a0] sm:$0xf0] }
 0x181   :  { %v18878_v51 = vld [vmem:[#allocation2 + $0x1344] sm:$0xf]  ;;  %v15389_v54 = vor.u32 %v19078_v43, %v15386_v45  ;;  %6292 = vmatpush.bf16.msra.mxu2 %v15133_v50  ;;  %v6041_v50 = vadd.f32 %v6040_v46, %v6028_v35 }
 0x182   :  { %v14586_v52 = vld [vmem:[#allocation2 + $0x1360] sm:$0xf0] }
 0x183   :  { %v18942_v53 = vld [vmem:[#allocation2 + $0x1544] sm:$0xf]  ;;  %v14589_v60 = vor.u32 %v18878_v51, %v14586_v52  ;;  %6305 = vmatpush.bf16.msra.mxu3 %v15389_v54  ;;  %v6053_v51 = vpop.f32.mrf.mxu3 }
 0x184   :  { %v14842_v55 = vld [vmem:[#allocation2 + $0x1560] sm:$0xf0] }
 0x185   :  { %v19006_v56 = vld [vmem:[#allocation2 + $0x1744] sm:$0xf]  ;;  %v14845_v61 = vor.u32 %v18942_v53, %v14842_v55  ;;  %6267 = vmatpush.bf16.msra.mxu0 %v14589_v60  ;;  %v20122_v55 = vadd.f32 %v6053_v51, %v6041_v50 }
 0x186   :  { %v15098_v57 = vld [vmem:[#allocation2 + $0x1760] sm:$0xf0] }
 0x187   :  { %v19070_v58 = vld [vmem:[#allocation2 + $0x1944] sm:$0xf]  ;;  %v15101_v62 = vor.u32 %v19006_v56, %v15098_v57  ;;  %6280 = vmatpush.bf16.msra.mxu1 %v14845_v61  ;;  %v6016_v56 = vpop.f32.mrf.mxu0 }
 0x188   :  { %v15354_v59 = vld [vmem:[#allocation2 + $0x1960] sm:$0xf0]  ;;  %v18315_v56 = vld [vmem:[#allocation2 + $0x1a4] sm:$0xf0] }
 0x189   :  { %v18870_v63 = vld [vmem:[#allocation2 + $0x1304] sm:$0xf]  ;;  %v15357_v2 = vor.u32 %v19070_v58, %v15354_v59  ;;  %6293 = vmatpush.bf16.msra.mxu2 %v15101_v62  ;;  %v6029_v62 = vpop.f32.mrf.mxu1 }
 0x18a   :  { %v14554_v0 = vld [vmem:[#allocation2 + $0x1320] sm:$0xf0] }
 0x18b   :  { %v18934_v1 = vld [vmem:[#allocation2 + $0x1504] sm:$0xf]  ;;  %v14557_v8 = vor.u32 %v18870_v63, %v14554_v0  ;;  %6306 = vmatpush.bf16.msra.mxu3 %v15357_v2 }
 0x18c   :  { %v14810_v3 = vld [vmem:[#allocation2 + $0x1520] sm:$0xf0] }
 0x18d   :  { %v18998_v4 = vld [vmem:[#allocation2 + $0x1704] sm:$0xf]  ;;  %v14813_v10 = vor.u32 %v18934_v1, %v14810_v3  ;;  %6268 = vmatpush.bf16.msra.mxu0 %v14557_v8 }
 0x18e   :  { %v15066_v5 = vld [vmem:[#allocation2 + $0x1720] sm:$0xf0] }
 0x18f   :  { %v19062_v6 = vld [vmem:[#allocation2 + $0x1904] sm:$0xf]  ;;  %v15069_v12 = vor.u32 %v18998_v4, %v15066_v5  ;;  %6281 = vmatpush.bf16.msra.mxu1 %v14813_v10 }
 0x190   :  { %v15322_v7 = vld [vmem:[#allocation2 + $0x1920] sm:$0xf0] }
 0x191   :  { %v18862_v13 = vld [vmem:[#allocation2 + $0x12c4] sm:$0xf]  ;;  %v15325_v23 = vor.u32 %v19062_v6, %v15322_v7  ;;  %6294 = vmatpush.bf16.msra.mxu2 %v15069_v12 }
 0x192   :  { %v14522_v14 = vld [vmem:[#allocation2 + $0x12e0] sm:$0xf0] }
 0x193   :  { %v18926_v15 = vld [vmem:[#allocation2 + $0x14c4] sm:$0xf]  ;;  %v14525_v36 = vor.u32 %v18862_v13, %v14522_v14  ;;  %6307 = vmatpush.bf16.msra.mxu3 %v15325_v23  ;;  %v6042_v14 = vpop.f32.mrf.mxu2 }
 0x194   :  { %v14778_v24 = vld [vmem:[#allocation2 + $0x14e0] sm:$0xf0] }
 0x195   :  { %v18990_v26 = vld [vmem:[#allocation2 + $0x16c4] sm:$0xf]  ;;  %v14781_v37 = vor.u32 %v18926_v15, %v14778_v24  ;;  %6269 = vmatpush.bf16.msra.mxu0 %v14525_v36  ;;  %v6055_v24 = vpop.f32.mrf.mxu3  ;;  %v12352_v36 = vld [vmem:[#allocation2 + $0x1c8] sm:$0xf] }
 0x196   :  { %v15034_v31 = vld [vmem:[#allocation2 + $0x16e0] sm:$0xf0]  ;;  %v12512_v24 = vld [vmem:[#allocation2 + $0x308] sm:$0xf] }
 0x197   :  { %v19054_v32 = vld [vmem:[#allocation2 + $0x18c4] sm:$0xf]  ;;  %v15037_v39 = vor.u32 %v18990_v26, %v15034_v31  ;;  %6282 = vmatpush.bf16.msra.mxu1 %v14781_v37  ;;  %v18323_v37 = vld [vmem:[#allocation2 + $0x1e4] sm:$0xf0] }
 0x198   :  { %v15290_v34 = vld [vmem:[#allocation2 + $0x18e0] sm:$0xf0] }
 0x199   :  { %v18854_v40 = vld [vmem:[#allocation2 + $0x1284] sm:$0xf]  ;;  %v15293_v11 = vor.u32 %v19054_v32, %v15290_v34  ;;  %6295 = vmatpush.bf16.msra.mxu2 %v15037_v39 }
 0x19a   :  { %v14490_v43 = vld [vmem:[#allocation2 + $0x12a0] sm:$0xf0] }
 0x19b   :  { %v18918_v45 = vld [vmem:[#allocation2 + $0x1484] sm:$0xf]  ;;  %v14493_v54 = vor.u32 %v18854_v40, %v14490_v43  ;;  %6308 = vmatpush.bf16.msra.mxu3 %v15293_v11  ;;  %v12608_v43 = vld [vmem:[#allocation2 + $0x3c8] sm:$0xf] }
 0x19c   :  { %v14746_v47 = vld [vmem:[#allocation2 + $0x14a0] sm:$0xf0] }
 0x19d   :  { %v18982_v48 = vld [vmem:[#allocation2 + $0x1684] sm:$0xf]  ;;  %v14749_v57 = vor.u32 %v18918_v45, %v14746_v47  ;;  %6270 = vmatpush.bf16.msra.mxu0 %v14493_v54  ;;  %v18387_v45 = vld [vmem:[#allocation2 + $0x3e4] sm:$0xf0] }
 0x19e   :  { %v15002_v49 = vld [vmem:[#allocation2 + $0x16a0] sm:$0xf0]  ;;  %v12320_v54 = vld [vmem:[#allocation2 + $0x188] sm:$0xf] }
 0x19f   :  { %v19046_v52 = vld [vmem:[#allocation2 + $0x1884] sm:$0xf]  ;;  %v15005_v58 = vor.u32 %v18982_v48, %v15002_v49  ;;  %6283 = vmatpush.bf16.msra.mxu1 %v14749_v57  ;;  %v12353_v48 = vor.u32 %v18323_v37, %v12352_v36  ;;  %v12576_v57 = vld [vmem:[#allocation2 + $0x388] sm:$0xf] }
 0x1a0   :  { %v15258_v53 = vld [vmem:[#allocation2 + $0x18a0] sm:$0xf0] }
 0x1a1   :  { %v18846_v59 = vld [vmem:[#allocation2 + $0x1244] sm:$0xf]  ;;  %v15261_v63 = vor.u32 %v19046_v52, %v15258_v53  ;;  %6296 = vmatpush.bf16.msra.mxu2 %v15005_v58  ;;  %v12609_v52 = vor.u32 %v18387_v45, %v12608_v43  ;;  %v18379_v58 = vld [vmem:[#allocation2 + $0x3a4] sm:$0xf0] }
 0x1a2   :  { %v14458_v60 = vld [vmem:[#allocation2 + $0x1260] sm:$0xf0] }
 0x1a3   :  { %v18910_v61 = vld [vmem:[#allocation2 + $0x1444] sm:$0xf]  ;;  %v14461_v5 = vor.u32 %v18846_v59, %v14458_v60  ;;  %6309 = vmatpush.bf16.msra.mxu3 %v15261_v63 }
 0x1a4   :  { %v14714_v0 = vld [vmem:[#allocation2 + $0x1460] sm:$0xf0] }
 0x1a5   :  { %v18974_v1 = vld [vmem:[#allocation2 + $0x1644] sm:$0xf]  ;;  %v14717_v8 = vor.u32 %v18910_v61, %v14714_v0  ;;  %6271 = vmatpush.bf16.msra.mxu0 %v14461_v5  ;;  %v12321_v61 = vor.u32 %v18315_v56, %v12320_v54  ;;  %v12544_v5 = vld [vmem:[#allocation2 + $0x348] sm:$0xf] }
 0x1a6   :  { %v14970_v2 = vld [vmem:[#allocation2 + $0x1660] sm:$0xf0] }
 0x1a7   :  { %v19038_v3 = vld [vmem:[#allocation2 + $0x1844] sm:$0xf]  ;;  %v14973_v9 = vor.u32 %v18974_v1, %v14970_v2  ;;  %6284 = vmatpush.bf16.msra.mxu1 %v14717_v8  ;;  %v12577_v1 = vor.u32 %v18379_v58, %v12576_v57  ;;  %v6092_v57 = vpop.f32.mrf.mxu2 }
 0x1a8   :  { %v15226_v4 = vld [vmem:[#allocation2 + $0x1860] sm:$0xf0] }
 0x1a9   :  { %v18838_v6 = vld [vmem:[#allocation2 + $0x1204] sm:$0xf]  ;;  %v15229_v15 = vor.u32 %v19038_v3, %v15226_v4  ;;  %6297 = vmatpush.bf16.msra.mxu2 %v14973_v9  ;;  %v12288_v3 = vld [vmem:[#allocation2 + $0x148] sm:$0xf] }
 0x1aa   :  { %v14426_v7 = vld [vmem:[#allocation2 + $0x1220] sm:$0xf0]  ;;  %v18307_v4 = vld [vmem:[#allocation2 + $0x164] sm:$0xf0] }
 0x1ab   :  { %v18902_v10 = vld [vmem:[#allocation2 + $0x1404] sm:$0xf]  ;;  %v14429_v34 = vor.u32 %v18838_v6, %v14426_v7  ;;  %6310 = vmatpush.bf16.msra.mxu3 %v15229_v15  ;;  %v18371_v6 = vld [vmem:[#allocation2 + $0x364] sm:$0xf0]  ;;  %v12289_v9 = vor.u32 %v18307_v4, %v12288_v3 }
 0x1ac   :  { %v14682_v12 = vld [vmem:[#allocation2 + $0x1420] sm:$0xf0]  ;;  %v12545_v14 = vor.u32 %v18371_v6, %v12544_v5 }
 0x1ad   :  { %v18966_v13 = vld [vmem:[#allocation2 + $0x1604] sm:$0xf]  ;;  %v14685_v39 = vor.u32 %v18902_v10, %v14682_v12  ;;  %6272 = vmatpush.bf16.msra.mxu0 %v14429_v34  ;;  %v6079_v34 = vpop.f32.mrf.mxu1 }
 0x1ae   :  { %v14938_v16 = vld [vmem:[#allocation2 + $0x1620] sm:$0xf0] }
 0x1af   :  { %v19030_v17 = vld [vmem:[#allocation2 + $0x1804] sm:$0xf]  ;;  %v14941_v40 = vor.u32 %v18966_v13, %v14938_v16  ;;  %6285 = vmatpush.bf16.msra.mxu1 %v14685_v39  ;;  %v12256_v16 = vld [vmem:[#allocation2 + $0x108] sm:$0xf] }
 0x1b0   :  { %v15194_v23 = vld [vmem:[#allocation2 + $0x1820] sm:$0xf0]  ;;  %6273 = vmatmul.bf16.vlgmr.msra.gmra.mxu0 %v20087_v30 }
 0x1b1   :  { %v19150_v26 = vld [vmem:[#allocation2 + $0x1bc4] sm:$0xf]  ;;  %v15197_v46 = vor.u32 %v19030_v17, %v15194_v23  ;;  %6298 = vmatpush.bf16.msra.mxu2 %v14941_v40  ;;  %v18299_v17 = vld [vmem:[#allocation2 + $0x124] sm:$0xf0]  ;;  %v6066_v23 = vpop.f32.mrf.mxu0 }
 0x1b2   :  { %v15674_v31 = vld [vmem:[#allocation2 + $0x1be0] sm:$0xf0]  ;;  %6286 = vmatmul.bf16.vlgmr.msra.gmra.mxu1 %v20085_v29  ;;  %v12257_v36 = vor.u32 %v18299_v17, %v12256_v16  ;;  %v18339_v16 = vld [vmem:[#allocation2 + $0x264] sm:$0xf0] }
 0x1b3   :  { %v19214_v32 = vld [vmem:[#allocation2 + $0x1dc4] sm:$0xf]  ;;  %v15677_v11 = vor.u32 %v19150_v26, %v15674_v31  ;;  %6311 = vmatpush.bf16.msra.mxu3 %v15197_v46  ;;  %v18363_v26 = vld [vmem:[#allocation2 + $0x324] sm:$0xf0]  ;;  %v6067_v31 = vadd.f32 %v6066_v23, %v20122_v55 }
 0x1b4   :  { %v15930_v35 = vld [vmem:[#allocation2 + $0x1de0] sm:$0xf0]  ;;  %6299 = vmatmul.bf16.vlgmr.msra.gmra.mxu2 %v20089_v33  ;;  %v12513_v43 = vor.u32 %v18363_v26, %v12512_v24 }
 0x1b5   :  { %v15933_v47 = vor.u32 %v19214_v32, %v15930_v35  ;;  %v19142_v49 = vld [vmem:[#allocation2 + $0x1b84] sm:$0xf]  ;;  %6317 = vmatpush.bf16.msrb.mxu0 %v15677_v11  ;;  %6343 = vmatpush.bf16.msrb.mxu2 %v12353_v48  ;;  %v6080_v45 = vadd.f32 %v6079_v34, %v6067_v31  ;;  %v12224_v11 = vld [vmem:[#allocation2 + $0xc8] sm:$0xf]  ;;  %v6081_v3 = vpop.f32.mrf.mxu1 }
 0x1b6   :  { %v15642_v50 = vld [vmem:[#allocation2 + $0x1ba0] sm:$0xf0]  ;;  %6312 = vmatmul.bf16.vlgmr.msra.gmra.mxu3 %v20101_v21  ;;  %v12480_v48 = vld [vmem:[#allocation2 + $0x2c8] sm:$0xf] }
 0x1b7   :  { %v19206_v51 = vld [vmem:[#allocation2 + $0x1d84] sm:$0xf]  ;;  %v15645_v59 = vor.u32 %v19142_v49, %v15642_v50  ;;  %6330 = vmatpush.bf16.msrb.mxu1 %v15933_v47  ;;  %6356 = vmatpush.bf16.msrb.mxu3 %v12609_v52  ;;  %v18291_v47 = vld [vmem:[#allocation2 + $0xe4] sm:$0xf0] }
 0x1b8   :  { %v15898_v53 = vld [vmem:[#allocation2 + $0x1da0] sm:$0xf0]  ;;  %v18355_v49 = vld [vmem:[#allocation2 + $0x2e4] sm:$0xf0] }
 0x1b9   :  { %v15901_v60 = vor.u32 %v19206_v51, %v15898_v53  ;;  %v19134_v62 = vld [vmem:[#allocation2 + $0x1b44] sm:$0xf]  ;;  %6318 = vmatpush.bf16.msrb.mxu0 %v15645_v59  ;;  %6344 = vmatpush.bf16.msrb.mxu2 %v12321_v61  ;;  %v12225_v51 = vor.u32 %v18291_v47, %v12224_v11  ;;  %v12481_v56 = vor.u32 %v18355_v49, %v12480_v48  ;;  %v12192_v59 = vld [vmem:[#allocation2 + $0x88] sm:$0xf] }
 0x1ba   :  { %v15610_v63 = vld [vmem:[#allocation2 + $0x1b60] sm:$0xf0]  ;;  %v6093_v61 = vadd.f32 %v6092_v57, %v6080_v45  ;;  %v12864_v45 = vld [vmem:[#allocation2 + $0x5c8] sm:$0xf] }
 0x1bb   :  { %v19198_v0 = vld [vmem:[#allocation2 + $0x1d44] sm:$0xf]  ;;  %v15613_v7 = vor.u32 %v19134_v62, %v15610_v63  ;;  %6331 = vmatpush.bf16.msrb.mxu1 %v15901_v60  ;;  %6357 = vmatpush.bf16.msrb.mxu3 %v12577_v1  ;;  %v18283_v60 = vld [vmem:[#allocation2 + $0xa4] sm:$0xf0]  ;;  %v6105_v62 = vpop.f32.mrf.mxu3  ;;  %v6068_v1 = vpop.f32.mrf.mxu0 }
 0x1bc   :  { %v15866_v2 = vld [vmem:[#allocation2 + $0x1d60] sm:$0xf0]  ;;  %v12448_v63 = vld [vmem:[#allocation2 + $0x288] sm:$0xf]  ;;  %v20129_v4 = vadd.f32 %v6105_v62, %v6093_v61  ;;  %v12193_v6 = vor.u32 %v18283_v60, %v12192_v59 }
 0x1bd   :  { %v15869_v8 = vor.u32 %v19198_v0, %v15866_v2  ;;  %v19126_v10 = vld [vmem:[#allocation2 + $0x1b04] sm:$0xf]  ;;  %6319 = vmatpush.bf16.msrb.mxu0 %v15613_v7  ;;  %6345 = vmatpush.bf16.msrb.mxu2 %v12289_v9  ;;  %v18347_v0 = vld [vmem:[#allocation2 + $0x2a4] sm:$0xf0] }
 0x1be   :  { %v15578_v12 = vld [vmem:[#allocation2 + $0x1b20] sm:$0xf0]  ;;  %v13120_v11 = vld [vmem:[#allocation2 + $0x7c8] sm:$0xf] }
 0x1bf   :  { %v19190_v13 = vld [vmem:[#allocation2 + $0x1d04] sm:$0xf]  ;;  %v15581_v32 = vor.u32 %v19126_v10, %v15578_v12  ;;  %6332 = vmatpush.bf16.msrb.mxu1 %v15869_v8  ;;  %6358 = vmatpush.bf16.msrb.mxu3 %v12545_v14  ;;  %v12449_v10 = vor.u32 %v18347_v0, %v12448_v63  ;;  %v18275_v14 = vld [vmem:[#allocation2 + $0x64] sm:$0xf0] }
 0x1c0   :  { %v15834_v15 = vld [vmem:[#allocation2 + $0x1d20] sm:$0xf0]  ;;  %v18515_v49 = vld [vmem:[#allocation2 + $0x7e4] sm:$0xf0] }
 0x1c1   :  { %v15837_v35 = vor.u32 %v19190_v13, %v15834_v15  ;;  %v19118_v37 = vld [vmem:[#allocation2 + $0x1ac4] sm:$0xf]  ;;  %6320 = vmatpush.bf16.msrb.mxu0 %v15581_v32  ;;  %6346 = vmatpush.bf16.msrb.mxu2 %v12257_v36  ;;  %v12160_v13 = vld [vmem:[#allocation2 + $0x48] sm:$0xf] }
 0x1c2   :  { %v15546_v39 = vld [vmem:[#allocation2 + $0x1ae0] sm:$0xf0]  ;;  %v12416_v15 = vld [vmem:[#allocation2 + $0x248] sm:$0xf]  ;;  %v12161_v31 = vor.u32 %v18275_v14, %v12160_v13 }
 0x1c3   :  { %v19182_v40 = vld [vmem:[#allocation2 + $0x1cc4] sm:$0xf]  ;;  %v15549_v50 = vor.u32 %v19118_v37, %v15546_v39  ;;  %6333 = vmatpush.bf16.msrb.mxu1 %v15837_v35  ;;  %6359 = vmatpush.bf16.msrb.mxu3 %v12513_v43  ;;  %v12128_v35 = vld [vmem:[#allocation2 + $0x8] sm:$0xf]  ;;  %v12417_v36 = vor.u32 %v18339_v16, %v12416_v15  ;;  %v6094_v43 = vpop.f32.mrf.mxu2  ;;  %v6107_v47 = vpop.f32.mrf.mxu3 }
 0x1c4   :  { %v15802_v46 = vld [vmem:[#allocation2 + $0x1ce0] sm:$0xf0]  ;;  %v18267_v37 = vld [vmem:[#allocation2 + $0x24] sm:$0xf0]  ;;  %v6118_v43 = vpop.f32.mrf.mxu0 }
 0x1c5   :  { %v15805_v55 = vor.u32 %v19182_v40, %v15802_v46  ;;  %v19110_v52 = vld [vmem:[#allocation2 + $0x1a84] sm:$0xf]  ;;  %6321 = vmatpush.bf16.msrb.mxu0 %v15549_v50  ;;  %6347 = vmatpush.bf16.msrb.mxu2 %v12225_v51  ;;  %v12384_v39 = vld [vmem:[#allocation2 + $0x208] sm:$0xf] }
 0x1c6   :  { %v15514_v53 = vld [vmem:[#allocation2 + $0x1aa0] sm:$0xf0]  ;;  %v18331_v40 = vld [vmem:[#allocation2 + $0x224] sm:$0xf0] }
 0x1c7   :  { %v19174_v54 = vld [vmem:[#allocation2 + $0x1c84] sm:$0xf]  ;;  %v15517_v2 = vor.u32 %v19110_v52, %v15514_v53  ;;  %6334 = vmatpush.bf16.msrb.mxu1 %v15805_v55  ;;  %6360 = vmatpush.bf16.msrb.mxu3 %v12481_v56  ;;  %v18451_v46 = vld [vmem:[#allocation2 + $0x5e4] sm:$0xf0]  ;;  %v12129_v52 = vor.u32 %v18267_v37, %v12128_v35  ;;  %v12385_v56 = vor.u32 %v18331_v40, %v12384_v39 }
 0x1c8   :  { %v15770_v58 = vld [vmem:[#allocation2 + $0x1ca0] sm:$0xf0]  ;;  %v13376_v50 = vld [vmem:[#allocation2 + $0x9c8] sm:$0xf]  ;;  %v12865_v57 = vor.u32 %v18451_v46, %v12864_v45 }
 0x1c9   :  { %v15773_v5 = vor.u32 %v19174_v54, %v15770_v58  ;;  %v19102_v7 = vld [vmem:[#allocation2 + $0x1a44] sm:$0xf]  ;;  %6322 = vmatpush.bf16.msrb.mxu0 %v15517_v2  ;;  %6348 = vmatpush.bf16.msrb.mxu2 %v12193_v6  ;;  %v18579_v55 = vld [vmem:[#allocation2 + $0x9e4] sm:$0xf0]  ;;  %v13121_v58 = vor.u32 %v18515_v49, %v13120_v11  ;;  %v6119_v11 = vadd.f32 %v6118_v43, %v20129_v4 }
 0x1ca   :  { %v15482_v8 = vld [vmem:[#allocation2 + $0x1a60] sm:$0xf0]  ;;  %v13632_v53 = vld [vmem:[#allocation2 + $0xbc8] sm:$0xf]  ;;  %v13377_v59 = vor.u32 %v18579_v55, %v13376_v50 }
 0x1cb   :  { %v19166_v9 = vld [vmem:[#allocation2 + $0x1c44] sm:$0xf]  ;;  %v15485_v17 = vor.u32 %v19102_v7, %v15482_v8  ;;  %6335 = vmatpush.bf16.msrb.mxu1 %v15773_v5  ;;  %6361 = vmatpush.bf16.msrb.mxu3 %v12449_v10  ;;  %v18643_v54 = vld [vmem:[#allocation2 + $0xbe4] sm:$0xf0] }
 0x1cc   :  { %v15738_v12 = vld [vmem:[#allocation2 + $0x1c60] sm:$0xf0]  ;;  %v12832_v60 = vld [vmem:[#allocation2 + $0x588] sm:$0xf]  ;;  %v13633_v63 = vor.u32 %v18643_v54, %v13632_v53 }
 0x1cd   :  { %v19094_v23 = vld [vmem:[#allocation2 + $0x1a04] sm:$0xf]  ;;  %v15741_v26 = vor.u32 %v19166_v9, %v15738_v12  ;;  %6323 = vmatpush.bf16.msrb.mxu0 %v15485_v17  ;;  %6349 = vmatpush.bf16.msrb.mxu2 %v12161_v31  ;;  %v18443_v61 = vld [vmem:[#allocation2 + $0x5a4] sm:$0xf0] }
 0x1ce   :  { %v15450_v24 = vld [vmem:[#allocation2 + $0x1a20] sm:$0xf0]  ;;  %v13088_v62 = vld [vmem:[#allocation2 + $0x788] sm:$0xf]  ;;  %v12833_v6 = vor.u32 %v18443_v61, %v12832_v60 }
 0x1cf   :  { %v19158_v32 = vld [vmem:[#allocation2 + $0x1c04] sm:$0xf]  ;;  %v15453_v48 = vor.u32 %v19094_v23, %v15450_v24  ;;  %6336 = vmatpush.bf16.msrb.mxu1 %v15741_v26  ;;  %6362 = vmatpush.bf16.msrb.mxu3 %v12417_v36  ;;  %v18507_v0 = vld [vmem:[#allocation2 + $0x7a4] sm:$0xf0] }
 0x1d0   :  { %v15706_v34 = vld [vmem:[#allocation2 + $0x1c20] sm:$0xf0]  ;;  %v13344_v1 = vld [vmem:[#allocation2 + $0x988] sm:$0xf]  ;;  %v13089_v7 = vor.u32 %v18507_v0, %v13088_v62 }
 0x1d1   :  { %v15709_v51 = vor.u32 %v19158_v32, %v15706_v34  ;;  %6324 = vmatpush.bf16.msrb.mxu0 %v15453_v48  ;;  %v18571_v2 = vld [vmem:[#allocation2 + $0x9a4] sm:$0xf0]  ;;  %6350 = vmatpush.bf16.msrb.mxu2 %v12129_v52  ;;  %v6131_v48 = vpop.f32.mrf.mxu1 }
 0x1d2   :  { %v13600_v3 = vld [vmem:[#allocation2 + $0xb88] sm:$0xf]  ;;  %v13345_v8 = vor.u32 %v18571_v2, %v13344_v1  ;;  %v6132_v54 = vadd.f32 %v6131_v48, %v6119_v11 }
 0x1d3   :  { %6337 = vmatpush.bf16.msrb.mxu1 %v15709_v51  ;;  %v18635_v5 = vld [vmem:[#allocation2 + $0xba4] sm:$0xf0]  ;;  %6363 = vmatpush.bf16.msrb.mxu3 %v12385_v56 }
 0x1d4   :  { %v12800_v9 = vld [vmem:[#allocation2 + $0x548] sm:$0xf]  ;;  %6325 = vmatmul.bf16.vlgmr.msrb.gmra.mxu0 %v20105_v28  ;;  %v13601_v13 = vor.u32 %v18635_v5, %v13600_v3  ;;  %6351 = vmatmul.bf16.vlgmr.msrb.gmra.mxu2 %v20049_v19  ;;  %v6144_v3 = vpop.f32.mrf.mxu2 }
 0x1d5   :  { %6369 = vmatpush.bf16.msra.mxu0 %v12865_v57  ;;  %6395 = vmatpush.bf16.msra.mxu2 %v13377_v59  ;;  %v18435_v10 = vld [vmem:[#allocation2 + $0x564] sm:$0xf0] }
 0x1d6   :  { %v13056_v12 = vld [vmem:[#allocation2 + $0x748] sm:$0xf]  ;;  %6338 = vmatmul.bf16.vlgmr.msrb.gmra.mxu1 %v20103_v27  ;;  %v12801_v24 = vor.u32 %v18435_v10, %v12800_v9  ;;  %6364 = vmatmul.bf16.vlgmr.msrb.gmra.mxu3 %v20053_v22 }
 0x1d7   :  { %6382 = vmatpush.bf16.msra.mxu1 %v13121_v58  ;;  %6408 = vmatpush.bf16.msra.mxu3 %v13633_v63  ;;  %v18499_v14 = vld [vmem:[#allocation2 + $0x764] sm:$0xf0] }
 0x1d8   :  { %v13312_v15 = vld [vmem:[#allocation2 + $0x948] sm:$0xf]  ;;  %v13057_v26 = vor.u32 %v18499_v14, %v13056_v12  ;;  %v20138_v12 = vpop.f32.mrf.mxu3 }
 0x1d9   :  { %v18563_v16 = vld [vmem:[#allocation2 + $0x964] sm:$0xf0]  ;;  %6370 = vmatpush.bf16.msra.mxu0 %v12833_v6  ;;  %6396 = vmatpush.bf16.msra.mxu2 %v13345_v8  ;;  %v20136_v8 = vadd.f32 %v6144_v3, %v6132_v54 }
 0x1da   :  { %v13568_v17 = vld [vmem:[#allocation2 + $0xb48] sm:$0xf]  ;;  %v13313_v31 = vor.u32 %v18563_v16, %v13312_v15  ;;  %v6133_v15 = vpop.f32.mrf.mxu1 }
 0x1db   :  { %v18627_v23 = vld [vmem:[#allocation2 + $0xb64] sm:$0xf0]  ;;  %6383 = vmatpush.bf16.msra.mxu1 %v13089_v7  ;;  %6409 = vmatpush.bf16.msra.mxu3 %v13601_v13  ;;  %v6120_v13 = vpop.f32.mrf.mxu0 }
 0x1dc   :  { %v12768_v32 = vld [vmem:[#allocation2 + $0x508] sm:$0xf]  ;;  %v13569_v36 = vor.u32 %v18627_v23, %v13568_v17 }
 0x1dd   :  { %v18427_v34 = vld [vmem:[#allocation2 + $0x524] sm:$0xf0]  ;;  %6371 = vmatpush.bf16.msra.mxu0 %v12801_v24  ;;  %6397 = vmatpush.bf16.msra.mxu2 %v13313_v31 }
 0x1de   :  { %v13024_v35 = vld [vmem:[#allocation2 + $0x708] sm:$0xf]  ;;  %v12769_v47 = vor.u32 %v18427_v34, %v12768_v32 }
 0x1df   :  { %v18491_v37 = vld [vmem:[#allocation2 + $0x724] sm:$0xf0]  ;;  %6384 = vmatpush.bf16.msra.mxu1 %v13057_v26  ;;  %6410 = vmatpush.bf16.msra.mxu3 %v13569_v36 }
 0x1e0   :  { %v13280_v39 = vld [vmem:[#allocation2 + $0x908] sm:$0xf]  ;;  %v13025_v49 = vor.u32 %v18491_v37, %v13024_v35 }
 0x1e1   :  { %v18555_v40 = vld [vmem:[#allocation2 + $0x924] sm:$0xf0]  ;;  %6372 = vmatpush.bf16.msra.mxu0 %v12769_v47 }
 0x1e2   :  { %v13536_v45 = vld [vmem:[#allocation2 + $0xb08] sm:$0xf]  ;;  %v13281_v50 = vor.u32 %v18555_v40, %v13280_v39 }
 0x1e3   :  { %v18619_v46 = vld [vmem:[#allocation2 + $0xb24] sm:$0xf0]  ;;  %6385 = vmatpush.bf16.msra.mxu1 %v13025_v49 }
 0x1e4   :  { %v12736_v55 = vld [vmem:[#allocation2 + $0x4c8] sm:$0xf]  ;;  %v13537_v53 = vor.u32 %v18619_v46, %v13536_v45  ;;  %6398 = vmatpush.bf16.msra.mxu2 %v13281_v50 }
 0x1e5   :  { %v18419_v51 = vld [vmem:[#allocation2 + $0x4e4] sm:$0xf0] }
 0x1e6   :  { %v12992_v52 = vld [vmem:[#allocation2 + $0x6c8] sm:$0xf]  ;;  %v12737_v61 = vor.u32 %v18419_v51, %v12736_v55  ;;  %6411 = vmatpush.bf16.msra.mxu3 %v13537_v53 }
 0x1e7   :  { %v18483_v56 = vld [vmem:[#allocation2 + $0x6e4] sm:$0xf0] }
 0x1e8   :  { %v13248_v57 = vld [vmem:[#allocation2 + $0x8c8] sm:$0xf]  ;;  %v12993_v4 = vor.u32 %v18483_v56, %v12992_v52  ;;  %6373 = vmatpush.bf16.msra.mxu0 %v12737_v61  ;;  %v6146_v52 = vpop.f32.mrf.mxu2 }
 0x1e9   :  { %v18547_v58 = vld [vmem:[#allocation2 + $0x8e4] sm:$0xf0] }
 0x1ea   :  { %v13504_v59 = vld [vmem:[#allocation2 + $0xac8] sm:$0xf]  ;;  %v13249_v62 = vor.u32 %v18547_v58, %v13248_v57  ;;  %6386 = vmatpush.bf16.msra.mxu1 %v12993_v4  ;;  %v6159_v57 = vpop.f32.mrf.mxu3 }
 0x1eb   :  { %v18611_v60 = vld [vmem:[#allocation2 + $0xae4] sm:$0xf0] }
 0x1ec   :  { %v12704_v63 = vld [vmem:[#allocation2 + $0x488] sm:$0xf]  ;;  %v13505_v2 = vor.u32 %v18611_v60, %v13504_v59  ;;  %6399 = vmatpush.bf16.msra.mxu2 %v13249_v62 }
 0x1ed   :  { %v18411_v0 = vld [vmem:[#allocation2 + $0x4a4] sm:$0xf0] }
 0x1ee   :  { %v12960_v1 = vld [vmem:[#allocation2 + $0x688] sm:$0xf]  ;;  %v12705_v14 = vor.u32 %v18411_v0, %v12704_v63  ;;  %6412 = vmatpush.bf16.msra.mxu3 %v13505_v2 }
 0x1ef   :  { %v18475_v5 = vld [vmem:[#allocation2 + $0x6a4] sm:$0xf0] }
 0x1f0   :  { %v13216_v6 = vld [vmem:[#allocation2 + $0x888] sm:$0xf]  ;;  %v12961_v16 = vor.u32 %v18475_v5, %v12960_v1  ;;  %6374 = vmatpush.bf16.msra.mxu0 %v12705_v14 }
 0x1f1   :  { %v18539_v7 = vld [vmem:[#allocation2 + $0x8a4] sm:$0xf0] }
 0x1f2   :  { %v13472_v9 = vld [vmem:[#allocation2 + $0xa88] sm:$0xf]  ;;  %v13217_v17 = vor.u32 %v18539_v7, %v13216_v6  ;;  %6387 = vmatpush.bf16.msra.mxu1 %v12961_v16 }
 0x1f3   :  { %v18603_v10 = vld [vmem:[#allocation2 + $0xaa4] sm:$0xf0] }
 0x1f4   :  { %v12672_v23 = vld [vmem:[#allocation2 + $0x448] sm:$0xf]  ;;  %v13473_v31 = vor.u32 %v18603_v10, %v13472_v9  ;;  %6400 = vmatpush.bf16.msra.mxu2 %v13217_v17 }
 0x1f5   :  { %v18403_v24 = vld [vmem:[#allocation2 + $0x464] sm:$0xf0] }
 0x1f6   :  { %v12928_v26 = vld [vmem:[#allocation2 + $0x648] sm:$0xf]  ;;  %v12673_v39 = vor.u32 %v18403_v24, %v12672_v23  ;;  %6413 = vmatpush.bf16.msra.mxu3 %v13473_v31 }
 0x1f7   :  { %v18467_v32 = vld [vmem:[#allocation2 + $0x664] sm:$0xf0] }
 0x1f8   :  { %v13184_v34 = vld [vmem:[#allocation2 + $0x848] sm:$0xf]  ;;  %v12929_v45 = vor.u32 %v18467_v32, %v12928_v26  ;;  %6375 = vmatpush.bf16.msra.mxu0 %v12673_v39 }
 0x1f9   :  { %v18531_v35 = vld [vmem:[#allocation2 + $0x864] sm:$0xf0] }
 0x1fa   :  { %v13440_v36 = vld [vmem:[#allocation2 + $0xa48] sm:$0xf]  ;;  %v13185_v46 = vor.u32 %v18531_v35, %v13184_v34  ;;  %6388 = vmatpush.bf16.msra.mxu1 %v12929_v45  ;;  %v20140_v35 = vld [vmem:[#allocation4] sm:$0xff] }
 0x1fb   :  { %v18595_v37 = vld [vmem:[#allocation2 + $0xa64] sm:$0xf0] }
 0x1fc   :  { %v12640_v40 = vld [vmem:[#allocation2 + $0x408] sm:$0xf]  ;;  %v13441_v49 = vor.u32 %v18595_v37, %v13440_v36  ;;  %6401 = vmatpush.bf16.msra.mxu2 %v13185_v46  ;;  %v1085_v36 = vperm.slane %v20140_v35, 1 }
 0x1fd   :  { %v18395_v43 = vld [vmem:[#allocation2 + $0x424] sm:$0xf0] }
 0x1fe   :  { %v12896_v11 = vld [vmem:[#allocation2 + $0x608] sm:$0xf]  ;;  %v12641_v58 = vor.u32 %v18395_v43, %v12640_v40  ;;  %6414 = vmatpush.bf16.msra.mxu3 %v13441_v49  ;;  %v6158_v49 = vadd.f32 %v20138_v12, %v1085_v36 }
 0x1ff   :  { %v18459_v47 = vld [vmem:[#allocation2 + $0x624] sm:$0xf0] }
 0x200   :  { %v13152_v48 = vld [vmem:[#allocation2 + $0x808] sm:$0xf]  ;;  %v12897_v4 = vor.u32 %v18459_v47, %v12896_v11  ;;  %6376 = vmatpush.bf16.msra.mxu0 %v12641_v58 }
 0x201   :  { %v18523_v50 = vld [vmem:[#allocation2 + $0x824] sm:$0xf0] }
 0x202   :  { %v13408_v55 = vld [vmem:[#allocation2 + $0xa08] sm:$0xf]  ;;  %v13153_v62 = vor.u32 %v18523_v50, %v13152_v48  ;;  %6389 = vmatpush.bf16.msra.mxu1 %v12897_v4 }
 0x203   :  { %v18587_v51 = vld [vmem:[#allocation2 + $0xa24] sm:$0xf0]  ;;  %6377 = vmatmul.bf16.vlgmr.msra.gmra.mxu0 %v20047_v18 }
 0x204   :  { %v13888_v53 = vld [vmem:[#allocation2 + $0xdc8] sm:$0xf]  ;;  %v13409_v1 = vor.u32 %v18587_v51, %v13408_v55  ;;  %6402 = vmatpush.bf16.msra.mxu2 %v13153_v62 }
 0x205   :  { %v18707_v54 = vld [vmem:[#allocation2 + $0xde4] sm:$0xf0]  ;;  %6390 = vmatmul.bf16.vlgmr.msra.gmra.mxu1 %v20051_v20 }
 0x206   :  { %v14144_v56 = vld [vmem:[#allocation2 + $0xfc8] sm:$0xf]  ;;  %v13889_v2 = vor.u32 %v18707_v54, %v13888_v53  ;;  %6415 = vmatpush.bf16.msra.mxu3 %v13409_v1  ;;  %v6183_v1 = vpop.f32.mrf.mxu1 }
 0x207   :  { %v18771_v59 = vld [vmem:[#allocation2 + $0xfe4] sm:$0xf0]  ;;  %6403 = vmatmul.bf16.vlgmr.msra.gmra.mxu2 %v20067_v41 }
 0x208   :  { %v14400_v60 = vld [vmem:[#allocation2 + $0x11c8] sm:$0xf]  ;;  %v14145_v3 = vor.u32 %v18771_v59, %v14144_v56  ;;  %6421 = vmatpush.bf16.msrb.mxu0 %v13889_v2 }
 0x209   :  { %v18835_v61 = vld [vmem:[#allocation2 + $0x11e4] sm:$0xf0]  ;;  %6416 = vmatmul.bf16.vlgmr.msra.gmra.mxu3 %v20071_v44 }
 0x20a   :  { %v14656_v63 = vld [vmem:[#allocation2 + $0x13c8] sm:$0xf]  ;;  %v14401_v5 = vor.u32 %v18835_v61, %v14400_v60  ;;  %6434 = vmatpush.bf16.msrb.mxu1 %v14145_v3  ;;  %v6170_v60 = vpop.f32.mrf.mxu0 }
 0x20b   :  { %v18899_v0 = vld [vmem:[#allocation2 + $0x13e4] sm:$0xf0] }
 0x20c   :  { %v13856_v6 = vld [vmem:[#allocation2 + $0xd88] sm:$0xf]  ;;  %v14657_v10 = vor.u32 %v18899_v0, %v14656_v63  ;;  %6447 = vmatpush.bf16.msrb.mxu2 %v14401_v5  ;;  %v6171_v0 = vadd.f32 %v6170_v60, %v6158_v49 }
 0x20d   :  { %v18699_v7 = vld [vmem:[#allocation2 + $0xda4] sm:$0xf0] }
 0x20e   :  { %v14112_v9 = vld [vmem:[#allocation2 + $0xf88] sm:$0xf]  ;;  %v13857_v23 = vor.u32 %v18699_v7, %v13856_v6  ;;  %6460 = vmatpush.bf16.msrb.mxu3 %v14657_v10  ;;  %v6184_v10 = vadd.f32 %v6183_v1, %v6171_v0 }
 0x20f   :  { %v18763_v13 = vld [vmem:[#allocation2 + $0xfa4] sm:$0xf0] }
 0x210   :  { %v14368_v14 = vld [vmem:[#allocation2 + $0x1188] sm:$0xf]  ;;  %v14113_v26 = vor.u32 %v18763_v13, %v14112_v9  ;;  %6422 = vmatpush.bf16.msrb.mxu0 %v13857_v23 }
 0x211   :  { %v18827_v15 = vld [vmem:[#allocation2 + $0x11a4] sm:$0xf0] }
 0x212   :  { %v14624_v16 = vld [vmem:[#allocation2 + $0x1388] sm:$0xf]  ;;  %v14369_v31 = vor.u32 %v18827_v15, %v14368_v14  ;;  %6435 = vmatpush.bf16.msrb.mxu1 %v14113_v26 }
 0x213   :  { %v18891_v17 = vld [vmem:[#allocation2 + $0x13a4] sm:$0xf0] }
 0x214   :  { %v13824_v24 = vld [vmem:[#allocation2 + $0xd48] sm:$0xf]  ;;  %v14625_v37 = vor.u32 %v18891_v17, %v14624_v16  ;;  %6448 = vmatpush.bf16.msrb.mxu2 %v14369_v31 }
 0x215   :  { %v18691_v32 = vld [vmem:[#allocation2 + $0xd64] sm:$0xf0] }
 0x216   :  { %v14080_v34 = vld [vmem:[#allocation2 + $0xf48] sm:$0xf]  ;;  %v13825_v11 = vor.u32 %v18691_v32, %v13824_v24  ;;  %6461 = vmatpush.bf16.msrb.mxu3 %v14625_v37  ;;  %v6196_v24 = vpop.f32.mrf.mxu2  ;;  %v6209_v37 = vpop.f32.mrf.mxu3 }
 0x217   :  { %v18755_v39 = vld [vmem:[#allocation2 + $0xf64] sm:$0xf0]  ;;  %v6197_v36 = vadd.f32 %v6196_v24, %v6184_v10 }
 0x218   :  { %v14336_v40 = vld [vmem:[#allocation2 + $0x1148] sm:$0xf]  ;;  %v14081_v47 = vor.u32 %v18755_v39, %v14080_v34  ;;  %6423 = vmatpush.bf16.msrb.mxu0 %v13825_v11 }
 0x219   :  { %v18819_v43 = vld [vmem:[#allocation2 + $0x1164] sm:$0xf0] }
 0x21a   :  { %v14592_v45 = vld [vmem:[#allocation2 + $0x1348] sm:$0xf]  ;;  %v14337_v48 = vor.u32 %v18819_v43, %v14336_v40  ;;  %6436 = vmatpush.bf16.msrb.mxu1 %v14081_v47 }
 0x21b   :  { %v18883_v46 = vld [vmem:[#allocation2 + $0x1364] sm:$0xf0] }
 0x21c   :  { %v13792_v50 = vld [vmem:[#allocation2 + $0xd08] sm:$0xf]  ;;  %v14593_v52 = vor.u32 %v18883_v46, %v14592_v45  ;;  %6449 = vmatpush.bf16.msrb.mxu2 %v14337_v48  ;;  %v20148_v45 = vadd.f32 %v6209_v37, %v6197_v36  ;;  %v6172_v46 = vpop.f32.mrf.mxu0 }
 0x21d   :  { %v18683_v55 = vld [vmem:[#allocation2 + $0xd24] sm:$0xf0] }
 0x21e   :  { %v14048_v51 = vld [vmem:[#allocation2 + $0xf08] sm:$0xf]  ;;  %v13793_v59 = vor.u32 %v18683_v55, %v13792_v50  ;;  %6462 = vmatpush.bf16.msrb.mxu3 %v14593_v52  ;;  %v6185_v55 = vpop.f32.mrf.mxu1  ;;  %v6198_v0 = vpop.f32.mrf.mxu2 }
 0x21f   :  { %v18747_v53 = vld [vmem:[#allocation2 + $0xf24] sm:$0xf0] }
 0x220   :  { %v14304_v54 = vld [vmem:[#allocation2 + $0x1108] sm:$0xf]  ;;  %v14049_v61 = vor.u32 %v18747_v53, %v14048_v51  ;;  %6424 = vmatpush.bf16.msrb.mxu0 %v13793_v59 }
 0x221   :  { %v18811_v56 = vld [vmem:[#allocation2 + $0x1124] sm:$0xf0] }
 0x222   :  { %v14560_v57 = vld [vmem:[#allocation2 + $0x1308] sm:$0xf]  ;;  %v14305_v4 = vor.u32 %v18811_v56, %v14304_v54  ;;  %6437 = vmatpush.bf16.msrb.mxu1 %v14049_v61 }
 0x223   :  { %v18875_v58 = vld [vmem:[#allocation2 + $0x1324] sm:$0xf0] }
 0x224   :  { %v13760_v62 = vld [vmem:[#allocation2 + $0xcc8] sm:$0xf]  ;;  %v14561_v2 = vor.u32 %v18875_v58, %v14560_v57  ;;  %6450 = vmatpush.bf16.msrb.mxu2 %v14305_v4 }
 0x225   :  { %v18675_v63 = vld [vmem:[#allocation2 + $0xce4] sm:$0xf0] }
 0x226   :  { %v14016_v12 = vld [vmem:[#allocation2 + $0xec8] sm:$0xf]  ;;  %v13761_v13 = vor.u32 %v18675_v63, %v13760_v62  ;;  %6463 = vmatpush.bf16.msrb.mxu3 %v14561_v2 }
 0x227   :  { %v18739_v3 = vld [vmem:[#allocation2 + $0xee4] sm:$0xf0] }
 0x228   :  { %v14272_v5 = vld [vmem:[#allocation2 + $0x10c8] sm:$0xf]  ;;  %v14017_v14 = vor.u32 %v18739_v3, %v14016_v12  ;;  %6425 = vmatpush.bf16.msrb.mxu0 %v13761_v13 }
 0x229   :  { %v18803_v6 = vld [vmem:[#allocation2 + $0x10e4] sm:$0xf0] }
 0x22a   :  { %v14528_v7 = vld [vmem:[#allocation2 + $0x12c8] sm:$0xf]  ;;  %v14273_v15 = vor.u32 %v18803_v6, %v14272_v5  ;;  %6438 = vmatpush.bf16.msrb.mxu1 %v14017_v14  ;;  %v6211_v6 = vpop.f32.mrf.mxu3 }
 0x22b   :  { %v18867_v9 = vld [vmem:[#allocation2 + $0x12e4] sm:$0xf0] }
 0x22c   :  { %v13728_v16 = vld [vmem:[#allocation2 + $0xc88] sm:$0xf]  ;;  %v14529_v26 = vor.u32 %v18867_v9, %v14528_v7  ;;  %6451 = vmatpush.bf16.msrb.mxu2 %v14273_v15 }
 0x22d   :  { %v18667_v17 = vld [vmem:[#allocation2 + $0xca4] sm:$0xf0] }
 0x22e   :  { %v13984_v23 = vld [vmem:[#allocation2 + $0xe88] sm:$0xf]  ;;  %v13729_v43 = vor.u32 %v18667_v17, %v13728_v16  ;;  %6464 = vmatpush.bf16.msrb.mxu3 %v14529_v26 }
 0x22f   :  { %v18731_v31 = vld [vmem:[#allocation2 + $0xea4] sm:$0xf0] }
 0x230   :  { %v14240_v32 = vld [vmem:[#allocation2 + $0x1088] sm:$0xf]  ;;  %v13985_v11 = vor.u32 %v18731_v31, %v13984_v23  ;;  %6426 = vmatpush.bf16.msrb.mxu0 %v13729_v43 }
 0x231   :  { %v18795_v34 = vld [vmem:[#allocation2 + $0x10a4] sm:$0xf0] }
 0x232   :  { %v14496_v39 = vld [vmem:[#allocation2 + $0x1288] sm:$0xf]  ;;  %v14241_v47 = vor.u32 %v18795_v34, %v14240_v32  ;;  %6439 = vmatpush.bf16.msrb.mxu1 %v13985_v11 }
 0x233   :  { %v18859_v40 = vld [vmem:[#allocation2 + $0x12a4] sm:$0xf0] }
 0x234   :  { %v13696_v48 = vld [vmem:[#allocation2 + $0xc48] sm:$0xf]  ;;  %v14497_v51 = vor.u32 %v18859_v40, %v14496_v39  ;;  %6452 = vmatpush.bf16.msrb.mxu2 %v14241_v47 }
 0x235   :  { %v18659_v49 = vld [vmem:[#allocation2 + $0xc64] sm:$0xf0] }
 0x236   :  { %v13952_v50 = vld [vmem:[#allocation2 + $0xe48] sm:$0xf]  ;;  %v13697_v58 = vor.u32 %v18659_v49, %v13696_v48  ;;  %6465 = vmatpush.bf16.msrb.mxu3 %v14497_v51 }
 0x237   :  { %v18723_v52 = vld [vmem:[#allocation2 + $0xe64] sm:$0xf0] }
 0x238   :  { %v14208_v53 = vld [vmem:[#allocation2 + $0x1048] sm:$0xf]  ;;  %v13953_v61 = vor.u32 %v18723_v52, %v13952_v50  ;;  %6427 = vmatpush.bf16.msrb.mxu0 %v13697_v58 }
 0x239   :  { %v18787_v54 = vld [vmem:[#allocation2 + $0x1064] sm:$0xf0] }
 0x23a   :  { %v14464_v56 = vld [vmem:[#allocation2 + $0x1248] sm:$0xf]  ;;  %v14209_v4 = vor.u32 %v18787_v54, %v14208_v53  ;;  %6440 = vmatpush.bf16.msrb.mxu1 %v13953_v61 }
 0x23b   :  { %v18851_v57 = vld [vmem:[#allocation2 + $0x1264] sm:$0xf0] }
 0x23c   :  { %v13664_v59 = vld [vmem:[#allocation2 + $0xc08] sm:$0xf]  ;;  %v14465_v1 = vor.u32 %v18851_v57, %v14464_v56  ;;  %6453 = vmatpush.bf16.msrb.mxu2 %v14209_v4 }
 0x23d   :  { %v18651_v60 = vld [vmem:[#allocation2 + $0xc24] sm:$0xf0] }
 0x23e   :  { %v13920_v62 = vld [vmem:[#allocation2 + $0xe08] sm:$0xf]  ;;  %v13665_v13 = vor.u32 %v18651_v60, %v13664_v59  ;;  %6466 = vmatpush.bf16.msrb.mxu3 %v14465_v1 }
 0x23f   :  { %v18715_v63 = vld [vmem:[#allocation2 + $0xe24] sm:$0xf0] }
 0x240   :  { %v14176_v12 = vld [vmem:[#allocation2 + $0x1008] sm:$0xf]  ;;  %v13921_v17 = vor.u32 %v18715_v63, %v13920_v62  ;;  %6428 = vmatpush.bf16.msrb.mxu0 %v13665_v13 }
 0x241   :  { %v18779_v2 = vld [vmem:[#allocation2 + $0x1024] sm:$0xf0] }
 0x242   :  { %v14432_v3 = vld [vmem:[#allocation2 + $0x1208] sm:$0xf]  ;;  %v14177_v23 = vor.u32 %v18779_v2, %v14176_v12  ;;  %6441 = vmatpush.bf16.msrb.mxu1 %v13921_v17 }
 0x243   :  { %v18843_v5 = vld [vmem:[#allocation2 + $0x1224] sm:$0xf0]  ;;  %6429 = vmatmul.bf16.vlgmr.msrb.gmra.mxu0 %v20065_v38 }
 0x244   :  { %v14912_v7 = vld [vmem:[#allocation2 + $0x15c8] sm:$0xf]  ;;  %v14433_v31 = vor.u32 %v18843_v5, %v14432_v3  ;;  %6454 = vmatpush.bf16.msrb.mxu2 %v14177_v23 }
 0x245   :  { %v18963_v9 = vld [vmem:[#allocation2 + $0x15e4] sm:$0xf0]  ;;  %6442 = vmatmul.bf16.vlgmr.msrb.gmra.mxu1 %v20069_v42 }
 0x246   :  { %v15168_v10 = vld [vmem:[#allocation2 + $0x17c8] sm:$0xf]  ;;  %v14913_v32 = vor.u32 %v18963_v9, %v14912_v7  ;;  %6467 = vmatpush.bf16.msrb.mxu3 %v14433_v31  ;;  %v6222_v7 = vpop.f32.mrf.mxu0 }
 0x247   :  { %v19027_v14 = vld [vmem:[#allocation2 + $0x17e4] sm:$0xf0]  ;;  %6455 = vmatmul.bf16.vlgmr.msrb.gmra.mxu2 %v20083_v25  ;;  %v6223_v13 = vadd.f32 %v6222_v7, %v20148_v45 }
 0x248   :  { %v15424_v15 = vld [vmem:[#allocation2 + $0x19c8] sm:$0xf]  ;;  %v15169_v34 = vor.u32 %v19027_v14, %v15168_v10  ;;  %6473 = vmatpush.bf16.msra.mxu0 %v14913_v32 }
 0x249   :  { %v19091_v16 = vld [vmem:[#allocation2 + $0x19e4] sm:$0xf0]  ;;  %6468 = vmatmul.bf16.vlgmr.msrb.gmra.mxu3 %v20087_v30 }
 0x24a   :  { %v15680_v24 = vld [vmem:[#allocation2 + $0x1bc8] sm:$0xf]  ;;  %v15425_v36 = vor.u32 %v19091_v16, %v15424_v15  ;;  %6486 = vmatpush.bf16.msra.mxu1 %v15169_v34  ;;  %v6235_v15 = vpop.f32.mrf.mxu1 }
 0x24b   :  { %v19155_v26 = vld [vmem:[#allocation2 + $0x1be4] sm:$0xf0]  ;;  %v6236_v32 = vadd.f32 %v6235_v15, %v6223_v13 }
 0x24c   :  { %v14880_v37 = vld [vmem:[#allocation2 + $0x1588] sm:$0xf]  ;;  %v15681_v43 = vor.u32 %v19155_v26, %v15680_v24  ;;  %6499 = vmatpush.bf16.msra.mxu2 %v15425_v36 }
 0x24d   :  { %v18955_v39 = vld [vmem:[#allocation2 + $0x15a4] sm:$0xf0] }
 0x24e   :  { %v15136_v40 = vld [vmem:[#allocation2 + $0x1788] sm:$0xf]  ;;  %v14881_v50 = vor.u32 %v18955_v39, %v14880_v37  ;;  %6512 = vmatpush.bf16.msra.mxu3 %v15681_v43 }
 0x24f   :  { %v19019_v46 = vld [vmem:[#allocation2 + $0x17a4] sm:$0xf0] }
 0x250   :  { %v15392_v11 = vld [vmem:[#allocation2 + $0x1988] sm:$0xf]  ;;  %v15137_v55 = vor.u32 %v19019_v46, %v15136_v40  ;;  %6474 = vmatpush.bf16.msra.mxu0 %v14881_v50  ;;  %v6248_v50 = vpop.f32.mrf.mxu2 }
 0x251   :  { %v19083_v47 = vld [vmem:[#allocation2 + $0x19a4] sm:$0xf0] }
 0x252   :  { %v15648_v48 = vld [vmem:[#allocation2 + $0x1b88] sm:$0xf]  ;;  %v15393_v51 = vor.u32 %v19083_v47, %v15392_v11  ;;  %6487 = vmatpush.bf16.msra.mxu1 %v15137_v55 }
 0x253   :  { %v19147_v49 = vld [vmem:[#allocation2 + $0x1ba4] sm:$0xf0] }
 0x254   :  { %v14848_v52 = vld [vmem:[#allocation2 + $0x1548] sm:$0xf]  ;;  %v15649_v56 = vor.u32 %v19147_v49, %v15648_v48  ;;  %6500 = vmatpush.bf16.msra.mxu2 %v15393_v51 }
 0x255   :  { %v18947_v53 = vld [vmem:[#allocation2 + $0x1564] sm:$0xf0] }
 0x256   :  { %v15104_v54 = vld [vmem:[#allocation2 + $0x1748] sm:$0xf]  ;;  %v14849_v4 = vor.u32 %v18947_v53, %v14848_v52  ;;  %6513 = vmatpush.bf16.msra.mxu3 %v15649_v56  ;;  %v6249_v53 = vadd.f32 %v6248_v50, %v6236_v32  ;;  %v12866_v50 = vld [vmem:[#allocation2 + $0x5e8] sm:$0xf0] }
 0x257   :  { %v19011_v57 = vld [vmem:[#allocation2 + $0x1764] sm:$0xf0] }
 0x258   :  { %v15360_v58 = vld [vmem:[#allocation2 + $0x1948] sm:$0xf]  ;;  %v15105_v62 = vor.u32 %v19011_v57, %v15104_v54  ;;  %6475 = vmatpush.bf16.msra.mxu0 %v14849_v4  ;;  %v6261_v54 = vpop.f32.mrf.mxu3 }
 0x259   :  { %v19075_v59 = vld [vmem:[#allocation2 + $0x1964] sm:$0xf0] }
 0x25a   :  { %v15616_v60 = vld [vmem:[#allocation2 + $0x1b48] sm:$0xf]  ;;  %v15361_v63 = vor.u32 %v19075_v59, %v15360_v58  ;;  %6488 = vmatpush.bf16.msra.mxu1 %v15105_v62  ;;  %v6224_v58 = vpop.f32.mrf.mxu0 }
 0x25b   :  { %v19139_v61 = vld [vmem:[#allocation2 + $0x1b64] sm:$0xf0] }
 0x25c   :  { %v14816_v12 = vld [vmem:[#allocation2 + $0x1508] sm:$0xf]  ;;  %v15617_v2 = vor.u32 %v19139_v61, %v15616_v60  ;;  %6501 = vmatpush.bf16.msra.mxu2 %v15361_v63  ;;  %v6237_v60 = vpop.f32.mrf.mxu1  ;;  %v20155_v61 = vadd.f32 %v6261_v54, %v6249_v53 }
 0x25d   :  { %v18939_v0 = vld [vmem:[#allocation2 + $0x1524] sm:$0xf0]  ;;  %v18375_v60 = vld [vmem:[#allocation2 + $0x38c] sm:$0xf] }
 0x25e   :  { %v15072_v1 = vld [vmem:[#allocation2 + $0x1708] sm:$0xf]  ;;  %v14817_v14 = vor.u32 %v18939_v0, %v14816_v12  ;;  %6514 = vmatpush.bf16.msra.mxu3 %v15617_v2 }
 0x25f   :  { %v19003_v3 = vld [vmem:[#allocation2 + $0x1724] sm:$0xf0] }
 0x260   :  { %v15328_v5 = vld [vmem:[#allocation2 + $0x1908] sm:$0xf]  ;;  %v15073_v16 = vor.u32 %v19003_v3, %v15072_v1  ;;  %6476 = vmatpush.bf16.msra.mxu0 %v14817_v14 }
 0x261   :  { %v19067_v6 = vld [vmem:[#allocation2 + $0x1924] sm:$0xf0] }
 0x262   :  { %v15584_v9 = vld [vmem:[#allocation2 + $0x1b08] sm:$0xf]  ;;  %v15329_v17 = vor.u32 %v19067_v6, %v15328_v5  ;;  %6489 = vmatpush.bf16.msra.mxu1 %v15073_v16 }
 0x263   :  { %v19131_v10 = vld [vmem:[#allocation2 + $0x1b24] sm:$0xf0] }
 0x264   :  { %v14784_v23 = vld [vmem:[#allocation2 + $0x14c8] sm:$0xf]  ;;  %v15585_v31 = vor.u32 %v19131_v10, %v15584_v9  ;;  %6502 = vmatpush.bf16.msra.mxu2 %v15329_v17 }
 0x265   :  { %v18931_v24 = vld [vmem:[#allocation2 + $0x14e4] sm:$0xf0] }
 0x266   :  { %v15040_v26 = vld [vmem:[#allocation2 + $0x16c8] sm:$0xf]  ;;  %v14785_v43 = vor.u32 %v18931_v24, %v14784_v23  ;;  %6515 = vmatpush.bf16.msra.mxu3 %v15585_v31 }
 0x267   :  { %v18995_v34 = vld [vmem:[#allocation2 + $0x16e4] sm:$0xf0] }
 0x268   :  { %v15296_v36 = vld [vmem:[#allocation2 + $0x18c8] sm:$0xf]  ;;  %v15041_v45 = vor.u32 %v18995_v34, %v15040_v26  ;;  %6477 = vmatpush.bf16.msra.mxu0 %v14785_v43  ;;  %v6250_v34 = vpop.f32.mrf.mxu2 }
 0x269   :  { %v19059_v37 = vld [vmem:[#allocation2 + $0x18e4] sm:$0xf0]  ;;  %v18359_v34 = vld [vmem:[#allocation2 + $0x30c] sm:$0xf] }
 0x26a   :  { %v15552_v39 = vld [vmem:[#allocation2 + $0x1ac8] sm:$0xf]  ;;  %v15297_v46 = vor.u32 %v19059_v37, %v15296_v36  ;;  %6490 = vmatpush.bf16.msra.mxu1 %v15041_v45  ;;  %v12354_v45 = vld [vmem:[#allocation2 + $0x1e8] sm:$0xf0] }
 0x26b   :  { %v19123_v40 = vld [vmem:[#allocation2 + $0x1ae4] sm:$0xf0] }
 0x26c   :  { %v14752_v11 = vld [vmem:[#allocation2 + $0x1488] sm:$0xf]  ;;  %v15553_v49 = vor.u32 %v19123_v40, %v15552_v39  ;;  %6503 = vmatpush.bf16.msra.mxu2 %v15297_v46  ;;  %v18319_v39 = vld [vmem:[#allocation2 + $0x1cc] sm:$0xf]  ;;  %v6263_v40 = vpop.f32.mrf.mxu3 }
 0x26d   :  { %v18923_v47 = vld [vmem:[#allocation2 + $0x14a4] sm:$0xf0]  ;;  %v18383_v46 = vld [vmem:[#allocation2 + $0x3cc] sm:$0xf] }
 0x26e   :  { %v15008_v48 = vld [vmem:[#allocation2 + $0x1688] sm:$0xf]  ;;  %v14753_v59 = vor.u32 %v18923_v47, %v14752_v11  ;;  %6516 = vmatpush.bf16.msra.mxu3 %v15553_v49  ;;  %v12610_v11 = vld [vmem:[#allocation2 + $0x3e8] sm:$0xf0] }
 0x26f   :  { %v18987_v55 = vld [vmem:[#allocation2 + $0x16a4] sm:$0xf0]  ;;  %v18447_v49 = vld [vmem:[#allocation2 + $0x5cc] sm:$0xf]  ;;  %v12613_v53 = vor.u32 %v18383_v46, %v12610_v11  ;;  %v6287_v46 = vpop.f32.mrf.mxu1 }
 0x270   :  { %v15264_v51 = vld [vmem:[#allocation2 + $0x1888] sm:$0xf]  ;;  %v15009_v4 = vor.u32 %v18987_v55, %v15008_v48  ;;  %6478 = vmatpush.bf16.msra.mxu0 %v14753_v59  ;;  %v12869_v58 = vor.u32 %v18447_v49, %v12866_v50  ;;  %v12322_v59 = vld [vmem:[#allocation2 + $0x1a8] sm:$0xf0] }
 0x271   :  { %v19051_v52 = vld [vmem:[#allocation2 + $0x18a4] sm:$0xf0]  ;;  %v12770_v40 = vld [vmem:[#allocation2 + $0x528] sm:$0xf0] }
 0x272   :  { %v15520_v56 = vld [vmem:[#allocation2 + $0x1a88] sm:$0xf]  ;;  %v15265_v62 = vor.u32 %v19051_v52, %v15264_v51  ;;  %6491 = vmatpush.bf16.msra.mxu1 %v15009_v4  ;;  %v12357_v52 = vor.u32 %v18319_v39, %v12354_v45  ;;  %v12578_v4 = vld [vmem:[#allocation2 + $0x3a8] sm:$0xf0] }
 0x273   :  { %v19115_v57 = vld [vmem:[#allocation2 + $0x1aa4] sm:$0xf0]  ;;  %v18423_v39 = vld [vmem:[#allocation2 + $0x50c] sm:$0xf] }
 0x274   :  { %v14720_v63 = vld [vmem:[#allocation2 + $0x1448] sm:$0xf]  ;;  %v15521_v1 = vor.u32 %v19115_v57, %v15520_v56  ;;  %6504 = vmatpush.bf16.msra.mxu2 %v15265_v62  ;;  %v18311_v57 = vld [vmem:[#allocation2 + $0x18c] sm:$0xf] }
 0x275   :  { %v18915_v12 = vld [vmem:[#allocation2 + $0x1464] sm:$0xf0]  ;;  %v18439_v62 = vld [vmem:[#allocation2 + $0x58c] sm:$0xf] }
 0x276   :  { %v14976_v0 = vld [vmem:[#allocation2 + $0x1648] sm:$0xf]  ;;  %v14721_v9 = vor.u32 %v18915_v12, %v14720_v63  ;;  %6517 = vmatpush.bf16.msra.mxu3 %v15521_v1  ;;  %v12834_v63 = vld [vmem:[#allocation2 + $0x5a8] sm:$0xf0]  ;;  %v12581_v1 = vor.u32 %v18375_v60, %v12578_v4 }
 0x277   :  { %v18979_v2 = vld [vmem:[#allocation2 + $0x1664] sm:$0xf0]  ;;  %v18287_v50 = vld [vmem:[#allocation2 + $0xcc] sm:$0xf] }
 0x278   :  { %v15232_v3 = vld [vmem:[#allocation2 + $0x1848] sm:$0xf]  ;;  %v14977_v14 = vor.u32 %v18979_v2, %v14976_v0  ;;  %6479 = vmatpush.bf16.msra.mxu0 %v14721_v9  ;;  %v12325_v0 = vor.u32 %v18311_v57, %v12322_v59  ;;  %v18367_v9 = vld [vmem:[#allocation2 + $0x34c] sm:$0xf] }
 0x279   :  { %v19043_v5 = vld [vmem:[#allocation2 + $0x1864] sm:$0xf0]  ;;  %v12738_v57 = vld [vmem:[#allocation2 + $0x4e8] sm:$0xf0] }
 0x27a   :  { %v15488_v6 = vld [vmem:[#allocation2 + $0x1a48] sm:$0xf]  ;;  %v15233_v15 = vor.u32 %v19043_v5, %v15232_v3  ;;  %6492 = vmatpush.bf16.msra.mxu1 %v14977_v14  ;;  %v18303_v5 = vld [vmem:[#allocation2 + $0x14c] sm:$0xf] }
 0x27b   :  { %v19107_v7 = vld [vmem:[#allocation2 + $0x1a64] sm:$0xf0]  ;;  %v12802_v14 = vld [vmem:[#allocation2 + $0x568] sm:$0xf0] }
 0x27c   :  { %v14688_v10 = vld [vmem:[#allocation2 + $0x1408] sm:$0xf]  ;;  %v15489_v24 = vor.u32 %v19107_v7, %v15488_v6  ;;  %6505 = vmatpush.bf16.msra.mxu2 %v15233_v15  ;;  %v12837_v6 = vor.u32 %v18439_v62, %v12834_v63  ;;  %v12290_v7 = vld [vmem:[#allocation2 + $0x168] sm:$0xf0] }
 0x27d   :  { %v18907_v13 = vld [vmem:[#allocation2 + $0x1424] sm:$0xf0]  ;;  %v18279_v62 = vld [vmem:[#allocation2 + $0x8c] sm:$0xf] }
 0x27e   :  { %v14944_v16 = vld [vmem:[#allocation2 + $0x1608] sm:$0xf]  ;;  %v14689_v43 = vor.u32 %v18907_v13, %v14688_v10  ;;  %6518 = vmatpush.bf16.msra.mxu3 %v15489_v24  ;;  %v12546_v10 = vld [vmem:[#allocation2 + $0x368] sm:$0xf0] }
 0x27f   :  { %v18971_v17 = vld [vmem:[#allocation2 + $0x1624] sm:$0xf0]  ;;  %v18431_v13 = vld [vmem:[#allocation2 + $0x54c] sm:$0xf] }
 0x280   :  { %v15200_v23 = vld [vmem:[#allocation2 + $0x1808] sm:$0xf]  ;;  %v14945_v47 = vor.u32 %v18971_v17, %v14944_v16  ;;  %6480 = vmatpush.bf16.msra.mxu0 %v14689_v43  ;;  %v12293_v16 = vor.u32 %v18303_v5, %v12290_v7  ;;  %v12549_v17 = vor.u32 %v18367_v9, %v12546_v10  ;;  %v6313_v5 = vpop.f32.mrf.mxu3  ;;  %v12706_v7 = vld [vmem:[#allocation2 + $0x4a8] sm:$0xf0] }
 0x281   :  { %v19035_v26 = vld [vmem:[#allocation2 + $0x1824] sm:$0xf0] }
 0x282   :  { %v15456_v31 = vld [vmem:[#allocation2 + $0x1a08] sm:$0xf]  ;;  %v15201_v48 = vor.u32 %v19035_v26, %v15200_v23  ;;  %6493 = vmatpush.bf16.msra.mxu1 %v14945_v47  ;;  %v18295_v26 = vld [vmem:[#allocation2 + $0x10c] sm:$0xf] }
 0x283   :  { %v19099_v32 = vld [vmem:[#allocation2 + $0x1a24] sm:$0xf0]  ;;  %6481 = vmatmul.bf16.vlgmr.msra.gmra.mxu0 %v20085_v29 }
 0x284   :  { %v15936_v36 = vld [vmem:[#allocation2 + $0x1dc8] sm:$0xf]  ;;  %v15457_v55 = vor.u32 %v19099_v32, %v15456_v31  ;;  %6506 = vmatpush.bf16.msra.mxu2 %v15201_v48  ;;  %v12805_v31 = vor.u32 %v18431_v13, %v12802_v14  ;;  %v12258_v32 = vld [vmem:[#allocation2 + $0x128] sm:$0xf0]  ;;  %v6289_v13 = vpop.f32.mrf.mxu1 }
 0x285   :  { %v19219_v37 = vld [vmem:[#allocation2 + $0x1de4] sm:$0xf0]  ;;  %6494 = vmatmul.bf16.vlgmr.msra.gmra.mxu1 %v20089_v33  ;;  %v12261_v11 = vor.u32 %v18295_v26, %v12258_v32  ;;  %v18335_v32 = vld [vmem:[#allocation2 + $0x24c] sm:$0xf] }
 0x286   :  { %v15937_v51 = vor.u32 %v19219_v37, %v15936_v36  ;;  %v15904_v54 = vld [vmem:[#allocation2 + $0x1d88] sm:$0xf]  ;;  %6519 = vmatpush.bf16.msra.mxu3 %v15457_v55  ;;  %6538 = vmatpush.bf16.msrb.mxu1 %v12357_v52  ;;  %v12514_v36 = vld [vmem:[#allocation2 + $0x328] sm:$0xf0]  ;;  %v6274_v37 = vpop.f32.mrf.mxu0  ;;  %v12773_v55 = vor.u32 %v18423_v39, %v12770_v40 }
 0x287   :  { %v19211_v56 = vld [vmem:[#allocation2 + $0x1da4] sm:$0xf0]  ;;  %6507 = vmatmul.bf16.vlgmr.msra.gmra.mxu2 %v20101_v21  ;;  %v6275_v43 = vadd.f32 %v6274_v37, %v20155_v61  ;;  %v12517_v47 = vor.u32 %v18359_v34, %v12514_v36  ;;  %v12226_v52 = vld [vmem:[#allocation2 + $0xe8] sm:$0xf0] }
 0x288   :  { %6525 = vmatpush.bf16.msrb.mxu0 %v15937_v51  ;;  %v15905_v12 = vor.u32 %v19211_v56, %v15904_v54  ;;  %6551 = vmatpush.bf16.msrb.mxu2 %v12613_v53  ;;  %v15872_v2 = vld [vmem:[#allocation2 + $0x1d48] sm:$0xf]  ;;  %v18351_v53 = vld [vmem:[#allocation2 + $0x2cc] sm:$0xf]  ;;  %v12229_v61 = vor.u32 %v18287_v50, %v12226_v52 }
 0x289   :  { %v19203_v3 = vld [vmem:[#allocation2 + $0x1d64] sm:$0xf0]  ;;  %6520 = vmatmul.bf16.vlgmr.msra.gmra.mxu3 %v20105_v28  ;;  %v6288_v51 = vadd.f32 %v6287_v46, %v6275_v43  ;;  %v12482_v54 = vld [vmem:[#allocation2 + $0x2e8] sm:$0xf0] }
 0x28a   :  { %6564 = vmatpush.bf16.msrb.mxu3 %v12869_v58  ;;  %v15873_v15 = vor.u32 %v19203_v3, %v15872_v2  ;;  %6539 = vmatpush.bf16.msrb.mxu1 %v12325_v0  ;;  %v15840_v23 = vld [vmem:[#allocation2 + $0x1d08] sm:$0xf]  ;;  %v18415_v56 = vld [vmem:[#allocation2 + $0x4cc] sm:$0xf]  ;;  %v12485_v59 = vor.u32 %v18351_v53, %v12482_v54 }
 0x28b   :  { %v19195_v24 = vld [vmem:[#allocation2 + $0x1d24] sm:$0xf0]  ;;  %v12741_v63 = vor.u32 %v18415_v56, %v12738_v57  ;;  %v12194_v0 = vld [vmem:[#allocation2 + $0xa8] sm:$0xf0]  ;;  %v6315_v57 = vpop.f32.mrf.mxu3 }
 0x28c   :  { %6526 = vmatpush.bf16.msrb.mxu0 %v15905_v12  ;;  %6552 = vmatpush.bf16.msrb.mxu2 %v12581_v1  ;;  %v15841_v45 = vor.u32 %v19195_v24, %v15840_v23  ;;  %v15808_v48 = vld [vmem:[#allocation2 + $0x1cc8] sm:$0xf]  ;;  %v6300_v12 = vpop.f32.mrf.mxu2  ;;  %v18343_v1 = vld [vmem:[#allocation2 + $0x28c] sm:$0xf] }
 0x28d   :  { %v19187_v49 = vld [vmem:[#allocation2 + $0x1ce4] sm:$0xf0]  ;;  %v12450_v2 = vld [vmem:[#allocation2 + $0x2a8] sm:$0xf0]  ;;  %v6301_v3 = vadd.f32 %v6300_v12, %v6288_v51 }
 0x28e   :  { %6565 = vmatpush.bf16.msrb.mxu3 %v12837_v6  ;;  %6540 = vmatpush.bf16.msrb.mxu1 %v12293_v16  ;;  %v15809_v58 = vor.u32 %v19187_v49, %v15808_v48  ;;  %v15776_v60 = vld [vmem:[#allocation2 + $0x1c88] sm:$0xf]  ;;  %v18407_v6 = vld [vmem:[#allocation2 + $0x48c] sm:$0xf]  ;;  %v6276_v9 = vpop.f32.mrf.mxu0  ;;  %v12453_v16 = vor.u32 %v18343_v1, %v12450_v2 }
 0x28f   :  { %v19179_v4 = vld [vmem:[#allocation2 + $0x1ca4] sm:$0xf0]  ;;  %v20162_v14 = vadd.f32 %v6313_v5, %v6301_v3  ;;  %v18271_v24 = vld [vmem:[#allocation2 + $0x4c] sm:$0xf]  ;;  %v12709_v26 = vor.u32 %v18407_v6, %v12706_v7 }
 0x290   :  { %6527 = vmatpush.bf16.msrb.mxu0 %v15873_v15  ;;  %6553 = vmatpush.bf16.msrb.mxu2 %v12549_v17  ;;  %v15777_v10 = vor.u32 %v19179_v4, %v15776_v60  ;;  %v12197_v15 = vor.u32 %v18279_v62, %v12194_v0  ;;  %v15744_v17 = vld [vmem:[#allocation2 + $0x1c48] sm:$0xf]  ;;  %v12418_v34 = vld [vmem:[#allocation2 + $0x268] sm:$0xf0] }
 0x291   :  { %v19171_v23 = vld [vmem:[#allocation2 + $0x1c64] sm:$0xf0]  ;;  %v18399_v36 = vld [vmem:[#allocation2 + $0x44c] sm:$0xf]  ;;  %v12421_v46 = vor.u32 %v18335_v32, %v12418_v34 }
 0x292   :  { %6566 = vmatpush.bf16.msrb.mxu3 %v12805_v31  ;;  %6541 = vmatpush.bf16.msrb.mxu1 %v12261_v11  ;;  %v12162_v31 = vld [vmem:[#allocation2 + $0x68] sm:$0xf0]  ;;  %v15745_v39 = vor.u32 %v19171_v23, %v15744_v17  ;;  %v15712_v40 = vld [vmem:[#allocation2 + $0x1c08] sm:$0xf] }
 0x293   :  { %v12674_v37 = vld [vmem:[#allocation2 + $0x468] sm:$0xf0]  ;;  %v19163_v43 = vld [vmem:[#allocation2 + $0x1c24] sm:$0xf0] }
 0x294   :  { %6528 = vmatpush.bf16.msrb.mxu0 %v15841_v45  ;;  %6554 = vmatpush.bf16.msrb.mxu2 %v12517_v47  ;;  %v12165_v45 = vor.u32 %v18271_v24, %v12162_v31  ;;  %v18263_v11 = vld [vmem:[#allocation2 + $0xc] sm:$0xf]  ;;  %v12677_v49 = vor.u32 %v18399_v36, %v12674_v37  ;;  %v6302_v52 = vpop.f32.mrf.mxu2 }
 0x295   :  { %v12130_v47 = vld [vmem:[#allocation2 + $0x28] sm:$0xf0] }
 0x296   :  { %6567 = vmatpush.bf16.msrb.mxu3 %v12773_v55  ;;  %6542 = vmatpush.bf16.msrb.mxu1 %v12229_v61  ;;  %v18327_v48 = vld [vmem:[#allocation2 + $0x20c] sm:$0xf]  ;;  %v12133_v4 = vor.u32 %v18263_v11, %v12130_v47 }
 0x297   :  { %v12386_v50 = vld [vmem:[#allocation2 + $0x228] sm:$0xf0] }
 0x298   :  { %6529 = vmatpush.bf16.msrb.mxu0 %v15809_v58  ;;  %6555 = vmatpush.bf16.msrb.mxu2 %v12485_v59  ;;  %v18391_v55 = vld [vmem:[#allocation2 + $0x40c] sm:$0xf]  ;;  %v15713_v58 = vor.u32 %v19163_v43, %v15712_v40  ;;  %v12389_v62 = vor.u32 %v18327_v48, %v12386_v50 }
 0x299   :  { %v12642_v51 = vld [vmem:[#allocation2 + $0x428] sm:$0xf0] }
 0x29a   :  { %6568 = vmatpush.bf16.msrb.mxu3 %v12741_v63  ;;  %6543 = vmatpush.bf16.msrb.mxu1 %v12197_v15  ;;  %v18511_v53 = vld [vmem:[#allocation2 + $0x7cc] sm:$0xf]  ;;  %v12645_v0 = vor.u32 %v18391_v55, %v12642_v51 }
 0x29b   :  { %v13122_v54 = vld [vmem:[#allocation2 + $0x7e8] sm:$0xf0] }
 0x29c   :  { %6530 = vmatpush.bf16.msrb.mxu0 %v15777_v10  ;;  %6556 = vmatpush.bf16.msrb.mxu2 %v12453_v16  ;;  %v18575_v56 = vld [vmem:[#allocation2 + $0x9cc] sm:$0xf]  ;;  %v13125_v1 = vor.u32 %v18511_v53, %v13122_v54  ;;  %v6326_v54 = vpop.f32.mrf.mxu0 }
 0x29d   :  { %v13378_v61 = vld [vmem:[#allocation2 + $0x9e8] sm:$0xf0] }
 0x29e   :  { %6569 = vmatpush.bf16.msrb.mxu3 %v12709_v26  ;;  %v18639_v59 = vld [vmem:[#allocation2 + $0xbcc] sm:$0xf]  ;;  %6544 = vmatpush.bf16.msrb.mxu1 %v12165_v45  ;;  %v13381_v2 = vor.u32 %v18575_v56, %v13378_v61 }
 0x29f   :  { %v13634_v60 = vld [vmem:[#allocation2 + $0xbe8] sm:$0xf0] }
 0x2a0   :  { %6531 = vmatpush.bf16.msrb.mxu0 %v15745_v39  ;;  %6557 = vmatpush.bf16.msrb.mxu2 %v12421_v46  ;;  %v18703_v63 = vld [vmem:[#allocation2 + $0xdcc] sm:$0xf]  ;;  %v13637_v3 = vor.u32 %v18639_v59, %v13634_v60  ;;  %v6339_v59 = vpop.f32.mrf.mxu1 }
 0x2a1   :  { %v13890_v12 = vld [vmem:[#allocation2 + $0xde8] sm:$0xf0] }
 0x2a2   :  { %6570 = vmatpush.bf16.msrb.mxu3 %v12677_v49  ;;  %v18503_v5 = vld [vmem:[#allocation2 + $0x78c] sm:$0xf]  ;;  %v13893_v9 = vor.u32 %v18703_v63, %v13890_v12  ;;  %6545 = vmatpush.bf16.msrb.mxu1 %v12133_v4 }
 0x2a3   :  { %v13090_v6 = vld [vmem:[#allocation2 + $0x7a8] sm:$0xf0] }
 0x2a4   :  { %v18567_v7 = vld [vmem:[#allocation2 + $0x98c] sm:$0xf]  ;;  %6532 = vmatpush.bf16.msrb.mxu0 %v15713_v58  ;;  %6558 = vmatpush.bf16.msrb.mxu2 %v12389_v62  ;;  %v13093_v23 = vor.u32 %v18503_v5, %v13090_v6  ;;  %v6327_v58 = vadd.f32 %v6326_v54, %v20162_v14  ;;  %v1086_v14 = vperm.slane %v20140_v35, 2  ;;  %v6328_v35 = vpop.f32.mrf.mxu0 }
 0x2a5   :  { %v13346_v10 = vld [vmem:[#allocation2 + $0x9a8] sm:$0xf0]  ;;  %6546 = vmatmul.bf16.vlgmr.msrb.gmra.mxu1 %v20049_v19 }
 0x2a6   :  { %v18631_v13 = vld [vmem:[#allocation2 + $0xb8c] sm:$0xf]  ;;  %6571 = vmatpush.bf16.msrb.mxu3 %v12645_v0  ;;  %6590 = vmatpush.bf16.msra.mxu1 %v13381_v2  ;;  %v13349_v24 = vor.u32 %v18567_v7, %v13346_v10 }
 0x2a7   :  { %v13602_v15 = vld [vmem:[#allocation2 + $0xba8] sm:$0xf0]  ;;  %6533 = vmatmul.bf16.vlgmr.msrb.gmra.mxu0 %v20103_v27  ;;  %6559 = vmatmul.bf16.vlgmr.msrb.gmra.mxu2 %v20053_v22 }
 0x2a8   :  { %v18695_v16 = vld [vmem:[#allocation2 + $0xd8c] sm:$0xf]  ;;  %6577 = vmatpush.bf16.msra.mxu0 %v13125_v1  ;;  %6603 = vmatpush.bf16.msra.mxu2 %v13637_v3  ;;  %v13605_v26 = vor.u32 %v18631_v13, %v13602_v15  ;;  %v20169_v1 = vadd.f32 %v6339_v59, %v6327_v58 }
 0x2a9   :  { %v13858_v17 = vld [vmem:[#allocation2 + $0xda8] sm:$0xf0]  ;;  %6572 = vmatmul.bf16.vlgmr.msrb.gmra.mxu3 %v20047_v18 }
 0x2aa   :  { %v18495_v31 = vld [vmem:[#allocation2 + $0x74c] sm:$0xf]  ;;  %6616 = vmatpush.bf16.msra.mxu3 %v13893_v9  ;;  %v13861_v36 = vor.u32 %v18695_v16, %v13858_v17  ;;  %6591 = vmatpush.bf16.msra.mxu1 %v13349_v24 }
 0x2ab   :  { %v13058_v32 = vld [vmem:[#allocation2 + $0x768] sm:$0xf0] }
 0x2ac   :  { %v18559_v34 = vld [vmem:[#allocation2 + $0x94c] sm:$0xf]  ;;  %6578 = vmatpush.bf16.msra.mxu0 %v13093_v23  ;;  %v13061_v46 = vor.u32 %v18495_v31, %v13058_v32  ;;  %6604 = vmatpush.bf16.msra.mxu2 %v13605_v26  ;;  %v6352_v32 = vpop.f32.mrf.mxu2 }
 0x2ad   :  { %v13314_v37 = vld [vmem:[#allocation2 + $0x968] sm:$0xf0] }
 0x2ae   :  { %v18623_v39 = vld [vmem:[#allocation2 + $0xb4c] sm:$0xf]  ;;  %v13317_v11 = vor.u32 %v18559_v34, %v13314_v37  ;;  %6617 = vmatpush.bf16.msra.mxu3 %v13861_v36  ;;  %v6353_v37 = vadd.f32 %v6352_v32, %v1086_v14 }
 0x2af   :  { %v13570_v40 = vld [vmem:[#allocation2 + $0xb68] sm:$0xf0] }
 0x2b0   :  { %v18687_v43 = vld [vmem:[#allocation2 + $0xd4c] sm:$0xf]  ;;  %v13573_v47 = vor.u32 %v18623_v39, %v13570_v40  ;;  %6579 = vmatpush.bf16.msra.mxu0 %v13061_v46  ;;  %6592 = vmatpush.bf16.msra.mxu1 %v13317_v11  ;;  %v6365_v39 = vpop.f32.mrf.mxu3 }
 0x2b1   :  { %v13826_v45 = vld [vmem:[#allocation2 + $0xd68] sm:$0xf0] }
 0x2b2   :  { %v18487_v48 = vld [vmem:[#allocation2 + $0x70c] sm:$0xf]  ;;  %v13829_v55 = vor.u32 %v18687_v43, %v13826_v45  ;;  %6605 = vmatpush.bf16.msra.mxu2 %v13573_v47  ;;  %v6341_v43 = vpop.f32.mrf.mxu1 }
 0x2b3   :  { %v13026_v49 = vld [vmem:[#allocation2 + $0x728] sm:$0xf0] }
 0x2b4   :  { %v18551_v50 = vld [vmem:[#allocation2 + $0x90c] sm:$0xf]  ;;  %v13029_v61 = vor.u32 %v18487_v48, %v13026_v49  ;;  %6618 = vmatpush.bf16.msra.mxu3 %v13829_v55  ;;  %v20172_v49 = vadd.f32 %v6365_v39, %v6353_v37 }
 0x2b5   :  { %v13282_v51 = vld [vmem:[#allocation2 + $0x928] sm:$0xf0] }
 0x2b6   :  { %v18615_v52 = vld [vmem:[#allocation2 + $0xb0c] sm:$0xf]  ;;  %v13285_v60 = vor.u32 %v18551_v50, %v13282_v51  ;;  %6580 = vmatpush.bf16.msra.mxu0 %v13029_v61 }
 0x2b7   :  { %v13538_v53 = vld [vmem:[#allocation2 + $0xb28] sm:$0xf0] }
 0x2b8   :  { %v18679_v56 = vld [vmem:[#allocation2 + $0xd0c] sm:$0xf]  ;;  %v13541_v4 = vor.u32 %v18615_v52, %v13538_v53  ;;  %6593 = vmatpush.bf16.msra.mxu1 %v13285_v60  ;;  %v6367_v14 = vpop.f32.mrf.mxu3 }
 0x2b9   :  { %v13794_v57 = vld [vmem:[#allocation2 + $0xd28] sm:$0xf0] }
 0x2ba   :  { %v18479_v62 = vld [vmem:[#allocation2 + $0x6cc] sm:$0xf]  ;;  %v13797_v0 = vor.u32 %v18679_v56, %v13794_v57  ;;  %6606 = vmatpush.bf16.msra.mxu2 %v13541_v4 }
 0x2bb   :  { %v12994_v63 = vld [vmem:[#allocation2 + $0x6e8] sm:$0xf0] }
 0x2bc   :  { %v18543_v12 = vld [vmem:[#allocation2 + $0x8cc] sm:$0xf]  ;;  %v12997_v9 = vor.u32 %v18479_v62, %v12994_v63  ;;  %6619 = vmatpush.bf16.msra.mxu3 %v13797_v0 }
 0x2bd   :  { %v13250_v2 = vld [vmem:[#allocation2 + $0x8e8] sm:$0xf0] }
 0x2be   :  { %v18607_v3 = vld [vmem:[#allocation2 + $0xacc] sm:$0xf]  ;;  %v13253_v10 = vor.u32 %v18543_v12, %v13250_v2  ;;  %6581 = vmatpush.bf16.msra.mxu0 %v12997_v9 }
 0x2bf   :  { %v13506_v5 = vld [vmem:[#allocation2 + $0xae8] sm:$0xf0] }
 0x2c0   :  { %v18671_v6 = vld [vmem:[#allocation2 + $0xccc] sm:$0xf]  ;;  %v13509_v13 = vor.u32 %v18607_v3, %v13506_v5  ;;  %6594 = vmatpush.bf16.msra.mxu1 %v13253_v10  ;;  %v6354_v3 = vpop.f32.mrf.mxu2 }
 0x2c1   :  { %v13762_v7 = vld [vmem:[#allocation2 + $0xce8] sm:$0xf0] }
 0x2c2   :  { %v18471_v15 = vld [vmem:[#allocation2 + $0x68c] sm:$0xf]  ;;  %v13765_v23 = vor.u32 %v18671_v6, %v13762_v7  ;;  %6607 = vmatpush.bf16.msra.mxu2 %v13509_v13 }
 0x2c3   :  { %v12962_v16 = vld [vmem:[#allocation2 + $0x6a8] sm:$0xf0] }
 0x2c4   :  { %v18535_v17 = vld [vmem:[#allocation2 + $0x88c] sm:$0xf]  ;;  %v12965_v40 = vor.u32 %v18471_v15, %v12962_v16  ;;  %6620 = vmatpush.bf16.msra.mxu3 %v13765_v23 }
 0x2c5   :  { %v13218_v24 = vld [vmem:[#allocation2 + $0x8a8] sm:$0xf0] }
 0x2c6   :  { %v18599_v26 = vld [vmem:[#allocation2 + $0xa8c] sm:$0xf]  ;;  %v13221_v45 = vor.u32 %v18535_v17, %v13218_v24  ;;  %6582 = vmatpush.bf16.msra.mxu0 %v12965_v40 }
 0x2c7   :  { %v13474_v31 = vld [vmem:[#allocation2 + $0xaa8] sm:$0xf0] }
 0x2c8   :  { %v18663_v34 = vld [vmem:[#allocation2 + $0xc8c] sm:$0xf]  ;;  %v13477_v46 = vor.u32 %v18599_v26, %v13474_v31  ;;  %6595 = vmatpush.bf16.msra.mxu1 %v13221_v45 }
 0x2c9   :  { %v13730_v36 = vld [vmem:[#allocation2 + $0xca8] sm:$0xf0] }
 0x2ca   :  { %v18463_v11 = vld [vmem:[#allocation2 + $0x64c] sm:$0xf]  ;;  %v13733_v50 = vor.u32 %v18663_v34, %v13730_v36  ;;  %6608 = vmatpush.bf16.msra.mxu2 %v13477_v46 }
 0x2cb   :  { %v12930_v47 = vld [vmem:[#allocation2 + $0x668] sm:$0xf0] }
 0x2cc   :  { %v18527_v48 = vld [vmem:[#allocation2 + $0x84c] sm:$0xf]  ;;  %v12933_v56 = vor.u32 %v18463_v11, %v12930_v47  ;;  %6621 = vmatpush.bf16.msra.mxu3 %v13733_v50 }
 0x2cd   :  { %v13186_v55 = vld [vmem:[#allocation2 + $0x868] sm:$0xf0] }
 0x2ce   :  { %v18591_v51 = vld [vmem:[#allocation2 + $0xa4c] sm:$0xf]  ;;  %v13189_v61 = vor.u32 %v18527_v48, %v13186_v55  ;;  %6583 = vmatpush.bf16.msra.mxu0 %v12933_v56 }
 0x2cf   :  { %v13442_v52 = vld [vmem:[#allocation2 + $0xa68] sm:$0xf0] }
 0x2d0   :  { %v18655_v53 = vld [vmem:[#allocation2 + $0xc4c] sm:$0xf]  ;;  %v13445_v59 = vor.u32 %v18591_v51, %v13442_v52  ;;  %6596 = vmatpush.bf16.msra.mxu1 %v13189_v61 }
 0x2d1   :  { %v13698_v54 = vld [vmem:[#allocation2 + $0xc68] sm:$0xf0] }
 0x2d2   :  { %v18455_v57 = vld [vmem:[#allocation2 + $0x60c] sm:$0xf]  ;;  %v13701_v63 = vor.u32 %v18655_v53, %v13698_v54  ;;  %6609 = vmatpush.bf16.msra.mxu2 %v13445_v59 }
 0x2d3   :  { %v12898_v58 = vld [vmem:[#allocation2 + $0x628] sm:$0xf0] }
 0x2d4   :  { %v18519_v60 = vld [vmem:[#allocation2 + $0x80c] sm:$0xf]  ;;  %v12901_v9 = vor.u32 %v18455_v57, %v12898_v58  ;;  %6622 = vmatpush.bf16.msra.mxu3 %v13701_v63 }
 0x2d5   :  { %v13154_v4 = vld [vmem:[#allocation2 + $0x828] sm:$0xf0] }
 0x2d6   :  { %v18583_v62 = vld [vmem:[#allocation2 + $0xa0c] sm:$0xf]  ;;  %v13157_v16 = vor.u32 %v18519_v60, %v13154_v4  ;;  %6584 = vmatpush.bf16.msra.mxu0 %v12901_v9  ;;  %v6378_v9 = vpop.f32.mrf.mxu0 }
 0x2d7   :  { %v13410_v12 = vld [vmem:[#allocation2 + $0xa28] sm:$0xf0] }
 0x2d8   :  { %v18647_v0 = vld [vmem:[#allocation2 + $0xc0c] sm:$0xf]  ;;  %v13413_v17 = vor.u32 %v18583_v62, %v13410_v12  ;;  %6597 = vmatpush.bf16.msra.mxu1 %v13157_v16 }
 0x2d9   :  { %v13666_v2 = vld [vmem:[#allocation2 + $0xc28] sm:$0xf0]  ;;  %6585 = vmatmul.bf16.vlgmr.msra.gmra.mxu0 %v20051_v20 }
 0x2da   :  { %v18767_v5 = vld [vmem:[#allocation2 + $0xfcc] sm:$0xf]  ;;  %v13669_v26 = vor.u32 %v18647_v0, %v13666_v2  ;;  %6610 = vmatpush.bf16.msra.mxu2 %v13413_v17 }
 0x2db   :  { %v14146_v6 = vld [vmem:[#allocation2 + $0xfe8] sm:$0xf0]  ;;  %6598 = vmatmul.bf16.vlgmr.msra.gmra.mxu1 %v20067_v41 }
 0x2dc   :  { %v18831_v7 = vld [vmem:[#allocation2 + $0x11cc] sm:$0xf]  ;;  %v14149_v31 = vor.u32 %v18767_v5, %v14146_v6  ;;  %6623 = vmatpush.bf16.msra.mxu3 %v13669_v26 }
 0x2dd   :  { %v14402_v10 = vld [vmem:[#allocation2 + $0x11e8] sm:$0xf0]  ;;  %6611 = vmatmul.bf16.vlgmr.msra.gmra.mxu2 %v20071_v44 }
 0x2de   :  { %v18895_v13 = vld [vmem:[#allocation2 + $0x13cc] sm:$0xf]  ;;  %v14405_v32 = vor.u32 %v18831_v7, %v14402_v10  ;;  %6629 = vmatpush.bf16.msrb.mxu0 %v14149_v31 }
 0x2df   :  { %v14658_v15 = vld [vmem:[#allocation2 + $0x13e8] sm:$0xf0]  ;;  %6624 = vmatmul.bf16.vlgmr.msra.gmra.mxu3 %v20065_v38 }
 0x2e0   :  { %v18959_v23 = vld [vmem:[#allocation2 + $0x15cc] sm:$0xf]  ;;  %v14661_v34 = vor.u32 %v18895_v13, %v14658_v15  ;;  %6642 = vmatpush.bf16.msrb.mxu1 %v14405_v32 }
 0x2e1   :  { %v14914_v24 = vld [vmem:[#allocation2 + $0x15e8] sm:$0xf0] }
 0x2e2   :  { %v18759_v36 = vld [vmem:[#allocation2 + $0xf8c] sm:$0xf]  ;;  %v14917_v35 = vor.u32 %v18959_v23, %v14914_v24  ;;  %6655 = vmatpush.bf16.msrb.mxu2 %v14661_v34  ;;  %v6379_v23 = vadd.f32 %v6378_v9, %v20172_v49  ;;  %v6391_v24 = vpop.f32.mrf.mxu1 }
 0x2e3   :  { %v14114_v37 = vld [vmem:[#allocation2 + $0xfa8] sm:$0xf0] }
 0x2e4   :  { %v18823_v39 = vld [vmem:[#allocation2 + $0x118c] sm:$0xf]  ;;  %v14117_v47 = vor.u32 %v18759_v36, %v14114_v37  ;;  %6668 = vmatpush.bf16.msrb.mxu3 %v14917_v35 }
 0x2e5   :  { %v14370_v40 = vld [vmem:[#allocation2 + $0x11a8] sm:$0xf0] }
 0x2e6   :  { %v18887_v43 = vld [vmem:[#allocation2 + $0x138c] sm:$0xf]  ;;  %v14373_v48 = vor.u32 %v18823_v39, %v14370_v40  ;;  %6630 = vmatpush.bf16.msrb.mxu0 %v14117_v47  ;;  %v6392_v39 = vadd.f32 %v6391_v24, %v6379_v23  ;;  %v6404_v47 = vpop.f32.mrf.mxu2 }
 0x2e7   :  { %v14626_v45 = vld [vmem:[#allocation2 + $0x13a8] sm:$0xf0] }
 0x2e8   :  { %v18951_v46 = vld [vmem:[#allocation2 + $0x158c] sm:$0xf]  ;;  %v14629_v50 = vor.u32 %v18887_v43, %v14626_v45  ;;  %6643 = vmatpush.bf16.msrb.mxu1 %v14373_v48 }
 0x2e9   :  { %v14882_v11 = vld [vmem:[#allocation2 + $0x15a8] sm:$0xf0] }
 0x2ea   :  { %v18751_v55 = vld [vmem:[#allocation2 + $0xf4c] sm:$0xf]  ;;  %v14885_v53 = vor.u32 %v18951_v46, %v14882_v11  ;;  %6656 = vmatpush.bf16.msrb.mxu2 %v14629_v50 }
 0x2eb   :  { %v14082_v51 = vld [vmem:[#allocation2 + $0xf68] sm:$0xf0] }
 0x2ec   :  { %v18815_v52 = vld [vmem:[#allocation2 + $0x114c] sm:$0xf]  ;;  %v14085_v59 = vor.u32 %v18751_v55, %v14082_v51  ;;  %6669 = vmatpush.bf16.msrb.mxu3 %v14885_v53  ;;  %v6405_v51 = vadd.f32 %v6404_v47, %v6392_v39 }
 0x2ed   :  { %v14338_v54 = vld [vmem:[#allocation2 + $0x1168] sm:$0xf0] }
 0x2ee   :  { %v18879_v56 = vld [vmem:[#allocation2 + $0x134c] sm:$0xf]  ;;  %v14341_v60 = vor.u32 %v18815_v52, %v14338_v54  ;;  %6631 = vmatpush.bf16.msrb.mxu0 %v14085_v59  ;;  %v6417_v52 = vpop.f32.mrf.mxu3  ;;  %v6406_v23 = vpop.f32.mrf.mxu2 }
 0x2ef   :  { %v14594_v57 = vld [vmem:[#allocation2 + $0x1368] sm:$0xf0] }
 0x2f0   :  { %v18943_v58 = vld [vmem:[#allocation2 + $0x154c] sm:$0xf]  ;;  %v14597_v4 = vor.u32 %v18879_v56, %v14594_v57  ;;  %6644 = vmatpush.bf16.msrb.mxu1 %v14341_v60  ;;  %v20179_v57 = vadd.f32 %v6417_v52, %v6405_v51 }
 0x2f1   :  { %v14850_v61 = vld [vmem:[#allocation2 + $0x1568] sm:$0xf0] }
 0x2f2   :  { %v18743_v62 = vld [vmem:[#allocation2 + $0xf0c] sm:$0xf]  ;;  %v14853_v0 = vor.u32 %v18943_v58, %v14850_v61  ;;  %6657 = vmatpush.bf16.msrb.mxu2 %v14597_v4  ;;  %v6380_v58 = vpop.f32.mrf.mxu0 }
 0x2f3   :  { %v14050_v63 = vld [vmem:[#allocation2 + $0xf28] sm:$0xf0] }
 0x2f4   :  { %v18807_v12 = vld [vmem:[#allocation2 + $0x110c] sm:$0xf]  ;;  %v14053_v14 = vor.u32 %v18743_v62, %v14050_v63  ;;  %6670 = vmatpush.bf16.msrb.mxu3 %v14853_v0  ;;  %v6393_v63 = vpop.f32.mrf.mxu1 }
 0x2f5   :  { %v14306_v2 = vld [vmem:[#allocation2 + $0x1128] sm:$0xf0] }
 0x2f6   :  { %v18871_v3 = vld [vmem:[#allocation2 + $0x130c] sm:$0xf]  ;;  %v14309_v10 = vor.u32 %v18807_v12, %v14306_v2  ;;  %6632 = vmatpush.bf16.msrb.mxu0 %v14053_v14 }
 0x2f7   :  { %v14562_v5 = vld [vmem:[#allocation2 + $0x1328] sm:$0xf0] }
 0x2f8   :  { %v18935_v6 = vld [vmem:[#allocation2 + $0x150c] sm:$0xf]  ;;  %v14565_v13 = vor.u32 %v18871_v3, %v14562_v5  ;;  %6645 = vmatpush.bf16.msrb.mxu1 %v14309_v10 }
 0x2f9   :  { %v14818_v7 = vld [vmem:[#allocation2 + $0x1528] sm:$0xf0] }
 0x2fa   :  { %v18735_v15 = vld [vmem:[#allocation2 + $0xecc] sm:$0xf]  ;;  %v14821_v26 = vor.u32 %v18935_v6, %v14818_v7  ;;  %6658 = vmatpush.bf16.msrb.mxu2 %v14565_v13 }
 0x2fb   :  { %v14018_v16 = vld [vmem:[#allocation2 + $0xee8] sm:$0xf0] }
 0x2fc   :  { %v18799_v17 = vld [vmem:[#allocation2 + $0x10cc] sm:$0xf]  ;;  %v14021_v35 = vor.u32 %v18735_v15, %v14018_v16  ;;  %6671 = vmatpush.bf16.msrb.mxu3 %v14821_v26 }
 0x2fd   :  { %v14274_v31 = vld [vmem:[#allocation2 + $0x10e8] sm:$0xf0] }
 0x2fe   :  { %v18863_v32 = vld [vmem:[#allocation2 + $0x12cc] sm:$0xf]  ;;  %v14277_v40 = vor.u32 %v18799_v17, %v14274_v31  ;;  %6633 = vmatpush.bf16.msrb.mxu0 %v14021_v35 }
 0x2ff   :  { %v14530_v34 = vld [vmem:[#allocation2 + $0x12e8] sm:$0xf0] }
 0x300   :  { %v18927_v36 = vld [vmem:[#allocation2 + $0x14cc] sm:$0xf]  ;;  %v14533_v43 = vor.u32 %v18863_v32, %v14530_v34  ;;  %6646 = vmatpush.bf16.msrb.mxu1 %v14277_v40  ;;  %v6419_v34 = vpop.f32.mrf.mxu3 }
 0x301   :  { %v14786_v37 = vld [vmem:[#allocation2 + $0x14e8] sm:$0xf0] }
 0x302   :  { %v18727_v45 = vld [vmem:[#allocation2 + $0xe8c] sm:$0xf]  ;;  %v14789_v49 = vor.u32 %v18927_v36, %v14786_v37  ;;  %6659 = vmatpush.bf16.msrb.mxu2 %v14533_v43 }
 0x303   :  { %v13986_v46 = vld [vmem:[#allocation2 + $0xea8] sm:$0xf0] }
 0x304   :  { %v18791_v11 = vld [vmem:[#allocation2 + $0x108c] sm:$0xf]  ;;  %v13989_v56 = vor.u32 %v18727_v45, %v13986_v46  ;;  %6672 = vmatpush.bf16.msrb.mxu3 %v14789_v49 }
 0x305   :  { %v14242_v48 = vld [vmem:[#allocation2 + $0x10a8] sm:$0xf0] }
 0x306   :  { %v18855_v50 = vld [vmem:[#allocation2 + $0x128c] sm:$0xf]  ;;  %v14245_v61 = vor.u32 %v18791_v11, %v14242_v48  ;;  %6634 = vmatpush.bf16.msrb.mxu0 %v13989_v56 }
 0x307   :  { %v14498_v55 = vld [vmem:[#allocation2 + $0x12a8] sm:$0xf0] }
 0x308   :  { %v18919_v53 = vld [vmem:[#allocation2 + $0x148c] sm:$0xf]  ;;  %v14501_v59 = vor.u32 %v18855_v50, %v14498_v55  ;;  %6647 = vmatpush.bf16.msrb.mxu1 %v14245_v61 }
 0x309   :  { %v14754_v54 = vld [vmem:[#allocation2 + $0x14a8] sm:$0xf0] }
 0x30a   :  { %v18719_v60 = vld [vmem:[#allocation2 + $0xe4c] sm:$0xf]  ;;  %v14757_v12 = vor.u32 %v18919_v53, %v14754_v54  ;;  %6660 = vmatpush.bf16.msrb.mxu2 %v14501_v59 }
 0x30b   :  { %v13954_v4 = vld [vmem:[#allocation2 + $0xe68] sm:$0xf0] }
 0x30c   :  { %v18783_v62 = vld [vmem:[#allocation2 + $0x104c] sm:$0xf]  ;;  %v13957_v7 = vor.u32 %v18719_v60, %v13954_v4  ;;  %6673 = vmatpush.bf16.msrb.mxu3 %v14757_v12 }
 0x30d   :  { %v14210_v0 = vld [vmem:[#allocation2 + $0x1068] sm:$0xf0] }
 0x30e   :  { %v18847_v2 = vld [vmem:[#allocation2 + $0x124c] sm:$0xf]  ;;  %v14213_v10 = vor.u32 %v18783_v62, %v14210_v0  ;;  %6635 = vmatpush.bf16.msrb.mxu0 %v13957_v7 }
 0x30f   :  { %v14466_v3 = vld [vmem:[#allocation2 + $0x1268] sm:$0xf0] }
 0x310   :  { %v18911_v5 = vld [vmem:[#allocation2 + $0x144c] sm:$0xf]  ;;  %v14469_v13 = vor.u32 %v18847_v2, %v14466_v3  ;;  %6648 = vmatpush.bf16.msrb.mxu1 %v14213_v10 }
 0x311   :  { %v14722_v6 = vld [vmem:[#allocation2 + $0x1468] sm:$0xf0] }
 0x312   :  { %v18711_v14 = vld [vmem:[#allocation2 + $0xe0c] sm:$0xf]  ;;  %v14725_v24 = vor.u32 %v18911_v5, %v14722_v6  ;;  %6661 = vmatpush.bf16.msrb.mxu2 %v14469_v13 }
 0x313   :  { %v13922_v9 = vld [vmem:[#allocation2 + $0xe28] sm:$0xf0] }
 0x314   :  { %v18775_v15 = vld [vmem:[#allocation2 + $0x100c] sm:$0xf]  ;;  %v13925_v35 = vor.u32 %v18711_v14, %v13922_v9  ;;  %6674 = vmatpush.bf16.msrb.mxu3 %v14725_v24 }
 0x315   :  { %v14178_v16 = vld [vmem:[#allocation2 + $0x1028] sm:$0xf0] }
 0x316   :  { %v18839_v17 = vld [vmem:[#allocation2 + $0x120c] sm:$0xf]  ;;  %v14181_v46 = vor.u32 %v18775_v15, %v14178_v16  ;;  %6636 = vmatpush.bf16.msrb.mxu0 %v13925_v35 }
 0x317   :  { %v14434_v26 = vld [vmem:[#allocation2 + $0x1228] sm:$0xf0] }
 0x318   :  { %v18903_v31 = vld [vmem:[#allocation2 + $0x140c] sm:$0xf]  ;;  %v14437_v11 = vor.u32 %v18839_v17, %v14434_v26  ;;  %6649 = vmatpush.bf16.msrb.mxu1 %v14181_v46 }
 0x319   :  { %v14690_v32 = vld [vmem:[#allocation2 + $0x1428] sm:$0xf0]  ;;  %6637 = vmatmul.bf16.vlgmr.msrb.gmra.mxu0 %v20069_v42 }
 0x31a   :  { %v19023_v36 = vld [vmem:[#allocation2 + $0x17cc] sm:$0xf]  ;;  %v14693_v48 = vor.u32 %v18903_v31, %v14690_v32  ;;  %6662 = vmatpush.bf16.msrb.mxu2 %v14437_v11 }
 0x31b   :  { %v15170_v37 = vld [vmem:[#allocation2 + $0x17e8] sm:$0xf0]  ;;  %6650 = vmatmul.bf16.vlgmr.msrb.gmra.mxu1 %v20083_v25 }
 0x31c   :  { %v19087_v39 = vld [vmem:[#allocation2 + $0x19cc] sm:$0xf]  ;;  %v15173_v50 = vor.u32 %v19023_v36, %v15170_v37  ;;  %6675 = vmatpush.bf16.msrb.mxu3 %v14693_v48  ;;  %v6430_v36 = vpop.f32.mrf.mxu0 }
 0x31d   :  { %v15426_v40 = vld [vmem:[#allocation2 + $0x19e8] sm:$0xf0]  ;;  %6663 = vmatmul.bf16.vlgmr.msrb.gmra.mxu2 %v20087_v30  ;;  %v6431_v35 = vadd.f32 %v6430_v36, %v20179_v57 }
 0x31e   :  { %v19151_v43 = vld [vmem:[#allocation2 + $0x1bcc] sm:$0xf]  ;;  %v15429_v55 = vor.u32 %v19087_v39, %v15426_v40  ;;  %6681 = vmatpush.bf16.msra.mxu0 %v15173_v50 }
 0x31f   :  { %v15682_v45 = vld [vmem:[#allocation2 + $0x1be8] sm:$0xf0]  ;;  %6676 = vmatmul.bf16.vlgmr.msrb.gmra.mxu3 %v20085_v29 }
 0x320   :  { %v19215_v47 = vld [vmem:[#allocation2 + $0x1dcc] sm:$0xf]  ;;  %v15685_v51 = vor.u32 %v19151_v43, %v15682_v45  ;;  %6694 = vmatpush.bf16.msra.mxu1 %v15429_v55  ;;  %v6443_v43 = vpop.f32.mrf.mxu1 }
 0x321   :  { %v15938_v49 = vld [vmem:[#allocation2 + $0x1de8] sm:$0xf0]  ;;  %v6444_v50 = vadd.f32 %v6443_v43, %v6431_v35 }
 0x322   :  { %v19015_v52 = vld [vmem:[#allocation2 + $0x178c] sm:$0xf]  ;;  %v15941_v56 = vor.u32 %v19215_v47, %v15938_v49  ;;  %6707 = vmatpush.bf16.msra.mxu2 %v15685_v51 }
 0x323   :  { %v15138_v53 = vld [vmem:[#allocation2 + $0x17a8] sm:$0xf0] }
 0x324   :  { %v19079_v54 = vld [vmem:[#allocation2 + $0x198c] sm:$0xf]  ;;  %v15141_v62 = vor.u32 %v19015_v52, %v15138_v53  ;;  %6720 = vmatpush.bf16.msra.mxu3 %v15941_v56 }
 0x325   :  { %v15394_v58 = vld [vmem:[#allocation2 + $0x19a8] sm:$0xf0] }
 0x326   :  { %v19143_v61 = vld [vmem:[#allocation2 + $0x1b8c] sm:$0xf]  ;;  %v15397_v63 = vor.u32 %v19079_v54, %v15394_v58  ;;  %6682 = vmatpush.bf16.msra.mxu0 %v15141_v62  ;;  %v6456_v62 = vpop.f32.mrf.mxu2 }
 0x327   :  { %v15650_v59 = vld [vmem:[#allocation2 + $0x1ba8] sm:$0xf0] }
 0x328   :  { %v19207_v60 = vld [vmem:[#allocation2 + $0x1d8c] sm:$0xf]  ;;  %v15653_v12 = vor.u32 %v19143_v61, %v15650_v59  ;;  %6695 = vmatpush.bf16.msra.mxu1 %v15397_v63 }
 0x329   :  { %v15906_v4 = vld [vmem:[#allocation2 + $0x1da8] sm:$0xf0] }
 0x32a   :  { %v19007_v0 = vld [vmem:[#allocation2 + $0x174c] sm:$0xf]  ;;  %v15909_v5 = vor.u32 %v19207_v60, %v15906_v4  ;;  %6708 = vmatpush.bf16.msra.mxu2 %v15653_v12 }
 0x32b   :  { %v15106_v2 = vld [vmem:[#allocation2 + $0x1768] sm:$0xf0] }
 0x32c   :  { %v19071_v3 = vld [vmem:[#allocation2 + $0x194c] sm:$0xf]  ;;  %v15109_v13 = vor.u32 %v19007_v0, %v15106_v2  ;;  %6721 = vmatpush.bf16.msra.mxu3 %v15909_v5  ;;  %v6457_v2 = vadd.f32 %v6456_v62, %v6444_v50  ;;  %v18516_v62 = vld [vmem:[#allocation2 + $0x7ec] sm:$0xf0] }
 0x32d   :  { %v15362_v6 = vld [vmem:[#allocation2 + $0x1968] sm:$0xf0] }
 0x32e   :  { %v19135_v7 = vld [vmem:[#allocation2 + $0x1b4c] sm:$0xf]  ;;  %v15365_v15 = vor.u32 %v19071_v3, %v15362_v6  ;;  %6683 = vmatpush.bf16.msra.mxu0 %v15109_v13  ;;  %v6469_v3 = vpop.f32.mrf.mxu3 }
 0x32f   :  { %v15618_v14 = vld [vmem:[#allocation2 + $0x1b68] sm:$0xf0] }
 0x330   :  { %v19199_v9 = vld [vmem:[#allocation2 + $0x1d4c] sm:$0xf]  ;;  %v15621_v16 = vor.u32 %v19135_v7, %v15618_v14  ;;  %6696 = vmatpush.bf16.msra.mxu1 %v15365_v15  ;;  %v6432_v7 = vpop.f32.mrf.mxu0 }
 0x331   :  { %v15874_v10 = vld [vmem:[#allocation2 + $0x1d68] sm:$0xf0] }
 0x332   :  { %v18999_v17 = vld [vmem:[#allocation2 + $0x170c] sm:$0xf]  ;;  %v15877_v26 = vor.u32 %v19199_v9, %v15874_v10  ;;  %6709 = vmatpush.bf16.msra.mxu2 %v15621_v16  ;;  %v6445_v9 = vpop.f32.mrf.mxu1  ;;  %v20186_v10 = vadd.f32 %v6469_v3, %v6457_v2  ;;  %v12328_v3 = vld [vmem:[#allocation2 + $0x190] sm:$0xf] }
 0x333   :  { %v15074_v23 = vld [vmem:[#allocation2 + $0x1728] sm:$0xf0]  ;;  %v12840_v9 = vld [vmem:[#allocation2 + $0x590] sm:$0xf] }
 0x334   :  { %v19063_v24 = vld [vmem:[#allocation2 + $0x190c] sm:$0xf]  ;;  %v15077_v40 = vor.u32 %v18999_v17, %v15074_v23  ;;  %6722 = vmatpush.bf16.msra.mxu3 %v15877_v26 }
 0x335   :  { %v15330_v31 = vld [vmem:[#allocation2 + $0x1928] sm:$0xf0] }
 0x336   :  { %v19127_v32 = vld [vmem:[#allocation2 + $0x1b0c] sm:$0xf]  ;;  %v15333_v45 = vor.u32 %v19063_v24, %v15330_v31  ;;  %6684 = vmatpush.bf16.msra.mxu0 %v15077_v40 }
 0x337   :  { %v15586_v34 = vld [vmem:[#allocation2 + $0x1b28] sm:$0xf0] }
 0x338   :  { %v19191_v37 = vld [vmem:[#allocation2 + $0x1d0c] sm:$0xf]  ;;  %v15589_v46 = vor.u32 %v19127_v32, %v15586_v34  ;;  %6697 = vmatpush.bf16.msra.mxu1 %v15333_v45 }
 0x339   :  { %v15842_v39 = vld [vmem:[#allocation2 + $0x1d28] sm:$0xf0] }
 0x33a   :  { %v18991_v11 = vld [vmem:[#allocation2 + $0x16cc] sm:$0xf]  ;;  %v15845_v48 = vor.u32 %v19191_v37, %v15842_v39  ;;  %6710 = vmatpush.bf16.msra.mxu2 %v15589_v46 }
 0x33b   :  { %v15042_v47 = vld [vmem:[#allocation2 + $0x16e8] sm:$0xf0] }
 0x33c   :  { %v19055_v49 = vld [vmem:[#allocation2 + $0x18cc] sm:$0xf]  ;;  %v15045_v56 = vor.u32 %v18991_v11, %v15042_v47  ;;  %6723 = vmatpush.bf16.msra.mxu3 %v15845_v48 }
 0x33d   :  { %v15298_v55 = vld [vmem:[#allocation2 + $0x18e8] sm:$0xf0] }
 0x33e   :  { %v19119_v51 = vld [vmem:[#allocation2 + $0x1acc] sm:$0xf]  ;;  %v15301_v57 = vor.u32 %v19055_v49, %v15298_v55  ;;  %6685 = vmatpush.bf16.msra.mxu0 %v15045_v56  ;;  %v6458_v55 = vpop.f32.mrf.mxu2 }
 0x33f   :  { %v15554_v52 = vld [vmem:[#allocation2 + $0x1ae8] sm:$0xf0]  ;;  %v12776_v55 = vld [vmem:[#allocation2 + $0x510] sm:$0xf] }
 0x340   :  { %v19183_v53 = vld [vmem:[#allocation2 + $0x1ccc] sm:$0xf]  ;;  %v15557_v58 = vor.u32 %v19119_v51, %v15554_v52  ;;  %6698 = vmatpush.bf16.msra.mxu1 %v15301_v57  ;;  %v12360_v51 = vld [vmem:[#allocation2 + $0x1d0] sm:$0xf] }
 0x341   :  { %v15810_v54 = vld [vmem:[#allocation2 + $0x1ce8] sm:$0xf0]  ;;  %v18324_v52 = vld [vmem:[#allocation2 + $0x1ec] sm:$0xf0] }
 0x342   :  { %v18983_v61 = vld [vmem:[#allocation2 + $0x168c] sm:$0xf]  ;;  %v15813_v4 = vor.u32 %v19183_v53, %v15810_v54  ;;  %6711 = vmatpush.bf16.msra.mxu2 %v15557_v58  ;;  %v12616_v53 = vld [vmem:[#allocation2 + $0x3d0] sm:$0xf]  ;;  %v6471_v54 = vpop.f32.mrf.mxu3 }
 0x343   :  { %v15010_v59 = vld [vmem:[#allocation2 + $0x16a8] sm:$0xf0]  ;;  %v18388_v57 = vld [vmem:[#allocation2 + $0x3ec] sm:$0xf0] }
 0x344   :  { %v19047_v60 = vld [vmem:[#allocation2 + $0x188c] sm:$0xf]  ;;  %v15013_v14 = vor.u32 %v18983_v61, %v15010_v59  ;;  %6724 = vmatpush.bf16.msra.mxu3 %v15813_v4  ;;  %v12872_v58 = vld [vmem:[#allocation2 + $0x5d0] sm:$0xf] }
 0x345   :  { %v15266_v63 = vld [vmem:[#allocation2 + $0x18a8] sm:$0xf0]  ;;  %v18452_v61 = vld [vmem:[#allocation2 + $0x5ec] sm:$0xf0] }
 0x346   :  { %v19111_v12 = vld [vmem:[#allocation2 + $0x1a8c] sm:$0xf]  ;;  %v15269_v13 = vor.u32 %v19047_v60, %v15266_v63  ;;  %6686 = vmatpush.bf16.msra.mxu0 %v15013_v14  ;;  %v13128_v4 = vld [vmem:[#allocation2 + $0x7d0] sm:$0xf]  ;;  %v12873_v2 = vor.u32 %v18452_v61, %v12872_v58  ;;  %v6495_v58 = vpop.f32.mrf.mxu1 }
 0x347   :  { %v15522_v0 = vld [vmem:[#allocation2 + $0x1aa8] sm:$0xf0]  ;;  %v13129_v7 = vor.u32 %v18516_v62, %v13128_v4  ;;  %v18380_v14 = vld [vmem:[#allocation2 + $0x3ac] sm:$0xf0] }
 0x348   :  { %v19175_v5 = vld [vmem:[#allocation2 + $0x1c8c] sm:$0xf]  ;;  %v15525_v15 = vor.u32 %v19111_v12, %v15522_v0  ;;  %6699 = vmatpush.bf16.msra.mxu1 %v15269_v13  ;;  %v12361_v12 = vor.u32 %v18324_v52, %v12360_v51  ;;  %v12617_v0 = vor.u32 %v18388_v57, %v12616_v53  ;;  %v18444_v13 = vld [vmem:[#allocation2 + $0x5ac] sm:$0xf0]  ;;  %v6482_v52 = vpop.f32.mrf.mxu0 }
 0x349   :  { %v15778_v6 = vld [vmem:[#allocation2 + $0x1ca8] sm:$0xf0]  ;;  %v18428_v51 = vld [vmem:[#allocation2 + $0x52c] sm:$0xf0] }
 0x34a   :  { %v18975_v16 = vld [vmem:[#allocation2 + $0x164c] sm:$0xf]  ;;  %v15781_v24 = vor.u32 %v19175_v5, %v15778_v6  ;;  %6712 = vmatpush.bf16.msra.mxu2 %v15525_v15  ;;  %v18316_v5 = vld [vmem:[#allocation2 + $0x1ac] sm:$0xf0] }
 0x34b   :  { %v14978_v17 = vld [vmem:[#allocation2 + $0x1668] sm:$0xf0]  ;;  %v12584_v6 = vld [vmem:[#allocation2 + $0x390] sm:$0xf] }
 0x34c   :  { %v19039_v23 = vld [vmem:[#allocation2 + $0x184c] sm:$0xf]  ;;  %v14981_v37 = vor.u32 %v18975_v16, %v14978_v17  ;;  %6725 = vmatpush.bf16.msra.mxu3 %v15781_v24  ;;  %v13096_v15 = vld [vmem:[#allocation2 + $0x790] sm:$0xf]  ;;  %v12329_v17 = vor.u32 %v18316_v5, %v12328_v3  ;;  %v12841_v24 = vor.u32 %v18444_v13, %v12840_v9 }
 0x34d   :  { %v15234_v26 = vld [vmem:[#allocation2 + $0x1868] sm:$0xf0]  ;;  %v18508_v16 = vld [vmem:[#allocation2 + $0x7ac] sm:$0xf0] }
 0x34e   :  { %v19103_v31 = vld [vmem:[#allocation2 + $0x1a4c] sm:$0xf]  ;;  %v15237_v40 = vor.u32 %v19039_v23, %v15234_v26  ;;  %6687 = vmatpush.bf16.msra.mxu0 %v14981_v37  ;;  %v12585_v23 = vor.u32 %v18380_v14, %v12584_v6  ;;  %v12296_v26 = vld [vmem:[#allocation2 + $0x150] sm:$0xf] }
 0x34f   :  { %v15490_v32 = vld [vmem:[#allocation2 + $0x1a68] sm:$0xf0]  ;;  %v12808_v37 = vld [vmem:[#allocation2 + $0x550] sm:$0xf] }
 0x350   :  { %v19167_v34 = vld [vmem:[#allocation2 + $0x1c4c] sm:$0xf]  ;;  %v15493_v43 = vor.u32 %v19103_v31, %v15490_v32  ;;  %6700 = vmatpush.bf16.msra.mxu1 %v15237_v40  ;;  %v18308_v31 = vld [vmem:[#allocation2 + $0x16c] sm:$0xf0] }
 0x351   :  { %v15746_v36 = vld [vmem:[#allocation2 + $0x1c68] sm:$0xf0]  ;;  %v12552_v32 = vld [vmem:[#allocation2 + $0x350] sm:$0xf] }
 0x352   :  { %v18967_v39 = vld [vmem:[#allocation2 + $0x160c] sm:$0xf]  ;;  %v15749_v47 = vor.u32 %v19167_v34, %v15746_v36  ;;  %6713 = vmatpush.bf16.msra.mxu2 %v15493_v43  ;;  %v13097_v34 = vor.u32 %v18508_v16, %v13096_v15  ;;  %v18372_v36 = vld [vmem:[#allocation2 + $0x36c] sm:$0xf0]  ;;  %v12297_v43 = vor.u32 %v18308_v31, %v12296_v26 }
 0x353   :  { %v14946_v35 = vld [vmem:[#allocation2 + $0x1628] sm:$0xf0]  ;;  %v18500_v40 = vld [vmem:[#allocation2 + $0x76c] sm:$0xf0] }
 0x354   :  { %v19031_v45 = vld [vmem:[#allocation2 + $0x180c] sm:$0xf]  ;;  %v14949_v56 = vor.u32 %v18967_v39, %v14946_v35  ;;  %6726 = vmatpush.bf16.msra.mxu3 %v15749_v47  ;;  %v18436_v39 = vld [vmem:[#allocation2 + $0x56c] sm:$0xf0] }
 0x355   :  { %v15202_v46 = vld [vmem:[#allocation2 + $0x1828] sm:$0xf0]  ;;  %v13064_v35 = vld [vmem:[#allocation2 + $0x750] sm:$0xf] }
 0x356   :  { %v19095_v11 = vld [vmem:[#allocation2 + $0x1a0c] sm:$0xf]  ;;  %v15205_v59 = vor.u32 %v19031_v45, %v15202_v46  ;;  %6688 = vmatpush.bf16.msra.mxu0 %v14949_v56  ;;  %v12553_v45 = vor.u32 %v18372_v36, %v12552_v32  ;;  %v12809_v46 = vor.u32 %v18436_v39, %v12808_v37  ;;  %v18300_v47 = vld [vmem:[#allocation2 + $0x12c] sm:$0xf0]  ;;  %v6483_v56 = vadd.f32 %v6482_v52, %v20186_v10  ;;  %v6521_v32 = vpop.f32.mrf.mxu3  ;;  %v6484_v37 = vpop.f32.mrf.mxu0 }
 0x357   :  { %v15458_v49 = vld [vmem:[#allocation2 + $0x1a28] sm:$0xf0]  ;;  %v13032_v53 = vld [vmem:[#allocation2 + $0x710] sm:$0xf] }
 0x358   :  { %v19159_v48 = vld [vmem:[#allocation2 + $0x1c0c] sm:$0xf]  ;;  %v15461_v60 = vor.u32 %v19095_v11, %v15458_v49  ;;  %6701 = vmatpush.bf16.msra.mxu1 %v15205_v59  ;;  %v12264_v11 = vld [vmem:[#allocation2 + $0x110] sm:$0xf]  ;;  %v12777_v59 = vor.u32 %v18428_v51, %v12776_v55 }
 0x359   :  { %v15714_v50 = vld [vmem:[#allocation2 + $0x1c28] sm:$0xf0]  ;;  %6689 = vmatmul.bf16.vlgmr.msra.gmra.mxu0 %v20089_v33  ;;  %v12520_v49 = vld [vmem:[#allocation2 + $0x310] sm:$0xf]  ;;  %v12265_v57 = vor.u32 %v18300_v47, %v12264_v11 }
 0x35a   :  { %v15717_v63 = vor.u32 %v19159_v48, %v15714_v50  ;;  %6714 = vmatpush.bf16.msra.mxu2 %v15461_v60  ;;  %6733 = vmatpush.bf16.msrb.mxu0 %v12361_v12  ;;  %v13065_v48 = vor.u32 %v18500_v40, %v13064_v35  ;;  %v18364_v50 = vld [vmem:[#allocation2 + $0x32c] sm:$0xf0]  ;;  %v6496_v12 = vadd.f32 %v6495_v58, %v6483_v56  ;;  %v6497_v35 = vpop.f32.mrf.mxu1 }
 0x35b   :  { %6702 = vmatmul.bf16.vlgmr.msra.gmra.mxu1 %v20101_v21  ;;  %v18492_v54 = vld [vmem:[#allocation2 + $0x72c] sm:$0xf0]  ;;  %v12521_v61 = vor.u32 %v18364_v50, %v12520_v49 }
 0x35c   :  { %6727 = vmatpush.bf16.msra.mxu3 %v15717_v63  ;;  %6746 = vmatpush.bf16.msrb.mxu1 %v12617_v0  ;;  %v12232_v60 = vld [vmem:[#allocation2 + $0xd0] sm:$0xf]  ;;  %v13033_v63 = vor.u32 %v18492_v54, %v13032_v53 }
 0x35d   :  { %6715 = vmatmul.bf16.vlgmr.msra.gmra.mxu2 %v20105_v28  ;;  %v18292_v4 = vld [vmem:[#allocation2 + $0xec] sm:$0xf0] }
 0x35e   :  { %6759 = vmatpush.bf16.msrb.mxu2 %v12873_v2  ;;  %6734 = vmatpush.bf16.msrb.mxu0 %v12329_v17  ;;  %v12488_v62 = vld [vmem:[#allocation2 + $0x2d0] sm:$0xf]  ;;  %v6508_v17 = vpop.f32.mrf.mxu2 }
 0x35f   :  { %6728 = vmatmul.bf16.vlgmr.msra.gmra.mxu3 %v20103_v27  ;;  %v18356_v0 = vld [vmem:[#allocation2 + $0x2ec] sm:$0xf0]  ;;  %v6509_v31 = vadd.f32 %v6508_v17, %v6496_v12 }
 0x360   :  { %6772 = vmatpush.bf16.msrb.mxu3 %v13129_v7  ;;  %6747 = vmatpush.bf16.msrb.mxu1 %v12585_v23  ;;  %v12744_v2 = vld [vmem:[#allocation2 + $0x4d0] sm:$0xf]  ;;  %v12233_v7 = vor.u32 %v18292_v4, %v12232_v60  ;;  %v12489_v10 = vor.u32 %v18356_v0, %v12488_v62 }
 0x361   :  { %v18420_v3 = vld [vmem:[#allocation2 + $0x4ec] sm:$0xf0]  ;;  %v20193_v40 = vadd.f32 %v6521_v32, %v6509_v31 }
 0x362   :  { %6760 = vmatpush.bf16.msrb.mxu2 %v12841_v24  ;;  %6735 = vmatpush.bf16.msrb.mxu0 %v12297_v43  ;;  %v13000_v5 = vld [vmem:[#allocation2 + $0x6d0] sm:$0xf]  ;;  %v12745_v14 = vor.u32 %v18420_v3, %v12744_v2 }
 0x363   :  { %v18484_v6 = vld [vmem:[#allocation2 + $0x6ec] sm:$0xf0] }
 0x364   :  { %6773 = vmatpush.bf16.msrb.mxu3 %v13097_v34  ;;  %6748 = vmatpush.bf16.msrb.mxu1 %v12553_v45  ;;  %v12200_v9 = vld [vmem:[#allocation2 + $0x90] sm:$0xf]  ;;  %v13001_v16 = vor.u32 %v18484_v6, %v13000_v5  ;;  %v6523_v6 = vpop.f32.mrf.mxu3 }
 0x365   :  { %v18284_v13 = vld [vmem:[#allocation2 + $0xac] sm:$0xf0] }
 0x366   :  { %6761 = vmatpush.bf16.msrb.mxu2 %v12809_v46  ;;  %6736 = vmatpush.bf16.msrb.mxu0 %v12265_v57  ;;  %v12456_v15 = vld [vmem:[#allocation2 + $0x290] sm:$0xf]  ;;  %v12201_v39 = vor.u32 %v18284_v13, %v12200_v9  ;;  %v6510_v0 = vpop.f32.mrf.mxu2 }
 0x367   :  { %v18348_v23 = vld [vmem:[#allocation2 + $0x2ac] sm:$0xf0] }
 0x368   :  { %6774 = vmatpush.bf16.msrb.mxu3 %v13065_v48  ;;  %6749 = vmatpush.bf16.msrb.mxu1 %v12521_v61  ;;  %v12712_v24 = vld [vmem:[#allocation2 + $0x490] sm:$0xf]  ;;  %v12457_v43 = vor.u32 %v18348_v23, %v12456_v15 }
 0x369   :  { %v18412_v26 = vld [vmem:[#allocation2 + $0x4ac] sm:$0xf0] }
 0x36a   :  { %6762 = vmatpush.bf16.msrb.mxu2 %v12777_v59  ;;  %v12968_v34 = vld [vmem:[#allocation2 + $0x690] sm:$0xf]  ;;  %6737 = vmatpush.bf16.msrb.mxu0 %v12233_v7  ;;  %v12713_v45 = vor.u32 %v18412_v26, %v12712_v24 }
 0x36b   :  { %v18476_v36 = vld [vmem:[#allocation2 + $0x6ac] sm:$0xf0] }
 0x36c   :  { %6775 = vmatpush.bf16.msrb.mxu3 %v13033_v63  ;;  %6750 = vmatpush.bf16.msrb.mxu1 %v12489_v10  ;;  %v12168_v46 = vld [vmem:[#allocation2 + $0x50] sm:$0xf]  ;;  %v12969_v49 = vor.u32 %v18476_v36, %v12968_v34 }
 0x36d   :  { %v18276_v11 = vld [vmem:[#allocation2 + $0x6c] sm:$0xf0] }
 0x36e   :  { %6763 = vmatpush.bf16.msrb.mxu2 %v12745_v14  ;;  %v12424_v47 = vld [vmem:[#allocation2 + $0x250] sm:$0xf]  ;;  %6738 = vmatpush.bf16.msrb.mxu0 %v12201_v39  ;;  %v12169_v53 = vor.u32 %v18276_v11, %v12168_v46 }
 0x36f   :  { %v18340_v48 = vld [vmem:[#allocation2 + $0x26c] sm:$0xf0] }
 0x370   :  { %6776 = vmatpush.bf16.msrb.mxu3 %v13001_v16  ;;  %v12680_v50 = vld [vmem:[#allocation2 + $0x450] sm:$0xf]  ;;  %6751 = vmatpush.bf16.msrb.mxu1 %v12457_v43  ;;  %v12425_v57 = vor.u32 %v18340_v48, %v12424_v47 }
 0x371   :  { %v18404_v55 = vld [vmem:[#allocation2 + $0x46c] sm:$0xf0] }
 0x372   :  { %v12936_v51 = vld [vmem:[#allocation2 + $0x650] sm:$0xf]  ;;  %6764 = vmatpush.bf16.msrb.mxu2 %v12713_v45  ;;  %v12681_v58 = vor.u32 %v18404_v55, %v12680_v50  ;;  %6739 = vmatpush.bf16.msrb.mxu0 %v12169_v53 }
 0x373   :  { %v18468_v52 = vld [vmem:[#allocation2 + $0x66c] sm:$0xf0] }
 0x374   :  { %v12136_v54 = vld [vmem:[#allocation2 + $0x10] sm:$0xf]  ;;  %6777 = vmatpush.bf16.msrb.mxu3 %v12969_v49  ;;  %v12937_v4 = vor.u32 %v18468_v52, %v12936_v51  ;;  %6752 = vmatpush.bf16.msrb.mxu1 %v12425_v57 }
 0x375   :  { %v18268_v56 = vld [vmem:[#allocation2 + $0x2c] sm:$0xf0] }
 0x376   :  { %v12392_v61 = vld [vmem:[#allocation2 + $0x210] sm:$0xf]  ;;  %v12137_v7 = vor.u32 %v18268_v56, %v12136_v54  ;;  %6765 = vmatpush.bf16.msrb.mxu2 %v12681_v58 }
 0x377   :  { %v18332_v59 = vld [vmem:[#allocation2 + $0x22c] sm:$0xf0] }
 0x378   :  { %v12648_v60 = vld [vmem:[#allocation2 + $0x410] sm:$0xf]  ;;  %v12393_v13 = vor.u32 %v18332_v59, %v12392_v61  ;;  %6778 = vmatpush.bf16.msrb.mxu3 %v12937_v4  ;;  %6740 = vmatpush.bf16.msrb.mxu0 %v12137_v7  ;;  %v19814_v7 = vld [vmem:[#allocation4] sm:$0xff] }
 0x379   :  { %v18396_v62 = vld [vmem:[#allocation2 + $0x42c] sm:$0xf0] }
 0x37a   :  { %v12904_v63 = vld [vmem:[#allocation2 + $0x610] sm:$0xf]  ;;  %v12649_v15 = vor.u32 %v18396_v62, %v12648_v60  ;;  %6753 = vmatpush.bf16.msrb.mxu1 %v12393_v13 }
 0x37b   :  { %v18460_v12 = vld [vmem:[#allocation2 + $0x62c] sm:$0xf0]  ;;  %6741 = vmatmul.bf16.vlgmr.msrb.gmra.mxu0 %v20049_v19 }
 0x37c   :  { %v13384_v2 = vld [vmem:[#allocation2 + $0x9d0] sm:$0xf]  ;;  %v12905_v23 = vor.u32 %v18460_v12, %v12904_v63  ;;  %6766 = vmatpush.bf16.msrb.mxu2 %v12649_v15 }
 0x37d   :  { %v18580_v3 = vld [vmem:[#allocation2 + $0x9ec] sm:$0xf0]  ;;  %6754 = vmatmul.bf16.vlgmr.msrb.gmra.mxu1 %v20053_v22 }
 0x37e   :  { %v13640_v5 = vld [vmem:[#allocation2 + $0xbd0] sm:$0xf]  ;;  %v13385_v24 = vor.u32 %v18580_v3, %v13384_v2  ;;  %6779 = vmatpush.bf16.msrb.mxu3 %v12905_v23  ;;  %v6534_v3 = vpop.f32.mrf.mxu0 }
 0x37f   :  { %v18644_v10 = vld [vmem:[#allocation2 + $0xbec] sm:$0xf0]  ;;  %6767 = vmatmul.bf16.vlgmr.msrb.gmra.mxu2 %v20047_v18 }
 0x380   :  { %v13896_v14 = vld [vmem:[#allocation2 + $0xdd0] sm:$0xf]  ;;  %v13641_v26 = vor.u32 %v18644_v10, %v13640_v5  ;;  %6785 = vmatpush.bf16.msra.mxu0 %v13385_v24  ;;  %v1087_v10 = vperm.slane %v19814_v7, 3  ;;  %v6547_v24 = vpop.f32.mrf.mxu1 }
 0x381   :  { %v18708_v9 = vld [vmem:[#allocation2 + $0xdec] sm:$0xf0]  ;;  %6780 = vmatmul.bf16.vlgmr.msrb.gmra.mxu3 %v20051_v20 }
 0x382   :  { %v14152_v16 = vld [vmem:[#allocation2 + $0xfd0] sm:$0xf]  ;;  %v13897_v31 = vor.u32 %v18708_v9, %v13896_v14  ;;  %6798 = vmatpush.bf16.msra.mxu1 %v13641_v26  ;;  %v20200_v14 = vadd.f32 %v6534_v3, %v20193_v40 }
 0x383   :  { %v18772_v17 = vld [vmem:[#allocation2 + $0xfec] sm:$0xf0] }
 0x384   :  { %v13352_v32 = vld [vmem:[#allocation2 + $0x990] sm:$0xf]  ;;  %v14153_v37 = vor.u32 %v18772_v17, %v14152_v16  ;;  %6811 = vmatpush.bf16.msra.mxu2 %v13897_v31 }
 0x385   :  { %v18572_v34 = vld [vmem:[#allocation2 + $0x9ac] sm:$0xf0] }
 0x386   :  { %v13608_v36 = vld [vmem:[#allocation2 + $0xb90] sm:$0xf]  ;;  %v13353_v11 = vor.u32 %v18572_v34, %v13352_v32  ;;  %6824 = vmatpush.bf16.msra.mxu3 %v14153_v37 }
 0x387   :  { %v18636_v39 = vld [vmem:[#allocation2 + $0xbac] sm:$0xf0] }
 0x388   :  { %v13864_v35 = vld [vmem:[#allocation2 + $0xd90] sm:$0xf]  ;;  %v13609_v47 = vor.u32 %v18636_v39, %v13608_v36  ;;  %6786 = vmatpush.bf16.msra.mxu0 %v13353_v11  ;;  %v6548_v39 = vadd.f32 %v6547_v24, %v1087_v10 }
 0x389   :  { %v18700_v43 = vld [vmem:[#allocation2 + $0xdac] sm:$0xf0] }
 0x38a   :  { %v14120_v45 = vld [vmem:[#allocation2 + $0xf90] sm:$0xf]  ;;  %v13865_v49 = vor.u32 %v18700_v43, %v13864_v35  ;;  %6799 = vmatpush.bf16.msra.mxu1 %v13609_v47 }
 0x38b   :  { %v18764_v46 = vld [vmem:[#allocation2 + $0xfac] sm:$0xf0] }
 0x38c   :  { %v13320_v48 = vld [vmem:[#allocation2 + $0x950] sm:$0xf]  ;;  %v14121_v51 = vor.u32 %v18764_v46, %v14120_v45  ;;  %6812 = vmatpush.bf16.msra.mxu2 %v13865_v49 }
 0x38d   :  { %v18564_v50 = vld [vmem:[#allocation2 + $0x96c] sm:$0xf0] }
 0x38e   :  { %v13576_v55 = vld [vmem:[#allocation2 + $0xb50] sm:$0xf]  ;;  %v13321_v58 = vor.u32 %v18564_v50, %v13320_v48  ;;  %6825 = vmatpush.bf16.msra.mxu3 %v14121_v51  ;;  %v6573_v51 = vpop.f32.mrf.mxu3 }
 0x38f   :  { %v18628_v52 = vld [vmem:[#allocation2 + $0xb6c] sm:$0xf0] }
 0x390   :  { %v13832_v53 = vld [vmem:[#allocation2 + $0xd50] sm:$0xf]  ;;  %v13577_v61 = vor.u32 %v18628_v52, %v13576_v55  ;;  %6787 = vmatpush.bf16.msra.mxu0 %v13321_v58  ;;  %v6560_v55 = vpop.f32.mrf.mxu2 }
 0x391   :  { %v18692_v54 = vld [vmem:[#allocation2 + $0xd6c] sm:$0xf0] }
 0x392   :  { %v14088_v56 = vld [vmem:[#allocation2 + $0xf50] sm:$0xf]  ;;  %v13833_v59 = vor.u32 %v18692_v54, %v13832_v53  ;;  %6800 = vmatpush.bf16.msra.mxu1 %v13577_v61  ;;  %v6561_v54 = vadd.f32 %v6560_v55, %v6548_v39 }
 0x393   :  { %v18756_v57 = vld [vmem:[#allocation2 + $0xf6c] sm:$0xf0] }
 0x394   :  { %v13288_v60 = vld [vmem:[#allocation2 + $0x910] sm:$0xf]  ;;  %v14089_v63 = vor.u32 %v18756_v57, %v14088_v56  ;;  %6813 = vmatpush.bf16.msra.mxu2 %v13833_v59  ;;  %v6536_v56 = vpop.f32.mrf.mxu0 }
 0x395   :  { %v18556_v4 = vld [vmem:[#allocation2 + $0x92c] sm:$0xf0] }
 0x396   :  { %v13544_v62 = vld [vmem:[#allocation2 + $0xb10] sm:$0xf]  ;;  %v13289_v9 = vor.u32 %v18556_v4, %v13288_v60  ;;  %6826 = vmatpush.bf16.msra.mxu3 %v14089_v63  ;;  %v6549_v63 = vpop.f32.mrf.mxu1 }
 0x397   :  { %v18620_v12 = vld [vmem:[#allocation2 + $0xb2c] sm:$0xf0] }
 0x398   :  { %v13800_v0 = vld [vmem:[#allocation2 + $0xd10] sm:$0xf]  ;;  %v13545_v13 = vor.u32 %v18620_v12, %v13544_v62  ;;  %6788 = vmatpush.bf16.msra.mxu0 %v13289_v9  ;;  %v20202_v62 = vadd.f32 %v6573_v51, %v6561_v54 }
 0x399   :  { %v18684_v2 = vld [vmem:[#allocation2 + $0xd2c] sm:$0xf0] }
 0x39a   :  { %v14056_v5 = vld [vmem:[#allocation2 + $0xf10] sm:$0xf]  ;;  %v13801_v15 = vor.u32 %v18684_v2, %v13800_v0  ;;  %6801 = vmatpush.bf16.msra.mxu1 %v13545_v13 }
 0x39b   :  { %v18748_v6 = vld [vmem:[#allocation2 + $0xf2c] sm:$0xf0] }
 0x39c   :  { %v13256_v16 = vld [vmem:[#allocation2 + $0x8d0] sm:$0xf]  ;;  %v14057_v26 = vor.u32 %v18748_v6, %v14056_v5  ;;  %6814 = vmatpush.bf16.msra.mxu2 %v13801_v15 }
 0x39d   :  { %v18548_v17 = vld [vmem:[#allocation2 + $0x8ec] sm:$0xf0] }
 0x39e   :  { %v13512_v23 = vld [vmem:[#allocation2 + $0xad0] sm:$0xf]  ;;  %v13257_v40 = vor.u32 %v18548_v17, %v13256_v16  ;;  %6827 = vmatpush.bf16.msra.mxu3 %v14057_v26 }
 0x39f   :  { %v18612_v31 = vld [vmem:[#allocation2 + $0xaec] sm:$0xf0] }
 0x3a0   :  { %v13768_v32 = vld [vmem:[#allocation2 + $0xcd0] sm:$0xf]  ;;  %v13513_v35 = vor.u32 %v18612_v31, %v13512_v23  ;;  %6789 = vmatpush.bf16.msra.mxu0 %v13257_v40 }
 0x3a1   :  { %v18676_v34 = vld [vmem:[#allocation2 + $0xcec] sm:$0xf0] }
 0x3a2   :  { %v14024_v36 = vld [vmem:[#allocation2 + $0xed0] sm:$0xf]  ;;  %v13769_v43 = vor.u32 %v18676_v34, %v13768_v32  ;;  %6802 = vmatpush.bf16.msra.mxu1 %v13513_v35  ;;  %v6562_v34 = vpop.f32.mrf.mxu2 }
 0x3a3   :  { %v18740_v37 = vld [vmem:[#allocation2 + $0xeec] sm:$0xf0] }
 0x3a4   :  { %v13224_v45 = vld [vmem:[#allocation2 + $0x890] sm:$0xf]  ;;  %v14025_v47 = vor.u32 %v18740_v37, %v14024_v36  ;;  %6815 = vmatpush.bf16.msra.mxu2 %v13769_v43  ;;  %v6575_v36 = vpop.f32.mrf.mxu3 }
 0x3a5   :  { %v18540_v46 = vld [vmem:[#allocation2 + $0x8ac] sm:$0xf0] }
 0x3a6   :  { %v13480_v11 = vld [vmem:[#allocation2 + $0xa90] sm:$0xf]  ;;  %v13225_v57 = vor.u32 %v18540_v46, %v13224_v45  ;;  %6828 = vmatpush.bf16.msra.mxu3 %v14025_v47 }
 0x3a7   :  { %v18604_v49 = vld [vmem:[#allocation2 + $0xaac] sm:$0xf0] }
 0x3a8   :  { %v13736_v48 = vld [vmem:[#allocation2 + $0xc90] sm:$0xf]  ;;  %v13481_v58 = vor.u32 %v18604_v49, %v13480_v11  ;;  %6790 = vmatpush.bf16.msra.mxu0 %v13225_v57 }
 0x3a9   :  { %v18668_v50 = vld [vmem:[#allocation2 + $0xcac] sm:$0xf0] }
 0x3aa   :  { %v13992_v52 = vld [vmem:[#allocation2 + $0xe90] sm:$0xf]  ;;  %v13737_v61 = vor.u32 %v18668_v50, %v13736_v48  ;;  %6803 = vmatpush.bf16.msra.mxu1 %v13481_v58 }
 0x3ab   :  { %v18732_v53 = vld [vmem:[#allocation2 + $0xeac] sm:$0xf0] }
 0x3ac   :  { %v13192_v59 = vld [vmem:[#allocation2 + $0x850] sm:$0xf]  ;;  %v13993_v12 = vor.u32 %v18732_v53, %v13992_v52  ;;  %6816 = vmatpush.bf16.msra.mxu2 %v13737_v61 }
 0x3ad   :  { %v18532_v60 = vld [vmem:[#allocation2 + $0x86c] sm:$0xf0] }
 0x3ae   :  { %v13448_v4 = vld [vmem:[#allocation2 + $0xa50] sm:$0xf]  ;;  %v13193_v7 = vor.u32 %v18532_v60, %v13192_v59  ;;  %6829 = vmatpush.bf16.msra.mxu3 %v13993_v12 }
 0x3af   :  { %v18596_v0 = vld [vmem:[#allocation2 + $0xa6c] sm:$0xf0] }
 0x3b0   :  { %v13704_v2 = vld [vmem:[#allocation2 + $0xc50] sm:$0xf]  ;;  %v13449_v13 = vor.u32 %v18596_v0, %v13448_v4  ;;  %6791 = vmatpush.bf16.msra.mxu0 %v13193_v7 }
 0x3b1   :  { %v18660_v3 = vld [vmem:[#allocation2 + $0xc6c] sm:$0xf0] }
 0x3b2   :  { %v13960_v5 = vld [vmem:[#allocation2 + $0xe50] sm:$0xf]  ;;  %v13705_v15 = vor.u32 %v18660_v3, %v13704_v2  ;;  %6804 = vmatpush.bf16.msra.mxu1 %v13449_v13 }
 0x3b3   :  { %v18724_v6 = vld [vmem:[#allocation2 + $0xe6c] sm:$0xf0] }
 0x3b4   :  { %v13160_v10 = vld [vmem:[#allocation2 + $0x810] sm:$0xf]  ;;  %v13961_v24 = vor.u32 %v18724_v6, %v13960_v5  ;;  %6817 = vmatpush.bf16.msra.mxu2 %v13705_v15 }
 0x3b5   :  { %v18524_v9 = vld [vmem:[#allocation2 + $0x82c] sm:$0xf0] }
 0x3b6   :  { %v13416_v16 = vld [vmem:[#allocation2 + $0xa10] sm:$0xf]  ;;  %v13161_v35 = vor.u32 %v18524_v9, %v13160_v10  ;;  %6830 = vmatpush.bf16.msra.mxu3 %v13961_v24 }
 0x3b7   :  { %v18588_v17 = vld [vmem:[#allocation2 + $0xa2c] sm:$0xf0] }
 0x3b8   :  { %v13672_v23 = vld [vmem:[#allocation2 + $0xc10] sm:$0xf]  ;;  %v13417_v11 = vor.u32 %v18588_v17, %v13416_v16  ;;  %6792 = vmatpush.bf16.msra.mxu0 %v13161_v35 }
 0x3b9   :  { %v18652_v26 = vld [vmem:[#allocation2 + $0xc2c] sm:$0xf0] }
 0x3ba   :  { %v13928_v31 = vld [vmem:[#allocation2 + $0xe10] sm:$0xf]  ;;  %v13673_v47 = vor.u32 %v18652_v26, %v13672_v23  ;;  %6805 = vmatpush.bf16.msra.mxu1 %v13417_v11 }
 0x3bb   :  { %v18716_v32 = vld [vmem:[#allocation2 + $0xe2c] sm:$0xf0]  ;;  %6793 = vmatmul.bf16.vlgmr.msra.gmra.mxu0 %v20067_v41 }
 0x3bc   :  { %v14408_v37 = vld [vmem:[#allocation2 + $0x11d0] sm:$0xf]  ;;  %v13929_v50 = vor.u32 %v18716_v32, %v13928_v31  ;;  %6818 = vmatpush.bf16.msra.mxu2 %v13673_v47 }
 0x3bd   :  { %v18836_v39 = vld [vmem:[#allocation2 + $0x11ec] sm:$0xf0]  ;;  %6806 = vmatmul.bf16.vlgmr.msra.gmra.mxu1 %v20071_v44 }
 0x3be   :  { %v14664_v40 = vld [vmem:[#allocation2 + $0x13d0] sm:$0xf]  ;;  %v14409_v55 = vor.u32 %v18836_v39, %v14408_v37  ;;  %6831 = vmatpush.bf16.msra.mxu3 %v13929_v50  ;;  %v6599_v50 = vpop.f32.mrf.mxu1 }
 0x3bf   :  { %v18900_v43 = vld [vmem:[#allocation2 + $0x13ec] sm:$0xf0]  ;;  %6819 = vmatmul.bf16.vlgmr.msra.gmra.mxu2 %v20065_v38 }
 0x3c0   :  { %v14920_v45 = vld [vmem:[#allocation2 + $0x15d0] sm:$0xf]  ;;  %v14665_v51 = vor.u32 %v18900_v43, %v14664_v40  ;;  %6837 = vmatpush.bf16.msrb.mxu0 %v14409_v55  ;;  %v6586_v43 = vpop.f32.mrf.mxu0 }
 0x3c1   :  { %v18964_v46 = vld [vmem:[#allocation2 + $0x15ec] sm:$0xf0]  ;;  %6832 = vmatmul.bf16.vlgmr.msra.gmra.mxu3 %v20069_v42 }
 0x3c2   :  { %v15176_v49 = vld [vmem:[#allocation2 + $0x17d0] sm:$0xf]  ;;  %v14921_v52 = vor.u32 %v18964_v46, %v14920_v45  ;;  %6850 = vmatpush.bf16.msrb.mxu1 %v14665_v51 }
 0x3c3   :  { %v19028_v48 = vld [vmem:[#allocation2 + $0x17ec] sm:$0xf0] }
 0x3c4   :  { %v14376_v53 = vld [vmem:[#allocation2 + $0x1190] sm:$0xf]  ;;  %v15177_v57 = vor.u32 %v19028_v48, %v15176_v49  ;;  %6863 = vmatpush.bf16.msrb.mxu2 %v14921_v52  ;;  %v6587_v48 = vadd.f32 %v6586_v43, %v20202_v62 }
 0x3c5   :  { %v18828_v54 = vld [vmem:[#allocation2 + $0x11ac] sm:$0xf0] }
 0x3c6   :  { %v14632_v56 = vld [vmem:[#allocation2 + $0x1390] sm:$0xf]  ;;  %v14377_v63 = vor.u32 %v18828_v54, %v14376_v53  ;;  %6876 = vmatpush.bf16.msrb.mxu3 %v15177_v57  ;;  %v6600_v57 = vadd.f32 %v6599_v50, %v6587_v48 }
 0x3c7   :  { %v18892_v58 = vld [vmem:[#allocation2 + $0x13ac] sm:$0xf0] }
 0x3c8   :  { %v14888_v61 = vld [vmem:[#allocation2 + $0x1590] sm:$0xf]  ;;  %v14633_v12 = vor.u32 %v18892_v58, %v14632_v56  ;;  %6838 = vmatpush.bf16.msrb.mxu0 %v14377_v63 }
 0x3c9   :  { %v18956_v59 = vld [vmem:[#allocation2 + $0x15ac] sm:$0xf0] }
 0x3ca   :  { %v15144_v60 = vld [vmem:[#allocation2 + $0x1790] sm:$0xf]  ;;  %v14889_v0 = vor.u32 %v18956_v59, %v14888_v61  ;;  %6851 = vmatpush.bf16.msrb.mxu1 %v14633_v12  ;;  %v6612_v12 = vpop.f32.mrf.mxu2 }
 0x3cb   :  { %v19020_v4 = vld [vmem:[#allocation2 + $0x17ac] sm:$0xf0] }
 0x3cc   :  { %v14344_v2 = vld [vmem:[#allocation2 + $0x1150] sm:$0xf]  ;;  %v15145_v6 = vor.u32 %v19020_v4, %v15144_v60  ;;  %6864 = vmatpush.bf16.msrb.mxu2 %v14889_v0 }
 0x3cd   :  { %v18820_v3 = vld [vmem:[#allocation2 + $0x116c] sm:$0xf0] }
 0x3ce   :  { %v14600_v5 = vld [vmem:[#allocation2 + $0x1350] sm:$0xf]  ;;  %v14345_v16 = vor.u32 %v18820_v3, %v14344_v2  ;;  %6877 = vmatpush.bf16.msrb.mxu3 %v15145_v6  ;;  %v6625_v6 = vpop.f32.mrf.mxu3 }
 0x3cf   :  { %v18884_v7 = vld [vmem:[#allocation2 + $0x136c] sm:$0xf0] }
 0x3d0   :  { %v14856_v10 = vld [vmem:[#allocation2 + $0x1550] sm:$0xf]  ;;  %v14601_v17 = vor.u32 %v18884_v7, %v14600_v5  ;;  %6839 = vmatpush.bf16.msrb.mxu0 %v14345_v16  ;;  %v6613_v5 = vadd.f32 %v6612_v12, %v6600_v57 }
 0x3d1   :  { %v18948_v9 = vld [vmem:[#allocation2 + $0x156c] sm:$0xf0] }
 0x3d2   :  { %v15112_v13 = vld [vmem:[#allocation2 + $0x1750] sm:$0xf]  ;;  %v14857_v23 = vor.u32 %v18948_v9, %v14856_v10  ;;  %6852 = vmatpush.bf16.msrb.mxu1 %v14601_v17  ;;  %v6614_v50 = vpop.f32.mrf.mxu2 }
 0x3d3   :  { %v19012_v15 = vld [vmem:[#allocation2 + $0x176c] sm:$0xf0] }
 0x3d4   :  { %v14312_v24 = vld [vmem:[#allocation2 + $0x1110] sm:$0xf]  ;;  %v15113_v32 = vor.u32 %v19012_v15, %v15112_v13  ;;  %6865 = vmatpush.bf16.msrb.mxu2 %v14857_v23  ;;  %v20209_v13 = vadd.f32 %v6625_v6, %v6613_v5  ;;  %v6588_v15 = vpop.f32.mrf.mxu0 }
 0x3d5   :  { %v18812_v26 = vld [vmem:[#allocation2 + $0x112c] sm:$0xf0] }
 0x3d6   :  { %v14568_v31 = vld [vmem:[#allocation2 + $0x1310] sm:$0xf]  ;;  %v14313_v35 = vor.u32 %v18812_v26, %v14312_v24  ;;  %6878 = vmatpush.bf16.msrb.mxu3 %v15113_v32 }
 0x3d7   :  { %v18876_v34 = vld [vmem:[#allocation2 + $0x132c] sm:$0xf0] }
 0x3d8   :  { %v14824_v36 = vld [vmem:[#allocation2 + $0x1510] sm:$0xf]  ;;  %v14569_v45 = vor.u32 %v18876_v34, %v14568_v31  ;;  %6840 = vmatpush.bf16.msrb.mxu0 %v14313_v35  ;;  %v6601_v31 = vpop.f32.mrf.mxu1 }
 0x3d9   :  { %v18940_v37 = vld [vmem:[#allocation2 + $0x152c] sm:$0xf0] }
 0x3da   :  { %v15080_v39 = vld [vmem:[#allocation2 + $0x1710] sm:$0xf]  ;;  %v14825_v46 = vor.u32 %v18940_v37, %v14824_v36  ;;  %6853 = vmatpush.bf16.msrb.mxu1 %v14569_v45 }
 0x3db   :  { %v19004_v40 = vld [vmem:[#allocation2 + $0x172c] sm:$0xf0] }
 0x3dc   :  { %v14280_v11 = vld [vmem:[#allocation2 + $0x10d0] sm:$0xf]  ;;  %v15081_v55 = vor.u32 %v19004_v40, %v15080_v39  ;;  %6866 = vmatpush.bf16.msrb.mxu2 %v14825_v46 }
 0x3dd   :  { %v18804_v47 = vld [vmem:[#allocation2 + $0x10ec] sm:$0xf0] }
 0x3de   :  { %v14536_v49 = vld [vmem:[#allocation2 + $0x12d0] sm:$0xf]  ;;  %v14281_v58 = vor.u32 %v18804_v47, %v14280_v11  ;;  %6879 = vmatpush.bf16.msrb.mxu3 %v15081_v55 }
 0x3df   :  { %v18868_v51 = vld [vmem:[#allocation2 + $0x12ec] sm:$0xf0] }
 0x3e0   :  { %v14792_v52 = vld [vmem:[#allocation2 + $0x14d0] sm:$0xf]  ;;  %v14537_v61 = vor.u32 %v18868_v51, %v14536_v49  ;;  %6841 = vmatpush.bf16.msrb.mxu0 %v14281_v58 }
 0x3e1   :  { %v18932_v53 = vld [vmem:[#allocation2 + $0x14ec] sm:$0xf0] }
 0x3e2   :  { %v15048_v54 = vld [vmem:[#allocation2 + $0x16d0] sm:$0xf]  ;;  %v14793_v59 = vor.u32 %v18932_v53, %v14792_v52  ;;  %6854 = vmatpush.bf16.msrb.mxu1 %v14537_v61 }
 0x3e3   :  { %v18996_v56 = vld [vmem:[#allocation2 + $0x16ec] sm:$0xf0] }
 0x3e4   :  { %v14248_v60 = vld [vmem:[#allocation2 + $0x1090] sm:$0xf]  ;;  %v15049_v62 = vor.u32 %v18996_v56, %v15048_v54  ;;  %6867 = vmatpush.bf16.msrb.mxu2 %v14793_v59  ;;  %v6627_v54 = vpop.f32.mrf.mxu3 }
 0x3e5   :  { %v18796_v4 = vld [vmem:[#allocation2 + $0x10ac] sm:$0xf0] }
 0x3e6   :  { %v14504_v63 = vld [vmem:[#allocation2 + $0x1290] sm:$0xf]  ;;  %v14249_v9 = vor.u32 %v18796_v4, %v14248_v60  ;;  %6880 = vmatpush.bf16.msrb.mxu3 %v15049_v62  ;;  %v18320_v62 = vld [vmem:[#allocation2 + $0x1d4] sm:$0xf] }
 0x3e7   :  { %v18860_v0 = vld [vmem:[#allocation2 + $0x12ac] sm:$0xf0] }
 0x3e8   :  { %v14760_v2 = vld [vmem:[#allocation2 + $0x1490] sm:$0xf]  ;;  %v14505_v16 = vor.u32 %v18860_v0, %v14504_v63  ;;  %6842 = vmatpush.bf16.msrb.mxu0 %v14249_v9  ;;  %v12362_v0 = vld [vmem:[#allocation2 + $0x1f0] sm:$0xf0] }
 0x3e9   :  { %v18924_v3 = vld [vmem:[#allocation2 + $0x14ac] sm:$0xf0]  ;;  %v12365_v15 = vor.u32 %v18320_v62, %v12362_v0 }
 0x3ea   :  { %v15016_v7 = vld [vmem:[#allocation2 + $0x1690] sm:$0xf]  ;;  %v14761_v17 = vor.u32 %v18924_v3, %v14760_v2  ;;  %6855 = vmatpush.bf16.msrb.mxu1 %v14505_v16 }
 0x3eb   :  { %v18988_v10 = vld [vmem:[#allocation2 + $0x16ac] sm:$0xf0] }
 0x3ec   :  { %v14216_v23 = vld [vmem:[#allocation2 + $0x1050] sm:$0xf]  ;;  %v15017_v32 = vor.u32 %v18988_v10, %v15016_v7  ;;  %6868 = vmatpush.bf16.msrb.mxu2 %v14761_v17 }
 0x3ed   :  { %v18788_v24 = vld [vmem:[#allocation2 + $0x106c] sm:$0xf0] }
 0x3ee   :  { %v14472_v26 = vld [vmem:[#allocation2 + $0x1250] sm:$0xf]  ;;  %v14217_v35 = vor.u32 %v18788_v24, %v14216_v23  ;;  %6881 = vmatpush.bf16.msrb.mxu3 %v15017_v32  ;;  %v18312_v24 = vld [vmem:[#allocation2 + $0x194] sm:$0xf] }
 0x3ef   :  { %v18852_v34 = vld [vmem:[#allocation2 + $0x126c] sm:$0xf0] }
 0x3f0   :  { %v14728_v36 = vld [vmem:[#allocation2 + $0x1450] sm:$0xf]  ;;  %v14473_v46 = vor.u32 %v18852_v34, %v14472_v26  ;;  %6843 = vmatpush.bf16.msrb.mxu0 %v14217_v35  ;;  %v12330_v26 = vld [vmem:[#allocation2 + $0x1b0] sm:$0xf0] }
 0x3f1   :  { %v18916_v37 = vld [vmem:[#allocation2 + $0x146c] sm:$0xf0] }
 0x3f2   :  { %v14984_v39 = vld [vmem:[#allocation2 + $0x1650] sm:$0xf]  ;;  %v14729_v11 = vor.u32 %v18916_v37, %v14728_v36  ;;  %6856 = vmatpush.bf16.msrb.mxu1 %v14473_v46  ;;  %v18304_v46 = vld [vmem:[#allocation2 + $0x154] sm:$0xf] }
 0x3f3   :  { %v18980_v40 = vld [vmem:[#allocation2 + $0x166c] sm:$0xf0] }
 0x3f4   :  { %v14184_v43 = vld [vmem:[#allocation2 + $0x1010] sm:$0xf]  ;;  %v14985_v55 = vor.u32 %v18980_v40, %v14984_v39  ;;  %6869 = vmatpush.bf16.msrb.mxu2 %v14729_v11  ;;  %v12333_v40 = vor.u32 %v18312_v24, %v12330_v26  ;;  %v12298_v11 = vld [vmem:[#allocation2 + $0x170] sm:$0xf0] }
 0x3f5   :  { %v18780_v45 = vld [vmem:[#allocation2 + $0x102c] sm:$0xf0] }
 0x3f6   :  { %v14440_v47 = vld [vmem:[#allocation2 + $0x1210] sm:$0xf]  ;;  %v14185_v61 = vor.u32 %v18780_v45, %v14184_v43  ;;  %6882 = vmatpush.bf16.msrb.mxu3 %v14985_v55 }
 0x3f7   :  { %v18844_v49 = vld [vmem:[#allocation2 + $0x122c] sm:$0xf0] }
 0x3f8   :  { %v14696_v48 = vld [vmem:[#allocation2 + $0x1410] sm:$0xf]  ;;  %v14441_v63 = vor.u32 %v18844_v49, %v14440_v47  ;;  %6844 = vmatpush.bf16.msrb.mxu0 %v14185_v61  ;;  %v12266_v61 = vld [vmem:[#allocation2 + $0x130] sm:$0xf0] }
 0x3f9   :  { %v18908_v51 = vld [vmem:[#allocation2 + $0x142c] sm:$0xf0] }
 0x3fa   :  { %v14952_v52 = vld [vmem:[#allocation2 + $0x1610] sm:$0xf]  ;;  %v14697_v12 = vor.u32 %v18908_v51, %v14696_v48  ;;  %6857 = vmatpush.bf16.msrb.mxu1 %v14441_v63 }
 0x3fb   :  { %v18972_v53 = vld [vmem:[#allocation2 + $0x162c] sm:$0xf0]  ;;  %6845 = vmatmul.bf16.vlgmr.msrb.gmra.mxu0 %v20083_v25 }
 0x3fc   :  { %v15432_v56 = vld [vmem:[#allocation2 + $0x19d0] sm:$0xf]  ;;  %v14953_v2 = vor.u32 %v18972_v53, %v14952_v52  ;;  %6870 = vmatpush.bf16.msrb.mxu2 %v14697_v12  ;;  %v12301_v52 = vor.u32 %v18304_v46, %v12298_v11 }
 0x3fd   :  { %v19092_v57 = vld [vmem:[#allocation2 + $0x19ec] sm:$0xf0]  ;;  %6858 = vmatmul.bf16.vlgmr.msrb.gmra.mxu1 %v20087_v30 }
 0x3fe   :  { %v15688_v58 = vld [vmem:[#allocation2 + $0x1bd0] sm:$0xf]  ;;  %v15433_v3 = vor.u32 %v19092_v57, %v15432_v56  ;;  %6883 = vmatpush.bf16.msrb.mxu3 %v14953_v2  ;;  %v6638_v57 = vpop.f32.mrf.mxu0 }
 0x3ff   :  { %v19156_v59 = vld [vmem:[#allocation2 + $0x1bec] sm:$0xf0]  ;;  %6871 = vmatmul.bf16.vlgmr.msrb.gmra.mxu2 %v20085_v29 }
 0x400   :  { %v15944_v60 = vld [vmem:[#allocation2 + $0x1dd0] sm:$0xf]  ;;  %v15689_v5 = vor.u32 %v19156_v59, %v15688_v58  ;;  %6889 = vmatpush.bf16.msra.mxu0 %v15433_v3  ;;  %v18296_v58 = vld [vmem:[#allocation2 + $0x114] sm:$0xf]  ;;  %v6639_v59 = vadd.f32 %v6638_v57, %v20209_v13 }
 0x401   :  { %v19220_v4 = vld [vmem:[#allocation2 + $0x1dec] sm:$0xf0]  ;;  %6884 = vmatmul.bf16.vlgmr.msrb.gmra.mxu3 %v20089_v33  ;;  %v12269_v3 = vor.u32 %v18296_v58, %v12266_v61  ;;  %v18272_v57 = vld [vmem:[#allocation2 + $0x54] sm:$0xf] }
 0x402   :  { %v15945_v6 = vor.u32 %v19220_v4, %v15944_v60  ;;  %v15400_v7 = vld [vmem:[#allocation2 + $0x1990] sm:$0xf]  ;;  %6902 = vmatpush.bf16.msra.mxu1 %v15689_v5  ;;  %6928 = vmatpush.bf16.msra.mxu3 %v12365_v15  ;;  %v6651_v4 = vpop.f32.mrf.mxu1  ;;  %v12234_v15 = vld [vmem:[#allocation2 + $0xf0] sm:$0xf0] }
 0x403   :  { %v19084_v10 = vld [vmem:[#allocation2 + $0x19ac] sm:$0xf0]  ;;  %v6652_v5 = vadd.f32 %v6651_v4, %v6639_v59  ;;  %v12170_v58 = vld [vmem:[#allocation2 + $0x70] sm:$0xf0] }
 0x404   :  { %v15656_v9 = vld [vmem:[#allocation2 + $0x1b90] sm:$0xf]  ;;  %v15401_v31 = vor.u32 %v19084_v10, %v15400_v7  ;;  %6915 = vmatpush.bf16.msra.mxu2 %v15945_v6 }
 0x405   :  { %v19148_v16 = vld [vmem:[#allocation2 + $0x1bac] sm:$0xf0] }
 0x406   :  { %v15912_v17 = vld [vmem:[#allocation2 + $0x1d90] sm:$0xf]  ;;  %v15657_v32 = vor.u32 %v19148_v16, %v15656_v9  ;;  %6890 = vmatpush.bf16.msra.mxu0 %v15401_v31  ;;  %6929 = vmatpush.bf16.msra.mxu3 %v12333_v40  ;;  %v18288_v9 = vld [vmem:[#allocation2 + $0xd4] sm:$0xf]  ;;  %v6677_v40 = vpop.f32.mrf.mxu3 }
 0x407   :  { %v19212_v23 = vld [vmem:[#allocation2 + $0x1dac] sm:$0xf0]  ;;  %v12237_v31 = vor.u32 %v18288_v9, %v12234_v15  ;;  %v12618_v9 = vld [vmem:[#allocation2 + $0x3f0] sm:$0xf0] }
 0x408   :  { %v15913_v34 = vor.u32 %v19212_v23, %v15912_v17  ;;  %v15368_v36 = vld [vmem:[#allocation2 + $0x1950] sm:$0xf]  ;;  %6903 = vmatpush.bf16.msra.mxu1 %v15657_v32  ;;  %v6664_v32 = vpop.f32.mrf.mxu2  ;;  %v18448_v15 = vld [vmem:[#allocation2 + $0x5d4] sm:$0xf] }
 0x409   :  { %v19076_v37 = vld [vmem:[#allocation2 + $0x196c] sm:$0xf0] }
 0x40a   :  { %v15624_v39 = vld [vmem:[#allocation2 + $0x1b50] sm:$0xf]  ;;  %v15369_v47 = vor.u32 %v19076_v37, %v15368_v36  ;;  %6916 = vmatpush.bf16.msra.mxu2 %v15913_v34  ;;  %6930 = vmatpush.bf16.msra.mxu3 %v12301_v52  ;;  %v6653_v11 = vpop.f32.mrf.mxu1 }
 0x40b   :  { %v19140_v35 = vld [vmem:[#allocation2 + $0x1b6c] sm:$0xf0]  ;;  %v12842_v11 = vld [vmem:[#allocation2 + $0x5b0] sm:$0xf0] }
 0x40c   :  { %v15880_v43 = vld [vmem:[#allocation2 + $0x1d50] sm:$0xf]  ;;  %v15625_v49 = vor.u32 %v19140_v35, %v15624_v39  ;;  %6891 = vmatpush.bf16.msra.mxu0 %v15369_v47  ;;  %v6665_v39 = vadd.f32 %v6664_v32, %v6652_v5  ;;  %v18280_v35 = vld [vmem:[#allocation2 + $0x94] sm:$0xf] }
 0x40d   :  { %v19204_v45 = vld [vmem:[#allocation2 + $0x1d6c] sm:$0xf0]  ;;  %v18264_v5 = vld [vmem:[#allocation2 + $0x14] sm:$0xf] }
 0x40e   :  { %v15881_v48 = vor.u32 %v19204_v45, %v15880_v43  ;;  %v15336_v50 = vld [vmem:[#allocation2 + $0x1910] sm:$0xf]  ;;  %6904 = vmatpush.bf16.msra.mxu1 %v15625_v49  ;;  %6931 = vmatpush.bf16.msra.mxu3 %v12269_v3  ;;  %v12202_v43 = vld [vmem:[#allocation2 + $0xb0] sm:$0xf0]  ;;  %v6640_v45 = vpop.f32.mrf.mxu0  ;;  %v20216_v47 = vadd.f32 %v6677_v40, %v6665_v39 }
 0x40f   :  { %v19068_v55 = vld [vmem:[#allocation2 + $0x192c] sm:$0xf0]  ;;  %v12205_v52 = vor.u32 %v18280_v35, %v12202_v43  ;;  %v18576_v32 = vld [vmem:[#allocation2 + $0x9d4] sm:$0xf] }
 0x410   :  { %v15592_v51 = vld [vmem:[#allocation2 + $0x1b10] sm:$0xf]  ;;  %v15337_v60 = vor.u32 %v19068_v55, %v15336_v50  ;;  %6917 = vmatpush.bf16.msra.mxu2 %v15881_v48  ;;  %v18376_v35 = vld [vmem:[#allocation2 + $0x394] sm:$0xf] }
 0x411   :  { %v19132_v53 = vld [vmem:[#allocation2 + $0x1b2c] sm:$0xf0]  ;;  %v12586_v43 = vld [vmem:[#allocation2 + $0x3b0] sm:$0xf0] }
 0x412   :  { %v15848_v54 = vld [vmem:[#allocation2 + $0x1d10] sm:$0xf]  ;;  %v15593_v63 = vor.u32 %v19132_v53, %v15592_v51  ;;  %6892 = vmatpush.bf16.msra.mxu0 %v15337_v60  ;;  %6932 = vmatpush.bf16.msra.mxu3 %v12237_v31  ;;  %v18440_v45 = vld [vmem:[#allocation2 + $0x594] sm:$0xf] }
 0x413   :  { %v19196_v56 = vld [vmem:[#allocation2 + $0x1d2c] sm:$0xf0] }
 0x414   :  { %v15849_v12 = vor.u32 %v19196_v56, %v15848_v54  ;;  %v15304_v62 = vld [vmem:[#allocation2 + $0x18d0] sm:$0xf]  ;;  %6905 = vmatpush.bf16.msra.mxu1 %v15593_v63 }
 0x415   :  { %v19060_v0 = vld [vmem:[#allocation2 + $0x18ec] sm:$0xf0] }
 0x416   :  { %v15560_v2 = vld [vmem:[#allocation2 + $0x1ad0] sm:$0xf]  ;;  %v15305_v16 = vor.u32 %v19060_v0, %v15304_v62  ;;  %6918 = vmatpush.bf16.msra.mxu2 %v15849_v12  ;;  %6933 = vmatpush.bf16.msra.mxu3 %v12205_v52  ;;  %v12845_v52 = vor.u32 %v18440_v45, %v12842_v11  ;;  %v18544_v45 = vld [vmem:[#allocation2 + $0x8d4] sm:$0xf] }
 0x417   :  { %v19124_v6 = vld [vmem:[#allocation2 + $0x1aec] sm:$0xf0] }
 0x418   :  { %v15816_v7 = vld [vmem:[#allocation2 + $0x1cd0] sm:$0xf]  ;;  %v15561_v13 = vor.u32 %v19124_v6, %v15560_v2  ;;  %6893 = vmatpush.bf16.msra.mxu0 %v15305_v16  ;;  %v12173_v2 = vor.u32 %v18272_v57, %v12170_v58  ;;  %v12138_v6 = vld [vmem:[#allocation2 + $0x30] sm:$0xf0]  ;;  %v6679_v16 = vpop.f32.mrf.mxu3 }
 0x419   :  { %v19188_v10 = vld [vmem:[#allocation2 + $0x1cec] sm:$0xf0]  ;;  %v18432_v57 = vld [vmem:[#allocation2 + $0x554] sm:$0xf] }
 0x41a   :  { %v15817_v17 = vor.u32 %v19188_v10, %v15816_v7  ;;  %v15272_v23 = vld [vmem:[#allocation2 + $0x1890] sm:$0xf]  ;;  %6906 = vmatpush.bf16.msra.mxu1 %v15561_v13  ;;  %v6666_v7 = vpop.f32.mrf.mxu2  ;;  %v18384_v10 = vld [vmem:[#allocation2 + $0x3d4] sm:$0xf]  ;;  %6934 = vmatpush.bf16.msra.mxu3 %v12173_v2 }
 0x41b   :  { %v19052_v24 = vld [vmem:[#allocation2 + $0x18ac] sm:$0xf0]  ;;  %v18360_v2 = vld [vmem:[#allocation2 + $0x314] sm:$0xf] }
 0x41c   :  { %v15528_v26 = vld [vmem:[#allocation2 + $0x1a90] sm:$0xf]  ;;  %v15273_v46 = vor.u32 %v19052_v24, %v15272_v23  ;;  %6919 = vmatpush.bf16.msra.mxu2 %v15817_v17  ;;  %v12874_v17 = vld [vmem:[#allocation2 + $0x5f0] sm:$0xf0] }
 0x41d   :  { %v19116_v34 = vld [vmem:[#allocation2 + $0x1aac] sm:$0xf0]  ;;  %v18512_v23 = vld [vmem:[#allocation2 + $0x7d4] sm:$0xf]  ;;  %v12877_v39 = vor.u32 %v18448_v15, %v12874_v17  ;;  %v6690_v15 = vpop.f32.mrf.mxu0 }
 0x41e   :  { %v15784_v36 = vld [vmem:[#allocation2 + $0x1c90] sm:$0xf]  ;;  %v15529_v49 = vor.u32 %v19116_v34, %v15528_v26  ;;  %6894 = vmatpush.bf16.msra.mxu0 %v15273_v46  ;;  %v13130_v24 = vld [vmem:[#allocation2 + $0x7f0] sm:$0xf0]  ;;  %v6691_v17 = vadd.f32 %v6690_v15, %v20216_v47 }
 0x41f   :  { %v19180_v37 = vld [vmem:[#allocation2 + $0x1cac] sm:$0xf0]  ;;  %v13386_v34 = vld [vmem:[#allocation2 + $0x9f0] sm:$0xf0]  ;;  %v13133_v40 = vor.u32 %v18512_v23, %v13130_v24  ;;  %v6703_v24 = vpop.f32.mrf.mxu1 }
 0x420   :  { %v15785_v48 = vor.u32 %v19180_v37, %v15784_v36  ;;  %v15240_v50 = vld [vmem:[#allocation2 + $0x1850] sm:$0xf]  ;;  %6907 = vmatpush.bf16.msra.mxu1 %v15529_v49  ;;  %v12141_v36 = vor.u32 %v18264_v5, %v12138_v6  ;;  %v12621_v37 = vor.u32 %v18384_v10, %v12618_v9  ;;  %v13389_v46 = vor.u32 %v18576_v32, %v13386_v34  ;;  %v18504_v49 = vld [vmem:[#allocation2 + $0x794] sm:$0xf] }
 0x421   :  { %v19044_v55 = vld [vmem:[#allocation2 + $0x186c] sm:$0xf0]  ;;  %v18424_v5 = vld [vmem:[#allocation2 + $0x514] sm:$0xf] }
 0x422   :  { %v15496_v51 = vld [vmem:[#allocation2 + $0x1a50] sm:$0xf]  ;;  %v15241_v61 = vor.u32 %v19044_v55, %v15240_v50  ;;  %6920 = vmatpush.bf16.msra.mxu2 %v15785_v48  ;;  %v13098_v48 = vld [vmem:[#allocation2 + $0x7b0] sm:$0xf0]  ;;  %6935 = vmatpush.bf16.msra.mxu3 %v12141_v36 }
 0x423   :  { %v19108_v53 = vld [vmem:[#allocation2 + $0x1a6c] sm:$0xf0]  ;;  %v18568_v50 = vld [vmem:[#allocation2 + $0x994] sm:$0xf] }
 0x424   :  { %v15752_v54 = vld [vmem:[#allocation2 + $0x1c50] sm:$0xf]  ;;  %v15497_v4 = vor.u32 %v19108_v53, %v15496_v51  ;;  %6895 = vmatpush.bf16.msra.mxu0 %v15241_v61  ;;  %v13354_v55 = vld [vmem:[#allocation2 + $0x9b0] sm:$0xf0]  ;;  %v12589_v51 = vor.u32 %v18376_v35, %v12586_v43  ;;  %v13101_v53 = vor.u32 %v18504_v49, %v13098_v48 }
 0x425   :  { %v19172_v56 = vld [vmem:[#allocation2 + $0x1c6c] sm:$0xf0]  ;;  %v13357_v58 = vor.u32 %v18568_v50, %v13354_v55  ;;  %v12810_v61 = vld [vmem:[#allocation2 + $0x570] sm:$0xf0]  ;;  %6936 = vmatmul.bf16.vlgmr.msra.gmra.mxu3 %v20049_v19 }
 0x426   :  { %v15208_v59 = vld [vmem:[#allocation2 + $0x1810] sm:$0xf]  ;;  %v15753_v63 = vor.u32 %v19172_v56, %v15752_v54  ;;  %6908 = vmatpush.bf16.msra.mxu1 %v15497_v4  ;;  %v18368_v54 = vld [vmem:[#allocation2 + $0x354] sm:$0xf]  ;;  %6980 = vmatpush.bf16.msrb.mxu3 %v13389_v46 }
 0x427   :  { %v19036_v60 = vld [vmem:[#allocation2 + $0x182c] sm:$0xf0]  ;;  %v12554_v56 = vld [vmem:[#allocation2 + $0x370] sm:$0xf0] }
 0x428   :  { %v15464_v12 = vld [vmem:[#allocation2 + $0x1a10] sm:$0xf]  ;;  %v15209_v13 = vor.u32 %v19036_v60, %v15208_v59  ;;  %6921 = vmatpush.bf16.msra.mxu2 %v15753_v63  ;;  %v18496_v59 = vld [vmem:[#allocation2 + $0x754] sm:$0xf] }
 0x429   :  { %v19100_v62 = vld [vmem:[#allocation2 + $0x1a2c] sm:$0xf0]  ;;  %v13066_v60 = vld [vmem:[#allocation2 + $0x770] sm:$0xf0] }
 0x42a   :  { %v15720_v0 = vld [vmem:[#allocation2 + $0x1c10] sm:$0xf]  ;;  %v15465_v26 = vor.u32 %v19100_v62, %v15464_v12  ;;  %6896 = vmatpush.bf16.msra.mxu0 %v15209_v13  ;;  %v18560_v4 = vld [vmem:[#allocation2 + $0x954] sm:$0xf]  ;;  %v12557_v12 = vor.u32 %v18368_v54, %v12554_v56  ;;  %v12813_v62 = vor.u32 %v18432_v57, %v12810_v61  ;;  %6981 = vmatpush.bf16.msrb.mxu3 %v13357_v58  ;;  %v6729_v58 = vpop.f32.mrf.mxu3 }
 0x42b   :  { %v19164_v3 = vld [vmem:[#allocation2 + $0x1c2c] sm:$0xf0]  ;;  %v13322_v63 = vld [vmem:[#allocation2 + $0x970] sm:$0xf0] }
 0x42c   :  { %v15721_v31 = vor.u32 %v19164_v3, %v15720_v0  ;;  %6909 = vmatpush.bf16.msra.mxu1 %v15465_v26  ;;  %v13069_v0 = vor.u32 %v18496_v59, %v13066_v60  ;;  %v12522_v3 = vld [vmem:[#allocation2 + $0x330] sm:$0xf0]  ;;  %v13325_v6 = vor.u32 %v18560_v4, %v13322_v63  ;;  %v6692_v60 = vpop.f32.mrf.mxu0  ;;  %v6705_v63 = vpop.f32.mrf.mxu1 }
 0x42d   :  { %6897 = vmatmul.bf16.vlgmr.msra.gmra.mxu0 %v20101_v21  ;;  %v12778_v7 = vld [vmem:[#allocation2 + $0x530] sm:$0xf0]  ;;  %v12525_v23 = vor.u32 %v18360_v2, %v12522_v3 }
 0x42e   :  { %6922 = vmatpush.bf16.msra.mxu2 %v15721_v31  ;;  %6941 = vmatpush.bf16.msrb.mxu0 %v12621_v37  ;;  %v18488_v10 = vld [vmem:[#allocation2 + $0x714] sm:$0xf]  ;;  %v12781_v26 = vor.u32 %v18424_v5, %v12778_v7 }
 0x42f   :  { %6910 = vmatmul.bf16.vlgmr.msra.gmra.mxu1 %v20105_v28  ;;  %v13034_v9 = vld [vmem:[#allocation2 + $0x730] sm:$0xf0]  ;;  %6982 = vmatpush.bf16.msrb.mxu3 %v13325_v6 }
 0x430   :  { %6954 = vmatpush.bf16.msrb.mxu1 %v12877_v39  ;;  %v18552_v16 = vld [vmem:[#allocation2 + $0x914] sm:$0xf]  ;;  %v13037_v31 = vor.u32 %v18488_v10, %v13034_v9  ;;  %v6704_v39 = vadd.f32 %v6703_v24, %v6691_v17 }
 0x431   :  { %6923 = vmatmul.bf16.vlgmr.msra.gmra.mxu2 %v20103_v27  ;;  %v13290_v13 = vld [vmem:[#allocation2 + $0x930] sm:$0xf0] }
 0x432   :  { %6967 = vmatpush.bf16.msrb.mxu2 %v13133_v40  ;;  %6942 = vmatpush.bf16.msrb.mxu0 %v12589_v51  ;;  %v18352_v32 = vld [vmem:[#allocation2 + $0x2d4] sm:$0xf]  ;;  %v13293_v37 = vor.u32 %v18552_v16, %v13290_v13 }
 0x433   :  { %v12490_v34 = vld [vmem:[#allocation2 + $0x2f0] sm:$0xf0] }
 0x434   :  { %6955 = vmatpush.bf16.msrb.mxu1 %v12845_v52  ;;  %v18416_v36 = vld [vmem:[#allocation2 + $0x4d4] sm:$0xf]  ;;  %v12493_v11 = vor.u32 %v18352_v32, %v12490_v34  ;;  %6983 = vmatpush.bf16.msrb.mxu3 %v13293_v37  ;;  %v6716_v52 = vpop.f32.mrf.mxu2 }
 0x435   :  { %v12746_v40 = vld [vmem:[#allocation2 + $0x4f0] sm:$0xf0]  ;;  %v6717_v57 = vadd.f32 %v6716_v52, %v6704_v39 }
 0x436   :  { %6968 = vmatpush.bf16.msrb.mxu2 %v13101_v53  ;;  %6943 = vmatpush.bf16.msrb.mxu0 %v12557_v12  ;;  %v18480_v35 = vld [vmem:[#allocation2 + $0x6d4] sm:$0xf]  ;;  %v12749_v47 = vor.u32 %v18416_v36, %v12746_v40 }
 0x437   :  { %v13002_v43 = vld [vmem:[#allocation2 + $0x6f0] sm:$0xf0]  ;;  %v20223_v12 = vadd.f32 %v6729_v58, %v6717_v57 }
 0x438   :  { %6956 = vmatpush.bf16.msrb.mxu1 %v12813_v62  ;;  %v13258_v46 = vld [vmem:[#allocation2 + $0x8f0] sm:$0xf0]  ;;  %v13005_v49 = vor.u32 %v18480_v35, %v13002_v43 }
 0x439   :  { %v18344_v48 = vld [vmem:[#allocation2 + $0x294] sm:$0xf]  ;;  %v13261_v51 = vor.u32 %v18544_v45, %v13258_v46 }
 0x43a   :  { %6969 = vmatpush.bf16.msrb.mxu2 %v13069_v0  ;;  %6944 = vmatpush.bf16.msrb.mxu0 %v12525_v23  ;;  %v12458_v50 = vld [vmem:[#allocation2 + $0x2b0] sm:$0xf0] }
 0x43b   :  { %v18408_v55 = vld [vmem:[#allocation2 + $0x494] sm:$0xf]  ;;  %v12461_v4 = vor.u32 %v18344_v48, %v12458_v50  ;;  %6984 = vmatpush.bf16.msrb.mxu3 %v13261_v51 }
 0x43c   :  { %6957 = vmatpush.bf16.msrb.mxu1 %v12781_v26  ;;  %v12714_v53 = vld [vmem:[#allocation2 + $0x4b0] sm:$0xf0]  ;;  %v6718_v35 = vpop.f32.mrf.mxu2 }
 0x43d   :  { %v18472_v54 = vld [vmem:[#allocation2 + $0x694] sm:$0xf]  ;;  %v12717_v62 = vor.u32 %v18408_v55, %v12714_v53 }
 0x43e   :  { %6970 = vmatpush.bf16.msrb.mxu2 %v13037_v31  ;;  %v12970_v56 = vld [vmem:[#allocation2 + $0x6b0] sm:$0xf0]  ;;  %6945 = vmatpush.bf16.msrb.mxu0 %v12493_v11  ;;  %v6731_v11 = vpop.f32.mrf.mxu3 }
 0x43f   :  { %v18536_v61 = vld [vmem:[#allocation2 + $0x894] sm:$0xf]  ;;  %v12973_v0 = vor.u32 %v18472_v54, %v12970_v56 }
 0x440   :  { %v13226_v59 = vld [vmem:[#allocation2 + $0x8b0] sm:$0xf0]  ;;  %6958 = vmatpush.bf16.msrb.mxu1 %v12749_v47 }
 0x441   :  { %v18336_v2 = vld [vmem:[#allocation2 + $0x254] sm:$0xf]  ;;  %v13229_v6 = vor.u32 %v18536_v61, %v13226_v59 }
 0x442   :  { %6971 = vmatpush.bf16.msrb.mxu2 %v13005_v49  ;;  %v12426_v3 = vld [vmem:[#allocation2 + $0x270] sm:$0xf0]  ;;  %6946 = vmatpush.bf16.msrb.mxu0 %v12461_v4 }
 0x443   :  { %v18400_v5 = vld [vmem:[#allocation2 + $0x454] sm:$0xf]  ;;  %v12429_v13 = vor.u32 %v18336_v2, %v12426_v3  ;;  %6985 = vmatpush.bf16.msrb.mxu3 %v13229_v6 }
 0x444   :  { %v12682_v7 = vld [vmem:[#allocation2 + $0x470] sm:$0xf0]  ;;  %6959 = vmatpush.bf16.msrb.mxu1 %v12717_v62 }
 0x445   :  { %v18464_v10 = vld [vmem:[#allocation2 + $0x654] sm:$0xf]  ;;  %v12685_v24 = vor.u32 %v18400_v5, %v12682_v7 }
 0x446   :  { %v12938_v9 = vld [vmem:[#allocation2 + $0x670] sm:$0xf0]  ;;  %6972 = vmatpush.bf16.msrb.mxu2 %v12973_v0  ;;  %6947 = vmatpush.bf16.msrb.mxu0 %v12429_v13 }
 0x447   :  { %v18528_v15 = vld [vmem:[#allocation2 + $0x854] sm:$0xf]  ;;  %v12941_v26 = vor.u32 %v18464_v10, %v12938_v9 }
 0x448   :  { %v13194_v16 = vld [vmem:[#allocation2 + $0x870] sm:$0xf0]  ;;  %6960 = vmatpush.bf16.msrb.mxu1 %v12685_v24 }
 0x449   :  { %v18328_v17 = vld [vmem:[#allocation2 + $0x214] sm:$0xf]  ;;  %v13197_v36 = vor.u32 %v18528_v15, %v13194_v16 }
 0x44a   :  { %v12394_v23 = vld [vmem:[#allocation2 + $0x230] sm:$0xf0]  ;;  %6973 = vmatpush.bf16.msrb.mxu2 %v12941_v26 }
 0x44b   :  { %v18392_v31 = vld [vmem:[#allocation2 + $0x414] sm:$0xf]  ;;  %v12397_v47 = vor.u32 %v18328_v17, %v12394_v23  ;;  %6986 = vmatpush.bf16.msrb.mxu3 %v13197_v36 }
 0x44c   :  { %v12650_v32 = vld [vmem:[#allocation2 + $0x430] sm:$0xf0] }
 0x44d   :  { %v18456_v34 = vld [vmem:[#allocation2 + $0x614] sm:$0xf]  ;;  %v12653_v55 = vor.u32 %v18392_v31, %v12650_v32  ;;  %6948 = vmatpush.bf16.msrb.mxu0 %v12397_v47 }
 0x44e   :  { %v12906_v37 = vld [vmem:[#allocation2 + $0x630] sm:$0xf0] }
 0x44f   :  { %v18520_v39 = vld [vmem:[#allocation2 + $0x814] sm:$0xf]  ;;  %v12909_v51 = vor.u32 %v18456_v34, %v12906_v37  ;;  %6961 = vmatpush.bf16.msrb.mxu1 %v12653_v55 }
 0x450   :  { %v13162_v40 = vld [vmem:[#allocation2 + $0x830] sm:$0xf0]  ;;  %6949 = vmatmul.bf16.vlgmr.msrb.gmra.mxu0 %v20053_v22 }
 0x451   :  { %v18640_v43 = vld [vmem:[#allocation2 + $0xbd4] sm:$0xf]  ;;  %v13165_v54 = vor.u32 %v18520_v39, %v13162_v40  ;;  %6974 = vmatpush.bf16.msrb.mxu2 %v12909_v51  ;;  %v19815_v40 = vld [vmem:[#allocation4] sm:$0xff] }
 0x452   :  { %v13642_v45 = vld [vmem:[#allocation2 + $0xbf0] sm:$0xf0]  ;;  %6962 = vmatmul.bf16.vlgmr.msrb.gmra.mxu1 %v20047_v18  ;;  %v1088_v35 = vperm.slane %v19815_v40, 4 }
 0x453   :  { %v18704_v46 = vld [vmem:[#allocation2 + $0xdd4] sm:$0xf]  ;;  %v13645_v56 = vor.u32 %v18640_v43, %v13642_v45  ;;  %6987 = vmatpush.bf16.msrb.mxu3 %v13165_v54 }
 0x454   :  { %v13898_v49 = vld [vmem:[#allocation2 + $0xdf0] sm:$0xf0]  ;;  %6975 = vmatmul.bf16.vlgmr.msrb.gmra.mxu2 %v20051_v20 }
 0x455   :  { %v18768_v48 = vld [vmem:[#allocation2 + $0xfd4] sm:$0xf]  ;;  %v13901_v57 = vor.u32 %v18704_v46, %v13898_v49  ;;  %6993 = vmatpush.bf16.msra.mxu0 %v13645_v56 }
 0x456   :  { %v14154_v50 = vld [vmem:[#allocation2 + $0xff0] sm:$0xf0]  ;;  %6988 = vmatmul.bf16.vlgmr.msrb.gmra.mxu3 %v20067_v41 }
 0x457   :  { %v18832_v52 = vld [vmem:[#allocation2 + $0x11d4] sm:$0xf]  ;;  %v14157_v58 = vor.u32 %v18768_v48, %v14154_v50  ;;  %7006 = vmatpush.bf16.msra.mxu1 %v13901_v57  ;;  %v6742_v50 = vpop.f32.mrf.mxu0  ;;  %v6755_v57 = vpop.f32.mrf.mxu1 }
 0x458   :  { %v14410_v53 = vld [vmem:[#allocation2 + $0x11f0] sm:$0xf0]  ;;  %v6743_v56 = vadd.f32 %v6742_v50, %v1088_v35 }
 0x459   :  { %v18632_v61 = vld [vmem:[#allocation2 + $0xb94] sm:$0xf]  ;;  %v14413_v4 = vor.u32 %v18832_v52, %v14410_v53  ;;  %7019 = vmatpush.bf16.msra.mxu2 %v14157_v58 }
 0x45a   :  { %v13610_v59 = vld [vmem:[#allocation2 + $0xbb0] sm:$0xf0] }
 0x45b   :  { %v18696_v60 = vld [vmem:[#allocation2 + $0xd94] sm:$0xf]  ;;  %v13613_v5 = vor.u32 %v18632_v61, %v13610_v59  ;;  %7032 = vmatpush.bf16.msra.mxu3 %v14413_v4 }
 0x45c   :  { %v13866_v63 = vld [vmem:[#allocation2 + $0xdb0] sm:$0xf0] }
 0x45d   :  { %v18760_v62 = vld [vmem:[#allocation2 + $0xf94] sm:$0xf]  ;;  %v13869_v6 = vor.u32 %v18696_v60, %v13866_v63  ;;  %6994 = vmatpush.bf16.msra.mxu0 %v13613_v5 }
 0x45e   :  { %v14122_v0 = vld [vmem:[#allocation2 + $0xfb0] sm:$0xf0] }
 0x45f   :  { %v18824_v2 = vld [vmem:[#allocation2 + $0x1194] sm:$0xf]  ;;  %v14125_v7 = vor.u32 %v18760_v62, %v14122_v0  ;;  %7007 = vmatpush.bf16.msra.mxu1 %v13869_v6  ;;  %v6756_v62 = vadd.f32 %v6755_v57, %v6743_v56 }
 0x460   :  { %v14378_v3 = vld [vmem:[#allocation2 + $0x11b0] sm:$0xf0] }
 0x461   :  { %v18624_v10 = vld [vmem:[#allocation2 + $0xb54] sm:$0xf]  ;;  %v14381_v16 = vor.u32 %v18824_v2, %v14378_v3  ;;  %7020 = vmatpush.bf16.msra.mxu2 %v14125_v7 }
 0x462   :  { %v13578_v9 = vld [vmem:[#allocation2 + $0xb70] sm:$0xf0] }
 0x463   :  { %v18688_v15 = vld [vmem:[#allocation2 + $0xd54] sm:$0xf]  ;;  %v13581_v31 = vor.u32 %v18624_v10, %v13578_v9  ;;  %7033 = vmatpush.bf16.msra.mxu3 %v14381_v16  ;;  %v6768_v10 = vpop.f32.mrf.mxu2 }
 0x464   :  { %v13834_v13 = vld [vmem:[#allocation2 + $0xd70] sm:$0xf0] }
 0x465   :  { %v18752_v17 = vld [vmem:[#allocation2 + $0xf54] sm:$0xf]  ;;  %v13837_v34 = vor.u32 %v18688_v15, %v13834_v13  ;;  %6995 = vmatpush.bf16.msra.mxu0 %v13581_v31 }
 0x466   :  { %v14090_v23 = vld [vmem:[#allocation2 + $0xf70] sm:$0xf0] }
 0x467   :  { %v18816_v24 = vld [vmem:[#allocation2 + $0x1154] sm:$0xf]  ;;  %v14093_v36 = vor.u32 %v18752_v17, %v14090_v23  ;;  %7008 = vmatpush.bf16.msra.mxu1 %v13837_v34  ;;  %v6769_v17 = vadd.f32 %v6768_v10, %v6756_v62  ;;  %v6781_v23 = vpop.f32.mrf.mxu3  ;;  %v6744_v34 = vpop.f32.mrf.mxu0 }
 0x468   :  { %v14346_v26 = vld [vmem:[#allocation2 + $0x1170] sm:$0xf0] }
 0x469   :  { %v18616_v32 = vld [vmem:[#allocation2 + $0xb14] sm:$0xf]  ;;  %v14349_v43 = vor.u32 %v18816_v24, %v14346_v26  ;;  %7021 = vmatpush.bf16.msra.mxu2 %v14093_v36 }
 0x46a   :  { %v13546_v37 = vld [vmem:[#allocation2 + $0xb30] sm:$0xf0] }
 0x46b   :  { %v18680_v39 = vld [vmem:[#allocation2 + $0xd14] sm:$0xf]  ;;  %v13549_v48 = vor.u32 %v18616_v32, %v13546_v37  ;;  %7034 = vmatpush.bf16.msra.mxu3 %v14349_v43  ;;  %v20229_v32 = vadd.f32 %v6781_v23, %v6769_v17  ;;  %v6757_v43 = vpop.f32.mrf.mxu1 }
 0x46c   :  { %v13802_v45 = vld [vmem:[#allocation2 + $0xd30] sm:$0xf0] }
 0x46d   :  { %v18744_v46 = vld [vmem:[#allocation2 + $0xf14] sm:$0xf]  ;;  %v13805_v55 = vor.u32 %v18680_v39, %v13802_v45  ;;  %6996 = vmatpush.bf16.msra.mxu0 %v13549_v48 }
 0x46e   :  { %v14058_v11 = vld [vmem:[#allocation2 + $0xf30] sm:$0xf0] }
 0x46f   :  { %v18808_v47 = vld [vmem:[#allocation2 + $0x1114] sm:$0xf]  ;;  %v14061_v51 = vor.u32 %v18744_v46, %v14058_v11  ;;  %7009 = vmatpush.bf16.msra.mxu1 %v13805_v55 }
 0x470   :  { %v14314_v49 = vld [vmem:[#allocation2 + $0x1130] sm:$0xf0] }
 0x471   :  { %v18608_v52 = vld [vmem:[#allocation2 + $0xad4] sm:$0xf]  ;;  %v14317_v58 = vor.u32 %v18808_v47, %v14314_v49  ;;  %7022 = vmatpush.bf16.msra.mxu2 %v14061_v51 }
 0x472   :  { %v13514_v53 = vld [vmem:[#allocation2 + $0xaf0] sm:$0xf0] }
 0x473   :  { %v18672_v54 = vld [vmem:[#allocation2 + $0xcd4] sm:$0xf]  ;;  %v13517_v0 = vor.u32 %v18608_v52, %v13514_v53  ;;  %7035 = vmatpush.bf16.msra.mxu3 %v14317_v58  ;;  %v6770_v58 = vpop.f32.mrf.mxu2 }
 0x474   :  { %v13770_v61 = vld [vmem:[#allocation2 + $0xcf0] sm:$0xf0] }
 0x475   :  { %v18736_v59 = vld [vmem:[#allocation2 + $0xed4] sm:$0xf]  ;;  %v13773_v2 = vor.u32 %v18672_v54, %v13770_v61  ;;  %6997 = vmatpush.bf16.msra.mxu0 %v13517_v0 }
 0x476   :  { %v14026_v60 = vld [vmem:[#allocation2 + $0xef0] sm:$0xf0] }
 0x477   :  { %v18800_v4 = vld [vmem:[#allocation2 + $0x10d4] sm:$0xf]  ;;  %v14029_v3 = vor.u32 %v18736_v59, %v14026_v60  ;;  %7010 = vmatpush.bf16.msra.mxu1 %v13773_v2 }
 0x478   :  { %v14282_v63 = vld [vmem:[#allocation2 + $0x10f0] sm:$0xf0] }
 0x479   :  { %v18600_v5 = vld [vmem:[#allocation2 + $0xa94] sm:$0xf]  ;;  %v14285_v9 = vor.u32 %v18800_v4, %v14282_v63  ;;  %7023 = vmatpush.bf16.msra.mxu2 %v14029_v3  ;;  %v6783_v63 = vpop.f32.mrf.mxu3 }
 0x47a   :  { %v13482_v6 = vld [vmem:[#allocation2 + $0xab0] sm:$0xf0] }
 0x47b   :  { %v18664_v7 = vld [vmem:[#allocation2 + $0xc94] sm:$0xf]  ;;  %v13485_v31 = vor.u32 %v18600_v5, %v13482_v6  ;;  %7036 = vmatpush.bf16.msra.mxu3 %v14285_v9 }
 0x47c   :  { %v13738_v15 = vld [vmem:[#allocation2 + $0xcb0] sm:$0xf0] }
 0x47d   :  { %v18728_v16 = vld [vmem:[#allocation2 + $0xe94] sm:$0xf]  ;;  %v13741_v36 = vor.u32 %v18664_v7, %v13738_v15  ;;  %6998 = vmatpush.bf16.msra.mxu0 %v13485_v31 }
 0x47e   :  { %v13994_v13 = vld [vmem:[#allocation2 + $0xeb0] sm:$0xf0] }
 0x47f   :  { %v18792_v24 = vld [vmem:[#allocation2 + $0x1094] sm:$0xf]  ;;  %v13997_v37 = vor.u32 %v18728_v16, %v13994_v13  ;;  %7011 = vmatpush.bf16.msra.mxu1 %v13741_v36 }
 0x480   :  { %v14250_v26 = vld [vmem:[#allocation2 + $0x10b0] sm:$0xf0] }
 0x481   :  { %v18592_v39 = vld [vmem:[#allocation2 + $0xa54] sm:$0xf]  ;;  %v14253_v45 = vor.u32 %v18792_v24, %v14250_v26  ;;  %7024 = vmatpush.bf16.msra.mxu2 %v13997_v37 }
 0x482   :  { %v13450_v40 = vld [vmem:[#allocation2 + $0xa70] sm:$0xf0] }
 0x483   :  { %v18656_v35 = vld [vmem:[#allocation2 + $0xc54] sm:$0xf]  ;;  %v13453_v50 = vor.u32 %v18592_v39, %v13450_v40  ;;  %7037 = vmatpush.bf16.msra.mxu3 %v14253_v45 }
 0x484   :  { %v13706_v46 = vld [vmem:[#allocation2 + $0xc70] sm:$0xf0] }
 0x485   :  { %v18720_v11 = vld [vmem:[#allocation2 + $0xe54] sm:$0xf]  ;;  %v13709_v52 = vor.u32 %v18656_v35, %v13706_v46  ;;  %6999 = vmatpush.bf16.msra.mxu0 %v13453_v50 }
 0x486   :  { %v13962_v47 = vld [vmem:[#allocation2 + $0xe70] sm:$0xf0] }
 0x487   :  { %v18784_v49 = vld [vmem:[#allocation2 + $0x1054] sm:$0xf]  ;;  %v13965_v53 = vor.u32 %v18720_v11, %v13962_v47  ;;  %7012 = vmatpush.bf16.msra.mxu1 %v13709_v52 }
 0x488   :  { %v14218_v48 = vld [vmem:[#allocation2 + $0x1070] sm:$0xf0] }
 0x489   :  { %v18584_v55 = vld [vmem:[#allocation2 + $0xa14] sm:$0xf]  ;;  %v14221_v61 = vor.u32 %v18784_v49, %v14218_v48  ;;  %7025 = vmatpush.bf16.msra.mxu2 %v13965_v53 }
 0x48a   :  { %v13418_v51 = vld [vmem:[#allocation2 + $0xa30] sm:$0xf0] }
 0x48b   :  { %v18648_v54 = vld [vmem:[#allocation2 + $0xc14] sm:$0xf]  ;;  %v13421_v3 = vor.u32 %v18584_v55, %v13418_v51  ;;  %7038 = vmatpush.bf16.msra.mxu3 %v14221_v61 }
 0x48c   :  { %v13674_v56 = vld [vmem:[#allocation2 + $0xc30] sm:$0xf0] }
 0x48d   :  { %v18712_v57 = vld [vmem:[#allocation2 + $0xe14] sm:$0xf]  ;;  %v13677_v10 = vor.u32 %v18648_v54, %v13674_v56  ;;  %7000 = vmatpush.bf16.msra.mxu0 %v13421_v3 }
 0x48e   :  { %v13930_v59 = vld [vmem:[#allocation2 + $0xe30] sm:$0xf0] }
 0x48f   :  { %v18776_v60 = vld [vmem:[#allocation2 + $0x1014] sm:$0xf]  ;;  %v13933_v9 = vor.u32 %v18712_v57, %v13930_v59  ;;  %7013 = vmatpush.bf16.msra.mxu1 %v13677_v10 }
 0x490   :  { %v14186_v4 = vld [vmem:[#allocation2 + $0x1030] sm:$0xf0]  ;;  %7001 = vmatmul.bf16.vlgmr.msra.gmra.mxu0 %v20071_v44 }
 0x491   :  { %v18896_v62 = vld [vmem:[#allocation2 + $0x13d4] sm:$0xf]  ;;  %v14189_v13 = vor.u32 %v18776_v60, %v14186_v4  ;;  %7026 = vmatpush.bf16.msra.mxu2 %v13933_v9 }
 0x492   :  { %v14666_v0 = vld [vmem:[#allocation2 + $0x13f0] sm:$0xf0]  ;;  %7014 = vmatmul.bf16.vlgmr.msra.gmra.mxu1 %v20065_v38 }
 0x493   :  { %v18960_v2 = vld [vmem:[#allocation2 + $0x15d4] sm:$0xf]  ;;  %v14669_v17 = vor.u32 %v18896_v62, %v14666_v0  ;;  %7039 = vmatpush.bf16.msra.mxu3 %v14189_v13 }
 0x494   :  { %v14922_v5 = vld [vmem:[#allocation2 + $0x15f0] sm:$0xf0]  ;;  %7027 = vmatmul.bf16.vlgmr.msra.gmra.mxu2 %v20069_v42 }
 0x495   :  { %v19024_v6 = vld [vmem:[#allocation2 + $0x17d4] sm:$0xf]  ;;  %v14925_v23 = vor.u32 %v18960_v2, %v14922_v5  ;;  %7045 = vmatpush.bf16.msrb.mxu0 %v14669_v17  ;;  %v6807_v17 = vpop.f32.mrf.mxu1 }
 0x496   :  { %v15178_v7 = vld [vmem:[#allocation2 + $0x17f0] sm:$0xf0]  ;;  %7040 = vmatmul.bf16.vlgmr.msra.gmra.mxu3 %v20083_v25 }
 0x497   :  { %v19088_v15 = vld [vmem:[#allocation2 + $0x19d4] sm:$0xf]  ;;  %v15181_v24 = vor.u32 %v19024_v6, %v15178_v7  ;;  %7058 = vmatpush.bf16.msrb.mxu1 %v14925_v23  ;;  %v6794_v6 = vpop.f32.mrf.mxu0 }
 0x498   :  { %v15434_v16 = vld [vmem:[#allocation2 + $0x19f0] sm:$0xf0]  ;;  %v6795_v13 = vadd.f32 %v6794_v6, %v20229_v32 }
 0x499   :  { %v18888_v26 = vld [vmem:[#allocation2 + $0x1394] sm:$0xf]  ;;  %v15437_v36 = vor.u32 %v19088_v15, %v15434_v16  ;;  %7071 = vmatpush.bf16.msrb.mxu2 %v15181_v24 }
 0x49a   :  { %v14634_v31 = vld [vmem:[#allocation2 + $0x13b0] sm:$0xf0] }
 0x49b   :  { %v18952_v34 = vld [vmem:[#allocation2 + $0x1594] sm:$0xf]  ;;  %v14637_v45 = vor.u32 %v18888_v26, %v14634_v31  ;;  %7084 = vmatpush.bf16.msrb.mxu3 %v15437_v36 }
 0x49c   :  { %v14890_v37 = vld [vmem:[#allocation2 + $0x15b0] sm:$0xf0] }
 0x49d   :  { %v19016_v39 = vld [vmem:[#allocation2 + $0x1794] sm:$0xf]  ;;  %v14893_v46 = vor.u32 %v18952_v34, %v14890_v37  ;;  %7046 = vmatpush.bf16.msrb.mxu0 %v14637_v45  ;;  %v6808_v37 = vadd.f32 %v6807_v17, %v6795_v13 }
 0x49e   :  { %v15146_v40 = vld [vmem:[#allocation2 + $0x17b0] sm:$0xf0] }
 0x49f   :  { %v19080_v35 = vld [vmem:[#allocation2 + $0x1994] sm:$0xf]  ;;  %v15149_v11 = vor.u32 %v19016_v39, %v15146_v40  ;;  %7059 = vmatpush.bf16.msrb.mxu1 %v14893_v46 }
 0x4a0   :  { %v15402_v43 = vld [vmem:[#allocation2 + $0x19b0] sm:$0xf0] }
 0x4a1   :  { %v18880_v47 = vld [vmem:[#allocation2 + $0x1354] sm:$0xf]  ;;  %v15405_v50 = vor.u32 %v19080_v35, %v15402_v43  ;;  %7072 = vmatpush.bf16.msrb.mxu2 %v15149_v11  ;;  %v6820_v11 = vpop.f32.mrf.mxu2 }
 0x4a2   :  { %v14602_v49 = vld [vmem:[#allocation2 + $0x1370] sm:$0xf0] }
 0x4a3   :  { %v18944_v48 = vld [vmem:[#allocation2 + $0x1554] sm:$0xf]  ;;  %v14605_v56 = vor.u32 %v18880_v47, %v14602_v49  ;;  %7085 = vmatpush.bf16.msrb.mxu3 %v15405_v50  ;;  %v6821_v50 = vadd.f32 %v6820_v11, %v6808_v37 }
 0x4a4   :  { %v14858_v55 = vld [vmem:[#allocation2 + $0x1570] sm:$0xf0] }
 0x4a5   :  { %v19008_v51 = vld [vmem:[#allocation2 + $0x1754] sm:$0xf]  ;;  %v14861_v57 = vor.u32 %v18944_v48, %v14858_v55  ;;  %7047 = vmatpush.bf16.msrb.mxu0 %v14605_v56  ;;  %v6833_v55 = vpop.f32.mrf.mxu3  ;;  %v6796_v56 = vpop.f32.mrf.mxu0 }
 0x4a6   :  { %v15114_v52 = vld [vmem:[#allocation2 + $0x1770] sm:$0xf0] }
 0x4a7   :  { %v19072_v53 = vld [vmem:[#allocation2 + $0x1954] sm:$0xf]  ;;  %v15117_v58 = vor.u32 %v19008_v51, %v15114_v52  ;;  %7060 = vmatpush.bf16.msrb.mxu1 %v14861_v57 }
 0x4a8   :  { %v15370_v54 = vld [vmem:[#allocation2 + $0x1970] sm:$0xf0] }
 0x4a9   :  { %v18872_v61 = vld [vmem:[#allocation2 + $0x1314] sm:$0xf]  ;;  %v15373_v4 = vor.u32 %v19072_v53, %v15370_v54  ;;  %7073 = vmatpush.bf16.msrb.mxu2 %v15117_v58  ;;  %v20236_v54 = vadd.f32 %v6833_v55, %v6821_v50 }
 0x4aa   :  { %v14570_v59 = vld [vmem:[#allocation2 + $0x1330] sm:$0xf0] }
 0x4ab   :  { %v18936_v60 = vld [vmem:[#allocation2 + $0x1514] sm:$0xf]  ;;  %v14573_v5 = vor.u32 %v18872_v61, %v14570_v59  ;;  %7086 = vmatpush.bf16.msrb.mxu3 %v15373_v4  ;;  %v6809_v4 = vpop.f32.mrf.mxu1 }
 0x4ac   :  { %v14826_v63 = vld [vmem:[#allocation2 + $0x1530] sm:$0xf0]  ;;  %v18381_v4 = vld [vmem:[#allocation2 + $0x3b4] sm:$0xf0] }
 0x4ad   :  { %v19000_v62 = vld [vmem:[#allocation2 + $0x1714] sm:$0xf]  ;;  %v14829_v7 = vor.u32 %v18936_v60, %v14826_v63  ;;  %7048 = vmatpush.bf16.msrb.mxu0 %v14573_v5 }
 0x4ae   :  { %v15082_v0 = vld [vmem:[#allocation2 + $0x1730] sm:$0xf0] }
 0x4af   :  { %v19064_v2 = vld [vmem:[#allocation2 + $0x1914] sm:$0xf]  ;;  %v15085_v10 = vor.u32 %v19000_v62, %v15082_v0  ;;  %7061 = vmatpush.bf16.msrb.mxu1 %v14829_v7 }
 0x4b0   :  { %v15338_v3 = vld [vmem:[#allocation2 + $0x1930] sm:$0xf0] }
 0x4b1   :  { %v18864_v9 = vld [vmem:[#allocation2 + $0x12d4] sm:$0xf]  ;;  %v15341_v23 = vor.u32 %v19064_v2, %v15338_v3  ;;  %7074 = vmatpush.bf16.msrb.mxu2 %v15085_v10 }
 0x4b2   :  { %v14538_v15 = vld [vmem:[#allocation2 + $0x12f0] sm:$0xf0] }
 0x4b3   :  { %v18928_v16 = vld [vmem:[#allocation2 + $0x14d4] sm:$0xf]  ;;  %v14541_v39 = vor.u32 %v18864_v9, %v14538_v15  ;;  %7087 = vmatpush.bf16.msrb.mxu3 %v15341_v23  ;;  %v6822_v23 = vpop.f32.mrf.mxu2 }
 0x4b4   :  { %v14794_v24 = vld [vmem:[#allocation2 + $0x14f0] sm:$0xf0] }
 0x4b5   :  { %v18992_v26 = vld [vmem:[#allocation2 + $0x16d4] sm:$0xf]  ;;  %v14797_v40 = vor.u32 %v18928_v16, %v14794_v24  ;;  %7049 = vmatpush.bf16.msrb.mxu0 %v14541_v39 }
 0x4b6   :  { %v15050_v31 = vld [vmem:[#allocation2 + $0x16f0] sm:$0xf0] }
 0x4b7   :  { %v19056_v34 = vld [vmem:[#allocation2 + $0x18d4] sm:$0xf]  ;;  %v15053_v35 = vor.u32 %v18992_v26, %v15050_v31  ;;  %7062 = vmatpush.bf16.msrb.mxu1 %v14797_v40 }
 0x4b8   :  { %v15306_v36 = vld [vmem:[#allocation2 + $0x18f0] sm:$0xf0] }
 0x4b9   :  { %v18856_v43 = vld [vmem:[#allocation2 + $0x1294] sm:$0xf]  ;;  %v15309_v32 = vor.u32 %v19056_v34, %v15306_v36  ;;  %7075 = vmatpush.bf16.msrb.mxu2 %v15053_v35  ;;  %v6835_v36 = vpop.f32.mrf.mxu3 }
 0x4ba   :  { %v14506_v45 = vld [vmem:[#allocation2 + $0x12b0] sm:$0xf0] }
 0x4bb   :  { %v18920_v46 = vld [vmem:[#allocation2 + $0x1494] sm:$0xf]  ;;  %v14509_v53 = vor.u32 %v18856_v43, %v14506_v45  ;;  %7088 = vmatpush.bf16.msrb.mxu3 %v15309_v32  ;;  %v12368_v45 = vld [vmem:[#allocation2 + $0x1d8] sm:$0xf] }
 0x4bc   :  { %v14762_v47 = vld [vmem:[#allocation2 + $0x14b0] sm:$0xf0] }
 0x4bd   :  { %v18984_v49 = vld [vmem:[#allocation2 + $0x1694] sm:$0xf]  ;;  %v14765_v57 = vor.u32 %v18920_v46, %v14762_v47  ;;  %7050 = vmatpush.bf16.msrb.mxu0 %v14509_v53  ;;  %v18325_v46 = vld [vmem:[#allocation2 + $0x1f4] sm:$0xf0] }
 0x4be   :  { %v15018_v48 = vld [vmem:[#allocation2 + $0x16b0] sm:$0xf0]  ;;  %v12624_v47 = vld [vmem:[#allocation2 + $0x3d8] sm:$0xf] }
 0x4bf   :  { %v19048_v51 = vld [vmem:[#allocation2 + $0x1894] sm:$0xf]  ;;  %v15021_v58 = vor.u32 %v18984_v49, %v15018_v48  ;;  %7063 = vmatpush.bf16.msrb.mxu1 %v14765_v57  ;;  %v18389_v49 = vld [vmem:[#allocation2 + $0x3f4] sm:$0xf0] }
 0x4c0   :  { %v15274_v52 = vld [vmem:[#allocation2 + $0x18b0] sm:$0xf0]  ;;  %v12625_v57 = vor.u32 %v18389_v49, %v12624_v47 }
 0x4c1   :  { %v18848_v61 = vld [vmem:[#allocation2 + $0x1254] sm:$0xf]  ;;  %v15277_v63 = vor.u32 %v19048_v51, %v15274_v52  ;;  %7076 = vmatpush.bf16.msrb.mxu2 %v15021_v58  ;;  %v12369_v51 = vor.u32 %v18325_v46, %v12368_v45 }
 0x4c2   :  { %v14474_v59 = vld [vmem:[#allocation2 + $0x1270] sm:$0xf0] }
 0x4c3   :  { %v18912_v60 = vld [vmem:[#allocation2 + $0x1454] sm:$0xf]  ;;  %v14477_v6 = vor.u32 %v18848_v61, %v14474_v59  ;;  %7089 = vmatpush.bf16.msrb.mxu3 %v15277_v63  ;;  %v12336_v61 = vld [vmem:[#allocation2 + $0x198] sm:$0xf] }
 0x4c4   :  { %v14730_v62 = vld [vmem:[#allocation2 + $0x1470] sm:$0xf0]  ;;  %v18317_v59 = vld [vmem:[#allocation2 + $0x1b4] sm:$0xf0] }
 0x4c5   :  { %v18976_v0 = vld [vmem:[#allocation2 + $0x1654] sm:$0xf]  ;;  %v14733_v9 = vor.u32 %v18912_v60, %v14730_v62  ;;  %7051 = vmatpush.bf16.msrb.mxu0 %v14477_v6  ;;  %v12592_v60 = vld [vmem:[#allocation2 + $0x398] sm:$0xf] }
 0x4c6   :  { %v14986_v2 = vld [vmem:[#allocation2 + $0x1670] sm:$0xf0]  ;;  %v12593_v6 = vor.u32 %v18381_v4, %v12592_v60 }
 0x4c7   :  { %v19040_v3 = vld [vmem:[#allocation2 + $0x1854] sm:$0xf]  ;;  %v14989_v15 = vor.u32 %v18976_v0, %v14986_v2  ;;  %7064 = vmatpush.bf16.msrb.mxu1 %v14733_v9  ;;  %v12337_v0 = vor.u32 %v18317_v59, %v12336_v61  ;;  %v18309_v9 = vld [vmem:[#allocation2 + $0x174] sm:$0xf0] }
 0x4c8   :  { %v15242_v5 = vld [vmem:[#allocation2 + $0x1870] sm:$0xf0] }
 0x4c9   :  { %v18840_v7 = vld [vmem:[#allocation2 + $0x1214] sm:$0xf]  ;;  %v15245_v24 = vor.u32 %v19040_v3, %v15242_v5  ;;  %7077 = vmatpush.bf16.msrb.mxu2 %v14989_v15  ;;  %v12560_v15 = vld [vmem:[#allocation2 + $0x358] sm:$0xf] }
 0x4ca   :  { %v14442_v10 = vld [vmem:[#allocation2 + $0x1230] sm:$0xf0] }
 0x4cb   :  { %v18904_v16 = vld [vmem:[#allocation2 + $0x1414] sm:$0xf]  ;;  %v14445_v35 = vor.u32 %v18840_v7, %v14442_v10  ;;  %7090 = vmatpush.bf16.msrb.mxu3 %v15245_v24  ;;  %v12304_v10 = vld [vmem:[#allocation2 + $0x158] sm:$0xf] }
 0x4cc   :  { %v14698_v13 = vld [vmem:[#allocation2 + $0x1430] sm:$0xf0]  ;;  %v12305_v23 = vor.u32 %v18309_v9, %v12304_v10  ;;  %v12464_v10 = vld [vmem:[#allocation2 + $0x298] sm:$0xf] }
 0x4cd   :  { %v18968_v17 = vld [vmem:[#allocation2 + $0x1614] sm:$0xf]  ;;  %v14701_v11 = vor.u32 %v18904_v16, %v14698_v13  ;;  %7052 = vmatpush.bf16.msrb.mxu0 %v14445_v35  ;;  %v18373_v16 = vld [vmem:[#allocation2 + $0x374] sm:$0xf0] }
 0x4ce   :  { %v14954_v26 = vld [vmem:[#allocation2 + $0x1630] sm:$0xf0]  ;;  %v12528_v35 = vld [vmem:[#allocation2 + $0x318] sm:$0xf] }
 0x4cf   :  { %v19032_v31 = vld [vmem:[#allocation2 + $0x1814] sm:$0xf]  ;;  %v14957_v32 = vor.u32 %v18968_v17, %v14954_v26  ;;  %7065 = vmatpush.bf16.msrb.mxu1 %v14701_v11  ;;  %v6859_v11 = vpop.f32.mrf.mxu1  ;;  %v18349_v9 = vld [vmem:[#allocation2 + $0x2b4] sm:$0xf0] }
 0x4d0   :  { %v15210_v34 = vld [vmem:[#allocation2 + $0x1830] sm:$0xf0]  ;;  %7053 = vmatmul.bf16.vlgmr.msrb.gmra.mxu0 %v20087_v30 }
 0x4d1   :  { %v19152_v37 = vld [vmem:[#allocation2 + $0x1bd4] sm:$0xf]  ;;  %v15213_v48 = vor.u32 %v19032_v31, %v15210_v34  ;;  %7078 = vmatpush.bf16.msrb.mxu2 %v14957_v32  ;;  %v12561_v34 = vor.u32 %v18373_v16, %v12560_v15 }
 0x4d2   :  { %v15690_v39 = vld [vmem:[#allocation2 + $0x1bf0] sm:$0xf0]  ;;  %7066 = vmatmul.bf16.vlgmr.msrb.gmra.mxu1 %v20085_v29 }
 0x4d3   :  { %v19216_v40 = vld [vmem:[#allocation2 + $0x1dd4] sm:$0xf]  ;;  %v15693_v50 = vor.u32 %v19152_v37, %v15690_v39  ;;  %7091 = vmatpush.bf16.msrb.mxu3 %v15213_v48  ;;  %v12272_v37 = vld [vmem:[#allocation2 + $0x118] sm:$0xf] }
 0x4d4   :  { %v15946_v43 = vld [vmem:[#allocation2 + $0x1df0] sm:$0xf0]  ;;  %7079 = vmatmul.bf16.vlgmr.msrb.gmra.mxu2 %v20089_v33  ;;  %v18301_v39 = vld [vmem:[#allocation2 + $0x134] sm:$0xf0] }
 0x4d5   :  { %v15949_v55 = vor.u32 %v19216_v40, %v15946_v43  ;;  %v19144_v52 = vld [vmem:[#allocation2 + $0x1b94] sm:$0xf]  ;;  %7097 = vmatpush.bf16.msra.mxu0 %v15693_v50  ;;  %7123 = vmatpush.bf16.msra.mxu2 %v12369_v51  ;;  %v6846_v40 = vpop.f32.mrf.mxu0  ;;  %v18365_v43 = vld [vmem:[#allocation2 + $0x334] sm:$0xf0]  ;;  %v12273_v47 = vor.u32 %v18301_v39, %v12272_v37 }
 0x4d6   :  { %v15658_v53 = vld [vmem:[#allocation2 + $0x1bb0] sm:$0xf0]  ;;  %7092 = vmatmul.bf16.vlgmr.msrb.gmra.mxu3 %v20101_v21  ;;  %v6847_v45 = vadd.f32 %v6846_v40, %v20236_v54  ;;  %v12176_v39 = vld [vmem:[#allocation2 + $0x58] sm:$0xf] }
 0x4d7   :  { %v19208_v56 = vld [vmem:[#allocation2 + $0x1d94] sm:$0xf]  ;;  %v15661_v63 = vor.u32 %v19144_v52, %v15658_v53  ;;  %7110 = vmatpush.bf16.msra.mxu1 %v15949_v55  ;;  %7136 = vmatpush.bf16.msra.mxu3 %v12625_v57  ;;  %v12529_v55 = vor.u32 %v18365_v43, %v12528_v35  ;;  %v12240_v53 = vld [vmem:[#allocation2 + $0xd8] sm:$0xf] }
 0x4d8   :  { %v15914_v58 = vld [vmem:[#allocation2 + $0x1db0] sm:$0xf0]  ;;  %v6860_v51 = vadd.f32 %v6859_v11, %v6847_v45  ;;  %v12496_v57 = vld [vmem:[#allocation2 + $0x2d8] sm:$0xf] }
 0x4d9   :  { %v15917_v62 = vor.u32 %v19208_v56, %v15914_v58  ;;  %v19136_v2 = vld [vmem:[#allocation2 + $0x1b54] sm:$0xf]  ;;  %7098 = vmatpush.bf16.msra.mxu0 %v15661_v63  ;;  %7124 = vmatpush.bf16.msra.mxu2 %v12337_v0  ;;  %v18293_v56 = vld [vmem:[#allocation2 + $0xf4] sm:$0xf0]  ;;  %v6872_v0 = vpop.f32.mrf.mxu2 }
 0x4da   :  { %v15626_v3 = vld [vmem:[#allocation2 + $0x1b70] sm:$0xf0]  ;;  %v18357_v58 = vld [vmem:[#allocation2 + $0x2f4] sm:$0xf0]  ;;  %v12241_v59 = vor.u32 %v18293_v56, %v12240_v53 }
 0x4db   :  { %v19200_v5 = vld [vmem:[#allocation2 + $0x1d54] sm:$0xf]  ;;  %v15629_v13 = vor.u32 %v19136_v2, %v15626_v3  ;;  %7111 = vmatpush.bf16.msra.mxu1 %v15917_v62  ;;  %7137 = vmatpush.bf16.msra.mxu3 %v12593_v6  ;;  %v12497_v62 = vor.u32 %v18357_v58, %v12496_v57  ;;  %v12208_v3 = vld [vmem:[#allocation2 + $0x98] sm:$0xf]  ;;  %v6873_v6 = vadd.f32 %v6872_v0, %v6860_v51 }
 0x4dc   :  { %v15882_v7 = vld [vmem:[#allocation2 + $0x1d70] sm:$0xf0]  ;;  %v18277_v40 = vld [vmem:[#allocation2 + $0x74] sm:$0xf0] }
 0x4dd   :  { %v15885_v17 = vor.u32 %v19200_v5, %v15882_v7  ;;  %v19128_v24 = vld [vmem:[#allocation2 + $0x1b14] sm:$0xf]  ;;  %7099 = vmatpush.bf16.msra.mxu0 %v15629_v13  ;;  %7125 = vmatpush.bf16.msra.mxu2 %v12305_v23  ;;  %v18285_v5 = vld [vmem:[#allocation2 + $0xb4] sm:$0xf0]  ;;  %v6885_v7 = vpop.f32.mrf.mxu3  ;;  %v6848_v15 = vpop.f32.mrf.mxu0 }
 0x4de   :  { %v15594_v26 = vld [vmem:[#allocation2 + $0x1b30] sm:$0xf0]  ;;  %v6861_v13 = vpop.f32.mrf.mxu1  ;;  %v12432_v35 = vld [vmem:[#allocation2 + $0x258] sm:$0xf] }
 0x4df   :  { %v19192_v31 = vld [vmem:[#allocation2 + $0x1d14] sm:$0xf]  ;;  %v15597_v46 = vor.u32 %v19128_v24, %v15594_v26  ;;  %7112 = vmatpush.bf16.msra.mxu1 %v15885_v17  ;;  %7138 = vmatpush.bf16.msra.mxu3 %v12561_v34  ;;  %v20243_v17 = vadd.f32 %v6885_v7, %v6873_v6  ;;  %v12209_v24 = vor.u32 %v18285_v5, %v12208_v3  ;;  %v18341_v43 = vld [vmem:[#allocation2 + $0x274] sm:$0xf0] }
 0x4e0   :  { %v15850_v36 = vld [vmem:[#allocation2 + $0x1d30] sm:$0xf0]  ;;  %v18269_v51 = vld [vmem:[#allocation2 + $0x34] sm:$0xf0] }
 0x4e1   :  { %v15853_v32 = vor.u32 %v19192_v31, %v15850_v36  ;;  %v19120_v49 = vld [vmem:[#allocation2 + $0x1ad4] sm:$0xf]  ;;  %7100 = vmatpush.bf16.msra.mxu0 %v15597_v46  ;;  %7126 = vmatpush.bf16.msra.mxu2 %v12273_v47  ;;  %v12465_v36 = vor.u32 %v18349_v9, %v12464_v10  ;;  %v12177_v47 = vor.u32 %v18277_v40, %v12176_v39  ;;  %v18333_v53 = vld [vmem:[#allocation2 + $0x234] sm:$0xf0]  ;;  %v6874_v56 = vpop.f32.mrf.mxu2 }
 0x4e2   :  { %v15562_v48 = vld [vmem:[#allocation2 + $0x1af0] sm:$0xf0]  ;;  %v12880_v57 = vld [vmem:[#allocation2 + $0x5d8] sm:$0xf] }
 0x4e3   :  { %v19184_v50 = vld [vmem:[#allocation2 + $0x1cd4] sm:$0xf]  ;;  %v15565_v61 = vor.u32 %v19120_v49, %v15562_v48  ;;  %7113 = vmatpush.bf16.msra.mxu1 %v15853_v32  ;;  %7139 = vmatpush.bf16.msra.mxu3 %v12529_v55  ;;  %v12433_v55 = vor.u32 %v18341_v43, %v12432_v35  ;;  %v18453_v58 = vld [vmem:[#allocation2 + $0x5f4] sm:$0xf0] }
 0x4e4   :  { %v15818_v52 = vld [vmem:[#allocation2 + $0x1cf0] sm:$0xf0]  ;;  %v18645_v3 = vld [vmem:[#allocation2 + $0xbf4] sm:$0xf0]  ;;  %v12881_v6 = vor.u32 %v18453_v58, %v12880_v57 }
 0x4e5   :  { %v15821_v54 = vor.u32 %v19184_v50, %v15818_v52  ;;  %v19112_v60 = vld [vmem:[#allocation2 + $0x1a94] sm:$0xf]  ;;  %7101 = vmatpush.bf16.msra.mxu0 %v15565_v61  ;;  %7127 = vmatpush.bf16.msra.mxu2 %v12241_v59  ;;  %v12144_v50 = vld [vmem:[#allocation2 + $0x18] sm:$0xf] }
 0x4e6   :  { %v15530_v4 = vld [vmem:[#allocation2 + $0x1ab0] sm:$0xf0]  ;;  %v12400_v52 = vld [vmem:[#allocation2 + $0x218] sm:$0xf]  ;;  %v12145_v0 = vor.u32 %v18269_v51, %v12144_v50 }
 0x4e7   :  { %v19176_v63 = vld [vmem:[#allocation2 + $0x1c94] sm:$0xf]  ;;  %v15533_v16 = vor.u32 %v19112_v60, %v15530_v4  ;;  %7114 = vmatpush.bf16.msra.mxu1 %v15821_v54  ;;  %7140 = vmatpush.bf16.msra.mxu3 %v12497_v62  ;;  %v13136_v61 = vld [vmem:[#allocation2 + $0x7d8] sm:$0xf]  ;;  %v6887_v54 = vpop.f32.mrf.mxu3  ;;  %v12401_v5 = vor.u32 %v18333_v53, %v12400_v52 }
 0x4e8   :  { %v15786_v2 = vld [vmem:[#allocation2 + $0x1cb0] sm:$0xf0]  ;;  %v18517_v60 = vld [vmem:[#allocation2 + $0x7f4] sm:$0xf0]  ;;  %v6898_v54 = vpop.f32.mrf.mxu0 }
 0x4e9   :  { %v15789_v23 = vor.u32 %v19176_v63, %v15786_v2  ;;  %v19104_v26 = vld [vmem:[#allocation2 + $0x1a54] sm:$0xf]  ;;  %7102 = vmatpush.bf16.msra.mxu0 %v15533_v16  ;;  %7128 = vmatpush.bf16.msra.mxu2 %v12209_v24  ;;  %v13392_v4 = vld [vmem:[#allocation2 + $0x9d8] sm:$0xf]  ;;  %v13137_v7 = vor.u32 %v18517_v60, %v13136_v61 }
 0x4ea   :  { %v15498_v31 = vld [vmem:[#allocation2 + $0x1a70] sm:$0xf0]  ;;  %v18581_v63 = vld [vmem:[#allocation2 + $0x9f4] sm:$0xf0] }
 0x4eb   :  { %v19168_v34 = vld [vmem:[#allocation2 + $0x1c54] sm:$0xf]  ;;  %v15501_v45 = vor.u32 %v19104_v26, %v15498_v31  ;;  %7115 = vmatpush.bf16.msra.mxu1 %v15789_v23  ;;  %7141 = vmatpush.bf16.msra.mxu3 %v12465_v36  ;;  %v13648_v2 = vld [vmem:[#allocation2 + $0xbd8] sm:$0xf]  ;;  %v13393_v10 = vor.u32 %v18581_v63, %v13392_v4  ;;  %v6899_v4 = vadd.f32 %v6898_v54, %v20243_v17 }
 0x4ec   :  { %v15754_v37 = vld [vmem:[#allocation2 + $0x1c70] sm:$0xf0]  ;;  %v12848_v9 = vld [vmem:[#allocation2 + $0x598] sm:$0xf]  ;;  %v13649_v13 = vor.u32 %v18645_v3, %v13648_v2 }
 0x4ed   :  { %v19096_v46 = vld [vmem:[#allocation2 + $0x1a14] sm:$0xf]  ;;  %v15757_v32 = vor.u32 %v19168_v34, %v15754_v37  ;;  %7103 = vmatpush.bf16.msra.mxu0 %v15501_v45  ;;  %7129 = vmatpush.bf16.msra.mxu2 %v12177_v47  ;;  %v18445_v15 = vld [vmem:[#allocation2 + $0x5b4] sm:$0xf0] }
 0x4ee   :  { %v15466_v11 = vld [vmem:[#allocation2 + $0x1a30] sm:$0xf0]  ;;  %v13104_v16 = vld [vmem:[#allocation2 + $0x798] sm:$0xf]  ;;  %v12849_v36 = vor.u32 %v18445_v15, %v12848_v9 }
 0x4ef   :  { %v19160_v49 = vld [vmem:[#allocation2 + $0x1c14] sm:$0xf]  ;;  %v15469_v59 = vor.u32 %v19096_v46, %v15466_v11  ;;  %7116 = vmatpush.bf16.msra.mxu1 %v15757_v32  ;;  %7142 = vmatpush.bf16.msra.mxu3 %v12433_v55  ;;  %v18509_v23 = vld [vmem:[#allocation2 + $0x7b4] sm:$0xf0] }
 0x4f0   :  { %v15722_v48 = vld [vmem:[#allocation2 + $0x1c30] sm:$0xf0]  ;;  %v13360_v24 = vld [vmem:[#allocation2 + $0x998] sm:$0xf]  ;;  %v13105_v37 = vor.u32 %v18509_v23, %v13104_v16 }
 0x4f1   :  { %v15725_v62 = vor.u32 %v19160_v49, %v15722_v48  ;;  %7104 = vmatpush.bf16.msra.mxu0 %v15469_v59  ;;  %v18573_v26 = vld [vmem:[#allocation2 + $0x9b4] sm:$0xf0]  ;;  %7130 = vmatpush.bf16.msra.mxu2 %v12145_v0 }
 0x4f2   :  { %v13616_v31 = vld [vmem:[#allocation2 + $0xb98] sm:$0xf]  ;;  %v13361_v39 = vor.u32 %v18573_v26, %v13360_v24 }
 0x4f3   :  { %7117 = vmatpush.bf16.msra.mxu1 %v15725_v62  ;;  %v18637_v34 = vld [vmem:[#allocation2 + $0xbb4] sm:$0xf0]  ;;  %7143 = vmatpush.bf16.msra.mxu3 %v12401_v5  ;;  %v6911_v62 = vpop.f32.mrf.mxu1 }
 0x4f4   :  { %v12816_v40 = vld [vmem:[#allocation2 + $0x558] sm:$0xf]  ;;  %7105 = vmatmul.bf16.vlgmr.msra.gmra.mxu0 %v20105_v28  ;;  %v13617_v45 = vor.u32 %v18637_v34, %v13616_v31  ;;  %7131 = vmatmul.bf16.vlgmr.msra.gmra.mxu2 %v20049_v19 }
 0x4f5   :  { %7149 = vmatpush.bf16.msrb.mxu0 %v12881_v6  ;;  %7175 = vmatpush.bf16.msrb.mxu2 %v13393_v10  ;;  %v18437_v35 = vld [vmem:[#allocation2 + $0x574] sm:$0xf0]  ;;  %v6912_v10 = vadd.f32 %v6911_v62, %v6899_v4 }
 0x4f6   :  { %v13072_v43 = vld [vmem:[#allocation2 + $0x758] sm:$0xf]  ;;  %7118 = vmatmul.bf16.vlgmr.msra.gmra.mxu1 %v20103_v27  ;;  %v12817_v48 = vor.u32 %v18437_v35, %v12816_v40  ;;  %7144 = vmatmul.bf16.vlgmr.msra.gmra.mxu3 %v20053_v22 }
 0x4f7   :  { %7162 = vmatpush.bf16.msrb.mxu1 %v13137_v7  ;;  %7188 = vmatpush.bf16.msrb.mxu3 %v13649_v13  ;;  %v18501_v46 = vld [vmem:[#allocation2 + $0x774] sm:$0xf0] }
 0x4f8   :  { %v13328_v11 = vld [vmem:[#allocation2 + $0x958] sm:$0xf]  ;;  %v13073_v50 = vor.u32 %v18501_v46, %v13072_v43 }
 0x4f9   :  { %v18565_v32 = vld [vmem:[#allocation2 + $0x974] sm:$0xf0]  ;;  %7150 = vmatpush.bf16.msrb.mxu0 %v12849_v36  ;;  %7176 = vmatpush.bf16.msrb.mxu2 %v13361_v39  ;;  %v6924_v39 = vpop.f32.mrf.mxu2 }
 0x4fa   :  { %v13584_v47 = vld [vmem:[#allocation2 + $0xb58] sm:$0xf]  ;;  %v13329_v55 = vor.u32 %v18565_v32, %v13328_v11  ;;  %v20252_v32 = vpop.f32.mrf.mxu3 }
 0x4fb   :  { %v18629_v49 = vld [vmem:[#allocation2 + $0xb74] sm:$0xf0]  ;;  %7163 = vmatpush.bf16.msrb.mxu1 %v13105_v37  ;;  %7189 = vmatpush.bf16.msrb.mxu3 %v13617_v45  ;;  %v20250_v45 = vadd.f32 %v6924_v39, %v6912_v10 }
 0x4fc   :  { %v12784_v51 = vld [vmem:[#allocation2 + $0x518] sm:$0xf]  ;;  %v13585_v56 = vor.u32 %v18629_v49, %v13584_v47  ;;  %v6900_v47 = vpop.f32.mrf.mxu0 }
 0x4fd   :  { %v18429_v52 = vld [vmem:[#allocation2 + $0x534] sm:$0xf0]  ;;  %7151 = vmatpush.bf16.msrb.mxu0 %v12817_v48  ;;  %7177 = vmatpush.bf16.msrb.mxu2 %v13329_v55  ;;  %v6913_v48 = vpop.f32.mrf.mxu1 }
 0x4fe   :  { %v13040_v53 = vld [vmem:[#allocation2 + $0x718] sm:$0xf]  ;;  %v12785_v63 = vor.u32 %v18429_v52, %v12784_v51 }
 0x4ff   :  { %v18493_v57 = vld [vmem:[#allocation2 + $0x734] sm:$0xf0]  ;;  %7164 = vmatpush.bf16.msrb.mxu1 %v13073_v50  ;;  %7190 = vmatpush.bf16.msrb.mxu3 %v13585_v56 }
 0x500   :  { %v13296_v58 = vld [vmem:[#allocation2 + $0x918] sm:$0xf]  ;;  %v13041_v0 = vor.u32 %v18493_v57, %v13040_v53 }
 0x501   :  { %v18557_v61 = vld [vmem:[#allocation2 + $0x934] sm:$0xf0]  ;;  %7152 = vmatpush.bf16.msrb.mxu0 %v12785_v63 }
 0x502   :  { %v13552_v59 = vld [vmem:[#allocation2 + $0xb18] sm:$0xf]  ;;  %v13297_v2 = vor.u32 %v18557_v61, %v13296_v58 }
 0x503   :  { %v18621_v60 = vld [vmem:[#allocation2 + $0xb34] sm:$0xf0]  ;;  %7165 = vmatpush.bf16.msrb.mxu1 %v13041_v0 }
 0x504   :  { %v12752_v3 = vld [vmem:[#allocation2 + $0x4d8] sm:$0xf]  ;;  %v13553_v7 = vor.u32 %v18621_v60, %v13552_v59  ;;  %7178 = vmatpush.bf16.msrb.mxu2 %v13297_v2 }
 0x505   :  { %v18421_v5 = vld [vmem:[#allocation2 + $0x4f4] sm:$0xf0] }
 0x506   :  { %v13008_v6 = vld [vmem:[#allocation2 + $0x6d8] sm:$0xf]  ;;  %v12753_v24 = vor.u32 %v18421_v5, %v12752_v3  ;;  %7191 = vmatpush.bf16.msrb.mxu3 %v13553_v7 }
 0x507   :  { %v18485_v9 = vld [vmem:[#allocation2 + $0x6f4] sm:$0xf0] }
 0x508   :  { %v13264_v15 = vld [vmem:[#allocation2 + $0x8d8] sm:$0xf]  ;;  %v13009_v17 = vor.u32 %v18485_v9, %v13008_v6  ;;  %7153 = vmatpush.bf16.msrb.mxu0 %v12753_v24  ;;  %v6939_v24 = vpop.f32.mrf.mxu3 }
 0x509   :  { %v18549_v16 = vld [vmem:[#allocation2 + $0x8f4] sm:$0xf0] }
 0x50a   :  { %v13520_v13 = vld [vmem:[#allocation2 + $0xad8] sm:$0xf]  ;;  %v13265_v26 = vor.u32 %v18549_v16, %v13264_v15  ;;  %7166 = vmatpush.bf16.msrb.mxu1 %v13009_v17  ;;  %v6926_v15 = vpop.f32.mrf.mxu2 }
 0x50b   :  { %v18613_v23 = vld [vmem:[#allocation2 + $0xaf4] sm:$0xf0] }
 0x50c   :  { %v12720_v31 = vld [vmem:[#allocation2 + $0x498] sm:$0xf]  ;;  %v13521_v37 = vor.u32 %v18613_v23, %v13520_v13  ;;  %7179 = vmatpush.bf16.msrb.mxu2 %v13265_v26 }
 0x50d   :  { %v18413_v34 = vld [vmem:[#allocation2 + $0x4b4] sm:$0xf0] }
 0x50e   :  { %v12976_v36 = vld [vmem:[#allocation2 + $0x698] sm:$0xf]  ;;  %v12721_v49 = vor.u32 %v18413_v34, %v12720_v31  ;;  %7192 = vmatpush.bf16.msrb.mxu3 %v13521_v37 }
 0x50f   :  { %v18477_v40 = vld [vmem:[#allocation2 + $0x6b4] sm:$0xf0] }
 0x510   :  { %v13232_v35 = vld [vmem:[#allocation2 + $0x898] sm:$0xf]  ;;  %v12977_v50 = vor.u32 %v18477_v40, %v12976_v36  ;;  %7154 = vmatpush.bf16.msrb.mxu0 %v12721_v49 }
 0x511   :  { %v18541_v43 = vld [vmem:[#allocation2 + $0x8b4] sm:$0xf0] }
 0x512   :  { %v13488_v46 = vld [vmem:[#allocation2 + $0xa98] sm:$0xf]  ;;  %v13233_v55 = vor.u32 %v18541_v43, %v13232_v35  ;;  %7167 = vmatpush.bf16.msrb.mxu1 %v12977_v50 }
 0x513   :  { %v18605_v11 = vld [vmem:[#allocation2 + $0xab4] sm:$0xf0] }
 0x514   :  { %v12688_v51 = vld [vmem:[#allocation2 + $0x458] sm:$0xf]  ;;  %v13489_v56 = vor.u32 %v18605_v11, %v13488_v46  ;;  %7180 = vmatpush.bf16.msrb.mxu2 %v13233_v55 }
 0x515   :  { %v18405_v52 = vld [vmem:[#allocation2 + $0x474] sm:$0xf0] }
 0x516   :  { %v12944_v53 = vld [vmem:[#allocation2 + $0x658] sm:$0xf]  ;;  %v12689_v60 = vor.u32 %v18405_v52, %v12688_v51  ;;  %7193 = vmatpush.bf16.msrb.mxu3 %v13489_v56 }
 0x517   :  { %v18469_v57 = vld [vmem:[#allocation2 + $0x674] sm:$0xf0] }
 0x518   :  { %v13200_v58 = vld [vmem:[#allocation2 + $0x858] sm:$0xf]  ;;  %v12945_v62 = vor.u32 %v18469_v57, %v12944_v53  ;;  %7155 = vmatpush.bf16.msrb.mxu0 %v12689_v60 }
 0x519   :  { %v18533_v61 = vld [vmem:[#allocation2 + $0x874] sm:$0xf0] }
 0x51a   :  { %v13456_v54 = vld [vmem:[#allocation2 + $0xa58] sm:$0xf]  ;;  %v13201_v0 = vor.u32 %v18533_v61, %v13200_v58  ;;  %7168 = vmatpush.bf16.msrb.mxu1 %v12945_v62 }
 0x51b   :  { %v18597_v59 = vld [vmem:[#allocation2 + $0xa74] sm:$0xf0] }
 0x51c   :  { %v12656_v4 = vld [vmem:[#allocation2 + $0x418] sm:$0xf]  ;;  %v13457_v6 = vor.u32 %v18597_v59, %v13456_v54  ;;  %7181 = vmatpush.bf16.msrb.mxu2 %v13201_v0 }
 0x51d   :  { %v18397_v63 = vld [vmem:[#allocation2 + $0x434] sm:$0xf0] }
 0x51e   :  { %v12912_v2 = vld [vmem:[#allocation2 + $0x618] sm:$0xf]  ;;  %v12657_v17 = vor.u32 %v18397_v63, %v12656_v4  ;;  %7194 = vmatpush.bf16.msrb.mxu3 %v13457_v6  ;;  %v20254_v4 = vld [vmem:[#allocation4] sm:$0xff] }
 0x51f   :  { %v18461_v3 = vld [vmem:[#allocation2 + $0x634] sm:$0xf0]  ;;  %v1089_v63 = vperm.slane %v20254_v4, 5 }
 0x520   :  { %v13168_v5 = vld [vmem:[#allocation2 + $0x818] sm:$0xf]  ;;  %v12913_v36 = vor.u32 %v18461_v3, %v12912_v2  ;;  %7156 = vmatpush.bf16.msrb.mxu0 %v12657_v17 }
 0x521   :  { %v18525_v7 = vld [vmem:[#allocation2 + $0x834] sm:$0xf0]  ;;  %v6938_v15 = vadd.f32 %v20252_v32, %v1089_v63 }
 0x522   :  { %v13424_v10 = vld [vmem:[#allocation2 + $0xa18] sm:$0xf]  ;;  %v13169_v37 = vor.u32 %v18525_v7, %v13168_v5  ;;  %7169 = vmatpush.bf16.msrb.mxu1 %v12913_v36 }
 0x523   :  { %v18589_v9 = vld [vmem:[#allocation2 + $0xa34] sm:$0xf0]  ;;  %7157 = vmatmul.bf16.vlgmr.msrb.gmra.mxu0 %v20047_v18 }
 0x524   :  { %v13904_v16 = vld [vmem:[#allocation2 + $0xdd8] sm:$0xf]  ;;  %v13425_v35 = vor.u32 %v18589_v9, %v13424_v10  ;;  %7182 = vmatpush.bf16.msrb.mxu2 %v13169_v37 }
 0x525   :  { %v18709_v13 = vld [vmem:[#allocation2 + $0xdf4] sm:$0xf0]  ;;  %7170 = vmatmul.bf16.vlgmr.msrb.gmra.mxu1 %v20051_v20 }
 0x526   :  { %v14160_v23 = vld [vmem:[#allocation2 + $0xfd8] sm:$0xf]  ;;  %v13905_v43 = vor.u32 %v18709_v13, %v13904_v16  ;;  %7195 = vmatpush.bf16.msrb.mxu3 %v13425_v35 }
 0x527   :  { %v18773_v26 = vld [vmem:[#allocation2 + $0xff4] sm:$0xf0]  ;;  %7183 = vmatmul.bf16.vlgmr.msrb.gmra.mxu2 %v20067_v41 }
 0x528   :  { %v14416_v31 = vld [vmem:[#allocation2 + $0x11d8] sm:$0xf]  ;;  %v14161_v46 = vor.u32 %v18773_v26, %v14160_v23  ;;  %7201 = vmatpush.bf16.msra.mxu0 %v13905_v43 }
 0x529   :  { %v18837_v34 = vld [vmem:[#allocation2 + $0x11f4] sm:$0xf0]  ;;  %7196 = vmatmul.bf16.vlgmr.msrb.gmra.mxu3 %v20071_v44 }
 0x52a   :  { %v14672_v39 = vld [vmem:[#allocation2 + $0x13d8] sm:$0xf]  ;;  %v14417_v11 = vor.u32 %v18837_v34, %v14416_v31  ;;  %7214 = vmatpush.bf16.msra.mxu1 %v14161_v46 }
 0x52b   :  { %v18901_v40 = vld [vmem:[#allocation2 + $0x13f4] sm:$0xf0] }
 0x52c   :  { %v13872_v47 = vld [vmem:[#allocation2 + $0xd98] sm:$0xf]  ;;  %v14673_v50 = vor.u32 %v18901_v40, %v14672_v39  ;;  %7227 = vmatpush.bf16.msra.mxu2 %v14417_v11  ;;  %v6950_v39 = vpop.f32.mrf.mxu0 }
 0x52d   :  { %v18701_v49 = vld [vmem:[#allocation2 + $0xdb4] sm:$0xf0]  ;;  %v6951_v11 = vadd.f32 %v6950_v39, %v6938_v15 }
 0x52e   :  { %v14128_v48 = vld [vmem:[#allocation2 + $0xf98] sm:$0xf]  ;;  %v13873_v57 = vor.u32 %v18701_v49, %v13872_v47  ;;  %7240 = vmatpush.bf16.msra.mxu3 %v14673_v50  ;;  %v6963_v47 = vpop.f32.mrf.mxu1 }
 0x52f   :  { %v18765_v55 = vld [vmem:[#allocation2 + $0xfb4] sm:$0xf0] }
 0x530   :  { %v14384_v51 = vld [vmem:[#allocation2 + $0x1198] sm:$0xf]  ;;  %v14129_v61 = vor.u32 %v18765_v55, %v14128_v48  ;;  %7202 = vmatpush.bf16.msra.mxu0 %v13873_v57 }
 0x531   :  { %v18829_v52 = vld [vmem:[#allocation2 + $0x11b4] sm:$0xf0] }
 0x532   :  { %v14640_v53 = vld [vmem:[#allocation2 + $0x1398] sm:$0xf]  ;;  %v14385_v54 = vor.u32 %v18829_v52, %v14384_v51  ;;  %7215 = vmatpush.bf16.msra.mxu1 %v14129_v61 }
 0x533   :  { %v18893_v56 = vld [vmem:[#allocation2 + $0x13b4] sm:$0xf0] }
 0x534   :  { %v13840_v58 = vld [vmem:[#allocation2 + $0xd58] sm:$0xf]  ;;  %v14641_v62 = vor.u32 %v18893_v56, %v14640_v53  ;;  %7228 = vmatpush.bf16.msra.mxu2 %v14385_v54  ;;  %v6964_v53 = vadd.f32 %v6963_v47, %v6951_v11  ;;  %v6952_v15 = vpop.f32.mrf.mxu0 }
 0x535   :  { %v18693_v59 = vld [vmem:[#allocation2 + $0xd74] sm:$0xf0] }
 0x536   :  { %v14096_v60 = vld [vmem:[#allocation2 + $0xf58] sm:$0xf]  ;;  %v13841_v7 = vor.u32 %v18693_v59, %v13840_v58  ;;  %7241 = vmatpush.bf16.msra.mxu3 %v14641_v62 }
 0x537   :  { %v18757_v0 = vld [vmem:[#allocation2 + $0xf74] sm:$0xf0] }
 0x538   :  { %v14352_v2 = vld [vmem:[#allocation2 + $0x1158] sm:$0xf]  ;;  %v14097_v10 = vor.u32 %v18757_v0, %v14096_v60  ;;  %7203 = vmatpush.bf16.msra.mxu0 %v13841_v7  ;;  %v6976_v60 = vpop.f32.mrf.mxu2 }
 0x539   :  { %v18821_v3 = vld [vmem:[#allocation2 + $0x1174] sm:$0xf0] }
 0x53a   :  { %v14608_v5 = vld [vmem:[#allocation2 + $0x1358] sm:$0xf]  ;;  %v14353_v9 = vor.u32 %v18821_v3, %v14352_v2  ;;  %7216 = vmatpush.bf16.msra.mxu1 %v14097_v10  ;;  %v6977_v3 = vadd.f32 %v6976_v60, %v6964_v53 }
 0x53b   :  { %v18885_v6 = vld [vmem:[#allocation2 + $0x1374] sm:$0xf0] }
 0x53c   :  { %v13808_v16 = vld [vmem:[#allocation2 + $0xd18] sm:$0xf]  ;;  %v14609_v24 = vor.u32 %v18885_v6, %v14608_v5  ;;  %7229 = vmatpush.bf16.msra.mxu2 %v14353_v9  ;;  %v6989_v5 = vpop.f32.mrf.mxu3 }
 0x53d   :  { %v18685_v13 = vld [vmem:[#allocation2 + $0xd34] sm:$0xf0]  ;;  %v20262_v9 = vadd.f32 %v6989_v5, %v6977_v3 }
 0x53e   :  { %v14064_v23 = vld [vmem:[#allocation2 + $0xf18] sm:$0xf]  ;;  %v13809_v37 = vor.u32 %v18685_v13, %v13808_v16  ;;  %7242 = vmatpush.bf16.msra.mxu3 %v14609_v24 }
 0x53f   :  { %v18749_v17 = vld [vmem:[#allocation2 + $0xf34] sm:$0xf0] }
 0x540   :  { %v14320_v26 = vld [vmem:[#allocation2 + $0x1118] sm:$0xf]  ;;  %v14065_v40 = vor.u32 %v18749_v17, %v14064_v23  ;;  %7204 = vmatpush.bf16.msra.mxu0 %v13809_v37 }
 0x541   :  { %v18813_v31 = vld [vmem:[#allocation2 + $0x1134] sm:$0xf0] }
 0x542   :  { %v14576_v34 = vld [vmem:[#allocation2 + $0x1318] sm:$0xf]  ;;  %v14321_v35 = vor.u32 %v18813_v31, %v14320_v26  ;;  %7217 = vmatpush.bf16.msra.mxu1 %v14065_v40  ;;  %v6965_v26 = vpop.f32.mrf.mxu1 }
 0x543   :  { %v18877_v36 = vld [vmem:[#allocation2 + $0x1334] sm:$0xf0] }
 0x544   :  { %v13776_v43 = vld [vmem:[#allocation2 + $0xcd8] sm:$0xf]  ;;  %v14577_v49 = vor.u32 %v18877_v36, %v14576_v34  ;;  %7230 = vmatpush.bf16.msra.mxu2 %v14321_v35 }
 0x545   :  { %v18677_v46 = vld [vmem:[#allocation2 + $0xcf4] sm:$0xf0] }
 0x546   :  { %v14032_v32 = vld [vmem:[#allocation2 + $0xed8] sm:$0xf]  ;;  %v13777_v56 = vor.u32 %v18677_v46, %v13776_v43  ;;  %7243 = vmatpush.bf16.msra.mxu3 %v14577_v49 }
 0x547   :  { %v18741_v48 = vld [vmem:[#allocation2 + $0xef4] sm:$0xf0] }
 0x548   :  { %v14288_v50 = vld [vmem:[#allocation2 + $0x10d8] sm:$0xf]  ;;  %v14033_v57 = vor.u32 %v18741_v48, %v14032_v32  ;;  %7205 = vmatpush.bf16.msra.mxu0 %v13777_v56  ;;  %v6991_v56 = vpop.f32.mrf.mxu3 }
 0x549   :  { %v18805_v55 = vld [vmem:[#allocation2 + $0x10f4] sm:$0xf0] }
 0x54a   :  { %v14544_v51 = vld [vmem:[#allocation2 + $0x12d8] sm:$0xf]  ;;  %v14289_v58 = vor.u32 %v18805_v55, %v14288_v50  ;;  %7218 = vmatpush.bf16.msra.mxu1 %v14033_v57  ;;  %v6978_v50 = vpop.f32.mrf.mxu2 }
 0x54b   :  { %v18869_v52 = vld [vmem:[#allocation2 + $0x12f4] sm:$0xf0] }
 0x54c   :  { %v13744_v61 = vld [vmem:[#allocation2 + $0xc98] sm:$0xf]  ;;  %v14545_v63 = vor.u32 %v18869_v52, %v14544_v51  ;;  %7231 = vmatpush.bf16.msra.mxu2 %v14289_v58 }
 0x54d   :  { %v18669_v54 = vld [vmem:[#allocation2 + $0xcb4] sm:$0xf0] }
 0x54e   :  { %v14000_v59 = vld [vmem:[#allocation2 + $0xe98] sm:$0xf]  ;;  %v13745_v10 = vor.u32 %v18669_v54, %v13744_v61  ;;  %7244 = vmatpush.bf16.msra.mxu3 %v14545_v63 }
 0x54f   :  { %v18733_v62 = vld [vmem:[#allocation2 + $0xeb4] sm:$0xf0] }
 0x550   :  { %v14256_v0 = vld [vmem:[#allocation2 + $0x1098] sm:$0xf]  ;;  %v14001_v16 = vor.u32 %v18733_v62, %v14000_v59  ;;  %7206 = vmatpush.bf16.msra.mxu0 %v13745_v10 }
 0x551   :  { %v18797_v2 = vld [vmem:[#allocation2 + $0x10b4] sm:$0xf0] }
 0x552   :  { %v14512_v6 = vld [vmem:[#allocation2 + $0x1298] sm:$0xf]  ;;  %v14257_v13 = vor.u32 %v18797_v2, %v14256_v0  ;;  %7219 = vmatpush.bf16.msra.mxu1 %v14001_v16 }
 0x553   :  { %v18861_v7 = vld [vmem:[#allocation2 + $0x12b4] sm:$0xf0] }
 0x554   :  { %v13712_v23 = vld [vmem:[#allocation2 + $0xc58] sm:$0xf]  ;;  %v14513_v31 = vor.u32 %v18861_v7, %v14512_v6  ;;  %7232 = vmatpush.bf16.msra.mxu2 %v14257_v13 }
 0x555   :  { %v18661_v24 = vld [vmem:[#allocation2 + $0xc74] sm:$0xf0] }
 0x556   :  { %v13968_v17 = vld [vmem:[#allocation2 + $0xe58] sm:$0xf]  ;;  %v13713_v35 = vor.u32 %v18661_v24, %v13712_v23  ;;  %7245 = vmatpush.bf16.msra.mxu3 %v14513_v31 }
 0x557   :  { %v18725_v34 = vld [vmem:[#allocation2 + $0xe74] sm:$0xf0] }
 0x558   :  { %v14224_v36 = vld [vmem:[#allocation2 + $0x1058] sm:$0xf]  ;;  %v13969_v32 = vor.u32 %v18725_v34, %v13968_v17  ;;  %7207 = vmatpush.bf16.msra.mxu0 %v13713_v35 }
 0x559   :  { %v18789_v37 = vld [vmem:[#allocation2 + $0x1074] sm:$0xf0] }
 0x55a   :  { %v14480_v39 = vld [vmem:[#allocation2 + $0x1258] sm:$0xf]  ;;  %v14225_v11 = vor.u32 %v18789_v37, %v14224_v36  ;;  %7220 = vmatpush.bf16.msra.mxu1 %v13969_v32 }
 0x55b   :  { %v18853_v40 = vld [vmem:[#allocation2 + $0x1274] sm:$0xf0] }
 0x55c   :  { %v13680_v43 = vld [vmem:[#allocation2 + $0xc18] sm:$0xf]  ;;  %v14481_v55 = vor.u32 %v18853_v40, %v14480_v39  ;;  %7233 = vmatpush.bf16.msra.mxu2 %v14225_v11 }
 0x55d   :  { %v18653_v46 = vld [vmem:[#allocation2 + $0xc34] sm:$0xf0] }
 0x55e   :  { %v13936_v47 = vld [vmem:[#allocation2 + $0xe18] sm:$0xf]  ;;  %v13681_v54 = vor.u32 %v18653_v46, %v13680_v43  ;;  %7246 = vmatpush.bf16.msra.mxu3 %v14481_v55 }
 0x55f   :  { %v18717_v49 = vld [vmem:[#allocation2 + $0xe34] sm:$0xf0] }
 0x560   :  { %v14192_v48 = vld [vmem:[#allocation2 + $0x1018] sm:$0xf]  ;;  %v13937_v62 = vor.u32 %v18717_v49, %v13936_v47  ;;  %7208 = vmatpush.bf16.msra.mxu0 %v13681_v54 }
 0x561   :  { %v18781_v51 = vld [vmem:[#allocation2 + $0x1034] sm:$0xf0] }
 0x562   :  { %v14448_v52 = vld [vmem:[#allocation2 + $0x1218] sm:$0xf]  ;;  %v14193_v0 = vor.u32 %v18781_v51, %v14192_v48  ;;  %7221 = vmatpush.bf16.msra.mxu1 %v13937_v62 }
 0x563   :  { %v18845_v53 = vld [vmem:[#allocation2 + $0x1234] sm:$0xf0]  ;;  %7209 = vmatmul.bf16.vlgmr.msra.gmra.mxu0 %v20065_v38 }
 0x564   :  { %v14928_v57 = vld [vmem:[#allocation2 + $0x15d8] sm:$0xf]  ;;  %v14449_v5 = vor.u32 %v18845_v53, %v14448_v52  ;;  %7234 = vmatpush.bf16.msra.mxu2 %v14193_v0 }
 0x565   :  { %v18965_v58 = vld [vmem:[#allocation2 + $0x15f4] sm:$0xf0]  ;;  %7222 = vmatmul.bf16.vlgmr.msra.gmra.mxu1 %v20069_v42 }
 0x566   :  { %v15184_v61 = vld [vmem:[#allocation2 + $0x17d8] sm:$0xf]  ;;  %v14929_v6 = vor.u32 %v18965_v58, %v14928_v57  ;;  %7247 = vmatpush.bf16.msra.mxu3 %v14449_v5 }
 0x567   :  { %v19029_v59 = vld [vmem:[#allocation2 + $0x17f4] sm:$0xf0]  ;;  %7235 = vmatmul.bf16.vlgmr.msra.gmra.mxu2 %v20083_v25 }
 0x568   :  { %v15440_v60 = vld [vmem:[#allocation2 + $0x19d8] sm:$0xf]  ;;  %v15185_v7 = vor.u32 %v19029_v59, %v15184_v61  ;;  %7253 = vmatpush.bf16.msrb.mxu0 %v14929_v6  ;;  %v7002_v59 = vpop.f32.mrf.mxu0 }
 0x569   :  { %v19093_v63 = vld [vmem:[#allocation2 + $0x19f4] sm:$0xf0]  ;;  %7248 = vmatmul.bf16.vlgmr.msra.gmra.mxu3 %v20087_v30  ;;  %v7003_v62 = vadd.f32 %v7002_v59, %v20262_v9 }
 0x56a   :  { %v15696_v2 = vld [vmem:[#allocation2 + $0x1bd8] sm:$0xf]  ;;  %v15441_v10 = vor.u32 %v19093_v63, %v15440_v60  ;;  %7266 = vmatpush.bf16.msrb.mxu1 %v15185_v7 }
 0x56b   :  { %v19157_v3 = vld [vmem:[#allocation2 + $0x1bf4] sm:$0xf0] }
 0x56c   :  { %v14896_v15 = vld [vmem:[#allocation2 + $0x1598] sm:$0xf]  ;;  %v15697_v23 = vor.u32 %v19157_v3, %v15696_v2  ;;  %7279 = vmatpush.bf16.msrb.mxu2 %v15441_v10  ;;  %v7015_v2 = vpop.f32.mrf.mxu1 }
 0x56d   :  { %v18957_v16 = vld [vmem:[#allocation2 + $0x15b4] sm:$0xf0] }
 0x56e   :  { %v15152_v13 = vld [vmem:[#allocation2 + $0x1798] sm:$0xf]  ;;  %v14897_v36 = vor.u32 %v18957_v16, %v14896_v15  ;;  %7292 = vmatpush.bf16.msrb.mxu3 %v15697_v23  ;;  %v7016_v16 = vadd.f32 %v7015_v2, %v7003_v62 }
 0x56f   :  { %v19021_v24 = vld [vmem:[#allocation2 + $0x17b4] sm:$0xf0] }
 0x570   :  { %v15408_v17 = vld [vmem:[#allocation2 + $0x1998] sm:$0xf]  ;;  %v15153_v37 = vor.u32 %v19021_v24, %v15152_v13  ;;  %7254 = vmatpush.bf16.msrb.mxu0 %v14897_v36 }
 0x571   :  { %v19085_v26 = vld [vmem:[#allocation2 + $0x19b4] sm:$0xf0] }
 0x572   :  { %v15664_v31 = vld [vmem:[#allocation2 + $0x1b98] sm:$0xf]  ;;  %v15409_v39 = vor.u32 %v19085_v26, %v15408_v17  ;;  %7267 = vmatpush.bf16.msrb.mxu1 %v15153_v37 }
 0x573   :  { %v19149_v34 = vld [vmem:[#allocation2 + $0x1bb4] sm:$0xf0] }
 0x574   :  { %v14864_v40 = vld [vmem:[#allocation2 + $0x1558] sm:$0xf]  ;;  %v15665_v46 = vor.u32 %v19149_v34, %v15664_v31  ;;  %7280 = vmatpush.bf16.msrb.mxu2 %v15409_v39 }
 0x575   :  { %v18949_v35 = vld [vmem:[#allocation2 + $0x1574] sm:$0xf0] }
 0x576   :  { %v15120_v43 = vld [vmem:[#allocation2 + $0x1758] sm:$0xf]  ;;  %v14865_v50 = vor.u32 %v18949_v35, %v14864_v40  ;;  %7293 = vmatpush.bf16.msrb.mxu3 %v15665_v46  ;;  %v7028_v35 = vpop.f32.mrf.mxu2 }
 0x577   :  { %v19013_v32 = vld [vmem:[#allocation2 + $0x1774] sm:$0xf0] }
 0x578   :  { %v15376_v11 = vld [vmem:[#allocation2 + $0x1958] sm:$0xf]  ;;  %v15121_v55 = vor.u32 %v19013_v32, %v15120_v43  ;;  %7255 = vmatpush.bf16.msrb.mxu0 %v14865_v50  ;;  %v7004_v50 = vpop.f32.mrf.mxu0 }
 0x579   :  { %v19077_v47 = vld [vmem:[#allocation2 + $0x1974] sm:$0xf0] }
 0x57a   :  { %v15632_v49 = vld [vmem:[#allocation2 + $0x1b58] sm:$0xf]  ;;  %v15377_v51 = vor.u32 %v19077_v47, %v15376_v11  ;;  %7268 = vmatpush.bf16.msrb.mxu1 %v15121_v55  ;;  %v7029_v11 = vadd.f32 %v7028_v35, %v7016_v16  ;;  %v7041_v47 = vpop.f32.mrf.mxu3  ;;  %v12626_v35 = vld [vmem:[#allocation2 + $0x3f8] sm:$0xf0] }
 0x57b   :  { %v19141_v48 = vld [vmem:[#allocation2 + $0x1b74] sm:$0xf0] }
 0x57c   :  { %v14832_v52 = vld [vmem:[#allocation2 + $0x1518] sm:$0xf]  ;;  %v15633_v57 = vor.u32 %v19141_v48, %v15632_v49  ;;  %7281 = vmatpush.bf16.msrb.mxu2 %v15377_v51  ;;  %v7017_v51 = vpop.f32.mrf.mxu1 }
 0x57d   :  { %v18941_v53 = vld [vmem:[#allocation2 + $0x1534] sm:$0xf0] }
 0x57e   :  { %v15088_v56 = vld [vmem:[#allocation2 + $0x1718] sm:$0xf]  ;;  %v14833_v0 = vor.u32 %v18941_v53, %v14832_v52  ;;  %7294 = vmatpush.bf16.msrb.mxu3 %v15633_v57  ;;  %v20269_v52 = vadd.f32 %v7041_v47, %v7029_v11  ;;  %v12882_v11 = vld [vmem:[#allocation2 + $0x5f8] sm:$0xf0] }
 0x57f   :  { %v19005_v58 = vld [vmem:[#allocation2 + $0x1734] sm:$0xf0] }
 0x580   :  { %v15344_v61 = vld [vmem:[#allocation2 + $0x1918] sm:$0xf]  ;;  %v15089_v3 = vor.u32 %v19005_v58, %v15088_v56  ;;  %7256 = vmatpush.bf16.msrb.mxu0 %v14833_v0 }
 0x581   :  { %v19069_v54 = vld [vmem:[#allocation2 + $0x1934] sm:$0xf0] }
 0x582   :  { %v15600_v60 = vld [vmem:[#allocation2 + $0x1b18] sm:$0xf]  ;;  %v15345_v5 = vor.u32 %v19069_v54, %v15344_v61  ;;  %7269 = vmatpush.bf16.msrb.mxu1 %v15089_v3 }
 0x583   :  { %v19133_v63 = vld [vmem:[#allocation2 + $0x1b34] sm:$0xf0] }
 0x584   :  { %v14800_v6 = vld [vmem:[#allocation2 + $0x14d8] sm:$0xf]  ;;  %v15601_v15 = vor.u32 %v19133_v63, %v15600_v60  ;;  %7282 = vmatpush.bf16.msrb.mxu2 %v15345_v5 }
 0x585   :  { %v18933_v7 = vld [vmem:[#allocation2 + $0x14f4] sm:$0xf0] }
 0x586   :  { %v15056_v10 = vld [vmem:[#allocation2 + $0x16d8] sm:$0xf]  ;;  %v14801_v31 = vor.u32 %v18933_v7, %v14800_v6  ;;  %7295 = vmatpush.bf16.msrb.mxu3 %v15601_v15 }
 0x587   :  { %v18997_v13 = vld [vmem:[#allocation2 + $0x16f4] sm:$0xf0] }
 0x588   :  { %v15312_v23 = vld [vmem:[#allocation2 + $0x18d8] sm:$0xf]  ;;  %v15057_v9 = vor.u32 %v18997_v13, %v15056_v10  ;;  %7257 = vmatpush.bf16.msrb.mxu0 %v14801_v31 }
 0x589   :  { %v19061_v24 = vld [vmem:[#allocation2 + $0x18f4] sm:$0xf0] }
 0x58a   :  { %v15568_v17 = vld [vmem:[#allocation2 + $0x1ad8] sm:$0xf]  ;;  %v15313_v34 = vor.u32 %v19061_v24, %v15312_v23  ;;  %7270 = vmatpush.bf16.msrb.mxu1 %v15057_v9 }
 0x58b   :  { %v19125_v26 = vld [vmem:[#allocation2 + $0x1af4] sm:$0xf0] }
 0x58c   :  { %v14768_v36 = vld [vmem:[#allocation2 + $0x1498] sm:$0xf]  ;;  %v15569_v40 = vor.u32 %v19125_v26, %v15568_v17  ;;  %7283 = vmatpush.bf16.msrb.mxu2 %v15313_v34  ;;  %v7030_v26 = vpop.f32.mrf.mxu2  ;;  %v18321_v34 = vld [vmem:[#allocation2 + $0x1dc] sm:$0xf] }
 0x58d   :  { %v18925_v37 = vld [vmem:[#allocation2 + $0x14b4] sm:$0xf0] }
 0x58e   :  { %v15024_v39 = vld [vmem:[#allocation2 + $0x1698] sm:$0xf]  ;;  %v14769_v55 = vor.u32 %v18925_v37, %v14768_v36  ;;  %7296 = vmatpush.bf16.msrb.mxu3 %v15569_v40  ;;  %v7043_v36 = vpop.f32.mrf.mxu3  ;;  %v18385_v40 = vld [vmem:[#allocation2 + $0x3dc] sm:$0xf] }
 0x58f   :  { %v18989_v43 = vld [vmem:[#allocation2 + $0x16b4] sm:$0xf0]  ;;  %v12629_v50 = vor.u32 %v18385_v40, %v12626_v35  ;;  %v18361_v36 = vld [vmem:[#allocation2 + $0x31c] sm:$0xf] }
 0x590   :  { %v15280_v46 = vld [vmem:[#allocation2 + $0x1898] sm:$0xf]  ;;  %v15025_v53 = vor.u32 %v18989_v43, %v15024_v39  ;;  %7258 = vmatpush.bf16.msrb.mxu0 %v14769_v55  ;;  %v12370_v39 = vld [vmem:[#allocation2 + $0x1f8] sm:$0xf0] }
 0x591   :  { %v19053_v32 = vld [vmem:[#allocation2 + $0x18b4] sm:$0xf0]  ;;  %v18425_v40 = vld [vmem:[#allocation2 + $0x51c] sm:$0xf] }
 0x592   :  { %v15536_v49 = vld [vmem:[#allocation2 + $0x1a98] sm:$0xf]  ;;  %v15281_v56 = vor.u32 %v19053_v32, %v15280_v46  ;;  %7271 = vmatpush.bf16.msrb.mxu1 %v15025_v53  ;;  %v18449_v32 = vld [vmem:[#allocation2 + $0x5dc] sm:$0xf] }
 0x593   :  { %v19117_v48 = vld [vmem:[#allocation2 + $0x1ab4] sm:$0xf0]  ;;  %v18313_v53 = vld [vmem:[#allocation2 + $0x19c] sm:$0xf] }
 0x594   :  { %v14736_v57 = vld [vmem:[#allocation2 + $0x1458] sm:$0xf]  ;;  %v15537_v54 = vor.u32 %v19117_v48, %v15536_v49  ;;  %7284 = vmatpush.bf16.msrb.mxu2 %v15281_v56  ;;  %v12373_v48 = vor.u32 %v18321_v34, %v12370_v39  ;;  %v12885_v56 = vor.u32 %v18449_v32, %v12882_v11  ;;  %v12274_v34 = vld [vmem:[#allocation2 + $0x138] sm:$0xf0]  ;;  %v7054_v39 = vpop.f32.mrf.mxu0  ;;  %v7067_v32 = vpop.f32.mrf.mxu1 }
 0x595   :  { %v18917_v58 = vld [vmem:[#allocation2 + $0x1474] sm:$0xf0]  ;;  %v12786_v35 = vld [vmem:[#allocation2 + $0x538] sm:$0xf0] }
 0x596   :  { %v14992_v61 = vld [vmem:[#allocation2 + $0x1658] sm:$0xf]  ;;  %v14737_v2 = vor.u32 %v18917_v58, %v14736_v57  ;;  %7297 = vmatpush.bf16.msrb.mxu3 %v15537_v54  ;;  %v12338_v57 = vld [vmem:[#allocation2 + $0x1b8] sm:$0xf0] }
 0x597   :  { %v18981_v59 = vld [vmem:[#allocation2 + $0x1674] sm:$0xf0]  ;;  %v18377_v58 = vld [vmem:[#allocation2 + $0x39c] sm:$0xf] }
 0x598   :  { %v15248_v60 = vld [vmem:[#allocation2 + $0x1858] sm:$0xf]  ;;  %v14993_v6 = vor.u32 %v18981_v59, %v14992_v61  ;;  %7259 = vmatpush.bf16.msrb.mxu0 %v14737_v2  ;;  %v12594_v61 = vld [vmem:[#allocation2 + $0x3b8] sm:$0xf0] }
 0x599   :  { %v19045_v63 = vld [vmem:[#allocation2 + $0x1874] sm:$0xf0]  ;;  %v18441_v54 = vld [vmem:[#allocation2 + $0x59c] sm:$0xf] }
 0x59a   :  { %v15504_v62 = vld [vmem:[#allocation2 + $0x1a58] sm:$0xf]  ;;  %v15249_v7 = vor.u32 %v19045_v63, %v15248_v60  ;;  %7272 = vmatpush.bf16.msrb.mxu1 %v14993_v6  ;;  %v12850_v59 = vld [vmem:[#allocation2 + $0x5b8] sm:$0xf0]  ;;  %v12341_v63 = vor.u32 %v18313_v53, %v12338_v57 }
 0x59b   :  { %v19109_v0 = vld [vmem:[#allocation2 + $0x1a74] sm:$0xf0]  ;;  %v12306_v6 = vld [vmem:[#allocation2 + $0x178] sm:$0xf0] }
 0x59c   :  { %v14704_v3 = vld [vmem:[#allocation2 + $0x1418] sm:$0xf]  ;;  %v15505_v13 = vor.u32 %v19109_v0, %v15504_v62  ;;  %7285 = vmatpush.bf16.msrb.mxu2 %v15249_v7  ;;  %v12597_v62 = vor.u32 %v18377_v58, %v12594_v61  ;;  %v18369_v7 = vld [vmem:[#allocation2 + $0x35c] sm:$0xf] }
 0x59d   :  { %v18909_v5 = vld [vmem:[#allocation2 + $0x1434] sm:$0xf0]  ;;  %v12242_v53 = vld [vmem:[#allocation2 + $0xf8] sm:$0xf0] }
 0x59e   :  { %v14960_v10 = vld [vmem:[#allocation2 + $0x1618] sm:$0xf]  ;;  %v14705_v37 = vor.u32 %v18909_v5, %v14704_v3  ;;  %7298 = vmatpush.bf16.msrb.mxu3 %v15505_v13  ;;  %v18305_v3 = vld [vmem:[#allocation2 + $0x15c] sm:$0xf]  ;;  %v12853_v5 = vor.u32 %v18441_v54, %v12850_v59 }
 0x59f   :  { %v18973_v15 = vld [vmem:[#allocation2 + $0x1634] sm:$0xf0]  ;;  %v12498_v57 = vld [vmem:[#allocation2 + $0x2f8] sm:$0xf0] }
 0x5a0   :  { %v15216_v16 = vld [vmem:[#allocation2 + $0x1818] sm:$0xf]  ;;  %v14961_v43 = vor.u32 %v18973_v15, %v14960_v10  ;;  %7260 = vmatpush.bf16.msrb.mxu0 %v14705_v37  ;;  %v12562_v10 = vld [vmem:[#allocation2 + $0x378] sm:$0xf0] }
 0x5a1   :  { %v19037_v23 = vld [vmem:[#allocation2 + $0x1834] sm:$0xf0]  ;;  %v18433_v15 = vld [vmem:[#allocation2 + $0x55c] sm:$0xf] }
 0x5a2   :  { %v15472_v24 = vld [vmem:[#allocation2 + $0x1a18] sm:$0xf]  ;;  %v15217_v46 = vor.u32 %v19037_v23, %v15216_v16  ;;  %7273 = vmatpush.bf16.msrb.mxu1 %v14961_v43  ;;  %v12818_v16 = vld [vmem:[#allocation2 + $0x578] sm:$0xf0]  ;;  %v12309_v23 = vor.u32 %v18305_v3, %v12306_v6  ;;  %v7055_v43 = vadd.f32 %v7054_v39, %v20269_v52 }
 0x5a3   :  { %v19101_v17 = vld [vmem:[#allocation2 + $0x1a34] sm:$0xf0]  ;;  %7261 = vmatmul.bf16.vlgmr.msrb.gmra.mxu0 %v20085_v29  ;;  %v12530_v37 = vld [vmem:[#allocation2 + $0x338] sm:$0xf0] }
 0x5a4   :  { %v15952_v31 = vld [vmem:[#allocation2 + $0x1dd8] sm:$0xf]  ;;  %v15473_v47 = vor.u32 %v19101_v17, %v15472_v24  ;;  %7286 = vmatpush.bf16.msrb.mxu2 %v15217_v46  ;;  %v12565_v24 = vor.u32 %v18369_v7, %v12562_v10  ;;  %v18417_v58 = vld [vmem:[#allocation2 + $0x4dc] sm:$0xf]  ;;  %v7093_v10 = vpop.f32.mrf.mxu3 }
 0x5a5   :  { %v19221_v9 = vld [vmem:[#allocation2 + $0x1df4] sm:$0xf0]  ;;  %7274 = vmatmul.bf16.vlgmr.msrb.gmra.mxu1 %v20089_v33  ;;  %v12754_v61 = vld [vmem:[#allocation2 + $0x4f8] sm:$0xf0] }
 0x5a6   :  { %v15953_v49 = vor.u32 %v19221_v9, %v15952_v31  ;;  %v15920_v55 = vld [vmem:[#allocation2 + $0x1d98] sm:$0xf]  ;;  %7299 = vmatpush.bf16.msrb.mxu3 %v15473_v47  ;;  %7318 = vmatpush.bf16.msra.mxu1 %v12373_v48  ;;  %v18297_v31 = vld [vmem:[#allocation2 + $0x11c] sm:$0xf]  ;;  %v12821_v9 = vor.u32 %v18433_v15, %v12818_v16  ;;  %v12533_v47 = vor.u32 %v18361_v36, %v12530_v37 }
 0x5a7   :  { %v19213_v51 = vld [vmem:[#allocation2 + $0x1db4] sm:$0xf0]  ;;  %7287 = vmatmul.bf16.vlgmr.msrb.gmra.mxu2 %v20101_v21  ;;  %v12277_v11 = vor.u32 %v18297_v31, %v12274_v34  ;;  %v12210_v3 = vld [vmem:[#allocation2 + $0xb8] sm:$0xf0] }
 0x5a8   :  { %7305 = vmatpush.bf16.msra.mxu0 %v15953_v49  ;;  %v15921_v60 = vor.u32 %v19213_v51, %v15920_v55  ;;  %7331 = vmatpush.bf16.msra.mxu2 %v12629_v50  ;;  %v15888_v0 = vld [vmem:[#allocation2 + $0x1d58] sm:$0xf]  ;;  %v18289_v50 = vld [vmem:[#allocation2 + $0xdc] sm:$0xf]  ;;  %v12789_v55 = vor.u32 %v18425_v40, %v12786_v35  ;;  %v7068_v51 = vadd.f32 %v7067_v32, %v7055_v43 }
 0x5a9   :  { %v19205_v2 = vld [vmem:[#allocation2 + $0x1d74] sm:$0xf0]  ;;  %7300 = vmatmul.bf16.vlgmr.msrb.gmra.mxu3 %v20105_v28  ;;  %v12245_v52 = vor.u32 %v18289_v50, %v12242_v53  ;;  %v12466_v6 = vld [vmem:[#allocation2 + $0x2b8] sm:$0xf0] }
 0x5aa   :  { %7344 = vmatpush.bf16.msra.mxu3 %v12885_v56  ;;  %v15889_v13 = vor.u32 %v19205_v2, %v15888_v0  ;;  %7319 = vmatpush.bf16.msra.mxu1 %v12341_v63  ;;  %v15856_v17 = vld [vmem:[#allocation2 + $0x1d18] sm:$0xf]  ;;  %v18353_v56 = vld [vmem:[#allocation2 + $0x2dc] sm:$0xf]  ;;  %v12757_v0 = vor.u32 %v18417_v58, %v12754_v61  ;;  %v7080_v2 = vpop.f32.mrf.mxu2 }
 0x5ab   :  { %v19197_v26 = vld [vmem:[#allocation2 + $0x1d34] sm:$0xf0]  ;;  %v12501_v59 = vor.u32 %v18353_v56, %v12498_v57  ;;  %v7081_v7 = vadd.f32 %v7080_v2, %v7068_v51  ;;  %v18409_v15 = vld [vmem:[#allocation2 + $0x49c] sm:$0xf] }
 0x5ac   :  { %7306 = vmatpush.bf16.msra.mxu0 %v15921_v60  ;;  %7332 = vmatpush.bf16.msra.mxu2 %v12597_v62  ;;  %v15857_v46 = vor.u32 %v19197_v26, %v15856_v17  ;;  %v15824_v49 = vld [vmem:[#allocation2 + $0x1cd8] sm:$0xf]  ;;  %v18281_v62 = vld [vmem:[#allocation2 + $0x9c] sm:$0xf] }
 0x5ad   :  { %v19189_v48 = vld [vmem:[#allocation2 + $0x1cf4] sm:$0xf0]  ;;  %v12722_v16 = vld [vmem:[#allocation2 + $0x4b8] sm:$0xf0]  ;;  %v20276_v17 = vadd.f32 %v7093_v10, %v7081_v7  ;;  %v12213_v26 = vor.u32 %v18281_v62, %v12210_v3 }
 0x5ae   :  { %7345 = vmatpush.bf16.msra.mxu3 %v12853_v5  ;;  %7320 = vmatpush.bf16.msra.mxu1 %v12309_v23  ;;  %v15825_v54 = vor.u32 %v19189_v48, %v15824_v49  ;;  %v15792_v60 = vld [vmem:[#allocation2 + $0x1c98] sm:$0xf]  ;;  %v18345_v5 = vld [vmem:[#allocation2 + $0x29c] sm:$0xf]  ;;  %v12725_v37 = vor.u32 %v18409_v15, %v12722_v16 }
 0x5af   :  { %v19181_v63 = vld [vmem:[#allocation2 + $0x1cb4] sm:$0xf0]  ;;  %v12469_v31 = vor.u32 %v18345_v5, %v12466_v6  ;;  %v18273_v36 = vld [vmem:[#allocation2 + $0x5c] sm:$0xf] }
 0x5b0   :  { %7307 = vmatpush.bf16.msra.mxu0 %v15889_v13  ;;  %7333 = vmatpush.bf16.msra.mxu2 %v12565_v24  ;;  %v7056_v13 = vpop.f32.mrf.mxu0  ;;  %v15793_v23 = vor.u32 %v19181_v63, %v15792_v60  ;;  %v7069_v24 = vpop.f32.mrf.mxu1  ;;  %v19173_v34 = vld [vmem:[#allocation2 + $0x1c74] sm:$0xf0]  ;;  %v12178_v39 = vld [vmem:[#allocation2 + $0x78] sm:$0xf0] }
 0x5b1   :  { %v18337_v40 = vld [vmem:[#allocation2 + $0x25c] sm:$0xf]  ;;  %v12181_v49 = vor.u32 %v18273_v36, %v12178_v39  ;;  %v7095_v60 = vpop.f32.mrf.mxu3 }
 0x5b2   :  { %7346 = vmatpush.bf16.msra.mxu3 %v12821_v9  ;;  %7321 = vmatpush.bf16.msra.mxu1 %v12277_v11  ;;  %v15760_v9 = vld [vmem:[#allocation2 + $0x1c58] sm:$0xf]  ;;  %v12434_v35 = vld [vmem:[#allocation2 + $0x278] sm:$0xf0]  ;;  %v7082_v61 = vpop.f32.mrf.mxu2 }
 0x5b3   :  { %v18401_v43 = vld [vmem:[#allocation2 + $0x45c] sm:$0xf]  ;;  %v15761_v32 = vor.u32 %v19173_v34, %v15760_v9  ;;  %v15728_v11 = vld [vmem:[#allocation2 + $0x1c18] sm:$0xf]  ;;  %v12437_v48 = vor.u32 %v18337_v40, %v12434_v35 }
 0x5b4   :  { %7308 = vmatpush.bf16.msra.mxu0 %v15857_v46  ;;  %7334 = vmatpush.bf16.msra.mxu2 %v12533_v47  ;;  %v12690_v46 = vld [vmem:[#allocation2 + $0x478] sm:$0xf0]  ;;  %v19165_v47 = vld [vmem:[#allocation2 + $0x1c34] sm:$0xf0] }
 0x5b5   :  { %v18265_v50 = vld [vmem:[#allocation2 + $0x1c] sm:$0xf]  ;;  %v12693_v53 = vor.u32 %v18401_v43, %v12690_v46  ;;  %v15729_v63 = vor.u32 %v19165_v47, %v15728_v11 }
 0x5b6   :  { %7347 = vmatpush.bf16.msra.mxu3 %v12789_v55  ;;  %7322 = vmatpush.bf16.msra.mxu1 %v12245_v52  ;;  %v12146_v55 = vld [vmem:[#allocation2 + $0x38] sm:$0xf0] }
 0x5b7   :  { %v18329_v51 = vld [vmem:[#allocation2 + $0x21c] sm:$0xf]  ;;  %v12149_v3 = vor.u32 %v18265_v50, %v12146_v55 }
 0x5b8   :  { %7309 = vmatpush.bf16.msra.mxu0 %v15825_v54  ;;  %7335 = vmatpush.bf16.msra.mxu2 %v12501_v59  ;;  %v12402_v56 = vld [vmem:[#allocation2 + $0x238] sm:$0xf0] }
 0x5b9   :  { %v18393_v57 = vld [vmem:[#allocation2 + $0x41c] sm:$0xf]  ;;  %v12405_v5 = vor.u32 %v18329_v51, %v12402_v56 }
 0x5ba   :  { %7348 = vmatpush.bf16.msra.mxu3 %v12757_v0  ;;  %7323 = vmatpush.bf16.msra.mxu1 %v12213_v26  ;;  %v12658_v58 = vld [vmem:[#allocation2 + $0x438] sm:$0xf0] }
 0x5bb   :  { %v18513_v54 = vld [vmem:[#allocation2 + $0x7dc] sm:$0xf]  ;;  %v12661_v10 = vor.u32 %v18393_v57, %v12658_v58 }
 0x5bc   :  { %7310 = vmatpush.bf16.msra.mxu0 %v15793_v23  ;;  %7336 = vmatpush.bf16.msra.mxu2 %v12469_v31  ;;  %v13138_v52 = vld [vmem:[#allocation2 + $0x7f8] sm:$0xf0] }
 0x5bd   :  { %v18577_v59 = vld [vmem:[#allocation2 + $0x9dc] sm:$0xf]  ;;  %v13141_v15 = vor.u32 %v18513_v54, %v13138_v52 }
 0x5be   :  { %7349 = vmatpush.bf16.msra.mxu3 %v12725_v37  ;;  %v13394_v62 = vld [vmem:[#allocation2 + $0x9f8] sm:$0xf0]  ;;  %7324 = vmatpush.bf16.msra.mxu1 %v12181_v49 }
 0x5bf   :  { %v18641_v0 = vld [vmem:[#allocation2 + $0xbdc] sm:$0xf]  ;;  %v13397_v16 = vor.u32 %v18577_v59, %v13394_v62  ;;  %v7106_v62 = vpop.f32.mrf.mxu0 }
 0x5c0   :  { %7311 = vmatpush.bf16.msra.mxu0 %v15761_v32  ;;  %v13650_v2 = vld [vmem:[#allocation2 + $0xbf8] sm:$0xf0]  ;;  %7337 = vmatpush.bf16.msra.mxu2 %v12437_v48 }
 0x5c1   :  { %v18705_v6 = vld [vmem:[#allocation2 + $0xddc] sm:$0xf]  ;;  %v13653_v13 = vor.u32 %v18641_v0, %v13650_v2 }
 0x5c2   :  { %v13906_v7 = vld [vmem:[#allocation2 + $0xdf8] sm:$0xf0]  ;;  %7350 = vmatpush.bf16.msra.mxu3 %v12693_v53  ;;  %7325 = vmatpush.bf16.msra.mxu1 %v12149_v3 }
 0x5c3   :  { %v18505_v23 = vld [vmem:[#allocation2 + $0x79c] sm:$0xf]  ;;  %v13909_v31 = vor.u32 %v18705_v6, %v13906_v7 }
 0x5c4   :  { %v13106_v24 = vld [vmem:[#allocation2 + $0x7b8] sm:$0xf0]  ;;  %7312 = vmatpush.bf16.msra.mxu0 %v15729_v63  ;;  %7338 = vmatpush.bf16.msra.mxu2 %v12405_v5 }
 0x5c5   :  { %v18569_v26 = vld [vmem:[#allocation2 + $0x99c] sm:$0xf]  ;;  %v13109_v40 = vor.u32 %v18505_v23, %v13106_v24  ;;  %7326 = vmatmul.bf16.vlgmr.msra.gmra.mxu1 %v20049_v19  ;;  %v7119_v19 = vpop.f32.mrf.mxu1 }
 0x5c6   :  { %v13362_v9 = vld [vmem:[#allocation2 + $0x9b8] sm:$0xf0]  ;;  %7351 = vmatpush.bf16.msra.mxu3 %v12661_v10  ;;  %7370 = vmatpush.bf16.msrb.mxu1 %v13397_v16 }
 0x5c7   :  { %v18633_v34 = vld [vmem:[#allocation2 + $0xb9c] sm:$0xf]  ;;  %v13365_v35 = vor.u32 %v18569_v26, %v13362_v9  ;;  %7313 = vmatmul.bf16.vlgmr.msra.gmra.mxu0 %v20103_v27  ;;  %7339 = vmatmul.bf16.vlgmr.msra.gmra.mxu2 %v20053_v22 }
 0x5c8   :  { %v13618_v36 = vld [vmem:[#allocation2 + $0xbb8] sm:$0xf0]  ;;  %7357 = vmatpush.bf16.msrb.mxu0 %v13141_v15  ;;  %7383 = vmatpush.bf16.msrb.mxu2 %v13653_v13 }
 0x5c9   :  { %v18697_v37 = vld [vmem:[#allocation2 + $0xd9c] sm:$0xf]  ;;  %v13621_v43 = vor.u32 %v18633_v34, %v13618_v36  ;;  %7352 = vmatmul.bf16.vlgmr.msra.gmra.mxu3 %v20047_v18  ;;  %v7107_v18 = vadd.f32 %v7106_v62, %v20276_v17  ;;  %v1090_v17 = vperm.slane %v20254_v4, 6  ;;  %v7108_v4 = vpop.f32.mrf.mxu0 }
 0x5ca   :  { %v13874_v39 = vld [vmem:[#allocation2 + $0xdb8] sm:$0xf0]  ;;  %7396 = vmatpush.bf16.msrb.mxu3 %v13909_v31  ;;  %7371 = vmatpush.bf16.msrb.mxu1 %v13365_v35 }
 0x5cb   :  { %v18497_v46 = vld [vmem:[#allocation2 + $0x75c] sm:$0xf]  ;;  %v13877_v47 = vor.u32 %v18697_v37, %v13874_v39  ;;  %v20283_v16 = vadd.f32 %v7119_v19, %v7107_v18 }
 0x5cc   :  { %v13074_v32 = vld [vmem:[#allocation2 + $0x778] sm:$0xf0]  ;;  %7358 = vmatpush.bf16.msrb.mxu0 %v13109_v40  ;;  %7384 = vmatpush.bf16.msrb.mxu2 %v13621_v43 }
 0x5cd   :  { %v18561_v11 = vld [vmem:[#allocation2 + $0x95c] sm:$0xf]  ;;  %v13077_v53 = vor.u32 %v18497_v46, %v13074_v32 }
 0x5ce   :  { %v13330_v49 = vld [vmem:[#allocation2 + $0x978] sm:$0xf0]  ;;  %7397 = vmatpush.bf16.msrb.mxu3 %v13877_v47 }
 0x5cf   :  { %v18625_v48 = vld [vmem:[#allocation2 + $0xb5c] sm:$0xf]  ;;  %v13333_v56 = vor.u32 %v18561_v11, %v13330_v49  ;;  %v7132_v11 = vpop.f32.mrf.mxu2 }
 0x5d0   :  { %v13586_v50 = vld [vmem:[#allocation2 + $0xb78] sm:$0xf0]  ;;  %7359 = vmatpush.bf16.msrb.mxu0 %v13077_v53 }
 0x5d1   :  { %v18689_v55 = vld [vmem:[#allocation2 + $0xd5c] sm:$0xf]  ;;  %v13589_v57 = vor.u32 %v18625_v48, %v13586_v50  ;;  %7372 = vmatpush.bf16.msrb.mxu1 %v13333_v56  ;;  %v7133_v48 = vadd.f32 %v7132_v11, %v1090_v17  ;;  %v7145_v50 = vpop.f32.mrf.mxu3 }
 0x5d2   :  { %v13842_v51 = vld [vmem:[#allocation2 + $0xd78] sm:$0xf0] }
 0x5d3   :  { %v18489_v58 = vld [vmem:[#allocation2 + $0x71c] sm:$0xf]  ;;  %v13845_v52 = vor.u32 %v18689_v55, %v13842_v51  ;;  %7385 = vmatpush.bf16.msrb.mxu2 %v13589_v57  ;;  %v7121_v51 = vpop.f32.mrf.mxu1 }
 0x5d4   :  { %v13042_v61 = vld [vmem:[#allocation2 + $0x738] sm:$0xf0] }
 0x5d5   :  { %v18553_v54 = vld [vmem:[#allocation2 + $0x91c] sm:$0xf]  ;;  %v13045_v2 = vor.u32 %v18489_v58, %v13042_v61  ;;  %7398 = vmatpush.bf16.msrb.mxu3 %v13845_v52 }
 0x5d6   :  { %v13298_v59 = vld [vmem:[#allocation2 + $0x938] sm:$0xf0] }
 0x5d7   :  { %v18617_v60 = vld [vmem:[#allocation2 + $0xb1c] sm:$0xf]  ;;  %v13301_v3 = vor.u32 %v18553_v54, %v13298_v59  ;;  %7360 = vmatpush.bf16.msrb.mxu0 %v13045_v2  ;;  %v20286_v54 = vadd.f32 %v7145_v50, %v7133_v48 }
 0x5d8   :  { %v13554_v63 = vld [vmem:[#allocation2 + $0xb38] sm:$0xf0] }
 0x5d9   :  { %v18681_v22 = vld [vmem:[#allocation2 + $0xd1c] sm:$0xf]  ;;  %v13557_v5 = vor.u32 %v18617_v60, %v13554_v63  ;;  %7373 = vmatpush.bf16.msrb.mxu1 %v13301_v3 }
 0x5da   :  { %v13810_v0 = vld [vmem:[#allocation2 + $0xd38] sm:$0xf0] }
 0x5db   :  { %v18481_v6 = vld [vmem:[#allocation2 + $0x6dc] sm:$0xf]  ;;  %v13813_v15 = vor.u32 %v18681_v22, %v13810_v0  ;;  %7386 = vmatpush.bf16.msrb.mxu2 %v13557_v5 }
 0x5dc   :  { %v13010_v7 = vld [vmem:[#allocation2 + $0x6f8] sm:$0xf0] }
 0x5dd   :  { %v18545_v10 = vld [vmem:[#allocation2 + $0x8dc] sm:$0xf]  ;;  %v13013_v9 = vor.u32 %v18481_v6, %v13010_v7  ;;  %7399 = vmatpush.bf16.msrb.mxu3 %v13813_v15 }
 0x5de   :  { %v13266_v13 = vld [vmem:[#allocation2 + $0x8f8] sm:$0xf0] }
 0x5df   :  { %v18609_v23 = vld [vmem:[#allocation2 + $0xadc] sm:$0xf]  ;;  %v13269_v34 = vor.u32 %v18545_v10, %v13266_v13  ;;  %7361 = vmatpush.bf16.msrb.mxu0 %v13013_v9  ;;  %v7147_v9 = vpop.f32.mrf.mxu3 }
 0x5e0   :  { %v13522_v24 = vld [vmem:[#allocation2 + $0xaf8] sm:$0xf0] }
 0x5e1   :  { %v18673_v26 = vld [vmem:[#allocation2 + $0xcdc] sm:$0xf]  ;;  %v13525_v36 = vor.u32 %v18609_v23, %v13522_v24  ;;  %7374 = vmatpush.bf16.msrb.mxu1 %v13269_v34  ;;  %v7134_v24 = vpop.f32.mrf.mxu2 }
 0x5e2   :  { %v13778_v31 = vld [vmem:[#allocation2 + $0xcf8] sm:$0xf0] }
 0x5e3   :  { %v18473_v37 = vld [vmem:[#allocation2 + $0x69c] sm:$0xf]  ;;  %v13781_v35 = vor.u32 %v18673_v26, %v13778_v31  ;;  %7387 = vmatpush.bf16.msrb.mxu2 %v13525_v36 }
 0x5e4   :  { %v12978_v39 = vld [vmem:[#allocation2 + $0x6b8] sm:$0xf0] }
 0x5e5   :  { %v18537_v40 = vld [vmem:[#allocation2 + $0x89c] sm:$0xf]  ;;  %v12981_v55 = vor.u32 %v18473_v37, %v12978_v39  ;;  %7400 = vmatpush.bf16.msrb.mxu3 %v13781_v35 }
 0x5e6   :  { %v13234_v43 = vld [vmem:[#allocation2 + $0x8b8] sm:$0xf0] }
 0x5e7   :  { %v18601_v46 = vld [vmem:[#allocation2 + $0xa9c] sm:$0xf]  ;;  %v13237_v53 = vor.u32 %v18537_v40, %v13234_v43  ;;  %7362 = vmatpush.bf16.msrb.mxu0 %v12981_v55 }
 0x5e8   :  { %v13490_v32 = vld [vmem:[#allocation2 + $0xab8] sm:$0xf0] }
 0x5e9   :  { %v18665_v47 = vld [vmem:[#allocation2 + $0xc9c] sm:$0xf]  ;;  %v13493_v56 = vor.u32 %v18601_v46, %v13490_v32  ;;  %7375 = vmatpush.bf16.msrb.mxu1 %v13237_v53 }
 0x5ea   :  { %v13746_v49 = vld [vmem:[#allocation2 + $0xcb8] sm:$0xf0] }
 0x5eb   :  { %v18465_v57 = vld [vmem:[#allocation2 + $0x65c] sm:$0xf]  ;;  %v13749_v52 = vor.u32 %v18665_v47, %v13746_v49  ;;  %7388 = vmatpush.bf16.msrb.mxu2 %v13493_v56 }
 0x5ec   :  { %v12946_v58 = vld [vmem:[#allocation2 + $0x678] sm:$0xf0] }
 0x5ed   :  { %v18529_v61 = vld [vmem:[#allocation2 + $0x85c] sm:$0xf]  ;;  %v12949_v0 = vor.u32 %v18465_v57, %v12946_v58  ;;  %7401 = vmatpush.bf16.msrb.mxu3 %v13749_v52 }
 0x5ee   :  { %v13202_v59 = vld [vmem:[#allocation2 + $0x878] sm:$0xf0] }
 0x5ef   :  { %v18593_v60 = vld [vmem:[#allocation2 + $0xa5c] sm:$0xf]  ;;  %v13205_v19 = vor.u32 %v18529_v61, %v13202_v59  ;;  %7363 = vmatpush.bf16.msrb.mxu0 %v12949_v0 }
 0x5f0   :  { %v13458_v63 = vld [vmem:[#allocation2 + $0xa78] sm:$0xf0] }
 0x5f1   :  { %v18657_v62 = vld [vmem:[#allocation2 + $0xc5c] sm:$0xf]  ;;  %v13461_v3 = vor.u32 %v18593_v60, %v13458_v63  ;;  %7376 = vmatpush.bf16.msrb.mxu1 %v13205_v19 }
 0x5f2   :  { %v13714_v22 = vld [vmem:[#allocation2 + $0xc78] sm:$0xf0] }
 0x5f3   :  { %v18457_v18 = vld [vmem:[#allocation2 + $0x61c] sm:$0xf]  ;;  %v13717_v10 = vor.u32 %v18657_v62, %v13714_v22  ;;  %7389 = vmatpush.bf16.msrb.mxu2 %v13461_v3 }
 0x5f4   :  { %v12914_v2 = vld [vmem:[#allocation2 + $0x638] sm:$0xf0] }
 0x5f5   :  { %v18521_v5 = vld [vmem:[#allocation2 + $0x81c] sm:$0xf]  ;;  %v12917_v34 = vor.u32 %v18457_v18, %v12914_v2  ;;  %7402 = vmatpush.bf16.msrb.mxu3 %v13717_v10 }
 0x5f6   :  { %v13170_v6 = vld [vmem:[#allocation2 + $0x838] sm:$0xf0] }
 0x5f7   :  { %v18585_v7 = vld [vmem:[#allocation2 + $0xa1c] sm:$0xf]  ;;  %v13173_v40 = vor.u32 %v18521_v5, %v13170_v6  ;;  %7364 = vmatpush.bf16.msrb.mxu0 %v12917_v34 }
 0x5f8   :  { %v13426_v15 = vld [vmem:[#allocation2 + $0xa38] sm:$0xf0] }
 0x5f9   :  { %v18649_v13 = vld [vmem:[#allocation2 + $0xc1c] sm:$0xf]  ;;  %v13429_v35 = vor.u32 %v18585_v7, %v13426_v15  ;;  %7377 = vmatpush.bf16.msrb.mxu1 %v13173_v40  ;;  %v7171_v40 = vpop.f32.mrf.mxu1 }
 0x5fa   :  { %v13682_v23 = vld [vmem:[#allocation2 + $0xc38] sm:$0xf0]  ;;  %7365 = vmatmul.bf16.vlgmr.msrb.gmra.mxu0 %v20051_v20 }
 0x5fb   :  { %v18769_v26 = vld [vmem:[#allocation2 + $0xfdc] sm:$0xf]  ;;  %v13685_v32 = vor.u32 %v18649_v13, %v13682_v23  ;;  %7390 = vmatpush.bf16.msrb.mxu2 %v13429_v35 }
 0x5fc   :  { %v14162_v31 = vld [vmem:[#allocation2 + $0xff8] sm:$0xf0]  ;;  %7378 = vmatmul.bf16.vlgmr.msrb.gmra.mxu1 %v20067_v41 }
 0x5fd   :  { %v18833_v17 = vld [vmem:[#allocation2 + $0x11dc] sm:$0xf]  ;;  %v14165_v11 = vor.u32 %v18769_v26, %v14162_v31  ;;  %7403 = vmatpush.bf16.msrb.mxu3 %v13685_v32 }
 0x5fe   :  { %v14418_v36 = vld [vmem:[#allocation2 + $0x11f8] sm:$0xf0]  ;;  %7391 = vmatmul.bf16.vlgmr.msrb.gmra.mxu2 %v20071_v44 }
 0x5ff   :  { %v18897_v37 = vld [vmem:[#allocation2 + $0x13dc] sm:$0xf]  ;;  %v14421_v47 = vor.u32 %v18833_v17, %v14418_v36  ;;  %7409 = vmatpush.bf16.msra.mxu0 %v14165_v11  ;;  %v7158_v17 = vpop.f32.mrf.mxu0 }
 0x600   :  { %v14674_v39 = vld [vmem:[#allocation2 + $0x13f8] sm:$0xf0]  ;;  %7404 = vmatmul.bf16.vlgmr.msrb.gmra.mxu3 %v20065_v38 }
 0x601   :  { %v18961_v43 = vld [vmem:[#allocation2 + $0x15dc] sm:$0xf]  ;;  %v14677_v49 = vor.u32 %v18897_v37, %v14674_v39  ;;  %7422 = vmatpush.bf16.msra.mxu1 %v14421_v47  ;;  %v7159_v39 = vadd.f32 %v7158_v17, %v20286_v54 }
 0x602   :  { %v14930_v46 = vld [vmem:[#allocation2 + $0x15f8] sm:$0xf0] }
 0x603   :  { %v18761_v48 = vld [vmem:[#allocation2 + $0xf9c] sm:$0xf]  ;;  %v14933_v55 = vor.u32 %v18961_v43, %v14930_v46  ;;  %7435 = vmatpush.bf16.msra.mxu2 %v14677_v49  ;;  %v7172_v49 = vadd.f32 %v7171_v40, %v7159_v39 }
 0x604   :  { %v14130_v50 = vld [vmem:[#allocation2 + $0xfb8] sm:$0xf0] }
 0x605   :  { %v18825_v4 = vld [vmem:[#allocation2 + $0x119c] sm:$0xf]  ;;  %v14133_v61 = vor.u32 %v18761_v48, %v14130_v50  ;;  %7448 = vmatpush.bf16.msra.mxu3 %v14933_v55 }
 0x606   :  { %v14386_v51 = vld [vmem:[#allocation2 + $0x11b8] sm:$0xf0] }
 0x607   :  { %v18889_v53 = vld [vmem:[#allocation2 + $0x139c] sm:$0xf]  ;;  %v14389_v52 = vor.u32 %v18825_v4, %v14386_v51  ;;  %7410 = vmatpush.bf16.msra.mxu0 %v14133_v61 }
 0x608   :  { %v14642_v56 = vld [vmem:[#allocation2 + $0x13b8] sm:$0xf0] }
 0x609   :  { %v18953_v57 = vld [vmem:[#allocation2 + $0x159c] sm:$0xf]  ;;  %v14645_v59 = vor.u32 %v18889_v53, %v14642_v56  ;;  %7423 = vmatpush.bf16.msra.mxu1 %v14389_v52  ;;  %v7184_v56 = vpop.f32.mrf.mxu2 }
 0x60a   :  { %v14898_v58 = vld [vmem:[#allocation2 + $0x15b8] sm:$0xf0]  ;;  %v7185_v52 = vadd.f32 %v7184_v56, %v7172_v49 }
 0x60b   :  { %v18753_v60 = vld [vmem:[#allocation2 + $0xf5c] sm:$0xf]  ;;  %v14901_v22 = vor.u32 %v18953_v57, %v14898_v58  ;;  %7436 = vmatpush.bf16.msra.mxu2 %v14645_v59  ;;  %v7197_v59 = vpop.f32.mrf.mxu3 }
 0x60c   :  { %v14098_v63 = vld [vmem:[#allocation2 + $0xf78] sm:$0xf0] }
 0x60d   :  { %v18817_v62 = vld [vmem:[#allocation2 + $0x115c] sm:$0xf]  ;;  %v14101_v5 = vor.u32 %v18753_v60, %v14098_v63  ;;  %7449 = vmatpush.bf16.msra.mxu3 %v14901_v22  ;;  %v20293_v22 = vadd.f32 %v7197_v59, %v7185_v52 }
 0x60e   :  { %v14354_v0 = vld [vmem:[#allocation2 + $0x1178] sm:$0xf0] }
 0x60f   :  { %v18881_v18 = vld [vmem:[#allocation2 + $0x135c] sm:$0xf]  ;;  %v14357_v6 = vor.u32 %v18817_v62, %v14354_v0  ;;  %7411 = vmatpush.bf16.msra.mxu0 %v14101_v5  ;;  %v7160_v0 = vpop.f32.mrf.mxu0 }
 0x610   :  { %v14610_v2 = vld [vmem:[#allocation2 + $0x1378] sm:$0xf0] }
 0x611   :  { %v18945_v19 = vld [vmem:[#allocation2 + $0x155c] sm:$0xf]  ;;  %v14613_v7 = vor.u32 %v18881_v18, %v14610_v2  ;;  %7424 = vmatpush.bf16.msra.mxu1 %v14357_v6  ;;  %v7173_v6 = vpop.f32.mrf.mxu1 }
 0x612   :  { %v14866_v3 = vld [vmem:[#allocation2 + $0x1578] sm:$0xf0] }
 0x613   :  { %v18745_v10 = vld [vmem:[#allocation2 + $0xf1c] sm:$0xf]  ;;  %v14869_v13 = vor.u32 %v18945_v19, %v14866_v3  ;;  %7437 = vmatpush.bf16.msra.mxu2 %v14613_v7 }
 0x614   :  { %v14066_v15 = vld [vmem:[#allocation2 + $0xf38] sm:$0xf0] }
 0x615   :  { %v18809_v44 = vld [vmem:[#allocation2 + $0x111c] sm:$0xf]  ;;  %v14069_v38 = vor.u32 %v18745_v10, %v14066_v15  ;;  %7450 = vmatpush.bf16.msra.mxu3 %v14869_v13 }
 0x616   :  { %v14322_v23 = vld [vmem:[#allocation2 + $0x1138] sm:$0xf0] }
 0x617   :  { %v18873_v24 = vld [vmem:[#allocation2 + $0x131c] sm:$0xf]  ;;  %v14325_v41 = vor.u32 %v18809_v44, %v14322_v23  ;;  %7412 = vmatpush.bf16.msra.mxu0 %v14069_v38 }
 0x618   :  { %v14578_v26 = vld [vmem:[#allocation2 + $0x1338] sm:$0xf0] }
 0x619   :  { %v18937_v31 = vld [vmem:[#allocation2 + $0x151c] sm:$0xf]  ;;  %v14581_v9 = vor.u32 %v18873_v24, %v14578_v26  ;;  %7425 = vmatpush.bf16.msra.mxu1 %v14325_v41 }
 0x61a   :  { %v14834_v20 = vld [vmem:[#allocation2 + $0x1538] sm:$0xf0] }
 0x61b   :  { %v18737_v34 = vld [vmem:[#allocation2 + $0xedc] sm:$0xf]  ;;  %v14837_v35 = vor.u32 %v18937_v31, %v14834_v20  ;;  %7438 = vmatpush.bf16.msra.mxu2 %v14581_v9 }
 0x61c   :  { %v14034_v36 = vld [vmem:[#allocation2 + $0xef8] sm:$0xf0] }
 0x61d   :  { %v18801_v37 = vld [vmem:[#allocation2 + $0x10dc] sm:$0xf]  ;;  %v14037_v48 = vor.u32 %v18737_v34, %v14034_v36  ;;  %7451 = vmatpush.bf16.msra.mxu3 %v14837_v35  ;;  %v7186_v34 = vpop.f32.mrf.mxu2  ;;  %v7199_v35 = vpop.f32.mrf.mxu3 }
 0x61e   :  { %v14290_v43 = vld [vmem:[#allocation2 + $0x10f8] sm:$0xf0] }
 0x61f   :  { %v18865_v46 = vld [vmem:[#allocation2 + $0x12dc] sm:$0xf]  ;;  %v14293_v50 = vor.u32 %v18801_v37, %v14290_v43  ;;  %7413 = vmatpush.bf16.msra.mxu0 %v14037_v48 }
 0x620   :  { %v14546_v32 = vld [vmem:[#allocation2 + $0x12f8] sm:$0xf0] }
 0x621   :  { %v18929_v11 = vld [vmem:[#allocation2 + $0x14dc] sm:$0xf]  ;;  %v14549_v4 = vor.u32 %v18865_v46, %v14546_v32  ;;  %7426 = vmatpush.bf16.msra.mxu1 %v14293_v50 }
 0x622   :  { %v14802_v47 = vld [vmem:[#allocation2 + $0x14f8] sm:$0xf0] }
 0x623   :  { %v18729_v55 = vld [vmem:[#allocation2 + $0xe9c] sm:$0xf]  ;;  %v14805_v54 = vor.u32 %v18929_v11, %v14802_v47  ;;  %7439 = vmatpush.bf16.msra.mxu2 %v14549_v4 }
 0x624   :  { %v14002_v51 = vld [vmem:[#allocation2 + $0xeb8] sm:$0xf0] }
 0x625   :  { %v18793_v53 = vld [vmem:[#allocation2 + $0x109c] sm:$0xf]  ;;  %v14005_v62 = vor.u32 %v18729_v55, %v14002_v51  ;;  %7452 = vmatpush.bf16.msra.mxu3 %v14805_v54 }
 0x626   :  { %v14258_v57 = vld [vmem:[#allocation2 + $0x10b8] sm:$0xf0] }
 0x627   :  { %v18857_v58 = vld [vmem:[#allocation2 + $0x129c] sm:$0xf]  ;;  %v14261_v18 = vor.u32 %v18793_v53, %v14258_v57  ;;  %7414 = vmatpush.bf16.msra.mxu0 %v14005_v62 }
 0x628   :  { %v14514_v61 = vld [vmem:[#allocation2 + $0x12b8] sm:$0xf0] }
 0x629   :  { %v18921_v60 = vld [vmem:[#allocation2 + $0x149c] sm:$0xf]  ;;  %v14517_v2 = vor.u32 %v18857_v58, %v14514_v61  ;;  %7427 = vmatpush.bf16.msra.mxu1 %v14261_v18 }
 0x62a   :  { %v14770_v63 = vld [vmem:[#allocation2 + $0x14b8] sm:$0xf0] }
 0x62b   :  { %v18721_v19 = vld [vmem:[#allocation2 + $0xe5c] sm:$0xf]  ;;  %v14773_v7 = vor.u32 %v18921_v60, %v14770_v63  ;;  %7440 = vmatpush.bf16.msra.mxu2 %v14517_v2 }
 0x62c   :  { %v13970_v3 = vld [vmem:[#allocation2 + $0xe78] sm:$0xf0] }
 0x62d   :  { %v18785_v5 = vld [vmem:[#allocation2 + $0x105c] sm:$0xf]  ;;  %v13973_v24 = vor.u32 %v18721_v19, %v13970_v3  ;;  %7453 = vmatpush.bf16.msra.mxu3 %v14773_v7 }
 0x62e   :  { %v14226_v10 = vld [vmem:[#allocation2 + $0x1078] sm:$0xf0] }
 0x62f   :  { %v18849_v15 = vld [vmem:[#allocation2 + $0x125c] sm:$0xf]  ;;  %v14229_v20 = vor.u32 %v18785_v5, %v14226_v10  ;;  %7415 = vmatpush.bf16.msra.mxu0 %v13973_v24 }
 0x630   :  { %v14482_v44 = vld [vmem:[#allocation2 + $0x1278] sm:$0xf0] }
 0x631   :  { %v18913_v13 = vld [vmem:[#allocation2 + $0x145c] sm:$0xf]  ;;  %v14485_v38 = vor.u32 %v18849_v15, %v14482_v44  ;;  %7428 = vmatpush.bf16.msra.mxu1 %v14229_v20 }
 0x632   :  { %v14738_v23 = vld [vmem:[#allocation2 + $0x1478] sm:$0xf0] }
 0x633   :  { %v18713_v26 = vld [vmem:[#allocation2 + $0xe1c] sm:$0xf]  ;;  %v14741_v36 = vor.u32 %v18913_v13, %v14738_v23  ;;  %7441 = vmatpush.bf16.msra.mxu2 %v14485_v38 }
 0x634   :  { %v13938_v31 = vld [vmem:[#allocation2 + $0xe38] sm:$0xf0] }
 0x635   :  { %v18777_v17 = vld [vmem:[#allocation2 + $0x101c] sm:$0xf]  ;;  %v13941_v11 = vor.u32 %v18713_v26, %v13938_v31  ;;  %7454 = vmatpush.bf16.msra.mxu3 %v14741_v36  ;;  %v20299_v36 = vpop.f32.mrf.mxu0 }
 0x636   :  { %v14194_v41 = vld [vmem:[#allocation2 + $0x1038] sm:$0xf0] }
 0x637   :  { %v18841_v9 = vld [vmem:[#allocation2 + $0x121c] sm:$0xf]  ;;  %v14197_v50 = vor.u32 %v18777_v17, %v14194_v41  ;;  %7416 = vmatpush.bf16.msra.mxu0 %v13941_v11 }
 0x638   :  { %v14450_v37 = vld [vmem:[#allocation2 + $0x1238] sm:$0xf0] }
 0x639   :  { %v18905_v39 = vld [vmem:[#allocation2 + $0x141c] sm:$0xf]  ;;  %v14453_v4 = vor.u32 %v18841_v9, %v14450_v37  ;;  %7429 = vmatpush.bf16.msra.mxu1 %v14197_v50 }
 0x63a   :  { %v14706_v40 = vld [vmem:[#allocation2 + $0x1438] sm:$0xf0]  ;;  %7417 = vmatmul.bf16.vlgmr.msra.gmra.mxu0 %v20069_v42 }
 0x63b   :  { %v19025_v43 = vld [vmem:[#allocation2 + $0x17dc] sm:$0xf]  ;;  %v14709_v53 = vor.u32 %v18905_v39, %v14706_v40  ;;  %7442 = vmatpush.bf16.msra.mxu2 %v14453_v4  ;;  %v20301_v39 = vpop.f32.mrf.mxu1 }
 0x63c   :  { %v15186_v46 = vld [vmem:[#allocation2 + $0x17f8] sm:$0xf0]  ;;  %7430 = vmatmul.bf16.vlgmr.msra.gmra.mxu1 %v20083_v25 }
 0x63d   :  { %v19089_v32 = vld [vmem:[#allocation2 + $0x19dc] sm:$0xf]  ;;  %v15189_v56 = vor.u32 %v19025_v43, %v15186_v46  ;;  %7455 = vmatpush.bf16.msra.mxu3 %v14709_v53 }
 0x63e   :  { %v15442_v47 = vld [vmem:[#allocation2 + $0x19f8] sm:$0xf0]  ;;  %7443 = vmatmul.bf16.vlgmr.msra.gmra.mxu2 %v20087_v30 }
 0x63f   :  { %v19153_v49 = vld [vmem:[#allocation2 + $0x1bdc] sm:$0xf]  ;;  %v15445_v54 = vor.u32 %v19089_v32, %v15442_v47  ;;  %7461 = vmatpush.bf16.msrb.mxu0 %v15189_v56 }
 0x640   :  { %v15698_v48 = vld [vmem:[#allocation2 + $0x1bf8] sm:$0xf0]  ;;  %7456 = vmatmul.bf16.vlgmr.msra.gmra.mxu3 %v20085_v29 }
 0x641   :  { %v19217_v55 = vld [vmem:[#allocation2 + $0x1ddc] sm:$0xf]  ;;  %v15701_v57 = vor.u32 %v19153_v49, %v15698_v48  ;;  %7474 = vmatpush.bf16.msrb.mxu1 %v15445_v54 }
 0x642   :  { %v15954_v51 = vld [vmem:[#allocation2 + $0x1df8] sm:$0xf0] }
 0x643   :  { %v19017_v58 = vld [vmem:[#allocation2 + $0x179c] sm:$0xf]  ;;  %v15957_v59 = vor.u32 %v19217_v55, %v15954_v51  ;;  %7487 = vmatpush.bf16.msrb.mxu2 %v15701_v57 }
 0x644   :  { %v15154_v61 = vld [vmem:[#allocation2 + $0x17b8] sm:$0xf0] }
 0x645   :  { %v19081_v52 = vld [vmem:[#allocation2 + $0x199c] sm:$0xf]  ;;  %v15157_v2 = vor.u32 %v19017_v58, %v15154_v61  ;;  %7500 = vmatpush.bf16.msrb.mxu3 %v15957_v59  ;;  %v20303_v61 = vpop.f32.mrf.mxu2 }
 0x646   :  { %v15410_v60 = vld [vmem:[#allocation2 + $0x19b8] sm:$0xf0] }
 0x647   :  { %v19145_v63 = vld [vmem:[#allocation2 + $0x1b9c] sm:$0xf]  ;;  %v15413_v19 = vor.u32 %v19081_v52, %v15410_v60  ;;  %7462 = vmatpush.bf16.msrb.mxu0 %v15157_v2 }
 0x648   :  { %v15666_v62 = vld [vmem:[#allocation2 + $0x1bb8] sm:$0xf0] }
 0x649   :  { %v19209_v0 = vld [vmem:[#allocation2 + $0x1d9c] sm:$0xf]  ;;  %v15669_v3 = vor.u32 %v19145_v63, %v15666_v62  ;;  %7475 = vmatpush.bf16.msrb.mxu1 %v15413_v19  ;;  %v20305_v63 = vpop.f32.mrf.mxu3  ;;  %v7225_v19 = vpop.f32.mrf.mxu1 }
 0x64a   :  { %v15922_v18 = vld [vmem:[#allocation2 + $0x1db8] sm:$0xf0]  ;;  %v19466_v19 = vld [vmem:[#allocation6 + $0x79c] sm:$0xf0] }
 0x64b   :  { %v19009_v5 = vld [vmem:[#allocation2 + $0x175c] sm:$0xf]  ;;  %v15925_v10 = vor.u32 %v19209_v0, %v15922_v18  ;;  %7488 = vmatpush.bf16.msrb.mxu2 %v15669_v3  ;;  %v7212_v18 = vpop.f32.mrf.mxu0 }
 0x64c   :  { %v15122_v6 = vld [vmem:[#allocation2 + $0x1778] sm:$0xf0]  ;;  %v19402_v18 = vld [vmem:[#allocation6 + $0x59c] sm:$0xf0] }
 0x64d   :  { %v19073_v7 = vld [vmem:[#allocation2 + $0x195c] sm:$0xf]  ;;  %v15125_v26 = vor.u32 %v19009_v5, %v15122_v6  ;;  %7501 = vmatpush.bf16.msrb.mxu3 %v15925_v10 }
 0x64e   :  { %v15378_v15 = vld [vmem:[#allocation2 + $0x1978] sm:$0xf0] }
 0x64f   :  { %v19137_v44 = vld [vmem:[#allocation2 + $0x1b5c] sm:$0xf]  ;;  %v15381_v31 = vor.u32 %v19073_v7, %v15378_v15  ;;  %7463 = vmatpush.bf16.msrb.mxu0 %v15125_v26 }
 0x650   :  { %v15634_v13 = vld [vmem:[#allocation2 + $0x1b78] sm:$0xf0] }
 0x651   :  { %v19201_v23 = vld [vmem:[#allocation2 + $0x1d5c] sm:$0xf]  ;;  %v15637_v20 = vor.u32 %v19137_v44, %v15634_v13  ;;  %7476 = vmatpush.bf16.msrb.mxu1 %v15381_v31 }
 0x652   :  { %v15890_v24 = vld [vmem:[#allocation2 + $0x1d78] sm:$0xf0] }
 0x653   :  { %v19001_v38 = vld [vmem:[#allocation2 + $0x171c] sm:$0xf]  ;;  %v15893_v41 = vor.u32 %v19201_v23, %v15890_v24  ;;  %7489 = vmatpush.bf16.msrb.mxu2 %v15637_v20 }
 0x654   :  { %v15090_v42 = vld [vmem:[#allocation2 + $0x1738] sm:$0xf0] }
 0x655   :  { %v19065_v17 = vld [vmem:[#allocation2 + $0x191c] sm:$0xf]  ;;  %v15093_v29 = vor.u32 %v19001_v38, %v15090_v42  ;;  %7502 = vmatpush.bf16.msrb.mxu3 %v15893_v41 }
 0x656   :  { %v15346_v9 = vld [vmem:[#allocation2 + $0x1938] sm:$0xf0] }
 0x657   :  { %v19129_v34 = vld [vmem:[#allocation2 + $0x1b1c] sm:$0xf]  ;;  %v15349_v40 = vor.u32 %v19065_v17, %v15346_v9  ;;  %7464 = vmatpush.bf16.msrb.mxu0 %v15093_v29 }
 0x658   :  { %v15602_v30 = vld [vmem:[#allocation2 + $0x1b38] sm:$0xf0] }
 0x659   :  { %v19193_v25 = vld [vmem:[#allocation2 + $0x1d1c] sm:$0xf]  ;;  %v15605_v35 = vor.u32 %v19129_v34, %v15602_v30  ;;  %7477 = vmatpush.bf16.msrb.mxu1 %v15349_v40  ;;  %v7238_v40 = vpop.f32.mrf.mxu2 }
 0x65a   :  { %v15858_v37 = vld [vmem:[#allocation2 + $0x1d38] sm:$0xf0] }
 0x65b   :  { %v18993_v43 = vld [vmem:[#allocation2 + $0x16dc] sm:$0xf]  ;;  %v15861_v11 = vor.u32 %v19193_v25, %v15858_v37  ;;  %7490 = vmatpush.bf16.msrb.mxu2 %v15605_v35  ;;  %v16184_v35 = vld [vmem:[#allocation6 + $0x1c0] sm:$0xf] }
 0x65c   :  { %v15058_v46 = vld [vmem:[#allocation2 + $0x16f8] sm:$0xf0] }
 0x65d   :  { %v19057_v32 = vld [vmem:[#allocation2 + $0x18dc] sm:$0xf]  ;;  %v15061_v55 = vor.u32 %v18993_v43, %v15058_v46  ;;  %7503 = vmatpush.bf16.msrb.mxu3 %v15861_v11  ;;  %v19282_v43 = vld [vmem:[#allocation6 + $0x1dc] sm:$0xf0] }
 0x65e   :  { %v15314_v47 = vld [vmem:[#allocation2 + $0x18f8] sm:$0xf0]  ;;  %v16440_v46 = vld [vmem:[#allocation6 + $0x3c0] sm:$0xf] }
 0x65f   :  { %v19121_v49 = vld [vmem:[#allocation2 + $0x1adc] sm:$0xf]  ;;  %v15317_v51 = vor.u32 %v19057_v32, %v15314_v47  ;;  %7465 = vmatpush.bf16.msrb.mxu0 %v15061_v55  ;;  %v7251_v32 = vpop.f32.mrf.mxu3  ;;  %v19346_v47 = vld [vmem:[#allocation6 + $0x3dc] sm:$0xf0] }
 0x660   :  { %v15570_v48 = vld [vmem:[#allocation2 + $0x1af8] sm:$0xf0]  ;;  %v16952_v55 = vld [vmem:[#allocation6 + $0x7c0] sm:$0xf] }
 0x661   :  { %v19185_v50 = vld [vmem:[#allocation2 + $0x1cdc] sm:$0xf]  ;;  %v15573_v53 = vor.u32 %v19121_v49, %v15570_v48  ;;  %7478 = vmatpush.bf16.msrb.mxu1 %v15317_v51  ;;  %v16696_v49 = vld [vmem:[#allocation6 + $0x5c0] sm:$0xf] }
 0x662   :  { %v15826_v4 = vld [vmem:[#allocation2 + $0x1cf8] sm:$0xf0]  ;;  %v19410_v48 = vld [vmem:[#allocation6 + $0x5dc] sm:$0xf0] }
 0x663   :  { %v18985_v56 = vld [vmem:[#allocation2 + $0x169c] sm:$0xf]  ;;  %v15829_v58 = vor.u32 %v19185_v50, %v15826_v4  ;;  %7491 = vmatpush.bf16.msrb.mxu2 %v15573_v53  ;;  %v19474_v51 = vld [vmem:[#allocation6 + $0x7dc] sm:$0xf0] }
 0x664   :  { %v15026_v54 = vld [vmem:[#allocation2 + $0x16b8] sm:$0xf0]  ;;  %v16312_v32 = vld [vmem:[#allocation6 + $0x2c0] sm:$0xf] }
 0x665   :  { %v19049_v57 = vld [vmem:[#allocation2 + $0x189c] sm:$0xf]  ;;  %v15029_v2 = vor.u32 %v18985_v56, %v15026_v54  ;;  %7504 = vmatpush.bf16.msrb.mxu3 %v15829_v58  ;;  %v16185_v56 = vor.u32 %v19282_v43, %v16184_v35  ;;  %v16441_v54 = vor.u32 %v19346_v47, %v16440_v46  ;;  %v16152_v58 = vld [vmem:[#allocation6 + $0x180] sm:$0xf] }
 0x666   :  { %v15282_v52 = vld [vmem:[#allocation2 + $0x18b8] sm:$0xf0]  ;;  %v16056_v43 = vld [vmem:[#allocation6 + $0xc0] sm:$0xf] }
 0x667   :  { %v19113_v59 = vld [vmem:[#allocation2 + $0x1a9c] sm:$0xf]  ;;  %v15285_v3 = vor.u32 %v19049_v57, %v15282_v52  ;;  %7466 = vmatpush.bf16.msrb.mxu0 %v15029_v2  ;;  %v16697_v57 = vor.u32 %v19410_v48, %v16696_v49  ;;  %v19274_v52 = vld [vmem:[#allocation6 + $0x19c] sm:$0xf0] }
 0x668   :  { %v15538_v60 = vld [vmem:[#allocation2 + $0x1ab8] sm:$0xf0]  ;;  %v16920_v2 = vld [vmem:[#allocation6 + $0x780] sm:$0xf] }
 0x669   :  { %v19177_v62 = vld [vmem:[#allocation2 + $0x1c9c] sm:$0xf]  ;;  %v15541_v5 = vor.u32 %v19113_v59, %v15538_v60  ;;  %7479 = vmatpush.bf16.msrb.mxu1 %v15285_v3  ;;  %v16408_v59 = vld [vmem:[#allocation6 + $0x380] sm:$0xf]  ;;  %v16953_v60 = vor.u32 %v19474_v51, %v16952_v55  ;;  %v16153_v3 = vor.u32 %v19274_v52, %v16152_v58  ;;  %v20315_v52 = vpop.f32.mrf.mxu2 }
 0x66a   :  { %v15794_v0 = vld [vmem:[#allocation2 + $0x1cb8] sm:$0xf0]  ;;  %v19250_v46 = vld [vmem:[#allocation6 + $0xdc] sm:$0xf0] }
 0x66b   :  { %v18977_v6 = vld [vmem:[#allocation2 + $0x165c] sm:$0xf]  ;;  %v15797_v15 = vor.u32 %v19177_v62, %v15794_v0  ;;  %7492 = vmatpush.bf16.msrb.mxu2 %v15541_v5  ;;  %v19338_v62 = vld [vmem:[#allocation6 + $0x39c] sm:$0xf0]  ;;  %v16057_v55 = vor.u32 %v19250_v46, %v16056_v43 }
 0x66c   :  { %v14994_v7 = vld [vmem:[#allocation2 + $0x1678] sm:$0xf0]  ;;  %v16664_v0 = vld [vmem:[#allocation6 + $0x580] sm:$0xf]  ;;  %v16409_v5 = vor.u32 %v19338_v62, %v16408_v59 }
 0x66d   :  { %v19041_v10 = vld [vmem:[#allocation2 + $0x185c] sm:$0xf]  ;;  %v14997_v31 = vor.u32 %v18977_v6, %v14994_v7  ;;  %7505 = vmatpush.bf16.msrb.mxu3 %v15797_v15  ;;  %v16665_v6 = vor.u32 %v19402_v18, %v16664_v0  ;;  %v16120_v7 = vld [vmem:[#allocation6 + $0x140] sm:$0xf]  ;;  %v20317_v0 = vpop.f32.mrf.mxu3 }
 0x66e   :  { %v15250_v44 = vld [vmem:[#allocation2 + $0x1878] sm:$0xf0]  ;;  %v16376_v15 = vld [vmem:[#allocation6 + $0x340] sm:$0xf] }
 0x66f   :  { %v19105_v13 = vld [vmem:[#allocation2 + $0x1a5c] sm:$0xf]  ;;  %v15253_v42 = vor.u32 %v19041_v10, %v15250_v44  ;;  %7467 = vmatpush.bf16.msrb.mxu0 %v14997_v31  ;;  %v19266_v10 = vld [vmem:[#allocation6 + $0x15c] sm:$0xf0]  ;;  %v16921_v44 = vor.u32 %v19466_v19, %v16920_v2 }
 0x670   :  { %v15506_v23 = vld [vmem:[#allocation2 + $0x1a78] sm:$0xf0]  ;;  %v19458_v31 = vld [vmem:[#allocation6 + $0x75c] sm:$0xf0] }
 0x671   :  { %v19169_v24 = vld [vmem:[#allocation2 + $0x1c5c] sm:$0xf]  ;;  %v15509_v17 = vor.u32 %v19105_v13, %v15506_v23  ;;  %7480 = vmatpush.bf16.msrb.mxu1 %v15253_v42  ;;  %v19330_v13 = vld [vmem:[#allocation6 + $0x35c] sm:$0xf0] }
 0x672   :  { %v15762_v26 = vld [vmem:[#allocation2 + $0x1c78] sm:$0xf0]  ;;  %v16632_v23 = vld [vmem:[#allocation6 + $0x540] sm:$0xf] }
 0x673   :  { %v18969_v20 = vld [vmem:[#allocation2 + $0x161c] sm:$0xf]  ;;  %v15765_v30 = vor.u32 %v19169_v24, %v15762_v26  ;;  %7493 = vmatpush.bf16.msrb.mxu2 %v15509_v17  ;;  %v19394_v24 = vld [vmem:[#allocation6 + $0x55c] sm:$0xf0] }
 0x674   :  { %v14962_v38 = vld [vmem:[#allocation2 + $0x1638] sm:$0xf0]  ;;  %v16888_v26 = vld [vmem:[#allocation6 + $0x740] sm:$0xf]  ;;  %v16633_v42 = vor.u32 %v19394_v24, %v16632_v23 }
 0x675   :  { %v19033_v41 = vld [vmem:[#allocation2 + $0x181c] sm:$0xf]  ;;  %v14965_v11 = vor.u32 %v18969_v20, %v14962_v38  ;;  %7506 = vmatpush.bf16.msrb.mxu3 %v15765_v30  ;;  %v16121_v20 = vor.u32 %v19266_v10, %v16120_v7  ;;  %v16377_v38 = vor.u32 %v19330_v13, %v16376_v15  ;;  %v16088_v17 = vld [vmem:[#allocation6 + $0x100] sm:$0xf] }
 0x676   :  { %v15218_v9 = vld [vmem:[#allocation2 + $0x1838] sm:$0xf0]  ;;  %v16600_v30 = vld [vmem:[#allocation6 + $0x500] sm:$0xf] }
 0x677   :  { %v19097_v34 = vld [vmem:[#allocation2 + $0x1a1c] sm:$0xf]  ;;  %v15221_v50 = vor.u32 %v19033_v41, %v15218_v9  ;;  %7468 = vmatpush.bf16.msrb.mxu0 %v14965_v11  ;;  %v16344_v41 = vld [vmem:[#allocation6 + $0x300] sm:$0xf]  ;;  %v16889_v9 = vor.u32 %v19458_v31, %v16888_v26 }
 0x678   :  { %v15474_v25 = vld [vmem:[#allocation2 + $0x1a38] sm:$0xf0]  ;;  %v19314_v47 = vld [vmem:[#allocation6 + $0x2dc] sm:$0xf0] }
 0x679   :  { %v19161_v37 = vld [vmem:[#allocation2 + $0x1c1c] sm:$0xf]  ;;  %v15477_v4 = vor.u32 %v19097_v34, %v15474_v25  ;;  %7481 = vmatpush.bf16.msrb.mxu1 %v15221_v50  ;;  %v19322_v34 = vld [vmem:[#allocation6 + $0x31c] sm:$0xf0]  ;;  %v20311_v25 = vpop.f32.mrf.mxu0  ;;  %v16313_v51 = vor.u32 %v19314_v47, %v16312_v32  ;;  %v7303_v32 = vpop.f32.mrf.mxu3 }
 0x67a   :  { %v15730_v29 = vld [vmem:[#allocation2 + $0x1c38] sm:$0xf0]  ;;  %7469 = vmatmul.bf16.vlgmr.msrb.gmra.mxu0 %v20089_v33  ;;  %v19258_v33 = vld [vmem:[#allocation6 + $0x11c] sm:$0xf0]  ;;  %v16345_v40 = vor.u32 %v19322_v34, %v16344_v41 }
 0x67b   :  { %v15733_v53 = vor.u32 %v19161_v37, %v15730_v29  ;;  %7494 = vmatpush.bf16.msrb.mxu2 %v15477_v4  ;;  %10619 = vmatpush.bf16.msra.mxu0 %v16185_v56  ;;  %v19450_v37 = vld [vmem:[#allocation6 + $0x71c] sm:$0xf0]  ;;  %v20313_v29 = vpop.f32.mrf.mxu1 }
 0x67c   :  { %7482 = vmatmul.bf16.vlgmr.msrb.gmra.mxu1 %v20101_v21  ;;  %v19386_v21 = vld [vmem:[#allocation6 + $0x51c] sm:$0xf0] }
 0x67d   :  { %7507 = vmatpush.bf16.msrb.mxu3 %v15733_v53  ;;  %10632 = vmatpush.bf16.msra.mxu1 %v16441_v54  ;;  %v16601_v35 = vor.u32 %v19386_v21, %v16600_v30  ;;  %v16568_v49 = vld [vmem:[#allocation6 + $0x4c0] sm:$0xf] }
 0x67e   :  { %7495 = vmatmul.bf16.vlgmr.msrb.gmra.mxu2 %v20105_v28  ;;  %v16856_v28 = vld [vmem:[#allocation6 + $0x700] sm:$0xf] }
 0x67f   :  { %10645 = vmatpush.bf16.msra.mxu2 %v16697_v57  ;;  %10620 = vmatpush.bf16.msra.mxu0 %v16153_v3  ;;  %v16857_v11 = vor.u32 %v19450_v37, %v16856_v28  ;;  %v19378_v48 = vld [vmem:[#allocation6 + $0x4dc] sm:$0xf0] }
 0x680   :  { %7508 = vmatmul.bf16.vlgmr.msrb.gmra.mxu3 %v20103_v27  ;;  %v16089_v27 = vor.u32 %v19258_v33, %v16088_v17  ;;  %v16824_v50 = vld [vmem:[#allocation6 + $0x6c0] sm:$0xf]  ;;  %v16569_v53 = vor.u32 %v19378_v48, %v16568_v49 }
 0x681   :  { %10658 = vmatpush.bf16.msra.mxu3 %v16953_v60  ;;  %10633 = vmatpush.bf16.msra.mxu1 %v16409_v5  ;;  %v19442_v4 = vld [vmem:[#allocation6 + $0x6dc] sm:$0xf0]  ;;  %v7264_v19 = vpop.f32.mrf.mxu0 }
 0x682   :  { %v16024_v56 = vld [vmem:[#allocation6 + $0x80] sm:$0xf]  ;;  %v16825_v58 = vor.u32 %v19442_v4, %v16824_v50  ;;  %v7513_v50 = vmax.f32 %v20136_v8, 0.0  ;;  %v7514_v4 = vmax.f32 %v20169_v1, 0.0  ;;  %v7211_v8 = vadd.f32 %v20299_v36, %v20293_v22 }
 0x683   :  { %10646 = vmatpush.bf16.msra.mxu2 %v16665_v6  ;;  %10621 = vmatpush.bf16.msra.mxu0 %v16121_v20  ;;  %v19242_v54 = vld [vmem:[#allocation6 + $0x9c] sm:$0xf0]  ;;  %v7277_v5 = vpop.f32.mrf.mxu1 }
 0x684   :  { %v16280_v57 = vld [vmem:[#allocation6 + $0x280] sm:$0xf]  ;;  %v16025_v3 = vor.u32 %v19242_v54, %v16024_v56  ;;  %v7516_v56 = vmax.f32 %v20223_v12, 0.0 }
 0x685   :  { %10659 = vmatpush.bf16.msra.mxu3 %v16921_v44  ;;  %10634 = vmatpush.bf16.msra.mxu1 %v16377_v38  ;;  %v19306_v59 = vld [vmem:[#allocation6 + $0x29c] sm:$0xf0] }
 0x686   :  { %v16536_v60 = vld [vmem:[#allocation6 + $0x480] sm:$0xf]  ;;  %v16281_v6 = vor.u32 %v19306_v59, %v16280_v57 }
 0x687   :  { %10647 = vmatpush.bf16.msra.mxu2 %v16633_v42  ;;  %10622 = vmatpush.bf16.msra.mxu0 %v16089_v27  ;;  %v19370_v62 = vld [vmem:[#allocation6 + $0x49c] sm:$0xf0] }
 0x688   :  { %v16792_v18 = vld [vmem:[#allocation6 + $0x680] sm:$0xf]  ;;  %v16537_v7 = vor.u32 %v19370_v62, %v16536_v60 }
 0x689   :  { %10660 = vmatpush.bf16.msra.mxu3 %v16889_v9  ;;  %10635 = vmatpush.bf16.msra.mxu1 %v16345_v40  ;;  %v19434_v2 = vld [vmem:[#allocation6 + $0x69c] sm:$0xf0]  ;;  %v7290_v40 = vpop.f32.mrf.mxu2 }
 0x68a   :  { %v15992_v10 = vld [vmem:[#allocation6 + $0x40] sm:$0xf]  ;;  %v16793_v13 = vor.u32 %v19434_v2, %v16792_v18 }
 0x68b   :  { %10648 = vmatpush.bf16.msra.mxu2 %v16601_v35  ;;  %10623 = vmatpush.bf16.msra.mxu0 %v16057_v55  ;;  %v19234_v15 = vld [vmem:[#allocation6 + $0x5c] sm:$0xf0] }
 0x68c   :  { %v16248_v44 = vld [vmem:[#allocation6 + $0x240] sm:$0xf]  ;;  %v15993_v38 = vor.u32 %v19234_v15, %v15992_v10 }
 0x68d   :  { %10661 = vmatpush.bf16.msra.mxu3 %v16857_v11  ;;  %10636 = vmatpush.bf16.msra.mxu1 %v16313_v51  ;;  %v19298_v23 = vld [vmem:[#allocation6 + $0x25c] sm:$0xf0] }
 0x68e   :  { %v16504_v24 = vld [vmem:[#allocation6 + $0x440] sm:$0xf]  ;;  %v16249_v33 = vor.u32 %v19298_v23, %v16248_v44  ;;  %v7224_v44 = vadd.f32 %v20301_v39, %v7211_v8 }
 0x68f   :  { %10649 = vmatpush.bf16.msra.mxu2 %v16569_v53  ;;  %v19362_v26 = vld [vmem:[#allocation6 + $0x45c] sm:$0xf0]  ;;  %10624 = vmatpush.bf16.msra.mxu0 %v16025_v3  ;;  %v7515_v53 = vmax.f32 %v20200_v14, 0.0  ;;  %v20325_v3 = vpack.c.bf16 %v7513_v50, %v7513_v50  ;;  %v20327_v14 = vpack.c.bf16 %v7514_v4, %v7514_v4 }
 0x690   :  { %v16760_v31 = vld [vmem:[#allocation6 + $0x640] sm:$0xf]  ;;  %v16505_v41 = vor.u32 %v19362_v26, %v16504_v24  ;;  %v7237_v26 = vadd.f32 %v20303_v61, %v7224_v44 }
 0x691   :  { %10662 = vmatpush.bf16.msra.mxu3 %v16825_v58  ;;  %v19426_v20 = vld [vmem:[#allocation6 + $0x65c] sm:$0xf0]  ;;  %10637 = vmatpush.bf16.msra.mxu1 %v16281_v6  ;;  %v20329_v12 = vpack.c.bf16 %v7515_v53, %v7515_v53  ;;  %v20331_v6 = vpack.c.bf16 %v7516_v56, %v7516_v56 }
 0x692   :  { %v15960_v42 = vld [vmem:[#allocation6] sm:$0xf]  ;;  %v16761_v21 = vor.u32 %v19426_v20, %v16760_v31 }
 0x693   :  { %v19226_v17 = vld [vmem:[#allocation6 + $0x1c] sm:$0xf0]  ;;  %10650 = vmatpush.bf16.msra.mxu2 %v16537_v7  ;;  %10625 = vmatpush.bf16.msra.mxu0 %v15993_v38 }
 0x694   :  { %v16216_v9 = vld [vmem:[#allocation6 + $0x200] sm:$0xf]  ;;  %v15961_v11 = vor.u32 %v19226_v17, %v15960_v42 }
 0x695   :  { %v19290_v34 = vld [vmem:[#allocation6 + $0x21c] sm:$0xf0]  ;;  %10663 = vmatpush.bf16.msra.mxu3 %v16793_v13  ;;  %10638 = vmatpush.bf16.msra.mxu1 %v16249_v33 }
 0x696   :  { %v16472_v30 = vld [vmem:[#allocation6 + $0x400] sm:$0xf]  ;;  %v16217_v55 = vor.u32 %v19290_v34, %v16216_v9  ;;  %v20339_v34 = vpop.f32.mrf.mxu0 }
 0x697   :  { %v19354_v28 = vld [vmem:[#allocation6 + $0x41c] sm:$0xf0]  ;;  %10651 = vmatpush.bf16.msra.mxu2 %v16505_v41  ;;  %10626 = vmatpush.bf16.msra.mxu0 %v15961_v11 }
 0x698   :  { %v16728_v37 = vld [vmem:[#allocation6 + $0x600] sm:$0xf]  ;;  %v16473_v51 = vor.u32 %v19354_v28, %v16472_v30  ;;  %v19817_v30 = vld [vmem:[#allocation4] sm:$0xff]  ;;  %v7250_v28 = vadd.f32 %v20305_v63, %v7237_v26 }
 0x699   :  { %v19418_v27 = vld [vmem:[#allocation6 + $0x61c] sm:$0xf0]  ;;  %10664 = vmatpush.bf16.msra.mxu3 %v16761_v21  ;;  %10639 = vmatpush.bf16.msra.mxu1 %v16217_v55  ;;  %v1091_v21 = vperm.slane %v19817_v30, 7 }
 0x69a   :  { %v17208_v35 = vld [vmem:[#allocation6 + $0x9c0] sm:$0xf]  ;;  %v16729_v54 = vor.u32 %v19418_v27, %v16728_v37  ;;  %10627 = vmatmul.bf16.vlgmr.msra.gmra.mxu0 %v20325_v3  ;;  %v7263_v32 = vadd.f32 %v20311_v25, %v7250_v28  ;;  %v7353_v25 = vpop.f32.mrf.mxu3  ;;  %v16442_v28 = vld [vmem:[#allocation6 + $0x3e0] sm:$0xf0] }
 0x69b   :  { %v19538_v43 = vld [vmem:[#allocation6 + $0x9dc] sm:$0xf0]  ;;  %10652 = vmatpush.bf16.msra.mxu2 %v16473_v51 }
 0x69c   :  { %v17464_v46 = vld [vmem:[#allocation6 + $0xbc0] sm:$0xf]  ;;  %v17209_v57 = vor.u32 %v19538_v43, %v17208_v35  ;;  %10640 = vmatmul.bf16.vlgmr.msra.gmra.mxu1 %v20327_v14  ;;  %v7276_v56 = vadd.f32 %v20313_v29, %v7263_v32  ;;  %v19270_v32 = vld [vmem:[#allocation6 + $0x184] sm:$0xf] }
 0x69d   :  { %v19602_v47 = vld [vmem:[#allocation6 + $0xbdc] sm:$0xf0]  ;;  %10665 = vmatpush.bf16.msra.mxu3 %v16729_v54 }
 0x69e   :  { %v17720_v49 = vld [vmem:[#allocation6 + $0xdc0] sm:$0xf]  ;;  %v17465_v58 = vor.u32 %v19602_v47, %v17464_v46  ;;  %10671 = vmatpush.bf16.msrb.mxu0 %v17209_v57  ;;  %10653 = vmatmul.bf16.vlgmr.msra.gmra.mxu2 %v20329_v12  ;;  %v7327_v46 = vpop.f32.mrf.mxu1 }
 0x69f   :  { %v19666_v48 = vld [vmem:[#allocation6 + $0xddc] sm:$0xf0] }
 0x6a0   :  { %v17721_v59 = vor.u32 %v19666_v48, %v17720_v49  ;;  %v17176_v60 = vld [vmem:[#allocation6 + $0x980] sm:$0xf]  ;;  %10684 = vmatpush.bf16.msrb.mxu1 %v17465_v58  ;;  %10666 = vmatmul.bf16.vlgmr.msra.gmra.mxu3 %v20331_v6  ;;  %v7328_v48 = vadd.f32 %v7327_v46, %v1091_v21  ;;  %v19342_v21 = vld [vmem:[#allocation6 + $0x3c4] sm:$0xf] }
 0x6a1   :  { %v19530_v62 = vld [vmem:[#allocation6 + $0x99c] sm:$0xf0] }
 0x6a2   :  { %v17432_v18 = vld [vmem:[#allocation6 + $0xb80] sm:$0xf]  ;;  %v17177_v5 = vor.u32 %v19530_v62, %v17176_v60  ;;  %10697 = vmatpush.bf16.msrb.mxu2 %v17721_v59  ;;  %v7340_v59 = vpop.f32.mrf.mxu2  ;;  %v7316_v62 = vpop.f32.mrf.mxu0 }
 0x6a3   :  { %v19594_v1 = vld [vmem:[#allocation6 + $0xb9c] sm:$0xf0]  ;;  %v7341_v60 = vadd.f32 %v7340_v59, %v7328_v48  ;;  %v16154_v48 = vld [vmem:[#allocation6 + $0x1a0] sm:$0xf0] }
 0x6a4   :  { %v17688_v2 = vld [vmem:[#allocation6 + $0xd80] sm:$0xf]  ;;  %v17433_v22 = vor.u32 %v19594_v1, %v17432_v18  ;;  %10672 = vmatpush.bf16.msrb.mxu0 %v17177_v5  ;;  %v7289_v18 = vadd.f32 %v20315_v52, %v7276_v56  ;;  %v19326_v62 = vld [vmem:[#allocation6 + $0x344] sm:$0xf] }
 0x6a5   :  { %v19658_v19 = vld [vmem:[#allocation6 + $0xd9c] sm:$0xf0] }
 0x6a6   :  { %v17689_v36 = vor.u32 %v19658_v19, %v17688_v2  ;;  %v17144_v7 = vld [vmem:[#allocation6 + $0x940] sm:$0xf]  ;;  %10685 = vmatpush.bf16.msrb.mxu1 %v17433_v22  ;;  %v7329_v29 = vpop.f32.mrf.mxu1  ;;  %v7302_v44 = vadd.f32 %v20317_v0, %v7289_v18  ;;  %v16186_v0 = vld [vmem:[#allocation6 + $0x1e0] sm:$0xf0] }
 0x6a7   :  { %v19522_v10 = vld [vmem:[#allocation6 + $0x95c] sm:$0xf0] }
 0x6a8   :  { %v17400_v15 = vld [vmem:[#allocation6 + $0xb40] sm:$0xf]  ;;  %v17145_v31 = vor.u32 %v19522_v10, %v17144_v7  ;;  %10698 = vmatpush.bf16.msrb.mxu2 %v17689_v36  ;;  %v20345_v36 = vadd.f32 %v7353_v25, %v7341_v60  ;;  %v19262_v25 = vld [vmem:[#allocation6 + $0x144] sm:$0xf] }
 0x6a9   :  { %v19586_v13 = vld [vmem:[#allocation6 + $0xb5c] sm:$0xf0]  ;;  %v16122_v60 = vld [vmem:[#allocation6 + $0x160] sm:$0xf0] }
 0x6aa   :  { %v17656_v23 = vld [vmem:[#allocation6 + $0xd40] sm:$0xf]  ;;  %v17401_v20 = vor.u32 %v19586_v13, %v17400_v15  ;;  %10673 = vmatpush.bf16.msrb.mxu0 %v17145_v31  ;;  %v16125_v29 = vor.u32 %v19262_v25, %v16122_v60  ;;  %v16250_v60 = vld [vmem:[#allocation6 + $0x260] sm:$0xf0] }
 0x6ab   :  { %v19650_v24 = vld [vmem:[#allocation6 + $0xd5c] sm:$0xf0] }
 0x6ac   :  { %v17657_v38 = vor.u32 %v19650_v24, %v17656_v23  ;;  %v17112_v39 = vld [vmem:[#allocation6 + $0x900] sm:$0xf]  ;;  %10686 = vmatpush.bf16.msrb.mxu1 %v17401_v20 }
 0x6ad   :  { %v19514_v42 = vld [vmem:[#allocation6 + $0x91c] sm:$0xf0] }
 0x6ae   :  { %v17368_v17 = vld [vmem:[#allocation6 + $0xb00] sm:$0xf]  ;;  %v17113_v61 = vor.u32 %v19514_v42, %v17112_v39  ;;  %10699 = vmatpush.bf16.msrb.mxu2 %v17657_v38  ;;  %v7315_v42 = vadd.f32 %v20339_v34, %v7302_v44 }
 0x6af   :  { %v19578_v33 = vld [vmem:[#allocation6 + $0xb1c] sm:$0xf0] }
 0x6b0   :  { %v17624_v41 = vld [vmem:[#allocation6 + $0xd00] sm:$0xf]  ;;  %v17369_v37 = vor.u32 %v19578_v33, %v17368_v17  ;;  %10674 = vmatpush.bf16.msrb.mxu0 %v17113_v61  ;;  %v19278_v17 = vld [vmem:[#allocation6 + $0x1c4] sm:$0xf]  ;;  %v7342_v33 = vpop.f32.mrf.mxu2 }
 0x6b1   :  { %v19642_v9 = vld [vmem:[#allocation6 + $0xd1c] sm:$0xf0] }
 0x6b2   :  { %v17625_v27 = vor.u32 %v19642_v9, %v17624_v41  ;;  %v17080_v40 = vld [vmem:[#allocation6 + $0x8c0] sm:$0xf]  ;;  %10687 = vmatpush.bf16.msrb.mxu1 %v17369_v37  ;;  %v7355_v41 = vpop.f32.mrf.mxu3 }
 0x6b3   :  { %v19506_v35 = vld [vmem:[#allocation6 + $0x8dc] sm:$0xf0] }
 0x6b4   :  { %v17336_v43 = vld [vmem:[#allocation6 + $0xac0] sm:$0xf]  ;;  %v17081_v50 = vor.u32 %v19506_v35, %v17080_v40  ;;  %10700 = vmatpush.bf16.msrb.mxu2 %v17625_v27  ;;  %v19406_v27 = vld [vmem:[#allocation6 + $0x5c4] sm:$0xf]  ;;  %v7517_v35 = vmax.f32 %v20250_v45, 0.0 }
 0x6b5   :  { %v19570_v11 = vld [vmem:[#allocation6 + $0xadc] sm:$0xf0]  ;;  %v16698_v40 = vld [vmem:[#allocation6 + $0x5e0] sm:$0xf0] }
 0x6b6   :  { %v17592_v47 = vld [vmem:[#allocation6 + $0xcc0] sm:$0xf]  ;;  %v17337_v63 = vor.u32 %v19570_v11, %v17336_v43  ;;  %10675 = vmatpush.bf16.msrb.mxu0 %v17081_v50  ;;  %v7518_v43 = vmax.f32 %v20283_v16, 0.0  ;;  %v7519_v11 = vmax.f32 %v7315_v42, 0.0  ;;  %v19334_v50 = vld [vmem:[#allocation6 + $0x384] sm:$0xf]  ;;  %v20351_v56 = vpack.c.bf16 %v7517_v35, %v7517_v35 }
 0x6b7   :  { %v19634_v49 = vld [vmem:[#allocation6 + $0xcdc] sm:$0xf0]  ;;  %v16666_v45 = vld [vmem:[#allocation6 + $0x5a0] sm:$0xf0] }
 0x6b8   :  { %v17593_v4 = vor.u32 %v19634_v49, %v17592_v47  ;;  %v17048_v55 = vld [vmem:[#allocation6 + $0x880] sm:$0xf]  ;;  %10688 = vmatpush.bf16.msrb.mxu1 %v17337_v63  ;;  %v16189_v47 = vor.u32 %v19278_v17, %v16186_v0  ;;  %v16445_v49 = vor.u32 %v19342_v21, %v16442_v28  ;;  %v16701_v63 = vor.u32 %v19406_v27, %v16698_v40  ;;  %v19246_v42 = vld [vmem:[#allocation6 + $0xc4] sm:$0xf]  ;;  %v20360_v17 = vpop.f32.mrf.mxu0  ;;  %v20362_v28 = vpop.f32.mrf.mxu1 }
 0x6b9   :  { %v19498_v51 = vld [vmem:[#allocation6 + $0x89c] sm:$0xf0]  ;;  %v20353_v16 = vpack.c.bf16 %v7518_v43, %v7518_v43  ;;  %v19310_v0 = vld [vmem:[#allocation6 + $0x2c4] sm:$0xf] }
 0x6ba   :  { %v17304_v53 = vld [vmem:[#allocation6 + $0xa80] sm:$0xf]  ;;  %v17049_v8 = vor.u32 %v19498_v51, %v17048_v55  ;;  %10701 = vmatpush.bf16.msrb.mxu2 %v17593_v4  ;;  %v16410_v4 = vld [vmem:[#allocation6 + $0x3a0] sm:$0xf0] }
 0x6bb   :  { %v19562_v54 = vld [vmem:[#allocation6 + $0xa9c] sm:$0xf0]  ;;  %v16413_v59 = vor.u32 %v19334_v50, %v16410_v4  ;;  %v16314_v21 = vld [vmem:[#allocation6 + $0x2e0] sm:$0xf0]  ;;  %v20366_v4 = vpop.f32.mrf.mxu3 }
 0x6bc   :  { %v17560_v57 = vld [vmem:[#allocation6 + $0xc80] sm:$0xf]  ;;  %v17305_v1 = vor.u32 %v19562_v54, %v17304_v53  ;;  %10676 = vmatpush.bf16.msrb.mxu0 %v17049_v8  ;;  %v19398_v53 = vld [vmem:[#allocation6 + $0x584] sm:$0xf]  ;;  %v16317_v35 = vor.u32 %v19310_v0, %v16314_v21 }
 0x6bd   :  { %v19626_v58 = vld [vmem:[#allocation6 + $0xc9c] sm:$0xf0]  ;;  %v16669_v18 = vor.u32 %v19398_v53, %v16666_v45  ;;  %v16378_v8 = vld [vmem:[#allocation6 + $0x360] sm:$0xf0] }
 0x6be   :  { %v17561_v2 = vor.u32 %v19626_v58, %v17560_v57  ;;  %v17016_v19 = vld [vmem:[#allocation6 + $0x840] sm:$0xf]  ;;  %10689 = vmatpush.bf16.msrb.mxu1 %v17305_v1  ;;  %v20355_v57 = vpack.c.bf16 %v7519_v11, %v7519_v11  ;;  %v16157_v58 = vor.u32 %v19270_v32, %v16154_v48  ;;  %v19238_v43 = vld [vmem:[#allocation6 + $0x84] sm:$0xf]  ;;  %v20364_v48 = vpop.f32.mrf.mxu2 }
 0x6bf   :  { %v19490_v5 = vld [vmem:[#allocation6 + $0x85c] sm:$0xf0]  ;;  %v16026_v11 = vld [vmem:[#allocation6 + $0xa0] sm:$0xf0] }
 0x6c0   :  { %v17272_v22 = vld [vmem:[#allocation6 + $0xa40] sm:$0xf]  ;;  %v17017_v13 = vor.u32 %v19490_v5, %v17016_v19  ;;  %10702 = vmatpush.bf16.msrb.mxu2 %v17561_v2  ;;  %v19390_v19 = vld [vmem:[#allocation6 + $0x544] sm:$0xf] }
 0x6c1   :  { %v19554_v7 = vld [vmem:[#allocation6 + $0xa5c] sm:$0xf0]  ;;  %v16634_v5 = vld [vmem:[#allocation6 + $0x560] sm:$0xf0] }
 0x6c2   :  { %v17528_v10 = vld [vmem:[#allocation6 + $0xc40] sm:$0xf]  ;;  %v17273_v26 = vor.u32 %v19554_v7, %v17272_v22  ;;  %10677 = vmatpush.bf16.msrb.mxu0 %v17017_v13  ;;  %v16381_v7 = vor.u32 %v19326_v62, %v16378_v8  ;;  %v16637_v13 = vor.u32 %v19390_v19, %v16634_v5  ;;  %v19366_v50 = vld [vmem:[#allocation6 + $0x484] sm:$0xf]  ;;  %v7381_v62 = vpop.f32.mrf.mxu1 }
 0x6c3   :  { %v19618_v15 = vld [vmem:[#allocation6 + $0xc5c] sm:$0xf0]  ;;  %v19230_v45 = vld [vmem:[#allocation6 + $0x44] sm:$0xf] }
 0x6c4   :  { %v16984_v52 = vld [vmem:[#allocation6 + $0x800] sm:$0xf]  ;;  %v17529_v31 = vor.u32 %v19618_v15, %v17528_v10  ;;  %10690 = vmatpush.bf16.msrb.mxu1 %v17273_v26  ;;  %v19254_v10 = vld [vmem:[#allocation6 + $0x104] sm:$0xf] }
 0x6c5   :  { %v19482_v23 = vld [vmem:[#allocation6 + $0x81c] sm:$0xf0]  ;;  %v19382_v26 = vld [vmem:[#allocation6 + $0x504] sm:$0xf] }
 0x6c6   :  { %v17240_v24 = vld [vmem:[#allocation6 + $0xa00] sm:$0xf]  ;;  %v16985_v37 = vor.u32 %v19482_v23, %v16984_v52  ;;  %10703 = vmatpush.bf16.msrb.mxu2 %v17529_v31  ;;  %v16090_v52 = vld [vmem:[#allocation6 + $0x120] sm:$0xf0] }
 0x6c7   :  { %v19546_v20 = vld [vmem:[#allocation6 + $0xa1c] sm:$0xf0]  ;;  %v19318_v23 = vld [vmem:[#allocation6 + $0x304] sm:$0xf] }
 0x6c8   :  { %v17496_v38 = vld [vmem:[#allocation6 + $0xc00] sm:$0xf]  ;;  %v17241_v34 = vor.u32 %v19546_v20, %v17240_v24  ;;  %10678 = vmatpush.bf16.msrb.mxu0 %v16985_v37  ;;  %v16346_v24 = vld [vmem:[#allocation6 + $0x320] sm:$0xf0] }
 0x6c9   :  { %v19610_v39 = vld [vmem:[#allocation6 + $0xc1c] sm:$0xf0]  ;;  %v16602_v31 = vld [vmem:[#allocation6 + $0x520] sm:$0xf0] }
 0x6ca   :  { %v17976_v9 = vld [vmem:[#allocation6 + $0xfc0] sm:$0xf]  ;;  %v17497_v46 = vor.u32 %v19610_v39, %v17496_v38  ;;  %10691 = vmatpush.bf16.msrb.mxu1 %v17241_v34  ;;  %v16093_v38 = vor.u32 %v19254_v10, %v16090_v52  ;;  %v16349_v39 = vor.u32 %v19318_v23, %v16346_v24  ;;  %v16570_v37 = vld [vmem:[#allocation6 + $0x4e0] sm:$0xf0] }
 0x6cb   :  { %v19730_v30 = vld [vmem:[#allocation6 + $0xfdc] sm:$0xf0]  ;;  %10679 = vmatmul.bf16.vlgmr.msrb.gmra.mxu0 %v20351_v56  ;;  %v19222_v19 = vld [vmem:[#allocation6 + $0x4] sm:$0xf] }
 0x6cc   :  { %v17977_v61 = vor.u32 %v19730_v30, %v17976_v9  ;;  %v17944_v55 = vld [vmem:[#allocation6 + $0xf80] sm:$0xf]  ;;  %10704 = vmatpush.bf16.msrb.mxu2 %v17497_v46  ;;  %10723 = vmatpush.bf16.msra.mxu0 %v16189_v47  ;;  %v16605_v9 = vor.u32 %v19382_v26, %v16602_v31  ;;  %v16058_v30 = vld [vmem:[#allocation6 + $0xe0] sm:$0xf0]  ;;  %v7394_v26 = vpop.f32.mrf.mxu2 }
 0x6cd   :  { %v19722_v51 = vld [vmem:[#allocation6 + $0xf9c] sm:$0xf0]  ;;  %10692 = vmatmul.bf16.vlgmr.msrb.gmra.mxu1 %v20353_v16  ;;  %v16061_v40 = vor.u32 %v19246_v42, %v16058_v30  ;;  %v19302_v47 = vld [vmem:[#allocation6 + $0x284] sm:$0xf] }
 0x6ce   :  { %10710 = vmatpush.bf16.msrb.mxu3 %v17977_v61  ;;  %v17945_v54 = vor.u32 %v19722_v51, %v17944_v55  ;;  %10736 = vmatpush.bf16.msra.mxu1 %v16445_v49  ;;  %v17912_v1 = vld [vmem:[#allocation6 + $0xf40] sm:$0xf]  ;;  %v19374_v61 = vld [vmem:[#allocation6 + $0x4c4] sm:$0xf]  ;;  %v16029_v51 = vor.u32 %v19238_v43, %v16026_v11 }
 0x6cf   :  { %v19714_v2 = vld [vmem:[#allocation6 + $0xf5c] sm:$0xf0]  ;;  %10705 = vmatmul.bf16.vlgmr.msrb.gmra.mxu2 %v20355_v57  ;;  %v16573_v32 = vor.u32 %v19374_v61, %v16570_v37  ;;  %v16282_v49 = vld [vmem:[#allocation6 + $0x2a0] sm:$0xf0] }
 0x6d0   :  { %10749 = vmatpush.bf16.msra.mxu2 %v16701_v63  ;;  %v17913_v22 = vor.u32 %v19714_v2, %v17912_v1  ;;  %10724 = vmatpush.bf16.msra.mxu0 %v16157_v58  ;;  %v17880_v15 = vld [vmem:[#allocation6 + $0xf00] sm:$0xf]  ;;  %v16538_v63 = vld [vmem:[#allocation6 + $0x4a0] sm:$0xf0]  ;;  %v16285_v53 = vor.u32 %v19302_v47, %v16282_v49 }
 0x6d1   :  { %v19706_v44 = vld [vmem:[#allocation6 + $0xf1c] sm:$0xf0]  ;;  %v19294_v58 = vld [vmem:[#allocation6 + $0x244] sm:$0xf]  ;;  %v16541_v25 = vor.u32 %v19366_v50, %v16538_v63 }
 0x6d2   :  { %10711 = vmatpush.bf16.msrb.mxu3 %v17945_v54  ;;  %10737 = vmatpush.bf16.msra.mxu1 %v16413_v59  ;;  %v17881_v20 = vor.u32 %v19706_v44, %v17880_v15  ;;  %v17848_v33 = vld [vmem:[#allocation6 + $0xec0] sm:$0xf]  ;;  %v15994_v54 = vld [vmem:[#allocation6 + $0x60] sm:$0xf0]  ;;  %v7368_v59 = vpop.f32.mrf.mxu0 }
 0x6d3   :  { %v19698_v41 = vld [vmem:[#allocation6 + $0xedc] sm:$0xf0]  ;;  %v19358_v1 = vld [vmem:[#allocation6 + $0x444] sm:$0xf] }
 0x6d4   :  { %10750 = vmatpush.bf16.msra.mxu2 %v16669_v18  ;;  %10725 = vmatpush.bf16.msra.mxu0 %v16125_v29  ;;  %v17849_v27 = vor.u32 %v19698_v41, %v17848_v33  ;;  %v17816_v34 = vld [vmem:[#allocation6 + $0xe80] sm:$0xf]  ;;  %v16506_v2 = vld [vmem:[#allocation6 + $0x460] sm:$0xf0]  ;;  %v15997_v29 = vor.u32 %v19230_v45, %v15994_v54 }
 0x6d5   :  { %v19690_v46 = vld [vmem:[#allocation6 + $0xe9c] sm:$0xf0]  ;;  %v15962_v5 = vld [vmem:[#allocation6 + $0x20] sm:$0xf0] }
 0x6d6   :  { %10712 = vmatpush.bf16.msrb.mxu3 %v17913_v22  ;;  %10738 = vmatpush.bf16.msra.mxu1 %v16381_v7  ;;  %v17817_v55 = vor.u32 %v19690_v46, %v17816_v34  ;;  %v17784_v18 = vld [vmem:[#allocation6 + $0xe40] sm:$0xf]  ;;  %v16253_v7 = vor.u32 %v19294_v58, %v16250_v60  ;;  %v19286_v10 = vld [vmem:[#allocation6 + $0x204] sm:$0xf]  ;;  %v15965_v30 = vor.u32 %v19222_v19, %v15962_v5 }
 0x6d7   :  { %v19682_v8 = vld [vmem:[#allocation6 + $0xe5c] sm:$0xf0]  ;;  %v16218_v52 = vld [vmem:[#allocation6 + $0x220] sm:$0xf0] }
 0x6d8   :  { %10751 = vmatpush.bf16.msra.mxu2 %v16637_v13  ;;  %10726 = vmatpush.bf16.msra.mxu0 %v16093_v38  ;;  %v17785_v22 = vor.u32 %v19682_v8, %v17784_v18  ;;  %v17752_v15 = vld [vmem:[#allocation6 + $0xe00] sm:$0xf]  ;;  %v16509_v13 = vor.u32 %v19358_v1, %v16506_v2  ;;  %v19350_v23 = vld [vmem:[#allocation6 + $0x404] sm:$0xf]  ;;  %v16221_v0 = vor.u32 %v19286_v10, %v16218_v52 }
 0x6d9   :  { %v19674_v44 = vld [vmem:[#allocation6 + $0xe1c] sm:$0xf0]  ;;  %v16474_v24 = vld [vmem:[#allocation6 + $0x420] sm:$0xf0] }
 0x6da   :  { %10713 = vmatpush.bf16.msrb.mxu3 %v17881_v20  ;;  %10739 = vmatpush.bf16.msra.mxu1 %v16349_v39  ;;  %v19534_v31 = vld [vmem:[#allocation6 + $0x9c4] sm:$0xf]  ;;  %v7407_v39 = vpop.f32.mrf.mxu3  ;;  %v16477_v21 = vor.u32 %v19350_v23, %v16474_v24 }
 0x6db   :  { %v17210_v20 = vld [vmem:[#allocation6 + $0x9e0] sm:$0xf0] }
 0x6dc   :  { %10752 = vmatpush.bf16.msra.mxu2 %v16605_v9  ;;  %10727 = vmatpush.bf16.msra.mxu0 %v16061_v40  ;;  %v19598_v38 = vld [vmem:[#allocation6 + $0xbc4] sm:$0xf]  ;;  %v17753_v9 = vor.u32 %v19674_v44, %v17752_v15  ;;  %v17213_v61 = vor.u32 %v19534_v31, %v17210_v20  ;;  %v20373_v20 = vpop.f32.mrf.mxu1 }
 0x6dd   :  { %v17466_v42 = vld [vmem:[#allocation6 + $0xbe0] sm:$0xf0] }
 0x6de   :  { %10714 = vmatpush.bf16.msrb.mxu3 %v17849_v27  ;;  %10740 = vmatpush.bf16.msra.mxu1 %v16317_v35  ;;  %v19662_v33 = vld [vmem:[#allocation6 + $0xdc4] sm:$0xf]  ;;  %v17469_v40 = vor.u32 %v19598_v38, %v17466_v42 }
 0x6df   :  { %v17722_v41 = vld [vmem:[#allocation6 + $0xde0] sm:$0xf0] }
 0x6e0   :  { %10753 = vmatpush.bf16.msra.mxu2 %v16573_v32  ;;  %10728 = vmatpush.bf16.msra.mxu0 %v16029_v51  ;;  %v19470_v37 = vld [vmem:[#allocation6 + $0x7c4] sm:$0xf]  ;;  %v17725_v35 = vor.u32 %v19662_v33, %v17722_v41 }
 0x6e1   :  { %v16954_v27 = vld [vmem:[#allocation6 + $0x7e0] sm:$0xf0] }
 0x6e2   :  { %10715 = vmatpush.bf16.msrb.mxu3 %v17817_v55  ;;  %10741 = vmatpush.bf16.msra.mxu1 %v16285_v53  ;;  %v19526_v43 = vld [vmem:[#allocation6 + $0x984] sm:$0xf]  ;;  %v16957_v49 = vor.u32 %v19470_v37, %v16954_v27 }
 0x6e3   :  { %v17178_v34 = vld [vmem:[#allocation6 + $0x9a0] sm:$0xf0] }
 0x6e4   :  { %10754 = vmatpush.bf16.msra.mxu2 %v16541_v25  ;;  %10729 = vmatpush.bf16.msra.mxu0 %v15997_v29  ;;  %v19590_v46 = vld [vmem:[#allocation6 + $0xb84] sm:$0xf]  ;;  %v17181_v50 = vor.u32 %v19526_v43, %v17178_v34  ;;  %v7367_v34 = vadd.f32 %v20360_v17, %v20345_v36 }
 0x6e5   :  { %v17434_v32 = vld [vmem:[#allocation6 + $0xba0] sm:$0xf0] }
 0x6e6   :  { %10716 = vmatpush.bf16.msrb.mxu3 %v17785_v22  ;;  %10742 = vmatpush.bf16.msra.mxu1 %v16253_v7  ;;  %v19654_v11 = vld [vmem:[#allocation6 + $0xd84] sm:$0xf]  ;;  %v17437_v51 = vor.u32 %v19590_v46, %v17434_v32 }
 0x6e7   :  { %v17690_v47 = vld [vmem:[#allocation6 + $0xda0] sm:$0xf0] }
 0x6e8   :  { %10755 = vmatpush.bf16.msra.mxu2 %v16509_v13  ;;  %10730 = vmatpush.bf16.msra.mxu0 %v15965_v30  ;;  %v19462_v63 = vld [vmem:[#allocation6 + $0x784] sm:$0xf]  ;;  %v17693_v53 = vor.u32 %v19654_v11, %v17690_v47  ;;  %v20371_v13 = vpop.f32.mrf.mxu0  ;;  %v20377_v47 = vpop.f32.mrf.mxu2 }
 0x6e9   :  { %v16922_v55 = vld [vmem:[#allocation6 + $0x7a0] sm:$0xf0] }
 0x6ea   :  { %10717 = vmatpush.bf16.msrb.mxu3 %v17753_v9  ;;  %10743 = vmatpush.bf16.msra.mxu1 %v16221_v0  ;;  %v19518_v45 = vld [vmem:[#allocation6 + $0x944] sm:$0xf]  ;;  %v16925_v62 = vor.u32 %v19462_v63, %v16922_v55 }
 0x6eb   :  { %v17146_v54 = vld [vmem:[#allocation6 + $0x960] sm:$0xf0]  ;;  %10731 = vmatmul.bf16.vlgmr.msra.gmra.mxu0 %v20325_v3 }
 0x6ec   :  { %10756 = vmatpush.bf16.msra.mxu2 %v16477_v21  ;;  %10775 = vmatpush.bf16.msrb.mxu0 %v17213_v61  ;;  %v19582_v58 = vld [vmem:[#allocation6 + $0xb44] sm:$0xf]  ;;  %v17149_v18 = vor.u32 %v19518_v45, %v17146_v54 }
 0x6ed   :  { %10744 = vmatmul.bf16.vlgmr.msra.gmra.mxu1 %v20327_v14  ;;  %v17402_v59 = vld [vmem:[#allocation6 + $0xb60] sm:$0xf0] }
 0x6ee   :  { %10788 = vmatpush.bf16.msrb.mxu1 %v17469_v40  ;;  %v19646_v25 = vld [vmem:[#allocation6 + $0xd44] sm:$0xf]  ;;  %10762 = vmatpush.bf16.msra.mxu3 %v16957_v49  ;;  %v17405_v2 = vor.u32 %v19582_v58, %v17402_v59  ;;  %v7433_v59 = vpop.f32.mrf.mxu1 }
 0x6ef   :  { %v17658_v60 = vld [vmem:[#allocation6 + $0xd60] sm:$0xf0]  ;;  %10757 = vmatmul.bf16.vlgmr.msra.gmra.mxu2 %v20329_v12 }
 0x6f0   :  { %10801 = vmatpush.bf16.msrb.mxu2 %v17725_v35  ;;  %10776 = vmatpush.bf16.msrb.mxu0 %v17181_v50  ;;  %v19454_v8 = vld [vmem:[#allocation6 + $0x744] sm:$0xf]  ;;  %v17661_v19 = vor.u32 %v19646_v25, %v17658_v60  ;;  %v20379_v50 = vpop.f32.mrf.mxu3  ;;  %v7420_v55 = vpop.f32.mrf.mxu0  ;;  %v7380_v25 = vadd.f32 %v20362_v28, %v7367_v34  ;;  %v16416_v34 = vld [vmem:[#allocation6 + $0x388] sm:$0xf] }
 0x6f1   :  { %v16890_v1 = vld [vmem:[#allocation6 + $0x760] sm:$0xf0] }
 0x6f2   :  { %10789 = vmatpush.bf16.msrb.mxu1 %v17437_v51  ;;  %v19510_v5 = vld [vmem:[#allocation6 + $0x904] sm:$0xf]  ;;  %10763 = vmatpush.bf16.msra.mxu3 %v16925_v62  ;;  %v16893_v44 = vor.u32 %v19454_v8, %v16890_v1 }
 0x6f3   :  { %v17114_v22 = vld [vmem:[#allocation6 + $0x920] sm:$0xf0] }
 0x6f4   :  { %10802 = vmatpush.bf16.msrb.mxu2 %v17693_v53  ;;  %v19574_v29 = vld [vmem:[#allocation6 + $0xb04] sm:$0xf]  ;;  %10777 = vmatpush.bf16.msrb.mxu0 %v17149_v18  ;;  %v17117_v52 = vor.u32 %v19510_v5, %v17114_v22 }
 0x6f5   :  { %v17370_v7 = vld [vmem:[#allocation6 + $0xb20] sm:$0xf0] }
 0x6f6   :  { %v19638_v10 = vld [vmem:[#allocation6 + $0xd04] sm:$0xf]  ;;  %10790 = vmatpush.bf16.msrb.mxu1 %v17405_v2  ;;  %v17373_v26 = vor.u32 %v19574_v29, %v17370_v7  ;;  %10764 = vmatpush.bf16.msra.mxu3 %v16893_v44  ;;  %v7393_v44 = vadd.f32 %v20364_v48, %v7380_v25 }
 0x6f7   :  { %v17626_v15 = vld [vmem:[#allocation6 + $0xd20] sm:$0xf0] }
 0x6f8   :  { %v19446_v23 = vld [vmem:[#allocation6 + $0x704] sm:$0xf]  ;;  %10803 = vmatpush.bf16.msrb.mxu2 %v17661_v19  ;;  %v17629_v31 = vor.u32 %v19638_v10, %v17626_v15  ;;  %10778 = vmatpush.bf16.msrb.mxu0 %v17117_v52  ;;  %v7406_v48 = vadd.f32 %v20366_v4, %v7393_v44  ;;  %v19251_v44 = vld [vmem:[#allocation6 + $0xe4] sm:$0xf0] }
 0x6f9   :  { %v16858_v24 = vld [vmem:[#allocation6 + $0x720] sm:$0xf0] }
 0x6fa   :  { %v19502_v38 = vld [vmem:[#allocation6 + $0x8c4] sm:$0xf]  ;;  %v16861_v30 = vor.u32 %v19446_v23, %v16858_v24  ;;  %10791 = vmatpush.bf16.msrb.mxu1 %v17373_v26  ;;  %v16192_v23 = vld [vmem:[#allocation6 + $0x1c8] sm:$0xf] }
 0x6fb   :  { %v17082_v39 = vld [vmem:[#allocation6 + $0x8e0] sm:$0xf0]  ;;  %v19283_v24 = vld [vmem:[#allocation6 + $0x1e4] sm:$0xf0] }
 0x6fc   :  { %v19566_v42 = vld [vmem:[#allocation6 + $0xac4] sm:$0xf]  ;;  %v17085_v0 = vor.u32 %v19502_v38, %v17082_v39  ;;  %10804 = vmatpush.bf16.msrb.mxu2 %v17629_v31  ;;  %10765 = vmatpush.bf16.msra.mxu3 %v16861_v30  ;;  %v16448_v26 = vld [vmem:[#allocation6 + $0x3c8] sm:$0xf]  ;;  %v7446_v38 = vpop.f32.mrf.mxu2 }
 0x6fd   :  { %v17338_v33 = vld [vmem:[#allocation6 + $0xae0] sm:$0xf0]  ;;  %v19347_v31 = vld [vmem:[#allocation6 + $0x3e4] sm:$0xf0] }
 0x6fe   :  { %v19630_v41 = vld [vmem:[#allocation6 + $0xcc4] sm:$0xf]  ;;  %v17341_v37 = vor.u32 %v19566_v42, %v17338_v33  ;;  %10779 = vmatpush.bf16.msrb.mxu0 %v17085_v0  ;;  %v16704_v33 = vld [vmem:[#allocation6 + $0x5c8] sm:$0xf] }
 0x6ff   :  { %v17594_v9 = vld [vmem:[#allocation6 + $0xce0] sm:$0xf0] }
 0x700   :  { %v19438_v21 = vld [vmem:[#allocation6 + $0x6c4] sm:$0xf]  ;;  %v17597_v27 = vor.u32 %v19630_v41, %v17594_v9  ;;  %10792 = vmatpush.bf16.msrb.mxu1 %v17341_v37  ;;  %v19411_v41 = vld [vmem:[#allocation6 + $0x5e4] sm:$0xf0]  ;;  %v7459_v9 = vpop.f32.mrf.mxu3 }
 0x701   :  { %v16826_v61 = vld [vmem:[#allocation6 + $0x6e0] sm:$0xf0]  ;;  %v16160_v37 = vld [vmem:[#allocation6 + $0x188] sm:$0xf] }
 0x702   :  { %v19494_v40 = vld [vmem:[#allocation6 + $0x884] sm:$0xf]  ;;  %v16829_v49 = vor.u32 %v19438_v21, %v16826_v61  ;;  %10805 = vmatpush.bf16.msrb.mxu2 %v17597_v27  ;;  %v16193_v21 = vor.u32 %v19283_v24, %v16192_v23  ;;  %v16449_v61 = vor.u32 %v19347_v31, %v16448_v26  ;;  %v16576_v24 = vld [vmem:[#allocation6 + $0x4c8] sm:$0xf] }
 0x703   :  { %v17050_v35 = vld [vmem:[#allocation6 + $0x8a0] sm:$0xf0]  ;;  %v19379_v26 = vld [vmem:[#allocation6 + $0x4e4] sm:$0xf0] }
 0x704   :  { %v19558_v43 = vld [vmem:[#allocation6 + $0xa84] sm:$0xf]  ;;  %v17053_v63 = vor.u32 %v19494_v40, %v17050_v35  ;;  %10766 = vmatpush.bf16.msra.mxu3 %v16829_v49  ;;  %v16705_v35 = vor.u32 %v19411_v41, %v16704_v33  ;;  %v19403_v49 = vld [vmem:[#allocation6 + $0x5a4] sm:$0xf0] }
 0x705   :  { %v17306_v46 = vld [vmem:[#allocation6 + $0xaa0] sm:$0xf0]  ;;  %v16288_v33 = vld [vmem:[#allocation6 + $0x288] sm:$0xf] }
 0x706   :  { %v19622_v32 = vld [vmem:[#allocation6 + $0xc84] sm:$0xf]  ;;  %v17309_v45 = vor.u32 %v19558_v43, %v17306_v46  ;;  %10780 = vmatpush.bf16.msrb.mxu0 %v17053_v63  ;;  %v19275_v43 = vld [vmem:[#allocation6 + $0x1a4] sm:$0xf0] }
 0x707   :  { %v17562_v11 = vld [vmem:[#allocation6 + $0xca0] sm:$0xf0]  ;;  %v19339_v46 = vld [vmem:[#allocation6 + $0x3a4] sm:$0xf0]  ;;  %v16161_v4 = vor.u32 %v19275_v43, %v16160_v37 }
 0x708   :  { %v19430_v51 = vld [vmem:[#allocation6 + $0x684] sm:$0xf]  ;;  %v17565_v54 = vor.u32 %v19622_v32, %v17562_v11  ;;  %10793 = vmatpush.bf16.msrb.mxu1 %v17309_v45  ;;  %v7419_v32 = vadd.f32 %v20371_v13, %v7406_v48  ;;  %v16672_v11 = vld [vmem:[#allocation6 + $0x588] sm:$0xf]  ;;  %v16417_v55 = vor.u32 %v19339_v46, %v16416_v34  ;;  %v7496_v48 = vpop.f32.mrf.mxu2 }
 0x709   :  { %v16794_v53 = vld [vmem:[#allocation6 + $0x6a0] sm:$0xf0]  ;;  %v19267_v45 = vld [vmem:[#allocation6 + $0x164] sm:$0xf0] }
 0x70a   :  { %v19486_v58 = vld [vmem:[#allocation6 + $0x844] sm:$0xf]  ;;  %v16797_v8 = vor.u32 %v19430_v51, %v16794_v53  ;;  %10806 = vmatpush.bf16.msrb.mxu2 %v17565_v54  ;;  %v16128_v51 = vld [vmem:[#allocation6 + $0x148] sm:$0xf]  ;;  %v16673_v53 = vor.u32 %v19403_v49, %v16672_v11  ;;  %v7432_v13 = vadd.f32 %v20373_v20, %v7419_v32 }
 0x70b   :  { %v17018_v36 = vld [vmem:[#allocation6 + $0x860] sm:$0xf0]  ;;  %v16384_v54 = vld [vmem:[#allocation6 + $0x348] sm:$0xf]  ;;  %v16129_v25 = vor.u32 %v19267_v45, %v16128_v51 }
 0x70c   :  { %v19550_v17 = vld [vmem:[#allocation6 + $0xa44] sm:$0xf]  ;;  %v17021_v1 = vor.u32 %v19486_v58, %v17018_v36  ;;  %10767 = vmatpush.bf16.msra.mxu3 %v16797_v8  ;;  %v19331_v58 = vld [vmem:[#allocation6 + $0x364] sm:$0xf0]  ;;  %v7445_v59 = vadd.f32 %v20377_v47, %v7432_v13 }
 0x70d   :  { %v17274_v60 = vld [vmem:[#allocation6 + $0xa60] sm:$0xf0]  ;;  %v16640_v36 = vld [vmem:[#allocation6 + $0x548] sm:$0xf] }
 0x70e   :  { %v19614_v62 = vld [vmem:[#allocation6 + $0xc44] sm:$0xf]  ;;  %v17277_v22 = vor.u32 %v19550_v17, %v17274_v60  ;;  %10781 = vmatpush.bf16.msrb.mxu0 %v17021_v1  ;;  %v19395_v17 = vld [vmem:[#allocation6 + $0x564] sm:$0xf0]  ;;  %v16385_v60 = vor.u32 %v19331_v58, %v16384_v54 }
 0x70f   :  { %v17530_v18 = vld [vmem:[#allocation6 + $0xc60] sm:$0xf0]  ;;  %v19259_v8 = vld [vmem:[#allocation6 + $0x124] sm:$0xf0] }
 0x710   :  { %v19478_v2 = vld [vmem:[#allocation6 + $0x804] sm:$0xf]  ;;  %v17533_v29 = vor.u32 %v19614_v62, %v17530_v18  ;;  %10794 = vmatpush.bf16.msrb.mxu1 %v17277_v22  ;;  %v16096_v62 = vld [vmem:[#allocation6 + $0x108] sm:$0xf]  ;;  %v16641_v18 = vor.u32 %v19395_v17, %v16640_v36  ;;  %v7470_v22 = vpop.f32.mrf.mxu0 }
 0x711   :  { %v19422_v19 = vld [vmem:[#allocation6 + $0x644] sm:$0xf]  ;;  %v16352_v1 = vld [vmem:[#allocation6 + $0x308] sm:$0xf] }
 0x712   :  { %v16762_v5 = vld [vmem:[#allocation6 + $0x660] sm:$0xf0]  ;;  %10807 = vmatpush.bf16.msrb.mxu2 %v17533_v29  ;;  %v16608_v20 = vld [vmem:[#allocation6 + $0x508] sm:$0xf]  ;;  %v16097_v29 = vor.u32 %v19259_v8, %v16096_v62 }
 0x713   :  { %v16986_v7 = vld [vmem:[#allocation6 + $0x820] sm:$0xf0]  ;;  %v16765_v39 = vor.u32 %v19422_v19, %v16762_v5  ;;  %v19387_v19 = vld [vmem:[#allocation6 + $0x524] sm:$0xf0]  ;;  %v7458_v5 = vadd.f32 %v20379_v50, %v7445_v59 }
 0x714   :  { %v19542_v10 = vld [vmem:[#allocation6 + $0xa04] sm:$0xf]  ;;  %v16989_v42 = vor.u32 %v19478_v2, %v16986_v7  ;;  %v19323_v2 = vld [vmem:[#allocation6 + $0x324] sm:$0xf0] }
 0x715   :  { %v17242_v15 = vld [vmem:[#allocation6 + $0xa20] sm:$0xf0]  ;;  %10768 = vmatpush.bf16.msra.mxu3 %v16765_v39  ;;  %v16353_v7 = vor.u32 %v19323_v2, %v16352_v1  ;;  %v16064_v47 = vld [vmem:[#allocation6 + $0xc8] sm:$0xf]  ;;  %v7471_v23 = vadd.f32 %v7470_v22, %v7458_v5  ;;  %v16577_v39 = vor.u32 %v19379_v26, %v16576_v24 }
 0x716   :  { %v19606_v28 = vld [vmem:[#allocation6 + $0xc04] sm:$0xf]  ;;  %v17245_v30 = vor.u32 %v19542_v10, %v17242_v15  ;;  %10782 = vmatpush.bf16.msrb.mxu0 %v16989_v42  ;;  %v7483_v10 = vpop.f32.mrf.mxu1  ;;  %v16609_v15 = vor.u32 %v19387_v19, %v16608_v20  ;;  %v16065_v31 = vor.u32 %v19251_v44, %v16064_v47  ;;  %v16032_v50 = vld [vmem:[#allocation6 + $0x88] sm:$0xf]  ;;  %v7498_v20 = vpop.f32.mrf.mxu2 }
 0x717   :  { %v17498_v52 = vld [vmem:[#allocation6 + $0xc20] sm:$0xf0]  ;;  %v19243_v42 = vld [vmem:[#allocation6 + $0xa4] sm:$0xf0]  ;;  %v7484_v9 = vadd.f32 %v7483_v10, %v7471_v23 }
 0x718   :  { %v17501_v0 = vor.u32 %v19606_v28, %v17498_v52  ;;  %v19414_v27 = vld [vmem:[#allocation6 + $0x604] sm:$0xf]  ;;  %10795 = vmatpush.bf16.msrb.mxu1 %v17245_v30  ;;  %v16320_v28 = vld [vmem:[#allocation6 + $0x2c8] sm:$0xf]  ;;  %v7472_v37 = vpop.f32.mrf.mxu0 }
 0x719   :  { %v16730_v40 = vld [vmem:[#allocation6 + $0x620] sm:$0xf0]  ;;  %10783 = vmatmul.bf16.vlgmr.msrb.gmra.mxu0 %v20351_v56  ;;  %v19315_v52 = vld [vmem:[#allocation6 + $0x2e4] sm:$0xf0] }
 0x71a   :  { %10808 = vmatpush.bf16.msrb.mxu2 %v17501_v0  ;;  %v16733_v63 = vor.u32 %v19414_v27, %v16730_v40  ;;  %10827 = vmatpush.bf16.msra.mxu0 %v16193_v21  ;;  %v16321_v38 = vor.u32 %v19315_v52, %v16320_v28  ;;  %v19307_v41 = vld [vmem:[#allocation6 + $0x2a4] sm:$0xf0]  ;;  %v7497_v21 = vadd.f32 %v7496_v48, %v7484_v9  ;;  %v17978_v51 = vld [vmem:[#allocation6 + $0xfe0] sm:$0xf0] }
 0x71b   :  { %10796 = vmatmul.bf16.vlgmr.msrb.gmra.mxu1 %v20353_v16  ;;  %v16544_v30 = vld [vmem:[#allocation6 + $0x488] sm:$0xf]  ;;  %v16033_v27 = vor.u32 %v19243_v42, %v16032_v50  ;;  %v16289_v40 = vor.u32 %v19307_v41, %v16288_v33  ;;  %v19718_v10 = vld [vmem:[#allocation6 + $0xf84] sm:$0xf] }
 0x71c   :  { %10840 = vmatpush.bf16.msra.mxu1 %v16449_v61  ;;  %10769 = vmatpush.bf16.msra.mxu3 %v16733_v63  ;;  %v19371_v0 = vld [vmem:[#allocation6 + $0x4a4] sm:$0xf0]  ;;  %v7509_v61 = vpop.f32.mrf.mxu3  ;;  %v19710_v33 = vld [vmem:[#allocation6 + $0xf44] sm:$0xf] }
 0x71d   :  { %10809 = vmatmul.bf16.vlgmr.msrb.gmra.mxu2 %v20355_v57  ;;  %v16545_v34 = vor.u32 %v19371_v0, %v16544_v30  ;;  %v19235_v46 = vld [vmem:[#allocation6 + $0x64] sm:$0xf0]  ;;  %v7510_v49 = vadd.f32 %v7509_v61, %v7497_v21  ;;  %v17914_v41 = vld [vmem:[#allocation6 + $0xf60] sm:$0xf0] }
 0x71e   :  { %10853 = vmatpush.bf16.msra.mxu2 %v16705_v35  ;;  %10828 = vmatpush.bf16.msra.mxu0 %v16161_v4  ;;  %v16000_v35 = vld [vmem:[#allocation6 + $0x48] sm:$0xf]  ;;  %v7485_v43 = vpop.f32.mrf.mxu1 }
 0x71f   :  { %v16256_v32 = vld [vmem:[#allocation6 + $0x248] sm:$0xf]  ;;  %v7520_v45 = vmax.f32 %v7510_v49, 0.0  ;;  %v16001_v54 = vor.u32 %v19235_v46, %v16000_v35  ;;  %v20395_v43 = vld [vmem:[#allocation7] sm:$0xff] }
 0x720   :  { %10841 = vmatpush.bf16.msra.mxu1 %v16417_v55  ;;  %v19299_v11 = vld [vmem:[#allocation6 + $0x264] sm:$0xf0]  ;;  %v19726_v55 = vld [vmem:[#allocation6 + $0xfc4] sm:$0xf] }
 0x721   :  { %v16512_v63 = vld [vmem:[#allocation6 + $0x448] sm:$0xf]  ;;  %v16257_v58 = vor.u32 %v19299_v11, %v16256_v32  ;;  %v20391_v62 = vpack.c.bf16 %v7520_v45, %v7520_v45  ;;  %v17882_v46 = vld [vmem:[#allocation6 + $0xf20] sm:$0xf0] }
 0x722   :  { %10854 = vmatpush.bf16.msra.mxu2 %v16673_v53  ;;  %10829 = vmatpush.bf16.msra.mxu0 %v16129_v25  ;;  %v19363_v4 = vld [vmem:[#allocation6 + $0x464] sm:$0xf0] }
 0x723   :  { %v15968_v53 = vld [vmem:[#allocation6 + $0x8] sm:$0xf]  ;;  %v16513_v17 = vor.u32 %v19363_v4, %v16512_v63  ;;  %10718 = vmatmul.bf16.vlgmr.msrb.gmra.mxu3 %v20391_v62  ;;  %v8043_v4 = vperm.slane %v20395_v43, 0 }
 0x724   :  { %10842 = vmatpush.bf16.msra.mxu1 %v16385_v60  ;;  %v19227_v13 = vld [vmem:[#allocation6 + $0x24] sm:$0xf0] }
 0x725   :  { %v16224_v36 = vld [vmem:[#allocation6 + $0x208] sm:$0xf] }
 0x726   :  { %10855 = vmatpush.bf16.msra.mxu2 %v16641_v18  ;;  %10830 = vmatpush.bf16.msra.mxu0 %v16097_v29  ;;  %v19291_v59 = vld [vmem:[#allocation6 + $0x224] sm:$0xf0]  ;;  %v17981_v18 = vor.u32 %v19726_v55, %v17978_v51  ;;  %v7511_v29 = vpop.f32.mrf.mxu3 }
 0x727   :  { %v16480_v25 = vld [vmem:[#allocation6 + $0x408] sm:$0xf]  ;;  %v16225_v47 = vor.u32 %v19291_v59, %v16224_v36  ;;  %v17850_v36 = vld [vmem:[#allocation6 + $0xee0] sm:$0xf0]  ;;  %v10628_v59 = vpop.f32.mrf.mxu0 }
 0x728   :  { %10843 = vmatpush.bf16.msra.mxu1 %v16353_v7  ;;  %v19355_v60 = vld [vmem:[#allocation6 + $0x424] sm:$0xf0]  ;;  %v15969_v7 = vor.u32 %v19227_v13, %v15968_v53  ;;  %10814 = vmatpush.bf16.msrb.mxu3 %v17981_v18  ;;  %v19694_v13 = vld [vmem:[#allocation6 + $0xec4] sm:$0xf]  ;;  %v10629_v20 = vadd.f32 %v10628_v59, %v8043_v4 }
 0x729   :  { %v17216_v8 = vld [vmem:[#allocation6 + $0x9c8] sm:$0xf]  ;;  %v16481_v44 = vor.u32 %v19355_v60, %v16480_v25  ;;  %v10641_v25 = vpop.f32.mrf.mxu1 }
 0x72a   :  { %10856 = vmatpush.bf16.msra.mxu2 %v16609_v15  ;;  %10831 = vmatpush.bf16.msra.mxu0 %v16065_v31  ;;  %v19539_v1 = vld [vmem:[#allocation6 + $0x9e4] sm:$0xf0]  ;;  %v17946_v15 = vld [vmem:[#allocation6 + $0xfa0] sm:$0xf0] }
 0x72b   :  { %v17472_v2 = vld [vmem:[#allocation6 + $0xbc8] sm:$0xf]  ;;  %v17217_v28 = vor.u32 %v19539_v1, %v17216_v8 }
 0x72c   :  { %10844 = vmatpush.bf16.msra.mxu1 %v16321_v38  ;;  %v19603_v19 = vld [vmem:[#allocation6 + $0xbe4] sm:$0xf0]  ;;  %v17949_v38 = vor.u32 %v19718_v10, %v17946_v15  ;;  %v10642_v10 = vadd.f32 %v10641_v25, %v10629_v20 }
 0x72d   :  { %v17728_v5 = vld [vmem:[#allocation6 + $0xdc8] sm:$0xf]  ;;  %v17473_v52 = vor.u32 %v19603_v19, %v17472_v2  ;;  %v17853_v19 = vor.u32 %v19694_v13, %v17850_v36 }
 0x72e   :  { %10857 = vmatpush.bf16.msra.mxu2 %v16577_v39  ;;  %10832 = vmatpush.bf16.msra.mxu0 %v16033_v27  ;;  %v19667_v22 = vld [vmem:[#allocation6 + $0xde4] sm:$0xf0]  ;;  %v17917_v27 = vor.u32 %v19710_v33, %v17914_v41  ;;  %v10654_v33 = vpop.f32.mrf.mxu2  ;;  %v10667_v41 = vpop.f32.mrf.mxu3 }
 0x72f   :  { %v17729_v23 = vor.u32 %v19667_v22, %v17728_v5  ;;  %v17184_v24 = vld [vmem:[#allocation6 + $0x988] sm:$0xf]  ;;  %10815 = vmatpush.bf16.msrb.mxu3 %v17949_v38 }
 0x730   :  { %10845 = vmatpush.bf16.msra.mxu1 %v16289_v40  ;;  %v19531_v26 = vld [vmem:[#allocation6 + $0x9a4] sm:$0xf0] }
 0x731   :  { %v17440_v31 = vld [vmem:[#allocation6 + $0xb88] sm:$0xf]  ;;  %v17185_v9 = vor.u32 %v19531_v26, %v17184_v24 }
 0x732   :  { %10858 = vmatpush.bf16.msra.mxu2 %v16545_v34  ;;  %10833 = vmatpush.bf16.msra.mxu0 %v16001_v54  ;;  %v19595_v50 = vld [vmem:[#allocation6 + $0xba4] sm:$0xf0]  ;;  %v19702_v34 = vld [vmem:[#allocation6 + $0xf04] sm:$0xf] }
 0x733   :  { %v17696_v39 = vld [vmem:[#allocation6 + $0xd88] sm:$0xf]  ;;  %v17441_v0 = vor.u32 %v19595_v50, %v17440_v31  ;;  %10816 = vmatpush.bf16.msrb.mxu3 %v17917_v27  ;;  %v17885_v53 = vor.u32 %v19702_v34, %v17882_v46 }
 0x734   :  { %10846 = vmatpush.bf16.msra.mxu1 %v16257_v58  ;;  %v19659_v42 = vld [vmem:[#allocation6 + $0xda4] sm:$0xf0]  ;;  %10770 = vmatmul.bf16.vlgmr.msra.gmra.mxu3 %v20331_v6 }
 0x735   :  { %v17152_v30 = vld [vmem:[#allocation6 + $0x948] sm:$0xf]  ;;  %v17697_v48 = vor.u32 %v19659_v42, %v17696_v39  ;;  %v19678_v39 = vld [vmem:[#allocation6 + $0xe44] sm:$0xf] }
 0x736   :  { %10859 = vmatpush.bf16.msra.mxu2 %v16513_v17  ;;  %10834 = vmatpush.bf16.msra.mxu0 %v15969_v7  ;;  %v19523_v21 = vld [vmem:[#allocation6 + $0x964] sm:$0xf0]  ;;  %v19686_v7 = vld [vmem:[#allocation6 + $0xe84] sm:$0xf]  ;;  %v10669_v20 = vpop.f32.mrf.mxu3 }
 0x737   :  { %v17408_v61 = vld [vmem:[#allocation6 + $0xb48] sm:$0xf]  ;;  %v17153_v32 = vor.u32 %v19523_v21, %v17152_v30  ;;  %10817 = vmatpush.bf16.msrb.mxu3 %v17885_v53  ;;  %v17786_v42 = vld [vmem:[#allocation6 + $0xe60] sm:$0xf0]  ;;  %v10655_v30 = vadd.f32 %v10654_v33, %v10642_v10 }
 0x738   :  { %10847 = vmatpush.bf16.msra.mxu1 %v16225_v47  ;;  %v19587_v37 = vld [vmem:[#allocation6 + $0xb64] sm:$0xf0]  ;;  %v17818_v47 = vld [vmem:[#allocation6 + $0xea0] sm:$0xf0] }
 0x739   :  { %10835 = vmatmul.bf16.vlgmr.msra.gmra.mxu0 %v20325_v3  ;;  %v17664_v40 = vld [vmem:[#allocation6 + $0xd48] sm:$0xf]  ;;  %v17409_v49 = vor.u32 %v19587_v37, %v17408_v61  ;;  %v17821_v26 = vor.u32 %v19686_v7, %v17818_v47 }
 0x73a   :  { %10860 = vmatpush.bf16.msra.mxu2 %v16481_v44  ;;  %10879 = vmatpush.bf16.msrb.mxu0 %v17217_v28  ;;  %v19651_v35 = vld [vmem:[#allocation6 + $0xd64] sm:$0xf0] }
 0x73b   :  { %10848 = vmatmul.bf16.vlgmr.msra.gmra.mxu1 %v20327_v14  ;;  %v17120_v11 = vld [vmem:[#allocation6 + $0x908] sm:$0xf]  ;;  %v17665_v63 = vor.u32 %v19651_v35, %v17664_v40  ;;  %10818 = vmatpush.bf16.msrb.mxu3 %v17853_v19  ;;  %v17789_v35 = vor.u32 %v19678_v39, %v17786_v42  ;;  %v16674_v39 = vld [vmem:[#allocation6 + $0x5a8] sm:$0xf0] }
 0x73c   :  { %10892 = vmatpush.bf16.msrb.mxu1 %v17473_v52  ;;  %v19515_v55 = vld [vmem:[#allocation6 + $0x924] sm:$0xf0] }
 0x73d   :  { %10861 = vmatmul.bf16.vlgmr.msra.gmra.mxu2 %v20329_v12  ;;  %v17376_v51 = vld [vmem:[#allocation6 + $0xb08] sm:$0xf]  ;;  %v17121_v17 = vor.u32 %v19515_v55, %v17120_v11  ;;  %v20401_v11 = vadd.f32 %v10667_v41, %v10655_v30 }
 0x73e   :  { %10905 = vmatpush.bf16.msrb.mxu2 %v17729_v23  ;;  %10880 = vmatpush.bf16.msrb.mxu0 %v17185_v9  ;;  %v19579_v45 = vld [vmem:[#allocation6 + $0xb24] sm:$0xf0] }
 0x73f   :  { %v17632_v54 = vld [vmem:[#allocation6 + $0xd08] sm:$0xf]  ;;  %v17377_v60 = vor.u32 %v19579_v45, %v17376_v51  ;;  %10819 = vmatpush.bf16.msrb.mxu3 %v17821_v26  ;;  %v19335_v26 = vld [vmem:[#allocation6 + $0x38c] sm:$0xf] }
 0x740   :  { %10893 = vmatpush.bf16.msrb.mxu1 %v17441_v0  ;;  %v19643_v58 = vld [vmem:[#allocation6 + $0xd24] sm:$0xf0]  ;;  %v10630_v0 = vpop.f32.mrf.mxu0 }
 0x741   :  { %v17633_v18 = vor.u32 %v19643_v58, %v17632_v54  ;;  %v17088_v8 = vld [vmem:[#allocation6 + $0x8c8] sm:$0xf]  ;;  %v19263_v0 = vld [vmem:[#allocation6 + $0x14c] sm:$0xf] }
 0x742   :  { %10906 = vmatpush.bf16.msrb.mxu2 %v17697_v48  ;;  %10881 = vmatpush.bf16.msrb.mxu0 %v17153_v32  ;;  %v19507_v1 = vld [vmem:[#allocation6 + $0x8e4] sm:$0xf0]  ;;  %v10643_v48 = vpop.f32.mrf.mxu1 }
 0x743   :  { %v17344_v2 = vld [vmem:[#allocation6 + $0xac8] sm:$0xf]  ;;  %v17089_v15 = vor.u32 %v19507_v1, %v17088_v8  ;;  %10820 = vmatpush.bf16.msrb.mxu3 %v17789_v35  ;;  %v16194_v8 = vld [vmem:[#allocation6 + $0x1e8] sm:$0xf0] }
 0x744   :  { %10894 = vmatpush.bf16.msrb.mxu1 %v17409_v49  ;;  %v19571_v5 = vld [vmem:[#allocation6 + $0xae4] sm:$0xf0]  ;;  %v19670_v49 = vld [vmem:[#allocation6 + $0xe04] sm:$0xf]  ;;  %v19343_v1 = vld [vmem:[#allocation6 + $0x3cc] sm:$0xf] }
 0x745   :  { %v17600_v22 = vld [vmem:[#allocation6 + $0xcc8] sm:$0xf]  ;;  %v17345_v44 = vor.u32 %v19571_v5, %v17344_v2  ;;  %v10656_v2 = vpop.f32.mrf.mxu2  ;;  %v16450_v5 = vld [vmem:[#allocation6 + $0x3e8] sm:$0xf0] }
 0x746   :  { %10907 = vmatpush.bf16.msrb.mxu2 %v17665_v63  ;;  %v19635_v29 = vld [vmem:[#allocation6 + $0xce4] sm:$0xf0]  ;;  %10882 = vmatpush.bf16.msrb.mxu0 %v17121_v17  ;;  %v17754_v63 = vld [vmem:[#allocation6 + $0xe20] sm:$0xf0]  ;;  %v16130_v48 = vld [vmem:[#allocation6 + $0x168] sm:$0xf0] }
 0x747   :  { %v17601_v28 = vor.u32 %v19635_v29, %v17600_v22  ;;  %v17056_v52 = vld [vmem:[#allocation6 + $0x888] sm:$0xf]  ;;  %v17757_v36 = vor.u32 %v19670_v49, %v17754_v63  ;;  %v19407_v22 = vld [vmem:[#allocation6 + $0x5cc] sm:$0xf] }
 0x748   :  { %10895 = vmatpush.bf16.msrb.mxu1 %v17377_v60  ;;  %v19499_v23 = vld [vmem:[#allocation6 + $0x8a4] sm:$0xf0]  ;;  %v16706_v29 = vld [vmem:[#allocation6 + $0x5e8] sm:$0xf0] }
 0x749   :  { %v17312_v24 = vld [vmem:[#allocation6 + $0xa88] sm:$0xf]  ;;  %v17057_v9 = vor.u32 %v19499_v23, %v17056_v52  ;;  %10821 = vmatpush.bf16.msrb.mxu3 %v17757_v36  ;;  %v16709_v52 = vor.u32 %v19407_v22, %v16706_v29  ;;  %v19271_v23 = vld [vmem:[#allocation6 + $0x18c] sm:$0xf]  ;;  %v10680_v36 = vpop.f32.mrf.mxu0 }
 0x74a   :  { %10908 = vmatpush.bf16.msrb.mxu2 %v17633_v18  ;;  %v19563_v31 = vld [vmem:[#allocation6 + $0xaa4] sm:$0xf0]  ;;  %10883 = vmatpush.bf16.msrb.mxu0 %v17089_v15  ;;  %v19279_v18 = vld [vmem:[#allocation6 + $0x1cc] sm:$0xf] }
 0x74b   :  { %v17568_v38 = vld [vmem:[#allocation6 + $0xc88] sm:$0xf]  ;;  %v17313_v21 = vor.u32 %v19563_v31, %v17312_v24  ;;  %v16162_v24 = vld [vmem:[#allocation6 + $0x1a8] sm:$0xf0] }
 0x74c   :  { %v19627_v50 = vld [vmem:[#allocation6 + $0xca4] sm:$0xf0]  ;;  %10896 = vmatpush.bf16.msrb.mxu1 %v17345_v44  ;;  %v16197_v44 = vor.u32 %v19279_v18, %v16194_v8  ;;  %10822 = vmatmul.bf16.vlgmr.msrb.gmra.mxu3 %v20391_v62  ;;  %v16165_v41 = vor.u32 %v19271_v23, %v16162_v24  ;;  %v19255_v63 = vld [vmem:[#allocation6 + $0x10c] sm:$0xf] }
 0x74d   :  { %v17569_v61 = vor.u32 %v19627_v50, %v17568_v38  ;;  %v17024_v37 = vld [vmem:[#allocation6 + $0x848] sm:$0xf]  ;;  %v16418_v38 = vld [vmem:[#allocation6 + $0x3a8] sm:$0xf0] }
 0x74e   :  { %10909 = vmatpush.bf16.msrb.mxu2 %v17601_v28  ;;  %v19491_v27 = vld [vmem:[#allocation6 + $0x864] sm:$0xf0]  ;;  %10884 = vmatpush.bf16.msrb.mxu0 %v17057_v9  ;;  %v16453_v28 = vor.u32 %v19343_v1, %v16450_v5  ;;  %v19399_v50 = vld [vmem:[#allocation6 + $0x58c] sm:$0xf]  ;;  %v16421_v9 = vor.u32 %v19335_v26, %v16418_v38 }
 0x74f   :  { %v17280_v40 = vld [vmem:[#allocation6 + $0xa48] sm:$0xf]  ;;  %v17025_v4 = vor.u32 %v19491_v27, %v17024_v37  ;;  %v16677_v30 = vor.u32 %v19399_v50, %v16674_v39  ;;  %v16386_v37 = vld [vmem:[#allocation6 + $0x368] sm:$0xf0] }
 0x750   :  { %v19555_v34 = vld [vmem:[#allocation6 + $0xa64] sm:$0xf0]  ;;  %10897 = vmatpush.bf16.msrb.mxu1 %v17313_v21  ;;  %v19327_v21 = vld [vmem:[#allocation6 + $0x34c] sm:$0xf] }
 0x751   :  { %v17536_v46 = vld [vmem:[#allocation6 + $0xc48] sm:$0xf]  ;;  %v17281_v53 = vor.u32 %v19555_v34, %v17280_v40  ;;  %v19391_v27 = vld [vmem:[#allocation6 + $0x54c] sm:$0xf] }
 0x752   :  { %v19619_v32 = vld [vmem:[#allocation6 + $0xc64] sm:$0xf0]  ;;  %10910 = vmatpush.bf16.msrb.mxu2 %v17569_v61  ;;  %10885 = vmatpush.bf16.msrb.mxu0 %v17025_v4  ;;  %v16642_v40 = vld [vmem:[#allocation6 + $0x568] sm:$0xf0]  ;;  %v10706_v38 = vpop.f32.mrf.mxu2 }
 0x753   :  { %v16960_v55 = vld [vmem:[#allocation6 + $0x7c8] sm:$0xf]  ;;  %v17537_v45 = vor.u32 %v19619_v32, %v17536_v46  ;;  %v16133_v46 = vor.u32 %v19263_v0, %v16130_v48  ;;  %v16389_v32 = vor.u32 %v19327_v21, %v16386_v37  ;;  %v16645_v49 = vor.u32 %v19391_v27, %v16642_v40  ;;  %v16098_v4 = vld [vmem:[#allocation6 + $0x128] sm:$0xf0] }
 0x754   :  { %v19475_v51 = vld [vmem:[#allocation6 + $0x7e4] sm:$0xf0]  ;;  %10898 = vmatpush.bf16.msrb.mxu1 %v17281_v53  ;;  %v16354_v53 = vld [vmem:[#allocation6 + $0x328] sm:$0xf0] }
 0x755   :  { %v16992_v54 = vld [vmem:[#allocation6 + $0x808] sm:$0xf]  ;;  %v16961_v60 = vor.u32 %v19475_v51, %v16960_v55  ;;  %v19319_v55 = vld [vmem:[#allocation6 + $0x30c] sm:$0xf] }
 0x756   :  { %v19483_v58 = vld [vmem:[#allocation6 + $0x824] sm:$0xf0]  ;;  %10911 = vmatpush.bf16.msrb.mxu2 %v17537_v45  ;;  %v19383_v45 = vld [vmem:[#allocation6 + $0x50c] sm:$0xf] }
 0x757   :  { %v17248_v13 = vld [vmem:[#allocation6 + $0xa08] sm:$0xf]  ;;  %v16993_v19 = vor.u32 %v19483_v58, %v16992_v54  ;;  %10866 = vmatpush.bf16.msra.mxu3 %v16961_v60  ;;  %v16610_v54 = vld [vmem:[#allocation6 + $0x528] sm:$0xf0]  ;;  %v16357_v60 = vor.u32 %v19319_v55, %v16354_v53 }
 0x758   :  { %v19547_v17 = vld [vmem:[#allocation6 + $0xa24] sm:$0xf0]  ;;  %v16613_v18 = vor.u32 %v19383_v45, %v16610_v54  ;;  %v19247_v8 = vld [vmem:[#allocation6 + $0xcc] sm:$0xf] }
 0x759   :  { %v17504_v59 = vld [vmem:[#allocation6 + $0xc08] sm:$0xf]  ;;  %v17249_v7 = vor.u32 %v19547_v17, %v17248_v13  ;;  %10886 = vmatpush.bf16.msrb.mxu0 %v16993_v19  ;;  %v16101_v17 = vor.u32 %v19255_v63, %v16098_v4  ;;  %v16066_v1 = vld [vmem:[#allocation6 + $0xe8] sm:$0xf0] }
 0x75a   :  { %v19611_v25 = vld [vmem:[#allocation6 + $0xc24] sm:$0xf0]  ;;  %v19311_v2 = vld [vmem:[#allocation6 + $0x2cc] sm:$0xf] }
 0x75b   :  { %v17505_v47 = vor.u32 %v19611_v25, %v17504_v59  ;;  %v16928_v10 = vld [vmem:[#allocation6 + $0x788] sm:$0xf]  ;;  %10899 = vmatpush.bf16.msrb.mxu1 %v17249_v7  ;;  %v10681_v59 = vadd.f32 %v10680_v36, %v20401_v11  ;;  %v10693_v25 = vpop.f32.mrf.mxu1  ;;  %v16322_v19 = vld [vmem:[#allocation6 + $0x2e8] sm:$0xf0] }
 0x75c   :  { %v19467_v15 = vld [vmem:[#allocation6 + $0x7a4] sm:$0xf0]  ;;  %10887 = vmatmul.bf16.vlgmr.msrb.gmra.mxu0 %v20351_v56  ;;  %v19375_v5 = vld [vmem:[#allocation6 + $0x4cc] sm:$0xf] }
 0x75d   :  { %v16929_v31 = vor.u32 %v19467_v15, %v16928_v10  ;;  %10912 = vmatpush.bf16.msrb.mxu2 %v17505_v47  ;;  %v16896_v42 = vld [vmem:[#allocation6 + $0x748] sm:$0xf]  ;;  %10931 = vmatpush.bf16.msra.mxu0 %v16197_v44  ;;  %v16578_v22 = vld [vmem:[#allocation6 + $0x4e8] sm:$0xf0]  ;;  %v10694_v29 = vadd.f32 %v10693_v25, %v10681_v59  ;;  %v16069_v10 = vor.u32 %v19247_v8, %v16066_v1 }
 0x75e   :  { %v19459_v33 = vld [vmem:[#allocation6 + $0x764] sm:$0xf0]  ;;  %10900 = vmatmul.bf16.vlgmr.msrb.gmra.mxu1 %v20353_v16  ;;  %v16325_v15 = vor.u32 %v19311_v2, %v16322_v19  ;;  %v16581_v11 = vor.u32 %v19375_v5, %v16578_v22  ;;  %v19239_v44 = vld [vmem:[#allocation6 + $0x8c] sm:$0xf] }
 0x75f   :  { %10944 = vmatpush.bf16.msra.mxu1 %v16453_v28  ;;  %10867 = vmatpush.bf16.msra.mxu3 %v16929_v31  ;;  %v16897_v61 = vor.u32 %v19459_v33, %v16896_v42  ;;  %v16864_v35 = vld [vmem:[#allocation6 + $0x708] sm:$0xf]  ;;  %v16034_v28 = vld [vmem:[#allocation6 + $0xa8] sm:$0xf0]  ;;  %v20408_v42 = vadd.f32 %v10706_v38, %v10694_v29  ;;  %v10682_v33 = vpop.f32.mrf.mxu0 }
 0x760   :  { %10913 = vmatmul.bf16.vlgmr.msrb.gmra.mxu2 %v20355_v57  ;;  %v19451_v34 = vld [vmem:[#allocation6 + $0x724] sm:$0xf0]  ;;  %v16290_v24 = vld [vmem:[#allocation6 + $0x2a8] sm:$0xf0] }
 0x761   :  { %10957 = vmatpush.bf16.msra.mxu2 %v16709_v52  ;;  %10932 = vmatpush.bf16.msra.mxu0 %v16165_v41  ;;  %v16865_v51 = vor.u32 %v19451_v34, %v16864_v35  ;;  %v16832_v58 = vld [vmem:[#allocation6 + $0x6c8] sm:$0xf]  ;;  %v19303_v52 = vld [vmem:[#allocation6 + $0x28c] sm:$0xf]  ;;  %v16037_v41 = vor.u32 %v19239_v44, %v16034_v28 }
 0x762   :  { %v19443_v13 = vld [vmem:[#allocation6 + $0x6e4] sm:$0xf0]  ;;  %v19367_v26 = vld [vmem:[#allocation6 + $0x48c] sm:$0xf] }
 0x763   :  { %10945 = vmatpush.bf16.msra.mxu1 %v16421_v9  ;;  %10868 = vmatpush.bf16.msra.mxu3 %v16897_v61  ;;  %v16833_v20 = vor.u32 %v19443_v13, %v16832_v58  ;;  %v16800_v7 = vld [vmem:[#allocation6 + $0x688] sm:$0xf]  ;;  %v16546_v31 = vld [vmem:[#allocation6 + $0x4a8] sm:$0xf0]  ;;  %v10695_v9 = vpop.f32.mrf.mxu1 }
 0x764   :  { %v19435_v47 = vld [vmem:[#allocation6 + $0x6a4] sm:$0xf0]  ;;  %v16549_v0 = vor.u32 %v19367_v26, %v16546_v31  ;;  %v19231_v48 = vld [vmem:[#allocation6 + $0x4c] sm:$0xf] }
 0x765   :  { %10958 = vmatpush.bf16.msra.mxu2 %v16677_v30  ;;  %10933 = vmatpush.bf16.msra.mxu0 %v16133_v46  ;;  %v16801_v23 = vor.u32 %v19435_v47, %v16800_v7  ;;  %v16768_v50 = vld [vmem:[#allocation6 + $0x648] sm:$0xf]  ;;  %v16293_v30 = vor.u32 %v19303_v52, %v16290_v24  ;;  %v16002_v21 = vld [vmem:[#allocation6 + $0x68] sm:$0xf0] }
 0x766   :  { %v19427_v39 = vld [vmem:[#allocation6 + $0x664] sm:$0xf0]  ;;  %v19295_v61 = vld [vmem:[#allocation6 + $0x24c] sm:$0xf] }
 0x767   :  { %10946 = vmatpush.bf16.msra.mxu1 %v16389_v32  ;;  %10869 = vmatpush.bf16.msra.mxu3 %v16865_v51  ;;  %v16769_v37 = vor.u32 %v19427_v39, %v16768_v50  ;;  %v16258_v27 = vld [vmem:[#allocation6 + $0x268] sm:$0xf0]  ;;  %v16736_v34 = vld [vmem:[#allocation6 + $0x608] sm:$0xf]  ;;  %v16005_v32 = vor.u32 %v19231_v48, %v16002_v21 }
 0x768   :  { %v19359_v40 = vld [vmem:[#allocation6 + $0x44c] sm:$0xf]  ;;  %v19419_v46 = vld [vmem:[#allocation6 + $0x624] sm:$0xf0]  ;;  %v16261_v4 = vor.u32 %v19295_v61, %v16258_v27 }
 0x769   :  { %10959 = vmatpush.bf16.msra.mxu2 %v16645_v49  ;;  %10934 = vmatpush.bf16.msra.mxu0 %v16101_v17  ;;  %v16514_v35 = vld [vmem:[#allocation6 + $0x468] sm:$0xf0]  ;;  %v17984_v49 = vld [vmem:[#allocation6 + $0xfc8] sm:$0xf]  ;;  %v16737_v54 = vor.u32 %v19419_v46, %v16736_v34  ;;  %v10708_v17 = vpop.f32.mrf.mxu2 }
 0x76a   :  { %v19731_v63 = vld [vmem:[#allocation6 + $0xfe4] sm:$0xf0]  ;;  %v16517_v55 = vor.u32 %v19359_v40, %v16514_v35  ;;  %v19223_v51 = vld [vmem:[#allocation6 + $0xc] sm:$0xf]  ;;  %v8044_v40 = vperm.slane %v20395_v43, 1 }
 0x76b   :  { %10947 = vmatpush.bf16.msra.mxu1 %v16357_v60  ;;  %10870 = vmatpush.bf16.msra.mxu3 %v16833_v20  ;;  %v15970_v53 = vld [vmem:[#allocation6 + $0x28] sm:$0xf0]  ;;  %v17985_v59 = vor.u32 %v19731_v63, %v17984_v49  ;;  %v17952_v5 = vld [vmem:[#allocation6 + $0xf88] sm:$0xf] }
 0x76c   :  { %v19287_v45 = vld [vmem:[#allocation6 + $0x20c] sm:$0xf]  ;;  %v15973_v8 = vor.u32 %v19223_v51, %v15970_v53  ;;  %v19723_v22 = vld [vmem:[#allocation6 + $0xfa4] sm:$0xf0] }
 0x76d   :  { %10960 = vmatpush.bf16.msra.mxu2 %v16613_v18  ;;  %10935 = vmatpush.bf16.msra.mxu0 %v16069_v10  ;;  %v16226_v58 = vld [vmem:[#allocation6 + $0x228] sm:$0xf0]  ;;  %v17953_v28 = vor.u32 %v19723_v22, %v17952_v5  ;;  %v17920_v26 = vld [vmem:[#allocation6 + $0xf48] sm:$0xf] }
 0x76e   :  { %v19351_v13 = vld [vmem:[#allocation6 + $0x40c] sm:$0xf]  ;;  %v16229_v19 = vor.u32 %v19287_v45, %v16226_v58  ;;  %v19715_v31 = vld [vmem:[#allocation6 + $0xf64] sm:$0xf0]  ;;  %v10745_v58 = vpop.f32.mrf.mxu1 }
 0x76f   :  { %10948 = vmatpush.bf16.msra.mxu1 %v16325_v15  ;;  %10871 = vmatpush.bf16.msra.mxu3 %v16801_v23  ;;  %v16482_v36 = vld [vmem:[#allocation6 + $0x428] sm:$0xf0]  ;;  %v17888_v61 = vld [vmem:[#allocation6 + $0xf08] sm:$0xf] }
 0x770   :  { %v19535_v25 = vld [vmem:[#allocation6 + $0x9cc] sm:$0xf]  ;;  %v16485_v29 = vor.u32 %v19351_v13, %v16482_v36  ;;  %v17856_v53 = vld [vmem:[#allocation6 + $0xec8] sm:$0xf] }
 0x771   :  { %10961 = vmatpush.bf16.msra.mxu2 %v16581_v11  ;;  %10936 = vmatpush.bf16.msra.mxu0 %v16037_v41  ;;  %v17218_v60 = vld [vmem:[#allocation6 + $0x9e8] sm:$0xf0]  ;;  %v19699_v45 = vld [vmem:[#allocation6 + $0xee4] sm:$0xf0] }
 0x772   :  { %v19599_v18 = vld [vmem:[#allocation6 + $0xbcc] sm:$0xf]  ;;  %v17221_v7 = vor.u32 %v19535_v25, %v17218_v60  ;;  %v19691_v5 = vld [vmem:[#allocation6 + $0xea4] sm:$0xf0] }
 0x773   :  { %10949 = vmatpush.bf16.msra.mxu1 %v16293_v30  ;;  %10872 = vmatpush.bf16.msra.mxu3 %v16769_v37  ;;  %v17474_v1 = vld [vmem:[#allocation6 + $0xbe8] sm:$0xf0]  ;;  %v17921_v30 = vor.u32 %v19715_v31, %v17920_v26  ;;  %v19707_v37 = vld [vmem:[#allocation6 + $0xf24] sm:$0xf0] }
 0x774   :  { %v19663_v2 = vld [vmem:[#allocation6 + $0xdcc] sm:$0xf]  ;;  %v17477_v47 = vor.u32 %v19599_v18, %v17474_v1  ;;  %v17889_v63 = vor.u32 %v19707_v37, %v17888_v61  ;;  %v17857_v18 = vor.u32 %v19699_v45, %v17856_v53  ;;  %v19683_v26 = vld [vmem:[#allocation6 + $0xe64] sm:$0xf0] }
 0x775   :  { %10962 = vmatpush.bf16.msra.mxu2 %v16549_v0  ;;  %10937 = vmatpush.bf16.msra.mxu0 %v16005_v32  ;;  %v17730_v20 = vld [vmem:[#allocation6 + $0xde8] sm:$0xf0] }
 0x776   :  { %v17733_v10 = vor.u32 %v19663_v2, %v17730_v20  ;;  %v19527_v15 = vld [vmem:[#allocation6 + $0x98c] sm:$0xf] }
 0x777   :  { %10950 = vmatpush.bf16.msra.mxu1 %v16261_v4  ;;  %10873 = vmatpush.bf16.msra.mxu3 %v16737_v54  ;;  %v17186_v11 = vld [vmem:[#allocation6 + $0x9a8] sm:$0xf0]  ;;  %v10732_v54 = vpop.f32.mrf.mxu0 }
 0x778   :  { %v19591_v44 = vld [vmem:[#allocation6 + $0xb8c] sm:$0xf]  ;;  %v17189_v38 = vor.u32 %v19527_v15, %v17186_v11  ;;  %v10733_v43 = vadd.f32 %v10732_v54, %v8044_v40  ;;  %v19675_v40 = vld [vmem:[#allocation6 + $0xe24] sm:$0xf0] }
 0x779   :  { %10963 = vmatpush.bf16.msra.mxu2 %v16517_v55  ;;  %10938 = vmatpush.bf16.msra.mxu0 %v15973_v8  ;;  %v17442_v52 = vld [vmem:[#allocation6 + $0xba8] sm:$0xf0] }
 0x77a   :  { %v19655_v23 = vld [vmem:[#allocation6 + $0xd8c] sm:$0xf]  ;;  %10874 = vmatmul.bf16.vlgmr.msra.gmra.mxu3 %v20331_v6  ;;  %v17445_v50 = vor.u32 %v19591_v44, %v17442_v52  ;;  %v10746_v20 = vadd.f32 %v10745_v58, %v10733_v43  ;;  %v16200_v43 = vld [vmem:[#allocation6 + $0x1d0] sm:$0xf] }
 0x77b   :  { %10918 = vmatpush.bf16.msrb.mxu3 %v17985_v59  ;;  %v17698_v24 = vld [vmem:[#allocation6 + $0xda8] sm:$0xf0]  ;;  %10951 = vmatpush.bf16.msra.mxu1 %v16229_v19  ;;  %v17824_v19 = vld [vmem:[#allocation6 + $0xe88] sm:$0xf] }
 0x77c   :  { %v17701_v39 = vor.u32 %v19655_v23, %v17698_v24  ;;  %v19519_v33 = vld [vmem:[#allocation6 + $0x94c] sm:$0xf]  ;;  %10939 = vmatmul.bf16.vlgmr.msra.gmra.mxu0 %v20325_v3  ;;  %v17825_v11 = vor.u32 %v19691_v5, %v17824_v19  ;;  %v10758_v23 = vpop.f32.mrf.mxu2  ;;  %v17792_v24 = vld [vmem:[#allocation6 + $0xe48] sm:$0xf] }
 0x77d   :  { %10964 = vmatpush.bf16.msra.mxu2 %v16485_v29  ;;  %10983 = vmatpush.bf16.msrb.mxu0 %v17221_v7  ;;  %v17154_v41 = vld [vmem:[#allocation6 + $0x968] sm:$0xf0]  ;;  %v20415_v31 = vadd.f32 %v10758_v23, %v10746_v20 }
 0x77e   :  { %v19583_v9 = vld [vmem:[#allocation6 + $0xb4c] sm:$0xf]  ;;  %10952 = vmatmul.bf16.vlgmr.msra.gmra.mxu1 %v20327_v14  ;;  %v17157_v27 = vor.u32 %v19519_v33, %v17154_v41 }
 0x77f   :  { %10996 = vmatpush.bf16.msrb.mxu1 %v17477_v47  ;;  %10919 = vmatpush.bf16.msrb.mxu3 %v17953_v28  ;;  %v17410_v0 = vld [vmem:[#allocation6 + $0xb68] sm:$0xf0] }
 0x780   :  { %v19647_v48 = vld [vmem:[#allocation6 + $0xd4c] sm:$0xf]  ;;  %10965 = vmatmul.bf16.vlgmr.msra.gmra.mxu2 %v20329_v12  ;;  %v17413_v35 = vor.u32 %v19583_v9, %v17410_v0 }
 0x781   :  { %11009 = vmatpush.bf16.msrb.mxu2 %v17733_v10  ;;  %v17666_v21 = vld [vmem:[#allocation6 + $0xd68] sm:$0xf0]  ;;  %10984 = vmatpush.bf16.msrb.mxu0 %v17189_v38  ;;  %v10734_v38 = vpop.f32.mrf.mxu0 }
 0x782   :  { %v17669_v34 = vor.u32 %v19647_v48, %v17666_v21  ;;  %v19511_v46 = vld [vmem:[#allocation6 + $0x90c] sm:$0xf]  ;;  %v17793_v48 = vor.u32 %v19683_v26, %v17792_v24  ;;  %v16136_v38 = vld [vmem:[#allocation6 + $0x150] sm:$0xf] }
 0x783   :  { %10997 = vmatpush.bf16.msrb.mxu1 %v17445_v50  ;;  %v17122_v32 = vld [vmem:[#allocation6 + $0x928] sm:$0xf0]  ;;  %10920 = vmatpush.bf16.msrb.mxu3 %v17921_v30  ;;  %v10747_v50 = vpop.f32.mrf.mxu1 }
 0x784   :  { %v19575_v49 = vld [vmem:[#allocation6 + $0xb0c] sm:$0xf]  ;;  %v17125_v13 = vor.u32 %v19511_v46, %v17122_v32  ;;  %v10760_v58 = vpop.f32.mrf.mxu2  ;;  %v19268_v50 = vld [vmem:[#allocation6 + $0x16c] sm:$0xf0] }
 0x785   :  { %11010 = vmatpush.bf16.msrb.mxu2 %v17701_v39  ;;  %v17378_v4 = vld [vmem:[#allocation6 + $0xb28] sm:$0xf0]  ;;  %10985 = vmatpush.bf16.msrb.mxu0 %v17157_v27  ;;  %v17760_v27 = vld [vmem:[#allocation6 + $0xe08] sm:$0xf]  ;;  %v16072_v58 = vld [vmem:[#allocation6 + $0xd0] sm:$0xf] }
 0x786   :  { %v19639_v55 = vld [vmem:[#allocation6 + $0xd0c] sm:$0xf]  ;;  %v17381_v36 = vor.u32 %v19575_v49, %v17378_v4 }
 0x787   :  { %v17634_v51 = vld [vmem:[#allocation6 + $0xd28] sm:$0xf0]  ;;  %10998 = vmatpush.bf16.msrb.mxu1 %v17413_v35  ;;  %10921 = vmatpush.bf16.msrb.mxu3 %v17889_v63 }
 0x788   :  { %v17637_v17 = vor.u32 %v19639_v55, %v17634_v51  ;;  %v19503_v59 = vld [vmem:[#allocation6 + $0x8cc] sm:$0xf]  ;;  %v17761_v51 = vor.u32 %v19675_v40, %v17760_v27  ;;  %v16104_v27 = vld [vmem:[#allocation6 + $0x110] sm:$0xf] }
 0x789   :  { %11011 = vmatpush.bf16.msrb.mxu2 %v17669_v34  ;;  %v17090_v25 = vld [vmem:[#allocation6 + $0x8e8] sm:$0xf0]  ;;  %10986 = vmatpush.bf16.msrb.mxu0 %v17125_v13  ;;  %v19260_v40 = vld [vmem:[#allocation6 + $0x12c] sm:$0xf0] }
 0x78a   :  { %v19567_v60 = vld [vmem:[#allocation6 + $0xacc] sm:$0xf]  ;;  %v17093_v22 = vor.u32 %v19503_v59, %v17090_v25  ;;  %v19348_v25 = vld [vmem:[#allocation6 + $0x3ec] sm:$0xf0] }
 0x78b   :  { %v17346_v8 = vld [vmem:[#allocation6 + $0xae8] sm:$0xf0]  ;;  %10999 = vmatpush.bf16.msrb.mxu1 %v17381_v36  ;;  %10922 = vmatpush.bf16.msrb.mxu3 %v17857_v18  ;;  %v19284_v36 = vld [vmem:[#allocation6 + $0x1ec] sm:$0xf0] }
 0x78c   :  { %v19631_v1 = vld [vmem:[#allocation6 + $0xccc] sm:$0xf]  ;;  %v17349_v29 = vor.u32 %v19567_v60, %v17346_v8  ;;  %v16712_v60 = vld [vmem:[#allocation6 + $0x5d0] sm:$0xf]  ;;  %v16201_v19 = vor.u32 %v19284_v36, %v16200_v43 }
 0x78d   :  { %v17602_v2 = vld [vmem:[#allocation6 + $0xce8] sm:$0xf0]  ;;  %11012 = vmatpush.bf16.msrb.mxu2 %v17637_v17  ;;  %10987 = vmatpush.bf16.msrb.mxu0 %v17093_v22  ;;  %v16456_v17 = vld [vmem:[#allocation6 + $0x3d0] sm:$0xf] }
 0x78e   :  { %v17605_v7 = vor.u32 %v19631_v1, %v17602_v2  ;;  %v19495_v47 = vld [vmem:[#allocation6 + $0x88c] sm:$0xf]  ;;  %v19412_v18 = vld [vmem:[#allocation6 + $0x5ec] sm:$0xf0]  ;;  %v16457_v5 = vor.u32 %v19348_v25, %v16456_v17 }
 0x78f   :  { %v17058_v10 = vld [vmem:[#allocation6 + $0x8a8] sm:$0xf0]  ;;  %11000 = vmatpush.bf16.msrb.mxu1 %v17349_v29  ;;  %10923 = vmatpush.bf16.msrb.mxu3 %v17825_v11  ;;  %v16713_v22 = vor.u32 %v19412_v18, %v16712_v60  ;;  %v16168_v29 = vld [vmem:[#allocation6 + $0x190] sm:$0xf] }
 0x790   :  { %v19559_v15 = vld [vmem:[#allocation6 + $0xa8c] sm:$0xf]  ;;  %v17061_v39 = vor.u32 %v19495_v47, %v17058_v10  ;;  %v16424_v47 = vld [vmem:[#allocation6 + $0x390] sm:$0xf] }
 0x791   :  { %v17314_v44 = vld [vmem:[#allocation6 + $0xaa8] sm:$0xf0]  ;;  %11013 = vmatpush.bf16.msrb.mxu2 %v17605_v7  ;;  %v19276_v7 = vld [vmem:[#allocation6 + $0x1ac] sm:$0xf0] }
 0x792   :  { %v19623_v28 = vld [vmem:[#allocation6 + $0xc8c] sm:$0xf]  ;;  %v17317_v33 = vor.u32 %v19559_v15, %v17314_v44  ;;  %10988 = vmatpush.bf16.msrb.mxu0 %v17061_v39  ;;  %v19340_v15 = vld [vmem:[#allocation6 + $0x3ac] sm:$0xf0]  ;;  %v16169_v23 = vor.u32 %v19276_v7, %v16168_v29 }
 0x793   :  { %v17570_v52 = vld [vmem:[#allocation6 + $0xca8] sm:$0xf0]  ;;  %10924 = vmatpush.bf16.msrb.mxu3 %v17793_v48  ;;  %v16680_v11 = vld [vmem:[#allocation6 + $0x590] sm:$0xf]  ;;  %v16425_v24 = vor.u32 %v19340_v15, %v16424_v47 }
 0x794   :  { %v17573_v41 = vor.u32 %v19623_v28, %v17570_v52  ;;  %v19487_v9 = vld [vmem:[#allocation6 + $0x84c] sm:$0xf]  ;;  %11001 = vmatpush.bf16.msrb.mxu1 %v17317_v33  ;;  %v19404_v44 = vld [vmem:[#allocation6 + $0x5ac] sm:$0xf0] }
 0x795   :  { %v17026_v30 = vld [vmem:[#allocation6 + $0x868] sm:$0xf0]  ;;  %v16681_v26 = vor.u32 %v19404_v44, %v16680_v11  ;;  %v16392_v39 = vld [vmem:[#allocation6 + $0x350] sm:$0xf] }
 0x796   :  { %v19551_v0 = vld [vmem:[#allocation6 + $0xa4c] sm:$0xf]  ;;  %v17029_v35 = vor.u32 %v19487_v9, %v17026_v30  ;;  %11014 = vmatpush.bf16.msrb.mxu2 %v17573_v41  ;;  %v19332_v41 = vld [vmem:[#allocation6 + $0x36c] sm:$0xf0] }
 0x797   :  { %v17282_v21 = vld [vmem:[#allocation6 + $0xa68] sm:$0xf0]  ;;  %10925 = vmatpush.bf16.msrb.mxu3 %v17761_v51  ;;  %v16648_v9 = vld [vmem:[#allocation6 + $0x550] sm:$0xf] }
 0x798   :  { %v19615_v61 = vld [vmem:[#allocation6 + $0xc4c] sm:$0xf]  ;;  %v17285_v32 = vor.u32 %v19551_v0, %v17282_v21  ;;  %10989 = vmatpush.bf16.msrb.mxu0 %v17029_v35  ;;  %v19396_v30 = vld [vmem:[#allocation6 + $0x56c] sm:$0xf0]  ;;  %v16137_v21 = vor.u32 %v19268_v50, %v16136_v38  ;;  %v20423_v51 = vpop.f32.mrf.mxu1 }
 0x799   :  { %v17538_v37 = vld [vmem:[#allocation6 + $0xc68] sm:$0xf0]  ;;  %v16360_v35 = vld [vmem:[#allocation6 + $0x310] sm:$0xf] }
 0x79a   :  { %v19471_v34 = vld [vmem:[#allocation6 + $0x7cc] sm:$0xf]  ;;  %v17541_v49 = vor.u32 %v19615_v61, %v17538_v37  ;;  %11002 = vmatpush.bf16.msrb.mxu1 %v17285_v32  ;;  %10926 = vmatmul.bf16.vlgmr.msrb.gmra.mxu3 %v20391_v62  ;;  %v16393_v61 = vor.u32 %v19332_v41, %v16392_v39  ;;  %v16649_v37 = vor.u32 %v19396_v30, %v16648_v9  ;;  %v16616_v32 = vld [vmem:[#allocation6 + $0x510] sm:$0xf] }
 0x79b   :  { %v16962_v46 = vld [vmem:[#allocation6 + $0x7e8] sm:$0xf0]  ;;  %v16328_v43 = vld [vmem:[#allocation6 + $0x2d0] sm:$0xf] }
 0x79c   :  { %v19479_v63 = vld [vmem:[#allocation6 + $0x80c] sm:$0xf]  ;;  %v16965_v13 = vor.u32 %v19471_v34, %v16962_v46  ;;  %11015 = vmatpush.bf16.msrb.mxu2 %v17541_v49  ;;  %v19324_v46 = vld [vmem:[#allocation6 + $0x32c] sm:$0xf0] }
 0x79d   :  { %v16994_v4 = vld [vmem:[#allocation6 + $0x828] sm:$0xf0]  ;;  %v19388_v49 = vld [vmem:[#allocation6 + $0x52c] sm:$0xf0] }
 0x79e   :  { %v19543_v55 = vld [vmem:[#allocation6 + $0xa0c] sm:$0xf]  ;;  %v16997_v59 = vor.u32 %v19479_v63, %v16994_v4  ;;  %10970 = vmatpush.bf16.msra.mxu3 %v16965_v13  ;;  %v20421_v63 = vpop.f32.mrf.mxu0  ;;  %v19252_v13 = vld [vmem:[#allocation6 + $0xec] sm:$0xf0] }
 0x79f   :  { %v17250_v53 = vld [vmem:[#allocation6 + $0xa28] sm:$0xf0]  ;;  %v19316_v17 = vld [vmem:[#allocation6 + $0x2ec] sm:$0xf0] }
 0x7a0   :  { %v19607_v45 = vld [vmem:[#allocation6 + $0xc0c] sm:$0xf]  ;;  %v17253_v8 = vor.u32 %v19543_v55, %v17250_v53  ;;  %10990 = vmatpush.bf16.msrb.mxu0 %v16997_v59  ;;  %v16105_v53 = vor.u32 %v19260_v40, %v16104_v27  ;;  %v16584_v59 = vld [vmem:[#allocation6 + $0x4d0] sm:$0xf] }
 0x7a1   :  { %v17506_v54 = vld [vmem:[#allocation6 + $0xc28] sm:$0xf0]  ;;  %v19380_v25 = vld [vmem:[#allocation6 + $0x4ec] sm:$0xf0] }
 0x7a2   :  { %v19463_v1 = vld [vmem:[#allocation6 + $0x78c] sm:$0xf]  ;;  %v17509_v20 = vor.u32 %v19607_v45, %v17506_v54  ;;  %11003 = vmatpush.bf16.msrb.mxu1 %v17253_v8  ;;  %v16361_v45 = vor.u32 %v19324_v46, %v16360_v35  ;;  %v16617_v54 = vor.u32 %v19388_v49, %v16616_v32  ;;  %v16073_v8 = vor.u32 %v19252_v13, %v16072_v58  ;;  %v19308_v7 = vld [vmem:[#allocation6 + $0x2ac] sm:$0xf0] }
 0x7a3   :  { %v16930_v2 = vld [vmem:[#allocation6 + $0x7a8] sm:$0xf0]  ;;  %10991 = vmatmul.bf16.vlgmr.msrb.gmra.mxu0 %v20351_v56  ;;  %v16552_v47 = vld [vmem:[#allocation6 + $0x490] sm:$0xf] }
 0x7a4   :  { %v16933_v10 = vor.u32 %v19463_v1, %v16930_v2  ;;  %v19455_v28 = vld [vmem:[#allocation6 + $0x74c] sm:$0xf]  ;;  %11016 = vmatpush.bf16.msrb.mxu2 %v17509_v20  ;;  %11035 = vmatpush.bf16.msra.mxu0 %v16201_v19  ;;  %v16329_v1 = vor.u32 %v19316_v17, %v16328_v43  ;;  %v16585_v2 = vor.u32 %v19380_v25, %v16584_v59  ;;  %v16040_v20 = vld [vmem:[#allocation6 + $0x90] sm:$0xf] }
 0x7a5   :  { %v16898_v52 = vld [vmem:[#allocation6 + $0x768] sm:$0xf0]  ;;  %11004 = vmatmul.bf16.vlgmr.msrb.gmra.mxu1 %v20353_v16  ;;  %v19244_v19 = vld [vmem:[#allocation6 + $0xac] sm:$0xf0] }
 0x7a6   :  { %11048 = vmatpush.bf16.msra.mxu1 %v16457_v5  ;;  %10971 = vmatpush.bf16.msra.mxu3 %v16933_v10  ;;  %v16901_v33 = vor.u32 %v19455_v28, %v16898_v52  ;;  %v19447_v0 = vld [vmem:[#allocation6 + $0x70c] sm:$0xf]  ;;  %v16296_v5 = vld [vmem:[#allocation6 + $0x290] sm:$0xf]  ;;  %v10786_v15 = vpop.f32.mrf.mxu0  ;;  %v10799_v28 = vpop.f32.mrf.mxu1  ;;  %v16041_v52 = vor.u32 %v19244_v19, %v16040_v20 }
 0x7a7   :  { %11017 = vmatmul.bf16.vlgmr.msrb.gmra.mxu2 %v20355_v57  ;;  %v16866_v48 = vld [vmem:[#allocation6 + $0x728] sm:$0xf0]  ;;  %v19372_v10 = vld [vmem:[#allocation6 + $0x4ac] sm:$0xf0] }
 0x7a8   :  { %11061 = vmatpush.bf16.msra.mxu2 %v16713_v22  ;;  %11036 = vmatpush.bf16.msra.mxu0 %v16169_v23  ;;  %v16869_v34 = vor.u32 %v19447_v0, %v16866_v48  ;;  %v19439_v4 = vld [vmem:[#allocation6 + $0x6cc] sm:$0xf]  ;;  %v20425_v22 = vpop.f32.mrf.mxu2  ;;  %v16297_v23 = vor.u32 %v19308_v7, %v16296_v5  ;;  %v19236_v38 = vld [vmem:[#allocation6 + $0x6c] sm:$0xf0] }
 0x7a9   :  { %v16834_v55 = vld [vmem:[#allocation6 + $0x6e8] sm:$0xf0]  ;;  %v16264_v50 = vld [vmem:[#allocation6 + $0x250] sm:$0xf] }
 0x7aa   :  { %11049 = vmatpush.bf16.msra.mxu1 %v16425_v24  ;;  %10972 = vmatpush.bf16.msra.mxu3 %v16901_v33  ;;  %v16837_v36 = vor.u32 %v19439_v4, %v16834_v55  ;;  %v19431_v60 = vld [vmem:[#allocation6 + $0x68c] sm:$0xf]  ;;  %v16553_v24 = vor.u32 %v19372_v10, %v16552_v47  ;;  %v19300_v33 = vld [vmem:[#allocation6 + $0x26c] sm:$0xf0] }
 0x7ab   :  { %v16802_v18 = vld [vmem:[#allocation6 + $0x6a8] sm:$0xf0]  ;;  %v16520_v41 = vld [vmem:[#allocation6 + $0x450] sm:$0xf] }
 0x7ac   :  { %11062 = vmatpush.bf16.msra.mxu2 %v16681_v26  ;;  %11037 = vmatpush.bf16.msra.mxu0 %v16137_v21  ;;  %v16805_v29 = vor.u32 %v19431_v60, %v16802_v18  ;;  %v19423_v11 = vld [vmem:[#allocation6 + $0x64c] sm:$0xf]  ;;  %v16008_v26 = vld [vmem:[#allocation6 + $0x50] sm:$0xf] }
 0x7ad   :  { %v16770_v44 = vld [vmem:[#allocation6 + $0x668] sm:$0xf0]  ;;  %v19364_v9 = vld [vmem:[#allocation6 + $0x46c] sm:$0xf0]  ;;  %v16009_v48 = vor.u32 %v19236_v38, %v16008_v26 }
 0x7ae   :  { %11050 = vmatpush.bf16.msra.mxu1 %v16393_v61  ;;  %10973 = vmatpush.bf16.msra.mxu3 %v16869_v34  ;;  %v16773_v39 = vor.u32 %v19423_v11, %v16770_v44  ;;  %v19415_v30 = vld [vmem:[#allocation6 + $0x60c] sm:$0xf]  ;;  %v16521_v27 = vor.u32 %v19364_v9, %v16520_v41  ;;  %v15976_v40 = vld [vmem:[#allocation6 + $0x10] sm:$0xf] }
 0x7af   :  { %v16738_v0 = vld [vmem:[#allocation6 + $0x628] sm:$0xf0]  ;;  %v19228_v35 = vld [vmem:[#allocation6 + $0x2c] sm:$0xf0] }
 0x7b0   :  { %11063 = vmatpush.bf16.msra.mxu2 %v16649_v37  ;;  %11038 = vmatpush.bf16.msra.mxu0 %v16105_v53  ;;  %v19727_v21 = vld [vmem:[#allocation6 + $0xfcc] sm:$0xf]  ;;  %v16265_v37 = vor.u32 %v19300_v33, %v16264_v50  ;;  %v16232_v34 = vld [vmem:[#allocation6 + $0x210] sm:$0xf]  ;;  %v10812_v46 = vpop.f32.mrf.mxu2  ;;  %v16741_v32 = vor.u32 %v19415_v30, %v16738_v0  ;;  %v15977_v13 = vor.u32 %v19228_v35, %v15976_v40  ;;  %v20431_v0 = vld [vmem:[#allocation7] sm:$0xff] }
 0x7b1   :  { %v17986_v61 = vld [vmem:[#allocation6 + $0xfe8] sm:$0xf0]  ;;  %v19292_v49 = vld [vmem:[#allocation6 + $0x22c] sm:$0xf0] }
 0x7b2   :  { %11051 = vmatpush.bf16.msra.mxu1 %v16361_v45  ;;  %10974 = vmatpush.bf16.msra.mxu3 %v16837_v36  ;;  %v16488_v4 = vld [vmem:[#allocation6 + $0x410] sm:$0xf]  ;;  %v17989_v53 = vor.u32 %v19727_v21, %v17986_v61  ;;  %v16233_v59 = vor.u32 %v19292_v49, %v16232_v34  ;;  %v19719_v25 = vld [vmem:[#allocation6 + $0xf8c] sm:$0xf] }
 0x7b3   :  { %v19356_v55 = vld [vmem:[#allocation6 + $0x42c] sm:$0xf0]  ;;  %v17954_v60 = vld [vmem:[#allocation6 + $0xfa8] sm:$0xf0] }
 0x7b4   :  { %11064 = vmatpush.bf16.msra.mxu2 %v16617_v54  ;;  %11039 = vmatpush.bf16.msra.mxu0 %v16073_v8  ;;  %v17224_v45 = vld [vmem:[#allocation6 + $0x9d0] sm:$0xf]  ;;  %v16489_v18 = vor.u32 %v19356_v55, %v16488_v4  ;;  %v19711_v15 = vld [vmem:[#allocation6 + $0xf4c] sm:$0xf]  ;;  %v10719_v4 = vpop.f32.mrf.mxu3 }
 0x7b5   :  { %v19540_v54 = vld [vmem:[#allocation6 + $0x9ec] sm:$0xf0]  ;;  %v17922_v11 = vld [vmem:[#allocation6 + $0xf68] sm:$0xf0] }
 0x7b6   :  { %11052 = vmatpush.bf16.msra.mxu1 %v16329_v1  ;;  %10975 = vmatpush.bf16.msra.mxu3 %v16805_v29  ;;  %v17480_v58 = vld [vmem:[#allocation6 + $0xbd0] sm:$0xf]  ;;  %v17225_v8 = vor.u32 %v19540_v54, %v17224_v45  ;;  %v17957_v29 = vor.u32 %v19719_v25, %v17954_v60  ;;  %v17925_v38 = vor.u32 %v19711_v15, %v17922_v11  ;;  %v19703_v41 = vld [vmem:[#allocation6 + $0xf0c] sm:$0xf]  ;;  %v10836_v49 = vpop.f32.mrf.mxu0 }
 0x7b7   :  { %v19604_v43 = vld [vmem:[#allocation6 + $0xbec] sm:$0xf0]  ;;  %v17890_v9 = vld [vmem:[#allocation6 + $0xf28] sm:$0xf0] }
 0x7b8   :  { %11065 = vmatpush.bf16.msra.mxu2 %v16585_v2  ;;  %11040 = vmatpush.bf16.msra.mxu0 %v16041_v52  ;;  %v17736_v36 = vld [vmem:[#allocation6 + $0xdd0] sm:$0xf]  ;;  %v17481_v1 = vor.u32 %v19604_v43, %v17480_v58  ;;  %v17893_v35 = vor.u32 %v19703_v41, %v17890_v9  ;;  %v19695_v55 = vld [vmem:[#allocation6 + $0xecc] sm:$0xf]  ;;  %v10849_v54 = vpop.f32.mrf.mxu1  ;;  %v20435_v58 = vadd.f32 %v10719_v4, %v20408_v42 }
 0x7b9   :  { %v19668_v17 = vld [vmem:[#allocation6 + $0xdec] sm:$0xf0] }
 0x7ba   :  { %11053 = vmatpush.bf16.msra.mxu1 %v16297_v23  ;;  %10976 = vmatpush.bf16.msra.mxu3 %v16773_v39  ;;  %v17737_v2 = vor.u32 %v19668_v17, %v17736_v36  ;;  %v17192_v20 = vld [vmem:[#allocation6 + $0x990] sm:$0xf] }
 0x7bb   :  { %v19532_v19 = vld [vmem:[#allocation6 + $0x9ac] sm:$0xf0] }
 0x7bc   :  { %11066 = vmatpush.bf16.msra.mxu2 %v16553_v24  ;;  %11041 = vmatpush.bf16.msra.mxu0 %v16009_v48  ;;  %v17448_v5 = vld [vmem:[#allocation6 + $0xb90] sm:$0xf]  ;;  %v17193_v44 = vor.u32 %v19532_v19, %v17192_v20  ;;  %v8045_v48 = vperm.slane %v20431_v0, 2  ;;  %v19687_v20 = vld [vmem:[#allocation6 + $0xe8c] sm:$0xf] }
 0x7bd   :  { %v19596_v7 = vld [vmem:[#allocation6 + $0xbac] sm:$0xf0]  ;;  %v17826_v19 = vld [vmem:[#allocation6 + $0xea8] sm:$0xf0] }
 0x7be   :  { %11054 = vmatpush.bf16.msra.mxu1 %v16265_v37  ;;  %10977 = vmatpush.bf16.msra.mxu3 %v16741_v32  ;;  %v17704_v47 = vld [vmem:[#allocation6 + $0xd90] sm:$0xf]  ;;  %v17449_v28 = vor.u32 %v19596_v7, %v17448_v5  ;;  %v10837_v45 = vadd.f32 %v10836_v49, %v8045_v48  ;;  %v17829_v11 = vor.u32 %v19687_v20, %v17826_v19  ;;  %v16458_v19 = vld [vmem:[#allocation6 + $0x3f0] sm:$0xf0] }
 0x7bf   :  { %v19660_v10 = vld [vmem:[#allocation6 + $0xdac] sm:$0xf0] }
 0x7c0   :  { %11067 = vmatpush.bf16.msra.mxu2 %v16521_v27  ;;  %11042 = vmatpush.bf16.msra.mxu0 %v15977_v13  ;;  %v17705_v52 = vor.u32 %v19660_v10, %v17704_v47  ;;  %v17160_v23 = vld [vmem:[#allocation6 + $0x950] sm:$0xf]  ;;  %v10850_v60 = vadd.f32 %v10849_v54, %v10837_v45  ;;  %v10862_v15 = vpop.f32.mrf.mxu2 }
 0x7c1   :  { %10978 = vmatmul.bf16.vlgmr.msra.gmra.mxu3 %v20331_v6  ;;  %v19524_v24 = vld [vmem:[#allocation6 + $0x96c] sm:$0xf0] }
 0x7c2   :  { %11022 = vmatpush.bf16.msrb.mxu3 %v17989_v53  ;;  %11055 = vmatpush.bf16.msra.mxu1 %v16233_v59  ;;  %v17416_v26 = vld [vmem:[#allocation6 + $0xb50] sm:$0xf]  ;;  %v17161_v30 = vor.u32 %v19524_v24, %v17160_v23  ;;  %v17858_v53 = vld [vmem:[#allocation6 + $0xee8] sm:$0xf0]  ;;  %v20437_v23 = vadd.f32 %v10862_v15, %v10850_v60  ;;  %v10838_v24 = vpop.f32.mrf.mxu0 }
 0x7c3   :  { %11043 = vmatmul.bf16.vlgmr.msra.gmra.mxu0 %v20325_v3  ;;  %v19588_v50 = vld [vmem:[#allocation6 + $0xb6c] sm:$0xf0]  ;;  %v16170_v24 = vld [vmem:[#allocation6 + $0x1b0] sm:$0xf0] }
 0x7c4   :  { %11068 = vmatpush.bf16.msra.mxu2 %v16489_v18  ;;  %11087 = vmatpush.bf16.msrb.mxu0 %v17225_v8  ;;  %v17672_v39 = vld [vmem:[#allocation6 + $0xd50] sm:$0xf]  ;;  %v17417_v21 = vor.u32 %v19588_v50, %v17416_v26  ;;  %v17861_v18 = vor.u32 %v19695_v55, %v17858_v53  ;;  %v10721_v26 = vpop.f32.mrf.mxu3  ;;  %v17794_v50 = vld [vmem:[#allocation6 + $0xe68] sm:$0xf0] }
 0x7c5   :  { %v19652_v33 = vld [vmem:[#allocation6 + $0xd6c] sm:$0xf0]  ;;  %11056 = vmatmul.bf16.vlgmr.msra.gmra.mxu1 %v20327_v14 }
 0x7c6   :  { %11100 = vmatpush.bf16.msrb.mxu1 %v17481_v1  ;;  %11023 = vmatpush.bf16.msrb.mxu3 %v17957_v29  ;;  %v17673_v61 = vor.u32 %v19652_v33, %v17672_v39  ;;  %v17128_v37 = vld [vmem:[#allocation6 + $0x910] sm:$0xf]  ;;  %v10851_v39 = vpop.f32.mrf.mxu1 }
 0x7c7   :  { %11069 = vmatmul.bf16.vlgmr.msra.gmra.mxu2 %v20329_v12  ;;  %v19516_v27 = vld [vmem:[#allocation6 + $0x92c] sm:$0xf0]  ;;  %v16682_v39 = vld [vmem:[#allocation6 + $0x5b0] sm:$0xf0] }
 0x7c8   :  { %11113 = vmatpush.bf16.msrb.mxu2 %v17737_v2  ;;  %11088 = vmatpush.bf16.msrb.mxu0 %v17193_v44  ;;  %v17384_v40 = vld [vmem:[#allocation6 + $0xb10] sm:$0xf]  ;;  %v17129_v13 = vor.u32 %v19516_v27, %v17128_v37 }
 0x7c9   :  { %v19580_v34 = vld [vmem:[#allocation6 + $0xb2c] sm:$0xf0] }
 0x7ca   :  { %11101 = vmatpush.bf16.msrb.mxu1 %v17449_v28  ;;  %11024 = vmatpush.bf16.msrb.mxu3 %v17925_v38  ;;  %v17640_v46 = vld [vmem:[#allocation6 + $0xd10] sm:$0xf]  ;;  %v17385_v43 = vor.u32 %v19580_v34, %v17384_v40  ;;  %v19679_v38 = vld [vmem:[#allocation6 + $0xe4c] sm:$0xf] }
 0x7cb   :  { %v19644_v32 = vld [vmem:[#allocation6 + $0xd2c] sm:$0xf0]  ;;  %v17762_v34 = vld [vmem:[#allocation6 + $0xe28] sm:$0xf0] }
 0x7cc   :  { %11114 = vmatpush.bf16.msrb.mxu2 %v17705_v52  ;;  %11089 = vmatpush.bf16.msrb.mxu0 %v17161_v30  ;;  %v17641_v36 = vor.u32 %v19644_v32, %v17640_v46  ;;  %v17096_v17 = vld [vmem:[#allocation6 + $0x8d0] sm:$0xf]  ;;  %v10771_v60 = vpop.f32.mrf.mxu3 }
 0x7cd   :  { %v19508_v59 = vld [vmem:[#allocation6 + $0x8ec] sm:$0xf0] }
 0x7ce   :  { %11102 = vmatpush.bf16.msrb.mxu1 %v17417_v21  ;;  %v17352_v25 = vld [vmem:[#allocation6 + $0xad0] sm:$0xf]  ;;  %11025 = vmatpush.bf16.msrb.mxu3 %v17893_v35  ;;  %v17097_v5 = vor.u32 %v19508_v59, %v17096_v17  ;;  %v19671_v35 = vld [vmem:[#allocation6 + $0xe0c] sm:$0xf] }
 0x7cf   :  { %v19572_v8 = vld [vmem:[#allocation6 + $0xaec] sm:$0xf0] }
 0x7d0   :  { %11115 = vmatpush.bf16.msrb.mxu2 %v17673_v61  ;;  %v17608_v1 = vld [vmem:[#allocation6 + $0xcd0] sm:$0xf]  ;;  %11090 = vmatpush.bf16.msrb.mxu0 %v17129_v13  ;;  %v17353_v42 = vor.u32 %v19572_v8, %v17352_v25  ;;  %v17797_v61 = vor.u32 %v19679_v38, %v17794_v50  ;;  %v10864_v13 = vpop.f32.mrf.mxu2  ;;  %v16202_v8 = vld [vmem:[#allocation6 + $0x1f0] sm:$0xf0] }
 0x7d1   :  { %v19636_v2 = vld [vmem:[#allocation6 + $0xcec] sm:$0xf0]  ;;  %v16426_v38 = vld [vmem:[#allocation6 + $0x3b0] sm:$0xf0] }
 0x7d2   :  { %11103 = vmatpush.bf16.msrb.mxu1 %v17385_v43  ;;  %v17609_v29 = vor.u32 %v19636_v2, %v17608_v1  ;;  %v17064_v7 = vld [vmem:[#allocation6 + $0x890] sm:$0xf]  ;;  %11026 = vmatpush.bf16.msrb.mxu3 %v17861_v18  ;;  %v17765_v43 = vor.u32 %v19671_v35, %v17762_v34  ;;  %v19280_v18 = vld [vmem:[#allocation6 + $0x1d4] sm:$0xf]  ;;  %v10772_v2 = vadd.f32 %v10771_v60, %v20415_v31 }
 0x7d3   :  { %v19500_v47 = vld [vmem:[#allocation6 + $0x8ac] sm:$0xf0]  ;;  %v19344_v1 = vld [vmem:[#allocation6 + $0x3d4] sm:$0xf] }
 0x7d4   :  { %11116 = vmatpush.bf16.msrb.mxu2 %v17641_v36  ;;  %v17320_v10 = vld [vmem:[#allocation6 + $0xa90] sm:$0xf]  ;;  %11091 = vmatpush.bf16.msrb.mxu0 %v17097_v5  ;;  %v17065_v33 = vor.u32 %v19500_v47, %v17064_v7  ;;  %v19408_v5 = vld [vmem:[#allocation6 + $0x5d4] sm:$0xf] }
 0x7d5   :  { %v19564_v44 = vld [vmem:[#allocation6 + $0xaac] sm:$0xf0]  ;;  %v19336_v31 = vld [vmem:[#allocation6 + $0x394] sm:$0xf] }
 0x7d6   :  { %v17576_v28 = vld [vmem:[#allocation6 + $0xc90] sm:$0xf]  ;;  %11104 = vmatpush.bf16.msrb.mxu1 %v17353_v42  ;;  %v17321_v41 = vor.u32 %v19564_v44, %v17320_v10  ;;  %11027 = vmatpush.bf16.msrb.mxu3 %v17829_v11  ;;  %v16714_v42 = vld [vmem:[#allocation6 + $0x5f0] sm:$0xf0]  ;;  %v10785_v10 = vadd.f32 %v20421_v63, %v10772_v2  ;;  %v16205_v11 = vor.u32 %v19280_v18, %v16202_v8 }
 0x7d7   :  { %v19628_v52 = vld [vmem:[#allocation6 + $0xcac] sm:$0xf0]  ;;  %v16461_v44 = vor.u32 %v19344_v1, %v16458_v19  ;;  %v19400_v50 = vld [vmem:[#allocation6 + $0x594] sm:$0xf] }
 0x7d8   :  { %11117 = vmatpush.bf16.msrb.mxu2 %v17609_v29  ;;  %v17577_v9 = vor.u32 %v19628_v52, %v17576_v28  ;;  %v17032_v30 = vld [vmem:[#allocation6 + $0x850] sm:$0xf]  ;;  %11092 = vmatpush.bf16.msrb.mxu0 %v17065_v33  ;;  %v16717_v28 = vor.u32 %v19408_v5, %v16714_v42  ;;  %v19272_v52 = vld [vmem:[#allocation6 + $0x194] sm:$0xf]  ;;  %v10798_v33 = vadd.f32 %v20423_v51, %v10785_v10 }
 0x7d9   :  { %v19492_v48 = vld [vmem:[#allocation6 + $0x86c] sm:$0xf0]  ;;  %v16394_v35 = vld [vmem:[#allocation6 + $0x370] sm:$0xf0] }
 0x7da   :  { %v17288_v21 = vld [vmem:[#allocation6 + $0xa50] sm:$0xf]  ;;  %v17033_v46 = vor.u32 %v19492_v48, %v17032_v30  ;;  %11105 = vmatpush.bf16.msrb.mxu1 %v17321_v41  ;;  %11028 = vmatpush.bf16.msrb.mxu3 %v17797_v61  ;;  %v10811_v30 = vadd.f32 %v20425_v22, %v10798_v33  ;;  %v16429_v48 = vor.u32 %v19336_v31, %v16426_v38  ;;  %v10773_v61 = vpop.f32.mrf.mxu3  ;;  %v19392_v34 = vld [vmem:[#allocation6 + $0x554] sm:$0xf] }
 0x7db   :  { %v19556_v37 = vld [vmem:[#allocation6 + $0xa6c] sm:$0xf0]  ;;  %v20449_v18 = vpop.f32.mrf.mxu1  ;;  %v16074_v19 = vld [vmem:[#allocation6 + $0xf0] sm:$0xf0] }
 0x7dc   :  { %v17544_v27 = vld [vmem:[#allocation6 + $0xc50] sm:$0xf]  ;;  %11118 = vmatpush.bf16.msrb.mxu2 %v17577_v9  ;;  %v17289_v4 = vor.u32 %v19556_v37, %v17288_v21  ;;  %11093 = vmatpush.bf16.msrb.mxu0 %v17033_v46  ;;  %v16173_v9 = vor.u32 %v19272_v52, %v16170_v24  ;;  %v16685_v21 = vor.u32 %v19400_v50, %v16682_v39  ;;  %v19264_v37 = vld [vmem:[#allocation6 + $0x154] sm:$0xf] }
 0x7dd   :  { %v19620_v40 = vld [vmem:[#allocation6 + $0xc6c] sm:$0xf0]  ;;  %v16650_v46 = vld [vmem:[#allocation6 + $0x570] sm:$0xf0] }
 0x7de   :  { %v16968_v32 = vld [vmem:[#allocation6 + $0x7d0] sm:$0xf]  ;;  %v17545_v55 = vor.u32 %v19620_v40, %v17544_v27  ;;  %11106 = vmatpush.bf16.msrb.mxu1 %v17289_v4  ;;  %11029 = vmatpush.bf16.msrb.mxu3 %v17765_v43  ;;  %v16138_v27 = vld [vmem:[#allocation6 + $0x170] sm:$0xf0] }
 0x7df   :  { %v19476_v49 = vld [vmem:[#allocation6 + $0x7ec] sm:$0xf0]  ;;  %v19328_v40 = vld [vmem:[#allocation6 + $0x354] sm:$0xf] }
 0x7e0   :  { %v17000_v53 = vld [vmem:[#allocation6 + $0x810] sm:$0xf]  ;;  %v16969_v25 = vor.u32 %v19476_v49, %v16968_v32  ;;  %11119 = vmatpush.bf16.msrb.mxu2 %v17545_v55  ;;  %v16141_v49 = vor.u32 %v19264_v37, %v16138_v27  ;;  %v16397_v4 = vor.u32 %v19328_v40, %v16394_v35  ;;  %v16653_v55 = vor.u32 %v19392_v34, %v16650_v46  ;;  %v16362_v43 = vld [vmem:[#allocation6 + $0x330] sm:$0xf0] }
 0x7e1   :  { %v19484_v45 = vld [vmem:[#allocation6 + $0x82c] sm:$0xf0]  ;;  %11030 = vmatmul.bf16.vlgmr.msrb.gmra.mxu3 %v20391_v62  ;;  %v19312_v5 = vld [vmem:[#allocation6 + $0x2d4] sm:$0xf] }
 0x7e2   :  { %v17256_v54 = vld [vmem:[#allocation6 + $0xa10] sm:$0xf]  ;;  %v17001_v20 = vor.u32 %v19484_v45, %v17000_v53  ;;  %11074 = vmatpush.bf16.msra.mxu3 %v16969_v25  ;;  %v19256_v53 = vld [vmem:[#allocation6 + $0x114] sm:$0xf]  ;;  %v10823_v10 = vpop.f32.mrf.mxu3 }
 0x7e3   :  { %v19548_v36 = vld [vmem:[#allocation6 + $0xa2c] sm:$0xf0]  ;;  %v16106_v45 = vld [vmem:[#allocation6 + $0x130] sm:$0xf0]  ;;  %v20453_v50 = vpop.f32.mrf.mxu2 }
 0x7e4   :  { %v17512_v17 = vld [vmem:[#allocation6 + $0xc10] sm:$0xf]  ;;  %v17257_v29 = vor.u32 %v19548_v36, %v17256_v54  ;;  %11094 = vmatpush.bf16.msrb.mxu0 %v17001_v20  ;;  %v19320_v54 = vld [vmem:[#allocation6 + $0x314] sm:$0xf]  ;;  %v16109_v8 = vor.u32 %v19256_v53, %v16106_v45 }
 0x7e5   :  { %v19612_v59 = vld [vmem:[#allocation6 + $0xc2c] sm:$0xf0]  ;;  %v19384_v36 = vld [vmem:[#allocation6 + $0x514] sm:$0xf]  ;;  %v16365_v1 = vor.u32 %v19320_v54, %v16362_v43 }
 0x7e6   :  { %v16936_v7 = vld [vmem:[#allocation6 + $0x790] sm:$0xf]  ;;  %v17513_v15 = vor.u32 %v19612_v59, %v17512_v17  ;;  %11107 = vmatpush.bf16.msrb.mxu1 %v17257_v29  ;;  %v16618_v17 = vld [vmem:[#allocation6 + $0x530] sm:$0xf0]  ;;  %v20447_v59 = vpop.f32.mrf.mxu0 }
 0x7e7   :  { %v19468_v47 = vld [vmem:[#allocation6 + $0x7ac] sm:$0xf0]  ;;  %11095 = vmatmul.bf16.vlgmr.msrb.gmra.mxu0 %v20351_v56  ;;  %v16621_v2 = vor.u32 %v19384_v36, %v16618_v17  ;;  %v19248_v20 = vld [vmem:[#allocation6 + $0xd4] sm:$0xf] }
 0x7e8   :  { %v16937_v26 = vor.u32 %v19468_v47, %v16936_v7  ;;  %v16904_v41 = vld [vmem:[#allocation6 + $0x750] sm:$0xf]  ;;  %11120 = vmatpush.bf16.msrb.mxu2 %v17513_v15  ;;  %11139 = vmatpush.bf16.msra.mxu0 %v16205_v11  ;;  %v16330_v29 = vld [vmem:[#allocation6 + $0x2f0] sm:$0xf0] }
 0x7e9   :  { %v19460_v63 = vld [vmem:[#allocation6 + $0x76c] sm:$0xf0]  ;;  %11108 = vmatmul.bf16.vlgmr.msrb.gmra.mxu1 %v20353_v16  ;;  %v19376_v7 = vld [vmem:[#allocation6 + $0x4d4] sm:$0xf]  ;;  %v16333_v52 = vor.u32 %v19312_v5, %v16330_v29 }
 0x7ea   :  { %11152 = vmatpush.bf16.msra.mxu1 %v16461_v44  ;;  %11075 = vmatpush.bf16.msra.mxu3 %v16937_v26  ;;  %v16905_v51 = vor.u32 %v19460_v63, %v16904_v41  ;;  %v16872_v22 = vld [vmem:[#allocation6 + $0x710] sm:$0xf]  ;;  %v16586_v47 = vld [vmem:[#allocation6 + $0x4f0] sm:$0xf0]  ;;  %v20451_v44 = vadd.f32 %v10823_v10, %v10811_v30  ;;  %v10903_v30 = vpop.f32.mrf.mxu1 }
 0x7eb   :  { %11121 = vmatmul.bf16.vlgmr.msrb.gmra.mxu2 %v20355_v57  ;;  %v19452_v32 = vld [vmem:[#allocation6 + $0x72c] sm:$0xf0]  ;;  %v16589_v24 = vor.u32 %v19376_v7, %v16586_v47  ;;  %v19240_v31 = vld [vmem:[#allocation6 + $0x94] sm:$0xf] }
 0x7ec   :  { %11165 = vmatpush.bf16.msra.mxu2 %v16717_v28  ;;  %11140 = vmatpush.bf16.msra.mxu0 %v16173_v9  ;;  %v16873_v13 = vor.u32 %v19452_v32, %v16872_v22  ;;  %v16840_v25 = vld [vmem:[#allocation6 + $0x6d0] sm:$0xf]  ;;  %v16077_v28 = vor.u32 %v19248_v20, %v16074_v19  ;;  %v16042_v26 = vld [vmem:[#allocation6 + $0xb0] sm:$0xf0] }
 0x7ed   :  { %v19444_v60 = vld [vmem:[#allocation6 + $0x6ec] sm:$0xf0]  ;;  %v19304_v38 = vld [vmem:[#allocation6 + $0x294] sm:$0xf]  ;;  %v16045_v61 = vor.u32 %v19240_v31, %v16042_v26 }
 0x7ee   :  { %11153 = vmatpush.bf16.msra.mxu1 %v16429_v48  ;;  %11076 = vmatpush.bf16.msra.mxu3 %v16905_v51  ;;  %v16841_v42 = vor.u32 %v19444_v60, %v16840_v25  ;;  %v16808_v15 = vld [vmem:[#allocation6 + $0x690] sm:$0xf]  ;;  %v16298_v33 = vld [vmem:[#allocation6 + $0x2b0] sm:$0xf0]  ;;  %v10890_v9 = vpop.f32.mrf.mxu0  ;;  %v10916_v60 = vpop.f32.mrf.mxu2 }
 0x7ef   :  { %v19436_v11 = vld [vmem:[#allocation6 + $0x6ac] sm:$0xf0]  ;;  %v19368_v41 = vld [vmem:[#allocation6 + $0x494] sm:$0xf]  ;;  %v16301_v37 = vor.u32 %v19304_v38, %v16298_v33 }
 0x7f0   :  { %11166 = vmatpush.bf16.msra.mxu2 %v16685_v21  ;;  %11141 = vmatpush.bf16.msra.mxu0 %v16141_v49  ;;  %v16809_v39 = vor.u32 %v19436_v11, %v16808_v15  ;;  %v16554_v63 = vld [vmem:[#allocation6 + $0x4b0] sm:$0xf0]  ;;  %v16776_v48 = vld [vmem:[#allocation6 + $0x650] sm:$0xf]  ;;  %v10825_v49 = vpop.f32.mrf.mxu3 }
 0x7f1   :  { %v19428_v21 = vld [vmem:[#allocation6 + $0x66c] sm:$0xf0]  ;;  %v16557_v27 = vor.u32 %v19368_v41, %v16554_v63  ;;  %v19232_v40 = vld [vmem:[#allocation6 + $0x54] sm:$0xf] }
 0x7f2   :  { %11154 = vmatpush.bf16.msra.mxu1 %v16397_v4  ;;  %11077 = vmatpush.bf16.msra.mxu3 %v16873_v13  ;;  %v16010_v51 = vld [vmem:[#allocation6 + $0x70] sm:$0xf0]  ;;  %v16777_v34 = vor.u32 %v19428_v21, %v16776_v48  ;;  %v16744_v4 = vld [vmem:[#allocation6 + $0x610] sm:$0xf] }
 0x7f3   :  { %v19296_v35 = vld [vmem:[#allocation6 + $0x254] sm:$0xf]  ;;  %v16013_v53 = vor.u32 %v19232_v40, %v16010_v51  ;;  %v17992_v45 = vld [vmem:[#allocation6 + $0xfd0] sm:$0xf] }
 0x7f4   :  { %11167 = vmatpush.bf16.msra.mxu2 %v16653_v55  ;;  %11142 = vmatpush.bf16.msra.mxu0 %v16109_v8  ;;  %v16266_v46 = vld [vmem:[#allocation6 + $0x270] sm:$0xf0]  ;;  %v19420_v55 = vld [vmem:[#allocation6 + $0x62c] sm:$0xf0] }
 0x7f5   :  { %v19360_v22 = vld [vmem:[#allocation6 + $0x454] sm:$0xf]  ;;  %v19732_v54 = vld [vmem:[#allocation6 + $0xfec] sm:$0xf0]  ;;  %v16269_v13 = vor.u32 %v19296_v35, %v16266_v46  ;;  %v16745_v8 = vor.u32 %v19420_v55, %v16744_v4 }
 0x7f6   :  { %11155 = vmatpush.bf16.msra.mxu1 %v16365_v1  ;;  %11078 = vmatpush.bf16.msra.mxu3 %v16841_v42  ;;  %v16522_v32 = vld [vmem:[#allocation6 + $0x470] sm:$0xf0]  ;;  %v17993_v19 = vor.u32 %v19732_v54, %v17992_v45  ;;  %v17928_v30 = vld [vmem:[#allocation6 + $0xf50] sm:$0xf]  ;;  %v8046_v45 = vperm.slane %v20431_v0, 3 }
 0x7f7   :  { %v16525_v43 = vor.u32 %v19360_v22, %v16522_v32  ;;  %v19224_v36 = vld [vmem:[#allocation6 + $0x14] sm:$0xf]  ;;  %v17896_v4 = vld [vmem:[#allocation6 + $0xf10] sm:$0xf] }
 0x7f8   :  { %11168 = vmatpush.bf16.msra.mxu2 %v16621_v2  ;;  %11143 = vmatpush.bf16.msra.mxu0 %v16077_v28  ;;  %v15978_v17 = vld [vmem:[#allocation6 + $0x30] sm:$0xf0]  ;;  %v17960_v28 = vld [vmem:[#allocation6 + $0xf90] sm:$0xf] }
 0x7f9   :  { %v19288_v25 = vld [vmem:[#allocation6 + $0x214] sm:$0xf]  ;;  %v15981_v7 = vor.u32 %v19224_v36, %v15978_v17  ;;  %v19708_v55 = vld [vmem:[#allocation6 + $0xf2c] sm:$0xf0] }
 0x7fa   :  { %11156 = vmatpush.bf16.msra.mxu1 %v16333_v52  ;;  %11079 = vmatpush.bf16.msra.mxu3 %v16809_v39  ;;  %v16234_v1 = vld [vmem:[#allocation6 + $0x230] sm:$0xf0]  ;;  %v19724_v52 = vld [vmem:[#allocation6 + $0xfac] sm:$0xf0] }
 0x7fb   :  { %v19352_v2 = vld [vmem:[#allocation6 + $0x414] sm:$0xf]  ;;  %v16237_v11 = vor.u32 %v19288_v25, %v16234_v1  ;;  %v17961_v63 = vor.u32 %v19724_v52, %v17960_v28  ;;  %v17897_v25 = vor.u32 %v19708_v55, %v17896_v4 }
 0x7fc   :  { %11169 = vmatpush.bf16.msra.mxu2 %v16589_v24  ;;  %11144 = vmatpush.bf16.msra.mxu0 %v16045_v61  ;;  %v16490_v20 = vld [vmem:[#allocation6 + $0x430] sm:$0xf0]  ;;  %v19716_v61 = vld [vmem:[#allocation6 + $0xf6c] sm:$0xf0] }
 0x7fd   :  { %v19536_v5 = vld [vmem:[#allocation6 + $0x9d4] sm:$0xf]  ;;  %v16493_v24 = vor.u32 %v19352_v2, %v16490_v20  ;;  %v17929_v46 = vor.u32 %v19716_v61, %v17928_v30  ;;  %v10940_v2 = vpop.f32.mrf.mxu0  ;;  %v17864_v20 = vld [vmem:[#allocation6 + $0xed0] sm:$0xf]  ;;  %v10875_v52 = vpop.f32.mrf.mxu3 }
 0x7fe   :  { %11157 = vmatpush.bf16.msra.mxu1 %v16301_v37  ;;  %11080 = vmatpush.bf16.msra.mxu3 %v16777_v34  ;;  %v17226_v42 = vld [vmem:[#allocation6 + $0x9f0] sm:$0xf0] }
 0x7ff   :  { %v19600_v29 = vld [vmem:[#allocation6 + $0xbd4] sm:$0xf]  ;;  %v17229_v31 = vor.u32 %v19536_v5, %v17226_v42  ;;  %v10941_v5 = vadd.f32 %v10940_v2, %v8046_v45  ;;  %v10953_v42 = vpop.f32.mrf.mxu1 }
 0x800   :  { %11170 = vmatpush.bf16.msra.mxu2 %v16557_v27  ;;  %11145 = vmatpush.bf16.msra.mxu0 %v16013_v53  ;;  %v17482_v47 = vld [vmem:[#allocation6 + $0xbf0] sm:$0xf0] }
 0x801   :  { %v19664_v10 = vld [vmem:[#allocation6 + $0xdd4] sm:$0xf]  ;;  %v17485_v26 = vor.u32 %v19600_v29, %v17482_v47 }
 0x802   :  { %v17738_v15 = vld [vmem:[#allocation6 + $0xdf0] sm:$0xf0]  ;;  %11158 = vmatpush.bf16.msra.mxu1 %v16269_v13  ;;  %11081 = vmatpush.bf16.msra.mxu3 %v16745_v8 }
 0x803   :  { %v17741_v38 = vor.u32 %v19664_v10, %v17738_v15  ;;  %v19528_v39 = vld [vmem:[#allocation6 + $0x994] sm:$0xf] }
 0x804   :  { %11171 = vmatpush.bf16.msra.mxu2 %v16525_v43  ;;  %v17194_v33 = vld [vmem:[#allocation6 + $0x9b0] sm:$0xf0]  ;;  %11146 = vmatpush.bf16.msra.mxu0 %v15981_v7 }
 0x805   :  { %v19592_v41 = vld [vmem:[#allocation6 + $0xb94] sm:$0xf]  ;;  %11082 = vmatmul.bf16.vlgmr.msra.gmra.mxu3 %v20331_v6  ;;  %v17197_v37 = vor.u32 %v19528_v39, %v17194_v33  ;;  %v17832_v39 = vld [vmem:[#allocation6 + $0xe90] sm:$0xf] }
 0x806   :  { %11126 = vmatpush.bf16.msrb.mxu3 %v17993_v19  ;;  %v17450_v9 = vld [vmem:[#allocation6 + $0xbb0] sm:$0xf0]  ;;  %11159 = vmatpush.bf16.msra.mxu1 %v16237_v11  ;;  %v19700_v19 = vld [vmem:[#allocation6 + $0xeec] sm:$0xf0]  ;;  %v10954_v11 = vadd.f32 %v10953_v42, %v10941_v5 }
 0x807   :  { %v19656_v48 = vld [vmem:[#allocation6 + $0xd94] sm:$0xf]  ;;  %v17453_v27 = vor.u32 %v19592_v41, %v17450_v9  ;;  %11147 = vmatmul.bf16.vlgmr.msra.gmra.mxu0 %v20325_v3  ;;  %v17865_v28 = vor.u32 %v19700_v19, %v17864_v20  ;;  %v19692_v33 = vld [vmem:[#allocation6 + $0xeac] sm:$0xf0] }
 0x808   :  { %v17706_v21 = vld [vmem:[#allocation6 + $0xdb0] sm:$0xf0]  ;;  %11172 = vmatpush.bf16.msra.mxu2 %v16493_v24  ;;  %11191 = vmatpush.bf16.msrb.mxu0 %v17229_v31 }
 0x809   :  { %v17709_v40 = vor.u32 %v19656_v48, %v17706_v21  ;;  %v19520_v51 = vld [vmem:[#allocation6 + $0x954] sm:$0xf]  ;;  %11160 = vmatmul.bf16.vlgmr.msra.gmra.mxu1 %v20327_v14 }
 0x80a   :  { %11204 = vmatpush.bf16.msrb.mxu1 %v17485_v26  ;;  %v17162_v35 = vld [vmem:[#allocation6 + $0x970] sm:$0xf0]  ;;  %11127 = vmatpush.bf16.msrb.mxu3 %v17961_v63 }
 0x80b   :  { %v19584_v34 = vld [vmem:[#allocation6 + $0xb54] sm:$0xf]  ;;  %11173 = vmatmul.bf16.vlgmr.msra.gmra.mxu2 %v20329_v12  ;;  %v17165_v53 = vor.u32 %v19520_v51, %v17162_v35 }
 0x80c   :  { %11217 = vmatpush.bf16.msrb.mxu2 %v17741_v38  ;;  %v17418_v22 = vld [vmem:[#allocation6 + $0xb70] sm:$0xf0]  ;;  %11192 = vmatpush.bf16.msrb.mxu0 %v17197_v37  ;;  %v10876_v38 = vadd.f32 %v10875_v52, %v20437_v23  ;;  %v10966_v37 = vpop.f32.mrf.mxu2  ;;  %v19285_v52 = vld [vmem:[#allocation6 + $0x1f4] sm:$0xf0] }
 0x80d   :  { %v19648_v32 = vld [vmem:[#allocation6 + $0xd54] sm:$0xf]  ;;  %v17421_v54 = vor.u32 %v19584_v34, %v17418_v22  ;;  %v20462_v23 = vadd.f32 %v10966_v37, %v10954_v11  ;;  %v10942_v34 = vpop.f32.mrf.mxu0  ;;  %v19684_v22 = vld [vmem:[#allocation6 + $0xe6c] sm:$0xf0]  ;;  %v19277_v37 = vld [vmem:[#allocation6 + $0x1b4] sm:$0xf0] }
 0x80e   :  { %v17674_v49 = vld [vmem:[#allocation6 + $0xd70] sm:$0xf0]  ;;  %11205 = vmatpush.bf16.msrb.mxu1 %v17453_v27  ;;  %11128 = vmatpush.bf16.msrb.mxu3 %v17929_v46  ;;  %v10889_v63 = vadd.f32 %v20447_v59, %v10876_v38  ;;  %v17833_v27 = vor.u32 %v19692_v33, %v17832_v39  ;;  %v17800_v46 = vld [vmem:[#allocation6 + $0xe50] sm:$0xf]  ;;  %v10955_v59 = vpop.f32.mrf.mxu1  ;;  %v16720_v38 = vld [vmem:[#allocation6 + $0x5d8] sm:$0xf] }
 0x80f   :  { %v17677_v13 = vor.u32 %v19648_v32, %v17674_v49  ;;  %v19512_v43 = vld [vmem:[#allocation6 + $0x914] sm:$0xf]  ;;  %v19413_v39 = vld [vmem:[#allocation6 + $0x5f4] sm:$0xf0] }
 0x810   :  { %11218 = vmatpush.bf16.msrb.mxu2 %v17709_v40  ;;  %v17130_v36 = vld [vmem:[#allocation6 + $0x930] sm:$0xf0]  ;;  %11193 = vmatpush.bf16.msrb.mxu0 %v17165_v53  ;;  %v10902_v32 = vadd.f32 %v20449_v18, %v10889_v63  ;;  %v17768_v18 = vld [vmem:[#allocation6 + $0xe10] sm:$0xf]  ;;  %v19405_v34 = vld [vmem:[#allocation6 + $0x5b4] sm:$0xf0] }
 0x811   :  { %v19576_v17 = vld [vmem:[#allocation6 + $0xb14] sm:$0xf]  ;;  %v17133_v29 = vor.u32 %v19512_v43, %v17130_v36  ;;  %v17801_v43 = vor.u32 %v19684_v22, %v17800_v46  ;;  %v10877_v36 = vpop.f32.mrf.mxu3 }
 0x812   :  { %v17386_v60 = vld [vmem:[#allocation6 + $0xb30] sm:$0xf0]  ;;  %11206 = vmatpush.bf16.msrb.mxu1 %v17421_v54  ;;  %11129 = vmatpush.bf16.msrb.mxu3 %v17897_v25  ;;  %v19397_v36 = vld [vmem:[#allocation6 + $0x574] sm:$0xf0] }
 0x813   :  { %v19640_v8 = vld [vmem:[#allocation6 + $0xd14] sm:$0xf]  ;;  %v17389_v0 = vor.u32 %v19576_v17, %v17386_v60 }
 0x814   :  { %v17642_v1 = vld [vmem:[#allocation6 + $0xd30] sm:$0xf0]  ;;  %11219 = vmatpush.bf16.msrb.mxu2 %v17677_v13  ;;  %11194 = vmatpush.bf16.msrb.mxu0 %v17133_v29  ;;  %v20466_v13 = vadd.f32 %v20453_v50, %v10902_v32 }
 0x815   :  { %v17645_v7 = vor.u32 %v19640_v8, %v17642_v1  ;;  %v19504_v47 = vld [vmem:[#allocation6 + $0x8d4] sm:$0xf]  ;;  %v19676_v8 = vld [vmem:[#allocation6 + $0xe2c] sm:$0xf0] }
 0x816   :  { %v17098_v10 = vld [vmem:[#allocation6 + $0x8f0] sm:$0xf0]  ;;  %11207 = vmatpush.bf16.msrb.mxu1 %v17389_v0  ;;  %11130 = vmatpush.bf16.msrb.mxu3 %v17865_v28  ;;  %v10968_v0 = vpop.f32.mrf.mxu2  ;;  %v16208_v28 = vld [vmem:[#allocation6 + $0x1d8] sm:$0xf] }
 0x817   :  { %v19568_v15 = vld [vmem:[#allocation6 + $0xad4] sm:$0xf]  ;;  %v17101_v41 = vor.u32 %v19504_v47, %v17098_v10 }
 0x818   :  { %v17354_v24 = vld [vmem:[#allocation6 + $0xaf0] sm:$0xf0]  ;;  %11220 = vmatpush.bf16.msrb.mxu2 %v17645_v7  ;;  %v17769_v7 = vor.u32 %v19676_v8, %v17768_v18 }
 0x819   :  { %v19632_v31 = vld [vmem:[#allocation6 + $0xcd4] sm:$0xf]  ;;  %v17357_v9 = vor.u32 %v19568_v15, %v17354_v24  ;;  %11195 = vmatpush.bf16.msrb.mxu0 %v17101_v41  ;;  %v16464_v24 = vld [vmem:[#allocation6 + $0x3d8] sm:$0xf] }
 0x81a   :  { %v17610_v26 = vld [vmem:[#allocation6 + $0xcf0] sm:$0xf0]  ;;  %11131 = vmatpush.bf16.msrb.mxu3 %v17833_v27  ;;  %v16432_v27 = vld [vmem:[#allocation6 + $0x398] sm:$0xf] }
 0x81b   :  { %v17613_v48 = vor.u32 %v19632_v31, %v17610_v26  ;;  %v19496_v21 = vld [vmem:[#allocation6 + $0x894] sm:$0xf]  ;;  %11208 = vmatpush.bf16.msrb.mxu1 %v17357_v9  ;;  %v19349_v26 = vld [vmem:[#allocation6 + $0x3f4] sm:$0xf0] }
 0x81c   :  { %v17066_v30 = vld [vmem:[#allocation6 + $0x8b0] sm:$0xf0] }
 0x81d   :  { %v19560_v61 = vld [vmem:[#allocation6 + $0xa94] sm:$0xf]  ;;  %v17069_v49 = vor.u32 %v19496_v21, %v17066_v30  ;;  %11221 = vmatpush.bf16.msrb.mxu2 %v17613_v48  ;;  %v16209_v48 = vor.u32 %v19285_v52, %v16208_v28  ;;  %v16465_v21 = vor.u32 %v19349_v26, %v16464_v24  ;;  %v16721_v30 = vor.u32 %v19413_v39, %v16720_v38  ;;  %v16080_v28 = vld [vmem:[#allocation6 + $0xd8] sm:$0xf]  ;;  %v10927_v26 = vpop.f32.mrf.mxu3 }
 0x81e   :  { %v17322_v40 = vld [vmem:[#allocation6 + $0xab0] sm:$0xf0]  ;;  %11132 = vmatpush.bf16.msrb.mxu3 %v17801_v43  ;;  %v16656_v43 = vld [vmem:[#allocation6 + $0x558] sm:$0xf] }
 0x81f   :  { %v19624_v51 = vld [vmem:[#allocation6 + $0xc94] sm:$0xf]  ;;  %v17325_v4 = vor.u32 %v19560_v61, %v17322_v40  ;;  %11196 = vmatpush.bf16.msrb.mxu0 %v17069_v49  ;;  %v16176_v61 = vld [vmem:[#allocation6 + $0x198] sm:$0xf]  ;;  %v16657_v8 = vor.u32 %v19397_v36, %v16656_v43 }
 0x820   :  { %v17578_v35 = vld [vmem:[#allocation6 + $0xcb0] sm:$0xf0]  ;;  %v16177_v32 = vor.u32 %v19277_v37, %v16176_v61  ;;  %v19253_v52 = vld [vmem:[#allocation6 + $0xf4] sm:$0xf0] }
 0x821   :  { %v17581_v55 = vor.u32 %v19624_v51, %v17578_v35  ;;  %v19488_v53 = vld [vmem:[#allocation6 + $0x854] sm:$0xf]  ;;  %11209 = vmatpush.bf16.msrb.mxu1 %v17325_v4  ;;  %v19341_v51 = vld [vmem:[#allocation6 + $0x3b4] sm:$0xf0] }
 0x822   :  { %v17034_v45 = vld [vmem:[#allocation6 + $0x870] sm:$0xf0]  ;;  %11133 = vmatpush.bf16.msrb.mxu3 %v17769_v7  ;;  %v16688_v35 = vld [vmem:[#allocation6 + $0x598] sm:$0xf]  ;;  %v16433_v59 = vor.u32 %v19341_v51, %v16432_v27 }
 0x823   :  { %v19552_v54 = vld [vmem:[#allocation6 + $0xa54] sm:$0xf]  ;;  %v17037_v1 = vor.u32 %v19488_v53, %v17034_v45  ;;  %11222 = vmatpush.bf16.msrb.mxu2 %v17581_v55  ;;  %v16689_v49 = vor.u32 %v19405_v34, %v16688_v35  ;;  %v16144_v4 = vld [vmem:[#allocation6 + $0x158] sm:$0xf] }
 0x824   :  { %v17290_v17 = vld [vmem:[#allocation6 + $0xa70] sm:$0xf0]  ;;  %v19269_v55 = vld [vmem:[#allocation6 + $0x174] sm:$0xf0] }
 0x825   :  { %v19616_v25 = vld [vmem:[#allocation6 + $0xc54] sm:$0xf]  ;;  %v17293_v19 = vor.u32 %v19552_v54, %v17290_v17  ;;  %11197 = vmatpush.bf16.msrb.mxu0 %v17037_v1  ;;  %11134 = vmatmul.bf16.vlgmr.msrb.gmra.mxu3 %v20391_v62  ;;  %v16400_v53 = vld [vmem:[#allocation6 + $0x358] sm:$0xf]  ;;  %v10929_v36 = vpop.f32.mrf.mxu3 }
 0x826   :  { %v17546_v60 = vld [vmem:[#allocation6 + $0xc70] sm:$0xf0]  ;;  %v19333_v54 = vld [vmem:[#allocation6 + $0x374] sm:$0xf0] }
 0x827   :  { %v19472_v2 = vld [vmem:[#allocation6 + $0x7d4] sm:$0xf]  ;;  %v17549_v5 = vor.u32 %v19616_v25, %v17546_v60  ;;  %11210 = vmatpush.bf16.msrb.mxu1 %v17293_v19  ;;  %v16145_v60 = vor.u32 %v19269_v55, %v16144_v4  ;;  %v16401_v18 = vor.u32 %v19333_v54, %v16400_v53  ;;  %v16112_v1 = vld [vmem:[#allocation6 + $0x118] sm:$0xf] }
 0x828   :  { %v16970_v20 = vld [vmem:[#allocation6 + $0x7f0] sm:$0xf0]  ;;  %v16336_v24 = vld [vmem:[#allocation6 + $0x2d8] sm:$0xf] }
 0x829   :  { %v19480_v42 = vld [vmem:[#allocation6 + $0x814] sm:$0xf]  ;;  %v16973_v11 = vor.u32 %v19472_v2, %v16970_v20  ;;  %11223 = vmatpush.bf16.msrb.mxu2 %v17549_v5  ;;  %v19261_v2 = vld [vmem:[#allocation6 + $0x134] sm:$0xf0] }
 0x82a   :  { %v17002_v29 = vld [vmem:[#allocation6 + $0x830] sm:$0xf0]  ;;  %v16368_v20 = vld [vmem:[#allocation6 + $0x318] sm:$0xf] }
 0x82b   :  { %v19544_v50 = vld [vmem:[#allocation6 + $0xa14] sm:$0xf]  ;;  %v17005_v31 = vor.u32 %v19480_v42, %v17002_v29  ;;  %11178 = vmatpush.bf16.msra.mxu3 %v16973_v11  ;;  %v19325_v5 = vld [vmem:[#allocation6 + $0x334] sm:$0xf0] }
 0x82c   :  { %v17258_v47 = vld [vmem:[#allocation6 + $0xa30] sm:$0xf0]  ;;  %v16624_v42 = vld [vmem:[#allocation6 + $0x518] sm:$0xf] }
 0x82d   :  { %v19608_v10 = vld [vmem:[#allocation6 + $0xc14] sm:$0xf]  ;;  %v17261_v33 = vor.u32 %v19544_v50, %v17258_v47  ;;  %11198 = vmatpush.bf16.msrb.mxu0 %v17005_v31  ;;  %v19389_v29 = vld [vmem:[#allocation6 + $0x534] sm:$0xf0]  ;;  %v20472_v50 = vpop.f32.mrf.mxu0  ;;  %v20474_v47 = vpop.f32.mrf.mxu1 }
 0x82e   :  { %v17514_v15 = vld [vmem:[#allocation6 + $0xc30] sm:$0xf0]  ;;  %v16625_v11 = vor.u32 %v19389_v29, %v16624_v42  ;;  %v19317_v38 = vld [vmem:[#allocation6 + $0x2f4] sm:$0xf0] }
 0x82f   :  { %v19464_v41 = vld [vmem:[#allocation6 + $0x794] sm:$0xf]  ;;  %v17517_v9 = vor.u32 %v19608_v10, %v17514_v15  ;;  %11211 = vmatpush.bf16.msrb.mxu1 %v17261_v33  ;;  %v16113_v10 = vor.u32 %v19261_v2, %v16112_v1  ;;  %v16369_v15 = vor.u32 %v19325_v5, %v16368_v20  ;;  %v16592_v39 = vld [vmem:[#allocation6 + $0x4d8] sm:$0xf] }
 0x830   :  { %v16938_v63 = vld [vmem:[#allocation6 + $0x7b0] sm:$0xf0]  ;;  %11199 = vmatmul.bf16.vlgmr.msrb.gmra.mxu0 %v20351_v56  ;;  %v19381_v33 = vld [vmem:[#allocation6 + $0x4f4] sm:$0xf0] }
 0x831   :  { %v16941_v40 = vor.u32 %v19464_v41, %v16938_v63  ;;  %v19456_v46 = vld [vmem:[#allocation6 + $0x754] sm:$0xf]  ;;  %11224 = vmatpush.bf16.msrb.mxu2 %v17517_v9  ;;  %11243 = vmatpush.bf16.msra.mxu0 %v16209_v48  ;;  %v20477_v41 = vadd.f32 %v10927_v26, %v20466_v13  ;;  %v16081_v48 = vor.u32 %v19253_v52, %v16080_v28  ;;  %v16048_v61 = vld [vmem:[#allocation6 + $0x98] sm:$0xf] }
 0x832   :  { %v16906_v22 = vld [vmem:[#allocation6 + $0x770] sm:$0xf0]  ;;  %11212 = vmatmul.bf16.vlgmr.msrb.gmra.mxu1 %v20353_v16  ;;  %v19245_v37 = vld [vmem:[#allocation6 + $0xb4] sm:$0xf0] }
 0x833   :  { %11256 = vmatpush.bf16.msra.mxu1 %v16465_v21  ;;  %11179 = vmatpush.bf16.msra.mxu3 %v16941_v40  ;;  %v16909_v45 = vor.u32 %v19456_v46, %v16906_v22  ;;  %v19448_v17 = vld [vmem:[#allocation6 + $0x714] sm:$0xf]  ;;  %v16337_v21 = vor.u32 %v19317_v38, %v16336_v24  ;;  %v16304_v27 = vld [vmem:[#allocation6 + $0x298] sm:$0xf]  ;;  %v20479_v40 = vpop.f32.mrf.mxu2 }
 0x834   :  { %11225 = vmatmul.bf16.vlgmr.msrb.gmra.mxu2 %v20355_v57  ;;  %v16874_v25 = vld [vmem:[#allocation6 + $0x730] sm:$0xf0]  ;;  %v19309_v35 = vld [vmem:[#allocation6 + $0x2b4] sm:$0xf0] }
 0x835   :  { %11269 = vmatpush.bf16.msra.mxu2 %v16721_v30  ;;  %11244 = vmatpush.bf16.msra.mxu0 %v16177_v32  ;;  %v16877_v19 = vor.u32 %v19448_v17, %v16874_v25  ;;  %v19440_v0 = vld [vmem:[#allocation6 + $0x6d4] sm:$0xf]  ;;  %v16593_v30 = vor.u32 %v19381_v33, %v16592_v39  ;;  %v16560_v34 = vld [vmem:[#allocation6 + $0x498] sm:$0xf]  ;;  %v10994_v13 = vpop.f32.mrf.mxu0  ;;  %v16305_v4 = vor.u32 %v19309_v35, %v16304_v27 }
 0x836   :  { %v16842_v7 = vld [vmem:[#allocation6 + $0x6f0] sm:$0xf0]  ;;  %v19373_v46 = vld [vmem:[#allocation6 + $0x4b4] sm:$0xf0] }
 0x837   :  { %11257 = vmatpush.bf16.msra.mxu1 %v16433_v59  ;;  %11180 = vmatpush.bf16.msra.mxu3 %v16909_v45  ;;  %v16845_v31 = vor.u32 %v19440_v0, %v16842_v7  ;;  %v19432_v63 = vld [vmem:[#allocation6 + $0x694] sm:$0xf]  ;;  %v11007_v59 = vpop.f32.mrf.mxu1  ;;  %v16561_v55 = vor.u32 %v19373_v46, %v16560_v34  ;;  %v16016_v53 = vld [vmem:[#allocation6 + $0x58] sm:$0xf] }
 0x838   :  { %v16810_v9 = vld [vmem:[#allocation6 + $0x6b0] sm:$0xf0]  ;;  %v19237_v45 = vld [vmem:[#allocation6 + $0x74] sm:$0xf0] }
 0x839   :  { %11270 = vmatpush.bf16.msra.mxu2 %v16689_v49  ;;  %11245 = vmatpush.bf16.msra.mxu0 %v16145_v60  ;;  %v16813_v51 = vor.u32 %v19432_v63, %v16810_v9  ;;  %v19424_v22 = vld [vmem:[#allocation6 + $0x654] sm:$0xf]  ;;  %v16049_v49 = vor.u32 %v19245_v37, %v16048_v61  ;;  %v16272_v54 = vld [vmem:[#allocation6 + $0x258] sm:$0xf]  ;;  %v16017_v1 = vor.u32 %v19237_v45, %v16016_v53 }
 0x83a   :  { %v16778_v32 = vld [vmem:[#allocation6 + $0x670] sm:$0xf0]  ;;  %v19301_v17 = vld [vmem:[#allocation6 + $0x274] sm:$0xf0] }
 0x83b   :  { %11258 = vmatpush.bf16.msra.mxu1 %v16401_v18  ;;  %11181 = vmatpush.bf16.msra.mxu3 %v16877_v19  ;;  %v16781_v43 = vor.u32 %v19424_v22, %v16778_v32  ;;  %v16528_v25 = vld [vmem:[#allocation6 + $0x458] sm:$0xf]  ;;  %v19416_v18 = vld [vmem:[#allocation6 + $0x614] sm:$0xf]  ;;  %v16273_v19 = vor.u32 %v19301_v17, %v16272_v54  ;;  %v11020_v7 = vpop.f32.mrf.mxu2 }
 0x83c   :  { %v19365_v60 = vld [vmem:[#allocation6 + $0x474] sm:$0xf0]  ;;  %v19728_v2 = vld [vmem:[#allocation6 + $0xfd4] sm:$0xf] }
 0x83d   :  { %11271 = vmatpush.bf16.msra.mxu2 %v16657_v8  ;;  %11246 = vmatpush.bf16.msra.mxu0 %v16113_v10  ;;  %v16746_v8 = vld [vmem:[#allocation6 + $0x630] sm:$0xf0]  ;;  %v16529_v5 = vor.u32 %v19365_v60, %v16528_v25  ;;  %v15984_v42 = vld [vmem:[#allocation6 + $0x18] sm:$0xf] }
 0x83e   :  { %v17994_v20 = vld [vmem:[#allocation6 + $0xff0] sm:$0xf0]  ;;  %v19229_v29 = vld [vmem:[#allocation6 + $0x34] sm:$0xf0]  ;;  %v16749_v10 = vor.u32 %v19416_v18, %v16746_v8 }
 0x83f   :  { %11259 = vmatpush.bf16.msra.mxu1 %v16369_v15  ;;  %11182 = vmatpush.bf16.msra.mxu3 %v16845_v31  ;;  %v16240_v0 = vld [vmem:[#allocation6 + $0x218] sm:$0xf]  ;;  %v17997_v52 = vor.u32 %v19728_v2, %v17994_v20  ;;  %v15985_v38 = vor.u32 %v19229_v29, %v15984_v42  ;;  %v19712_v59 = vld [vmem:[#allocation6 + $0xf54] sm:$0xf]  ;;  %v20485_v2 = vld [vmem:[#allocation7] sm:$0xff] }
 0x840   :  { %v19293_v15 = vld [vmem:[#allocation6 + $0x234] sm:$0xf0]  ;;  %v19704_v18 = vld [vmem:[#allocation6 + $0xf14] sm:$0xf]  ;;  %v8047_v20 = vperm.slane %v20485_v2, 4 }
 0x841   :  { %11272 = vmatpush.bf16.msra.mxu2 %v16625_v11  ;;  %11247 = vmatpush.bf16.msra.mxu0 %v16081_v48  ;;  %v16496_v11 = vld [vmem:[#allocation6 + $0x418] sm:$0xf]  ;;  %v16241_v9 = vor.u32 %v19293_v15, %v16240_v0  ;;  %v19720_v48 = vld [vmem:[#allocation6 + $0xf94] sm:$0xf] }
 0x842   :  { %v19357_v28 = vld [vmem:[#allocation6 + $0x434] sm:$0xf0]  ;;  %v17898_v8 = vld [vmem:[#allocation6 + $0xf30] sm:$0xf0] }
 0x843   :  { %11260 = vmatpush.bf16.msra.mxu1 %v16337_v21  ;;  %11183 = vmatpush.bf16.msra.mxu3 %v16813_v51  ;;  %v17232_v24 = vld [vmem:[#allocation6 + $0x9d8] sm:$0xf]  ;;  %v17962_v21 = vld [vmem:[#allocation6 + $0xfb0] sm:$0xf0]  ;;  %v17901_v7 = vor.u32 %v19704_v18, %v17898_v8 }
 0x844   :  { %v19541_v31 = vld [vmem:[#allocation6 + $0x9f4] sm:$0xf0]  ;;  %v17965_v46 = vor.u32 %v19720_v48, %v17962_v21 }
 0x845   :  { %11273 = vmatpush.bf16.msra.mxu2 %v16593_v30  ;;  %11248 = vmatpush.bf16.msra.mxu0 %v16049_v49  ;;  %v17488_v26 = vld [vmem:[#allocation6 + $0xbd8] sm:$0xf]  ;;  %v16497_v30 = vor.u32 %v19357_v28, %v16496_v11  ;;  %v17233_v61 = vor.u32 %v19541_v31, %v17232_v24  ;;  %v17930_v49 = vld [vmem:[#allocation6 + $0xf70] sm:$0xf0]  ;;  %v11044_v28 = vpop.f32.mrf.mxu0 }
 0x846   :  { %v19605_v39 = vld [vmem:[#allocation6 + $0xbf4] sm:$0xf0]  ;;  %v17933_v36 = vor.u32 %v19712_v59, %v17930_v49  ;;  %v17866_v24 = vld [vmem:[#allocation6 + $0xef0] sm:$0xf0]  ;;  %v11045_v31 = vadd.f32 %v11044_v28, %v8047_v20 }
 0x847   :  { %11261 = vmatpush.bf16.msra.mxu1 %v16305_v4  ;;  %11184 = vmatpush.bf16.msra.mxu3 %v16781_v43  ;;  %v17744_v33 = vld [vmem:[#allocation6 + $0xdd8] sm:$0xf]  ;;  %v17489_v37 = vor.u32 %v19605_v39, %v17488_v26  ;;  %v11057_v26 = vpop.f32.mrf.mxu1  ;;  %v17770_v28 = vld [vmem:[#allocation6 + $0xe30] sm:$0xf0] }
 0x848   :  { %v19669_v63 = vld [vmem:[#allocation6 + $0xdf4] sm:$0xf0]  ;;  %v11058_v21 = vadd.f32 %v11057_v26, %v11045_v31 }
 0x849   :  { %11274 = vmatpush.bf16.msra.mxu2 %v16561_v55  ;;  %11249 = vmatpush.bf16.msra.mxu0 %v16017_v1  ;;  %v17745_v27 = vor.u32 %v19669_v63, %v17744_v33  ;;  %v17200_v51 = vld [vmem:[#allocation6 + $0x998] sm:$0xf] }
 0x84a   :  { %v19533_v35 = vld [vmem:[#allocation6 + $0x9b4] sm:$0xf0] }
 0x84b   :  { %11262 = vmatpush.bf16.msra.mxu1 %v16273_v19  ;;  %11185 = vmatpush.bf16.msra.mxu3 %v16749_v10  ;;  %v17456_v34 = vld [vmem:[#allocation6 + $0xb98] sm:$0xf]  ;;  %v17201_v4 = vor.u32 %v19533_v35, %v17200_v51 }
 0x84c   :  { %v19597_v13 = vld [vmem:[#allocation6 + $0xbb4] sm:$0xf0] }
 0x84d   :  { %11275 = vmatpush.bf16.msra.mxu2 %v16529_v5  ;;  %11250 = vmatpush.bf16.msra.mxu0 %v15985_v38  ;;  %v17712_v22 = vld [vmem:[#allocation6 + $0xd98] sm:$0xf]  ;;  %v17457_v55 = vor.u32 %v19597_v13, %v17456_v34  ;;  %v19688_v34 = vld [vmem:[#allocation6 + $0xe94] sm:$0xf] }
 0x84e   :  { %v19661_v32 = vld [vmem:[#allocation6 + $0xdb4] sm:$0xf0]  ;;  %11186 = vmatmul.bf16.vlgmr.msra.gmra.mxu3 %v20331_v6 }
 0x84f   :  { %11230 = vmatpush.bf16.msrb.mxu3 %v17997_v52  ;;  %11263 = vmatpush.bf16.msra.mxu1 %v16241_v9  ;;  %v17713_v53 = vor.u32 %v19661_v32, %v17712_v22  ;;  %v17168_v45 = vld [vmem:[#allocation6 + $0x958] sm:$0xf]  ;;  %v19696_v52 = vld [vmem:[#allocation6 + $0xed4] sm:$0xf] }
 0x850   :  { %v19525_v54 = vld [vmem:[#allocation6 + $0x974] sm:$0xf0]  ;;  %11251 = vmatmul.bf16.vlgmr.msra.gmra.mxu0 %v20325_v3 }
 0x851   :  { %11276 = vmatpush.bf16.msra.mxu2 %v16497_v30  ;;  %11295 = vmatpush.bf16.msrb.mxu0 %v17233_v61  ;;  %v17424_v43 = vld [vmem:[#allocation6 + $0xb58] sm:$0xf]  ;;  %v17169_v1 = vor.u32 %v19525_v54, %v17168_v45  ;;  %v17869_v30 = vor.u32 %v19696_v52, %v17866_v24  ;;  %v10979_v61 = vpop.f32.mrf.mxu3 }
 0x852   :  { %v19589_v17 = vld [vmem:[#allocation6 + $0xb74] sm:$0xf0]  ;;  %11264 = vmatmul.bf16.vlgmr.msra.gmra.mxu1 %v20327_v14  ;;  %v10980_v35 = vadd.f32 %v10979_v61, %v20462_v23 }
 0x853   :  { %11308 = vmatpush.bf16.msrb.mxu1 %v17489_v37  ;;  %11231 = vmatpush.bf16.msrb.mxu3 %v17965_v46  ;;  %v17680_v25 = vld [vmem:[#allocation6 + $0xd58] sm:$0xf]  ;;  %v17425_v19 = vor.u32 %v19589_v17, %v17424_v43  ;;  %v17834_v46 = vld [vmem:[#allocation6 + $0xeb0] sm:$0xf0]  ;;  %v11046_v17 = vpop.f32.mrf.mxu0 }
 0x854   :  { %v19653_v60 = vld [vmem:[#allocation6 + $0xd74] sm:$0xf0]  ;;  %11277 = vmatmul.bf16.vlgmr.msra.gmra.mxu2 %v20329_v12  ;;  %v10993_v22 = vadd.f32 %v20472_v50, %v10980_v35  ;;  %v17837_v45 = vor.u32 %v19688_v34, %v17834_v46  ;;  %v11059_v50 = vpop.f32.mrf.mxu1  ;;  %v16466_v34 = vld [vmem:[#allocation6 + $0x3f8] sm:$0xf0] }
 0x855   :  { %11321 = vmatpush.bf16.msrb.mxu2 %v17745_v27  ;;  %11296 = vmatpush.bf16.msrb.mxu0 %v17201_v4  ;;  %v17681_v5 = vor.u32 %v19653_v60, %v17680_v25  ;;  %v17136_v42 = vld [vmem:[#allocation6 + $0x918] sm:$0xf]  ;;  %v19680_v25 = vld [vmem:[#allocation6 + $0xe54] sm:$0xf]  ;;  %v19409_v46 = vld [vmem:[#allocation6 + $0x5dc] sm:$0xf] }
 0x856   :  { %v19517_v29 = vld [vmem:[#allocation6 + $0x934] sm:$0xf0]  ;;  %v17802_v60 = vld [vmem:[#allocation6 + $0xe70] sm:$0xf0]  ;;  %v11006_v18 = vadd.f32 %v20474_v47, %v10993_v22  ;;  %v16434_v17 = vld [vmem:[#allocation6 + $0x3b8] sm:$0xf0] }
 0x857   :  { %11309 = vmatpush.bf16.msrb.mxu1 %v17457_v55  ;;  %v17392_v0 = vld [vmem:[#allocation6 + $0xb18] sm:$0xf]  ;;  %11232 = vmatpush.bf16.msrb.mxu3 %v17933_v36  ;;  %v17137_v38 = vor.u32 %v19517_v29, %v17136_v42  ;;  %v19672_v47 = vld [vmem:[#allocation6 + $0xe14] sm:$0xf] }
 0x858   :  { %v19581_v10 = vld [vmem:[#allocation6 + $0xb34] sm:$0xf0]  ;;  %v20494_v29 = vadd.f32 %v20479_v40, %v11006_v18 }
 0x859   :  { %11322 = vmatpush.bf16.msrb.mxu2 %v17713_v53  ;;  %v17648_v15 = vld [vmem:[#allocation6 + $0xd18] sm:$0xf]  ;;  %11297 = vmatpush.bf16.msrb.mxu0 %v17169_v1  ;;  %v17393_v39 = vor.u32 %v19581_v10, %v17392_v0  ;;  %v11070_v53 = vpop.f32.mrf.mxu2  ;;  %v17805_v0 = vor.u32 %v19680_v25, %v17802_v60  ;;  %v19401_v25 = vld [vmem:[#allocation6 + $0x59c] sm:$0xf] }
 0x85a   :  { %v19645_v11 = vld [vmem:[#allocation6 + $0xd34] sm:$0xf0]  ;;  %v20490_v23 = vadd.f32 %v11070_v53, %v11058_v21  ;;  %v16690_v60 = vld [vmem:[#allocation6 + $0x5b8] sm:$0xf0] }
 0x85b   :  { %11310 = vmatpush.bf16.msrb.mxu1 %v17425_v19  ;;  %v17649_v33 = vor.u32 %v19645_v11, %v17648_v15  ;;  %v17104_v63 = vld [vmem:[#allocation6 + $0x8d8] sm:$0xf]  ;;  %11233 = vmatpush.bf16.msrb.mxu3 %v17901_v7  ;;  %v10981_v7 = vpop.f32.mrf.mxu3 }
 0x85c   :  { %v19509_v9 = vld [vmem:[#allocation6 + $0x8f4] sm:$0xf0]  ;;  %v16402_v7 = vld [vmem:[#allocation6 + $0x378] sm:$0xf0] }
 0x85d   :  { %11323 = vmatpush.bf16.msrb.mxu2 %v17681_v5  ;;  %v17360_v48 = vld [vmem:[#allocation6 + $0xad8] sm:$0xf]  ;;  %11298 = vmatpush.bf16.msrb.mxu0 %v17137_v38  ;;  %v17105_v13 = vor.u32 %v19509_v9, %v17104_v63  ;;  %v17773_v9 = vor.u32 %v19672_v47, %v17770_v28 }
 0x85e   :  { %v19573_v37 = vld [vmem:[#allocation6 + $0xaf4] sm:$0xf0] }
 0x85f   :  { %v17616_v27 = vld [vmem:[#allocation6 + $0xcd8] sm:$0xf]  ;;  %11311 = vmatpush.bf16.msrb.mxu1 %v17393_v39  ;;  %v17361_v32 = vor.u32 %v19573_v37, %v17360_v48  ;;  %11234 = vmatpush.bf16.msrb.mxu3 %v17869_v30  ;;  %v19281_v37 = vld [vmem:[#allocation6 + $0x1dc] sm:$0xf] }
 0x860   :  { %v19637_v51 = vld [vmem:[#allocation6 + $0xcf4] sm:$0xf0] }
 0x861   :  { %11324 = vmatpush.bf16.msrb.mxu2 %v17649_v33  ;;  %v17617_v59 = vor.u32 %v19637_v51, %v17616_v27  ;;  %v17072_v49 = vld [vmem:[#allocation6 + $0x898] sm:$0xf]  ;;  %11299 = vmatpush.bf16.msrb.mxu0 %v17105_v13  ;;  %v11072_v63 = vpop.f32.mrf.mxu2  ;;  %v16210_v27 = vld [vmem:[#allocation6 + $0x1f8] sm:$0xf0] }
 0x862   :  { %v19501_v4 = vld [vmem:[#allocation6 + $0x8b4] sm:$0xf0]  ;;  %v19345_v51 = vld [vmem:[#allocation6 + $0x3dc] sm:$0xf] }
 0x863   :  { %v17328_v55 = vld [vmem:[#allocation6 + $0xa98] sm:$0xf]  ;;  %v17073_v8 = vor.u32 %v19501_v4, %v17072_v49  ;;  %11312 = vmatpush.bf16.msrb.mxu1 %v17361_v32  ;;  %11235 = vmatpush.bf16.msrb.mxu3 %v17837_v45  ;;  %v16722_v13 = vld [vmem:[#allocation6 + $0x5f8] sm:$0xf0]  ;;  %v16213_v4 = vor.u32 %v19281_v37, %v16210_v27 }
 0x864   :  { %v19565_v54 = vld [vmem:[#allocation6 + $0xab4] sm:$0xf0]  ;;  %v16725_v53 = vor.u32 %v19409_v46, %v16722_v13  ;;  %v19273_v45 = vld [vmem:[#allocation6 + $0x19c] sm:$0xf]  ;;  %v11031_v13 = vpop.f32.mrf.mxu3 }
 0x865   :  { %v17584_v43 = vld [vmem:[#allocation6 + $0xc98] sm:$0xf]  ;;  %11325 = vmatpush.bf16.msrb.mxu2 %v17617_v59  ;;  %v17329_v1 = vor.u32 %v19565_v54, %v17328_v55  ;;  %11300 = vmatpush.bf16.msrb.mxu0 %v17073_v8  ;;  %v16469_v55 = vor.u32 %v19345_v51, %v16466_v34  ;;  %v16178_v54 = vld [vmem:[#allocation6 + $0x1b8] sm:$0xf0] }
 0x866   :  { %v19629_v36 = vld [vmem:[#allocation6 + $0xcb4] sm:$0xf0]  ;;  %v16181_v8 = vor.u32 %v19273_v45, %v16178_v54  ;;  %v16626_v63 = vld [vmem:[#allocation6 + $0x538] sm:$0xf0] }
 0x867   :  { %v17585_v20 = vor.u32 %v19629_v36, %v17584_v43  ;;  %v17040_v19 = vld [vmem:[#allocation6 + $0x858] sm:$0xf]  ;;  %11313 = vmatpush.bf16.msrb.mxu1 %v17329_v1  ;;  %11236 = vmatpush.bf16.msrb.mxu3 %v17805_v0  ;;  %v19337_v43 = vld [vmem:[#allocation6 + $0x39c] sm:$0xf] }
 0x868   :  { %v19493_v5 = vld [vmem:[#allocation6 + $0x874] sm:$0xf0]  ;;  %v16437_v1 = vor.u32 %v19337_v43, %v16434_v17  ;;  %v19249_v51 = vld [vmem:[#allocation6 + $0xdc] sm:$0xf] }
 0x869   :  { %v17296_v42 = vld [vmem:[#allocation6 + $0xa58] sm:$0xf]  ;;  %v17041_v52 = vor.u32 %v19493_v5, %v17040_v19  ;;  %11326 = vmatpush.bf16.msrb.mxu2 %v17585_v20  ;;  %v16693_v20 = vor.u32 %v19401_v25, %v16690_v60  ;;  %v19265_v19 = vld [vmem:[#allocation6 + $0x15c] sm:$0xf] }
 0x86a   :  { %v19557_v10 = vld [vmem:[#allocation6 + $0xa74] sm:$0xf0]  ;;  %v16146_v5 = vld [vmem:[#allocation6 + $0x178] sm:$0xf0] }
 0x86b   :  { %v17552_v15 = vld [vmem:[#allocation6 + $0xc58] sm:$0xf]  ;;  %v17297_v26 = vor.u32 %v19557_v10, %v17296_v42  ;;  %11301 = vmatpush.bf16.msrb.mxu0 %v17041_v52  ;;  %11237 = vmatpush.bf16.msrb.mxu3 %v17773_v9  ;;  %v19329_v42 = vld [vmem:[#allocation6 + $0x35c] sm:$0xf]  ;;  %v16149_v28 = vor.u32 %v19265_v19, %v16146_v5  ;;  %v20500_v9 = vpop.f32.mrf.mxu0 }
 0x86c   :  { %v19621_v11 = vld [vmem:[#allocation6 + $0xc74] sm:$0xf0]  ;;  %v19393_v10 = vld [vmem:[#allocation6 + $0x55c] sm:$0xf]  ;;  %v16405_v52 = vor.u32 %v19329_v42, %v16402_v7 }
 0x86d   :  { %v16976_v24 = vld [vmem:[#allocation6 + $0x7d8] sm:$0xf]  ;;  %v17553_v38 = vor.u32 %v19621_v11, %v17552_v15  ;;  %11314 = vmatpush.bf16.msrb.mxu1 %v17297_v26  ;;  %v16658_v15 = vld [vmem:[#allocation6 + $0x578] sm:$0xf0] }
 0x86e   :  { %v19477_v31 = vld [vmem:[#allocation6 + $0x7f4] sm:$0xf0]  ;;  %11238 = vmatmul.bf16.vlgmr.msrb.gmra.mxu3 %v20391_v62  ;;  %v16114_v26 = vld [vmem:[#allocation6 + $0x138] sm:$0xf0]  ;;  %v20507_v25 = vpop.f32.mrf.mxu2 }
 0x86f   :  { %v17008_v39 = vld [vmem:[#allocation6 + $0x818] sm:$0xf]  ;;  %v16977_v61 = vor.u32 %v19477_v31, %v16976_v24  ;;  %11327 = vmatpush.bf16.msrb.mxu2 %v17553_v38  ;;  %v16661_v24 = vor.u32 %v19393_v10, %v16658_v15  ;;  %v19257_v31 = vld [vmem:[#allocation6 + $0x11c] sm:$0xf] }
 0x870   :  { %v19485_v33 = vld [vmem:[#allocation6 + $0x834] sm:$0xf0]  ;;  %v19321_v38 = vld [vmem:[#allocation6 + $0x31c] sm:$0xf] }
 0x871   :  { %v17264_v40 = vld [vmem:[#allocation6 + $0xa18] sm:$0xf]  ;;  %v17009_v35 = vor.u32 %v19485_v33, %v17008_v39  ;;  %11282 = vmatpush.bf16.msra.mxu3 %v16977_v61  ;;  %v16370_v33 = vld [vmem:[#allocation6 + $0x338] sm:$0xf0]  ;;  %v16117_v61 = vor.u32 %v19257_v31, %v16114_v26 }
 0x872   :  { %v19549_v48 = vld [vmem:[#allocation6 + $0xa34] sm:$0xf0]  ;;  %v16373_v37 = vor.u32 %v19321_v38, %v16370_v33  ;;  %v19313_v34 = vld [vmem:[#allocation6 + $0x2dc] sm:$0xf] }
 0x873   :  { %v17520_v21 = vld [vmem:[#allocation6 + $0xc18] sm:$0xf]  ;;  %v17265_v22 = vor.u32 %v19549_v48, %v17264_v40  ;;  %11302 = vmatpush.bf16.msrb.mxu0 %v17009_v35  ;;  %v19385_v40 = vld [vmem:[#allocation6 + $0x51c] sm:$0xf] }
 0x874   :  { %v19613_v30 = vld [vmem:[#allocation6 + $0xc34] sm:$0xf0]  ;;  %v16629_v27 = vor.u32 %v19385_v40, %v16626_v63  ;;  %v16082_v35 = vld [vmem:[#allocation6 + $0xf8] sm:$0xf0] }
 0x875   :  { %v16944_v32 = vld [vmem:[#allocation6 + $0x798] sm:$0xf]  ;;  %v17521_v49 = vor.u32 %v19613_v30, %v17520_v21  ;;  %11315 = vmatpush.bf16.msrb.mxu1 %v17265_v22  ;;  %v20502_v30 = vpop.f32.mrf.mxu1  ;;  %v16338_v22 = vld [vmem:[#allocation6 + $0x2f8] sm:$0xf0] }
 0x876   :  { %v19469_v59 = vld [vmem:[#allocation6 + $0x7b4] sm:$0xf0]  ;;  %11303 = vmatmul.bf16.vlgmr.msrb.gmra.mxu0 %v20351_v56  ;;  %v16341_v45 = vor.u32 %v19313_v34, %v16338_v22  ;;  %v19241_v43 = vld [vmem:[#allocation6 + $0x9c] sm:$0xf] }
 0x877   :  { %v16945_v36 = vor.u32 %v19469_v59, %v16944_v32  ;;  %v16912_v18 = vld [vmem:[#allocation6 + $0x758] sm:$0xf]  ;;  %11328 = vmatpush.bf16.msrb.mxu2 %v17521_v49  ;;  %11347 = vmatpush.bf16.msra.mxu0 %v16213_v4  ;;  %v19377_v32 = vld [vmem:[#allocation6 + $0x4dc] sm:$0xf]  ;;  %v20505_v49 = vadd.f32 %v11031_v13, %v20494_v29  ;;  %v11098_v29 = vpop.f32.mrf.mxu0 }
 0x878   :  { %v19461_v50 = vld [vmem:[#allocation6 + $0x774] sm:$0xf0]  ;;  %11316 = vmatmul.bf16.vlgmr.msrb.gmra.mxu1 %v20353_v16  ;;  %v16594_v59 = vld [vmem:[#allocation6 + $0x4f8] sm:$0xf0] }
 0x879   :  { %11360 = vmatpush.bf16.msra.mxu1 %v16469_v55  ;;  %11283 = vmatpush.bf16.msra.mxu3 %v16945_v36  ;;  %v16913_v0 = vor.u32 %v19461_v50, %v16912_v18  ;;  %v16880_v11 = vld [vmem:[#allocation6 + $0x718] sm:$0xf]  ;;  %v16597_v54 = vor.u32 %v19377_v32, %v16594_v59  ;;  %v16050_v36 = vld [vmem:[#allocation6 + $0xb8] sm:$0xf0] }
 0x87a   :  { %11329 = vmatmul.bf16.vlgmr.msrb.gmra.mxu2 %v20355_v57  ;;  %v19453_v47 = vld [vmem:[#allocation6 + $0x734] sm:$0xf0]  ;;  %v19305_v17 = vld [vmem:[#allocation6 + $0x29c] sm:$0xf]  ;;  %v16053_v5 = vor.u32 %v19241_v43, %v16050_v36 }
 0x87b   :  { %11373 = vmatpush.bf16.msra.mxu2 %v16725_v53  ;;  %11348 = vmatpush.bf16.msra.mxu0 %v16181_v8  ;;  %v16881_v39 = vor.u32 %v19453_v47, %v16880_v11  ;;  %v16848_v48 = vld [vmem:[#allocation6 + $0x6d8] sm:$0xf]  ;;  %v16085_v53 = vor.u32 %v19249_v51, %v16082_v35  ;;  %v16306_v18 = vld [vmem:[#allocation6 + $0x2b8] sm:$0xf0]  ;;  %v11033_v47 = vpop.f32.mrf.mxu3 }
 0x87c   :  { %v19445_v21 = vld [vmem:[#allocation6 + $0x6f4] sm:$0xf0]  ;;  %v19369_v50 = vld [vmem:[#allocation6 + $0x49c] sm:$0xf]  ;;  %v16309_v42 = vor.u32 %v19305_v17, %v16306_v18 }
 0x87d   :  { %11361 = vmatpush.bf16.msra.mxu1 %v16437_v1  ;;  %11284 = vmatpush.bf16.msra.mxu3 %v16913_v0  ;;  %v16849_v46 = vor.u32 %v19445_v21, %v16848_v48  ;;  %v16816_v4 = vld [vmem:[#allocation6 + $0x698] sm:$0xf]  ;;  %v16562_v8 = vld [vmem:[#allocation6 + $0x4b8] sm:$0xf0]  ;;  %v11111_v19 = vpop.f32.mrf.mxu1 }
 0x87e   :  { %v19437_v55 = vld [vmem:[#allocation6 + $0x6b4] sm:$0xf0]  ;;  %v16565_v0 = vor.u32 %v19369_v50, %v16562_v8  ;;  %v19233_v7 = vld [vmem:[#allocation6 + $0x5c] sm:$0xf] }
 0x87f   :  { %11374 = vmatpush.bf16.msra.mxu2 %v16693_v20  ;;  %11349 = vmatpush.bf16.msra.mxu0 %v16149_v28  ;;  %v16817_v60 = vor.u32 %v19437_v55, %v16816_v4  ;;  %v16784_v1 = vld [vmem:[#allocation6 + $0x658] sm:$0xf]  ;;  %v16018_v10 = vld [vmem:[#allocation6 + $0x78] sm:$0xf0] }
 0x880   :  { %v19429_v20 = vld [vmem:[#allocation6 + $0x674] sm:$0xf0]  ;;  %v19297_v15 = vld [vmem:[#allocation6 + $0x25c] sm:$0xf]  ;;  %v16021_v38 = vor.u32 %v19233_v7, %v16018_v10 }
 0x881   :  { %11362 = vmatpush.bf16.msra.mxu1 %v16405_v52  ;;  %11285 = vmatpush.bf16.msra.mxu3 %v16881_v39  ;;  %v16785_v11 = vor.u32 %v19429_v20, %v16784_v1  ;;  %v16274_v28 = vld [vmem:[#allocation6 + $0x278] sm:$0xf0]  ;;  %v16752_v31 = vld [vmem:[#allocation6 + $0x618] sm:$0xf] }
 0x882   :  { %v19361_v52 = vld [vmem:[#allocation6 + $0x45c] sm:$0xf]  ;;  %v19421_v26 = vld [vmem:[#allocation6 + $0x634] sm:$0xf0]  ;;  %v16277_v40 = vor.u32 %v19297_v15, %v16274_v28 }
 0x883   :  { %11375 = vmatpush.bf16.msra.mxu2 %v16661_v24  ;;  %11350 = vmatpush.bf16.msra.mxu0 %v16117_v61  ;;  %v16530_v24 = vld [vmem:[#allocation6 + $0x478] sm:$0xf0]  ;;  %v18000_v39 = vld [vmem:[#allocation6 + $0xfd8] sm:$0xf] }
 0x884   :  { %v19733_v33 = vld [vmem:[#allocation6 + $0xff4] sm:$0xf0]  ;;  %v16533_v63 = vor.u32 %v19361_v52, %v16530_v24  ;;  %v19225_v48 = vld [vmem:[#allocation6 + $0x1c] sm:$0xf] }
 0x885   :  { %11363 = vmatpush.bf16.msra.mxu1 %v16373_v37  ;;  %11286 = vmatpush.bf16.msra.mxu3 %v16849_v46  ;;  %v15986_v21 = vld [vmem:[#allocation6 + $0x38] sm:$0xf0]  ;;  %v11124_v37 = vpop.f32.mrf.mxu2  ;;  %v18001_v46 = vor.u32 %v19733_v33, %v18000_v39  ;;  %v19725_v43 = vld [vmem:[#allocation6 + $0xfb4] sm:$0xf0] }
 0x886   :  { %v19289_v61 = vld [vmem:[#allocation6 + $0x21c] sm:$0xf]  ;;  %v15989_v59 = vor.u32 %v19225_v48, %v15986_v21  ;;  %v19709_v39 = vld [vmem:[#allocation6 + $0xf34] sm:$0xf0] }
 0x887   :  { %11376 = vmatpush.bf16.msra.mxu2 %v16629_v27  ;;  %11351 = vmatpush.bf16.msra.mxu0 %v16085_v53  ;;  %v16753_v27 = vor.u32 %v19421_v26, %v16752_v31  ;;  %v16242_v51 = vld [vmem:[#allocation6 + $0x238] sm:$0xf0] }
 0x888   :  { %v19353_v35 = vld [vmem:[#allocation6 + $0x41c] sm:$0xf] }
 0x889   :  { %11364 = vmatpush.bf16.msra.mxu1 %v16341_v45  ;;  %11287 = vmatpush.bf16.msra.mxu3 %v16817_v60  ;;  %v16498_v34 = vld [vmem:[#allocation6 + $0x438] sm:$0xf0]  ;;  %v16245_v45 = vor.u32 %v19289_v61, %v16242_v51 }
 0x88a   :  { %v19537_v13 = vld [vmem:[#allocation6 + $0x9dc] sm:$0xf]  ;;  %v16501_v36 = vor.u32 %v19353_v35, %v16498_v34  ;;  %v11148_v35 = vpop.f32.mrf.mxu0  ;;  %v19701_v34 = vld [vmem:[#allocation6 + $0xef4] sm:$0xf0] }
 0x88b   :  { %11377 = vmatpush.bf16.msra.mxu2 %v16597_v54  ;;  %11352 = vmatpush.bf16.msra.mxu0 %v16053_v5  ;;  %v17234_v22 = vld [vmem:[#allocation6 + $0x9f8] sm:$0xf0]  ;;  %v17968_v54 = vld [vmem:[#allocation6 + $0xf98] sm:$0xf] }
 0x88c   :  { %v19601_v32 = vld [vmem:[#allocation6 + $0xbdc] sm:$0xf]  ;;  %v17237_v17 = vor.u32 %v19537_v13, %v17234_v22  ;;  %v17969_v1 = vor.u32 %v19725_v43, %v17968_v54  ;;  %v11161_v13 = vpop.f32.mrf.mxu1  ;;  %v11083_v54 = vpop.f32.mrf.mxu3 }
 0x88d   :  { %11365 = vmatpush.bf16.msra.mxu1 %v16309_v42  ;;  %11288 = vmatpush.bf16.msra.mxu3 %v16785_v11  ;;  %v17490_v4 = vld [vmem:[#allocation6 + $0xbf8] sm:$0xf0]  ;;  %v17936_v42 = vld [vmem:[#allocation6 + $0xf58] sm:$0xf] }
 0x88e   :  { %v19665_v55 = vld [vmem:[#allocation6 + $0xddc] sm:$0xf]  ;;  %v17493_v60 = vor.u32 %v19601_v32, %v17490_v4 }
 0x88f   :  { %11378 = vmatpush.bf16.msra.mxu2 %v16565_v0  ;;  %11353 = vmatpush.bf16.msra.mxu0 %v16021_v38  ;;  %v17746_v53 = vld [vmem:[#allocation6 + $0xdf8] sm:$0xf0]  ;;  %v19717_v0 = vld [vmem:[#allocation6 + $0xf74] sm:$0xf0] }
 0x890   :  { %v17749_v18 = vor.u32 %v19665_v55, %v17746_v53  ;;  %v19529_v50 = vld [vmem:[#allocation6 + $0x99c] sm:$0xf]  ;;  %v17937_v52 = vor.u32 %v19717_v0, %v17936_v42  ;;  %v17904_v38 = vld [vmem:[#allocation6 + $0xf18] sm:$0xf]  ;;  %v11174_v0 = vpop.f32.mrf.mxu2 }
 0x891   :  { %11366 = vmatpush.bf16.msra.mxu1 %v16277_v40  ;;  %11289 = vmatpush.bf16.msra.mxu3 %v16753_v27  ;;  %v17202_v8 = vld [vmem:[#allocation6 + $0x9b8] sm:$0xf0]  ;;  %v8048_v40 = vperm.slane %v20485_v2, 5  ;;  %v17905_v37 = vor.u32 %v19709_v39, %v17904_v38 }
 0x892   :  { %v19593_v29 = vld [vmem:[#allocation6 + $0xb9c] sm:$0xf]  ;;  %v17205_v7 = vor.u32 %v19529_v50, %v17202_v8  ;;  %v19693_v50 = vld [vmem:[#allocation6 + $0xeb4] sm:$0xf0] }
 0x893   :  { %11379 = vmatpush.bf16.msra.mxu2 %v16533_v63  ;;  %11354 = vmatpush.bf16.msra.mxu0 %v15989_v59  ;;  %v17458_v20 = vld [vmem:[#allocation6 + $0xbb8] sm:$0xf0] }
 0x894   :  { %v19657_v19 = vld [vmem:[#allocation6 + $0xd9c] sm:$0xf]  ;;  %11290 = vmatmul.bf16.vlgmr.msra.gmra.mxu3 %v20331_v6  ;;  %v17461_v10 = vor.u32 %v19593_v29, %v17458_v20 }
 0x895   :  { %11334 = vmatpush.bf16.msrb.mxu3 %v18001_v46  ;;  %v17714_v5 = vld [vmem:[#allocation6 + $0xdb8] sm:$0xf0]  ;;  %11367 = vmatpush.bf16.msra.mxu1 %v16245_v45  ;;  %v11149_v46 = vadd.f32 %v11148_v35, %v8048_v40 }
 0x896   :  { %v17717_v15 = vor.u32 %v19657_v19, %v17714_v5  ;;  %v19521_v11 = vld [vmem:[#allocation6 + $0x95c] sm:$0xf]  ;;  %11355 = vmatmul.bf16.vlgmr.msra.gmra.mxu0 %v20325_v3 }
 0x897   :  { %11380 = vmatpush.bf16.msra.mxu2 %v16501_v36  ;;  %11399 = vmatpush.bf16.msrb.mxu0 %v17237_v17  ;;  %v17170_v47 = vld [vmem:[#allocation6 + $0x978] sm:$0xf0]  ;;  %v11162_v53 = vadd.f32 %v11161_v13, %v11149_v46 }
 0x898   :  { %v19585_v28 = vld [vmem:[#allocation6 + $0xb5c] sm:$0xf]  ;;  %11368 = vmatmul.bf16.vlgmr.msra.gmra.mxu1 %v20327_v14  ;;  %v17173_v33 = vor.u32 %v19521_v11, %v17170_v47  ;;  %v11150_v47 = vpop.f32.mrf.mxu0 }
 0x899   :  { %11412 = vmatpush.bf16.msrb.mxu1 %v17493_v60  ;;  %11335 = vmatpush.bf16.msrb.mxu3 %v17969_v1  ;;  %v17426_v24 = vld [vmem:[#allocation6 + $0xb78] sm:$0xf0]  ;;  %v11084_v60 = vadd.f32 %v11083_v54, %v20490_v23  ;;  %v20516_v23 = vadd.f32 %v11174_v0, %v11162_v53 }
 0x89a   :  { %v19649_v31 = vld [vmem:[#allocation6 + $0xd5c] sm:$0xf]  ;;  %11381 = vmatmul.bf16.vlgmr.msra.gmra.mxu2 %v20329_v12  ;;  %v17429_v63 = vor.u32 %v19585_v28, %v17426_v24  ;;  %v17872_v12 = vld [vmem:[#allocation6 + $0xed8] sm:$0xf] }
 0x89b   :  { %11425 = vmatpush.bf16.msrb.mxu2 %v17749_v18  ;;  %v17682_v26 = vld [vmem:[#allocation6 + $0xd78] sm:$0xf0]  ;;  %11400 = vmatpush.bf16.msrb.mxu0 %v17205_v7  ;;  %v17873_v45 = vor.u32 %v19701_v34, %v17872_v12  ;;  %v17840_v18 = vld [vmem:[#allocation6 + $0xe98] sm:$0xf]  ;;  %v11097_v29 = vadd.f32 %v20500_v9, %v11084_v60  ;;  %v11163_v9 = vpop.f32.mrf.mxu1  ;;  %v19749_v60 = vld [vmem:[#allocation9 + $0x78] sm:$0xff] }
 0x89c   :  { %v17685_v48 = vor.u32 %v19649_v31, %v17682_v26  ;;  %v19513_v21 = vld [vmem:[#allocation6 + $0x91c] sm:$0xf]  ;;  %v17841_v7 = vor.u32 %v19693_v50, %v17840_v18  ;;  %v17808_v28 = vld [vmem:[#allocation6 + $0xe58] sm:$0xf]  ;;  %v19757_v18 = vld [vmem:[#allocation9 + $0xb8] sm:$0xff] }
 0x89d   :  { %11413 = vmatpush.bf16.msrb.mxu1 %v17461_v10  ;;  %v17138_v3 = vld [vmem:[#allocation6 + $0x938] sm:$0xf0]  ;;  %11336 = vmatpush.bf16.msrb.mxu3 %v17937_v52  ;;  %v19685_v52 = vld [vmem:[#allocation6 + $0xe74] sm:$0xf0]  ;;  %v11110_v24 = vadd.f32 %v20502_v30, %v11097_v29 }
 0x89e   :  { %v19577_v61 = vld [vmem:[#allocation6 + $0xb1c] sm:$0xf]  ;;  %v17141_v22 = vor.u32 %v19513_v21, %v17138_v3  ;;  %v11085_v21 = vpop.f32.mrf.mxu3  ;;  %v17776_v30 = vld [vmem:[#allocation6 + $0xe18] sm:$0xf] }
 0x89f   :  { %11426 = vmatpush.bf16.msrb.mxu2 %v17717_v15  ;;  %v17394_v27 = vld [vmem:[#allocation6 + $0xb38] sm:$0xf0]  ;;  %11401 = vmatpush.bf16.msrb.mxu0 %v17173_v33 }
 0x8a0   :  { %v19641_v51 = vld [vmem:[#allocation6 + $0xd1c] sm:$0xf]  ;;  %v17397_v2 = vor.u32 %v19577_v61, %v17394_v27  ;;  %v19677_v27 = vld [vmem:[#allocation6 + $0xe34] sm:$0xf0] }
 0x8a1   :  { %v17650_v14 = vld [vmem:[#allocation6 + $0xd38] sm:$0xf0]  ;;  %11414 = vmatpush.bf16.msrb.mxu1 %v17429_v63  ;;  %11337 = vmatpush.bf16.msrb.mxu3 %v17905_v37  ;;  %v20520_v63 = vadd.f32 %v20507_v25, %v11110_v24  ;;  %v11176_v25 = vpop.f32.mrf.mxu2  ;;  %v19754_v24 = vld [vmem:[#allocation9 + $0xa0] sm:$0xff] }
 0x8a2   :  { %v17653_v32 = vor.u32 %v19641_v51, %v17650_v14  ;;  %v19505_v59 = vld [vmem:[#allocation6 + $0x8dc] sm:$0xf] }
 0x8a3   :  { %11427 = vmatpush.bf16.msrb.mxu2 %v17685_v48  ;;  %v17106_v4 = vld [vmem:[#allocation6 + $0x8f8] sm:$0xf0]  ;;  %11402 = vmatpush.bf16.msrb.mxu0 %v17141_v22  ;;  %v17809_v48 = vor.u32 %v19685_v52, %v17808_v28  ;;  %v17777_v22 = vor.u32 %v19677_v27, %v17776_v30 }
 0x8a4   :  { %v19569_v55 = vld [vmem:[#allocation6 + $0xadc] sm:$0xf]  ;;  %v17109_v8 = vor.u32 %v19505_v59, %v17106_v4 }
 0x8a5   :  { %v17362_v43 = vld [vmem:[#allocation6 + $0xaf8] sm:$0xf0]  ;;  %11415 = vmatpush.bf16.msrb.mxu1 %v17397_v2  ;;  %11338 = vmatpush.bf16.msrb.mxu3 %v17873_v45 }
 0x8a6   :  { %v19633_v36 = vld [vmem:[#allocation6 + $0xcdc] sm:$0xf]  ;;  %v17365_v1 = vor.u32 %v19569_v55, %v17362_v43 }
 0x8a7   :  { %v17618_v17 = vld [vmem:[#allocation6 + $0xcf8] sm:$0xf0]  ;;  %11428 = vmatpush.bf16.msrb.mxu2 %v17653_v32  ;;  %11403 = vmatpush.bf16.msrb.mxu0 %v17109_v8 }
 0x8a8   :  { %v17621_v20 = vor.u32 %v19633_v36, %v17618_v17  ;;  %v19497_v19 = vld [vmem:[#allocation6 + $0x89c] sm:$0xf]  ;;  %v19741_v17 = vld [vmem:[#allocation9 + $0x38] sm:$0xff] }
 0x8a9   :  { %v17074_v5 = vld [vmem:[#allocation6 + $0x8b8] sm:$0xf0]  ;;  %11416 = vmatpush.bf16.msrb.mxu1 %v17365_v1  ;;  %11339 = vmatpush.bf16.msrb.mxu3 %v17841_v7  ;;  %v19739_v7 = vld [vmem:[#allocation9 + $0x28] sm:$0xff] }
 0x8aa   :  { %v19561_v42 = vld [vmem:[#allocation6 + $0xa9c] sm:$0xf]  ;;  %v17077_v31 = vor.u32 %v19497_v19, %v17074_v5 }
 0x8ab   :  { %v17330_v10 = vld [vmem:[#allocation6 + $0xab8] sm:$0xf0]  ;;  %11429 = vmatpush.bf16.msrb.mxu2 %v17621_v20 }
 0x8ac   :  { %v19625_v15 = vld [vmem:[#allocation6 + $0xc9c] sm:$0xf]  ;;  %v17333_v26 = vor.u32 %v19561_v42, %v17330_v10  ;;  %11404 = vmatpush.bf16.msrb.mxu0 %v17077_v31  ;;  %v19747_v10 = vld [vmem:[#allocation9 + $0x68] sm:$0xff]  ;;  %v20530_v31 = vpop.f32.mrf.mxu3 }
 0x8ad   :  { %v17586_v11 = vld [vmem:[#allocation6 + $0xcb8] sm:$0xf0]  ;;  %11340 = vmatpush.bf16.msrb.mxu3 %v17809_v48  ;;  %v20526_v47 = vpop.f32.mrf.mxu0 }
 0x8ae   :  { %v17589_v38 = vor.u32 %v19625_v15, %v17586_v11  ;;  %v19489_v39 = vld [vmem:[#allocation6 + $0x85c] sm:$0xf]  ;;  %11417 = vmatpush.bf16.msrb.mxu1 %v17333_v26  ;;  %v19755_v15 = vld [vmem:[#allocation9 + $0xa8] sm:$0xff] }
 0x8af   :  { %v17042_v33 = vld [vmem:[#allocation6 + $0x878] sm:$0xf0] }
 0x8b0   :  { %v19553_v40 = vld [vmem:[#allocation6 + $0xa5c] sm:$0xf]  ;;  %v17045_v51 = vor.u32 %v19489_v39, %v17042_v33  ;;  %11430 = vmatpush.bf16.msrb.mxu2 %v17589_v38  ;;  %v19737_v39 = vld [vmem:[#allocation9 + $0x18] sm:$0xff] }
 0x8b1   :  { %v17298_v3 = vld [vmem:[#allocation6 + $0xa78] sm:$0xf0]  ;;  %11341 = vmatpush.bf16.msrb.mxu3 %v17777_v22  ;;  %v19745_v33 = vld [vmem:[#allocation9 + $0x58] sm:$0xff] }
 0x8b2   :  { %v19617_v61 = vld [vmem:[#allocation6 + $0xc5c] sm:$0xf]  ;;  %v17301_v12 = vor.u32 %v19553_v40, %v17298_v3  ;;  %11405 = vmatpush.bf16.msrb.mxu0 %v17045_v51  ;;  %v19753_v40 = vld [vmem:[#allocation9 + $0x98] sm:$0xff] }
 0x8b3   :  { %v17554_v37 = vld [vmem:[#allocation6 + $0xc78] sm:$0xf0] }
 0x8b4   :  { %v19473_v14 = vld [vmem:[#allocation6 + $0x7dc] sm:$0xf]  ;;  %v17557_v34 = vor.u32 %v19617_v61, %v17554_v37  ;;  %11418 = vmatpush.bf16.msrb.mxu1 %v17301_v12  ;;  %11342 = vmatmul.bf16.vlgmr.msrb.gmra.mxu3 %v20391_v62  ;;  %v11137_v12 = vpop.f32.mrf.mxu3 }
 0x8b5   :  { %v16978_v35 = vld [vmem:[#allocation6 + $0x7f8] sm:$0xf0]  ;;  %v11202_v3 = vpop.f32.mrf.mxu0  ;;  %v19777_v12 = vld [vmem:[#allocation9 + $0x158] sm:$0xff] }
 0x8b6   :  { %v19481_v46 = vld [vmem:[#allocation6 + $0x81c] sm:$0xf]  ;;  %v16981_v59 = vor.u32 %v19473_v14, %v16978_v35  ;;  %11431 = vmatpush.bf16.msrb.mxu2 %v17557_v34  ;;  %v19778_v3 = vld [vmem:[#allocation9 + $0x160] sm:$0xff] }
 0x8b7   :  { %v17010_v13 = vld [vmem:[#allocation6 + $0x838] sm:$0xf0]  ;;  %v20532_v48 = vpop.f32.mrf.mxu2 }
 0x8b8   :  { %v19545_v2 = vld [vmem:[#allocation6 + $0xa1c] sm:$0xf]  ;;  %v17013_v53 = vor.u32 %v19481_v46, %v17010_v13  ;;  %11386 = vmatpush.bf16.msra.mxu3 %v16981_v59  ;;  %v19735_v13 = vld [vmem:[#allocation9 + $0x8] sm:$0xff] }
 0x8b9   :  { %v17266_v32 = vld [vmem:[#allocation6 + $0xa38] sm:$0xf0] }
 0x8ba   :  { %v19609_v4 = vld [vmem:[#allocation6 + $0xc1c] sm:$0xf]  ;;  %v17269_v45 = vor.u32 %v19545_v2, %v17266_v32  ;;  %11406 = vmatpush.bf16.msrb.mxu0 %v17013_v53  ;;  %v19743_v2 = vld [vmem:[#allocation9 + $0x48] sm:$0xff]  ;;  %v19734_v53 = vld [vmem:[#allocation9] sm:$0xff] }
 0x8bb   :  { %v17522_v55 = vld [vmem:[#allocation6 + $0xc38] sm:$0xf0]  ;;  %v19751_v32 = vld [vmem:[#allocation9 + $0x88] sm:$0xff] }
 0x8bc   :  { %v19465_v54 = vld [vmem:[#allocation6 + $0x79c] sm:$0xf]  ;;  %v17525_v36 = vor.u32 %v19609_v4, %v17522_v55  ;;  %11419 = vmatpush.bf16.msrb.mxu1 %v17269_v45 }
 0x8bd   :  { %v16946_v43 = vld [vmem:[#allocation6 + $0x7b8] sm:$0xf0]  ;;  %11407 = vmatmul.bf16.vlgmr.msrb.gmra.mxu0 %v20351_v56  ;;  %v20528_v56 = vpop.f32.mrf.mxu1 }
 0x8be   :  { %v16949_v50 = vor.u32 %v19465_v54, %v16946_v43  ;;  %v19457_v8 = vld [vmem:[#allocation6 + $0x75c] sm:$0xf]  ;;  %11432 = vmatpush.bf16.msrb.mxu2 %v17525_v36  ;;  %11983 = vmatpush.bf16.msra.mxu0 %v19741_v17  ;;  %v11451_v43 = vmax.f32 %v20435_v58, 0.0  ;;  %v19742_v36 = vld [vmem:[#allocation9 + $0x40] sm:$0xff]  ;;  %v11452_v17 = vmax.f32 %v20451_v44, 0.0  ;;  %v19781_v58 = vld [vmem:[#allocation9 + $0x178] sm:$0xff] }
 0x8bf   :  { %v16914_v29 = vld [vmem:[#allocation6 + $0x778] sm:$0xf0]  ;;  %11420 = vmatmul.bf16.vlgmr.msrb.gmra.mxu1 %v20353_v16  ;;  %v19738_v16 = vld [vmem:[#allocation9 + $0x20] sm:$0xff]  ;;  %v11228_v59 = vpop.f32.mrf.mxu2 }
 0x8c0   :  { %v19740_v1 = vld [vmem:[#allocation9 + $0x30] sm:$0xff]  ;;  %11996 = vmatpush.bf16.msra.mxu1 %v19749_v60  ;;  %11387 = vmatpush.bf16.msra.mxu3 %v16949_v50  ;;  %v16917_v5 = vor.u32 %v19457_v8, %v16914_v29  ;;  %v19750_v60 = vld [vmem:[#allocation9 + $0x80] sm:$0xff]  ;;  %v11453_v50 = vmax.f32 %v20477_v41, 0.0  ;;  %v19767_v59 = vld [vmem:[#allocation9 + $0x108] sm:$0xff] }
 0x8c1   :  { %v19748_v20 = vld [vmem:[#allocation9 + $0x70] sm:$0xff]  ;;  %11433 = vmatmul.bf16.vlgmr.msrb.gmra.mxu2 %v20355_v57  ;;  %v19746_v57 = vld [vmem:[#allocation9 + $0x60] sm:$0xff] }
 0x8c2   :  { %12009 = vmatpush.bf16.msra.mxu2 %v19757_v18  ;;  %v19756_v19 = vld [vmem:[#allocation9 + $0xb0] sm:$0xff]  ;;  %11984 = vmatpush.bf16.msra.mxu0 %v19740_v1  ;;  %v19773_v18 = vld [vmem:[#allocation9 + $0x138] sm:$0xff]  ;;  %v11461_v44 = vpack.c.bf16 %v11453_v50, %v11453_v50 }
 0x8c3   :  { %v19449_v42 = vld [vmem:[#allocation6 + $0x71c] sm:$0xf] }
 0x8c4   :  { %v16882_v0 = vld [vmem:[#allocation6 + $0x738] sm:$0xf0]  ;;  %11997 = vmatpush.bf16.msra.mxu1 %v19748_v20  ;;  %11388 = vmatpush.bf16.msra.mxu3 %v16917_v5  ;;  %v11459_v20 = vpack.c.bf16 %v11451_v43, %v11451_v43  ;;  %v19766_v43 = vld [vmem:[#allocation9 + $0x100] sm:$0xff] }
 0x8c5   :  { %v16885_v11 = vor.u32 %v19449_v42, %v16882_v0  ;;  %v19441_v28 = vld [vmem:[#allocation6 + $0x6dc] sm:$0xf]  ;;  %v11215_v30 = vpop.f32.mrf.mxu1 }
 0x8c6   :  { %12010 = vmatpush.bf16.msra.mxu2 %v19756_v19  ;;  %v16850_v52 = vld [vmem:[#allocation6 + $0x6f8] sm:$0xf0]  ;;  %11985 = vmatpush.bf16.msra.mxu0 %v19739_v7  ;;  %v11460_v19 = vpack.c.bf16 %v11452_v17, %v11452_v17 }
 0x8c7   :  { %v16853_v9 = vor.u32 %v19441_v28, %v16850_v52  ;;  %v19433_v26 = vld [vmem:[#allocation6 + $0x69c] sm:$0xf] }
 0x8c8   :  { %11998 = vmatpush.bf16.msra.mxu1 %v19747_v10  ;;  %11389 = vmatpush.bf16.msra.mxu3 %v16885_v11  ;;  %v16818_v38 = vld [vmem:[#allocation6 + $0x6b8] sm:$0xf0]  ;;  %v19771_v10 = vld [vmem:[#allocation9 + $0x128] sm:$0xff] }
 0x8c9   :  { %v16821_v21 = vor.u32 %v19433_v26, %v16818_v38  ;;  %v19425_v61 = vld [vmem:[#allocation6 + $0x65c] sm:$0xf]  ;;  %v19770_v26 = vld [vmem:[#allocation9 + $0x120] sm:$0xff] }
 0x8ca   :  { %12011 = vmatpush.bf16.msra.mxu2 %v19755_v15  ;;  %11986 = vmatpush.bf16.msra.mxu0 %v19738_v16  ;;  %v16786_v37 = vld [vmem:[#allocation6 + $0x678] sm:$0xf0]  ;;  %v20538_v15 = vld [vmem:[#allocation7] sm:$0xff] }
 0x8cb   :  { %v19736_v27 = vld [vmem:[#allocation9 + $0x10] sm:$0xff]  ;;  %v16789_v35 = vor.u32 %v19425_v61, %v16786_v37  ;;  %v19769_v61 = vld [vmem:[#allocation9 + $0x118] sm:$0xff] }
 0x8cc   :  { %11999 = vmatpush.bf16.msra.mxu1 %v19746_v57  ;;  %11390 = vmatpush.bf16.msra.mxu3 %v16853_v9  ;;  %v19744_v51 = vld [vmem:[#allocation9 + $0x50] sm:$0xff]  ;;  %v19779_v57 = vld [vmem:[#allocation9 + $0x168] sm:$0xff] }
 0x8cd   :  { %v19752_v14 = vld [vmem:[#allocation9 + $0x90] sm:$0xff]  ;;  %v11252_v16 = vpop.f32.mrf.mxu0 }
 0x8ce   :  { %12012 = vmatpush.bf16.msra.mxu2 %v19754_v24  ;;  %11987 = vmatpush.bf16.msra.mxu0 %v19737_v39  ;;  %v19417_v34 = vld [vmem:[#allocation6 + $0x61c] sm:$0xf] }
 0x8cf   :  { %v16754_v46 = vld [vmem:[#allocation6 + $0x638] sm:$0xf0]  ;;  %v11265_v9 = vpop.f32.mrf.mxu1 }
 0x8d0   :  { %12000 = vmatpush.bf16.msra.mxu1 %v19745_v33  ;;  %11391 = vmatpush.bf16.msra.mxu3 %v16821_v21  ;;  %v19729_v25 = vld [vmem:[#allocation6 + $0xfdc] sm:$0xf]  ;;  %v16757_v4 = vor.u32 %v19417_v34, %v16754_v46 }
 0x8d1   :  { %v18002_v22 = vld [vmem:[#allocation6 + $0xff8] sm:$0xf0]  ;;  %v11187_v33 = vpop.f32.mrf.mxu3 }
 0x8d2   :  { %12013 = vmatpush.bf16.msra.mxu2 %v19753_v40  ;;  %11988 = vmatpush.bf16.msra.mxu0 %v19736_v27  ;;  %v18005_v55 = vor.u32 %v19729_v25, %v18002_v22  ;;  %v19721_v45 = vld [vmem:[#allocation6 + $0xf9c] sm:$0xf] }
 0x8d3   :  { %v17970_v54 = vld [vmem:[#allocation6 + $0xfb8] sm:$0xf0] }
 0x8d4   :  { %12001 = vmatpush.bf16.msra.mxu1 %v19744_v51  ;;  %11392 = vmatpush.bf16.msra.mxu3 %v16789_v35  ;;  %v17973_v8 = vor.u32 %v19721_v45, %v17970_v54  ;;  %v19713_v29 = vld [vmem:[#allocation6 + $0xf5c] sm:$0xf]  ;;  %v19765_v45 = vld [vmem:[#allocation9 + $0xf8] sm:$0xff]  ;;  %v19775_v54 = vld [vmem:[#allocation9 + $0x148] sm:$0xff] }
 0x8d5   :  { %v17938_v1 = vld [vmem:[#allocation6 + $0xf78] sm:$0xf0]  ;;  %v11254_v35 = vpop.f32.mrf.mxu0 }
 0x8d6   :  { %12014 = vmatpush.bf16.msra.mxu2 %v19752_v14  ;;  %11989 = vmatpush.bf16.msra.mxu0 %v19735_v13  ;;  %v19772_v5 = vld [vmem:[#allocation9 + $0x130] sm:$0xff]  ;;  %v17941_v42 = vor.u32 %v19713_v29, %v17938_v1 }
 0x8d7   :  { %v19705_v41 = vld [vmem:[#allocation6 + $0xf1c] sm:$0xf]  ;;  %v11278_v30 = vpop.f32.mrf.mxu2  ;;  %v11267_v34 = vpop.f32.mrf.mxu1 }
 0x8d8   :  { %12002 = vmatpush.bf16.msra.mxu1 %v19743_v2  ;;  %11393 = vmatpush.bf16.msra.mxu3 %v16757_v4  ;;  %v17906_v0 = vld [vmem:[#allocation6 + $0xf38] sm:$0xf0]  ;;  %v11136_v4 = vadd.f32 %v20530_v31, %v20520_v63  ;;  %v19763_v31 = vld [vmem:[#allocation9 + $0xe8] sm:$0xff] }
 0x8d9   :  { %v19780_v7 = vld [vmem:[#allocation9 + $0x170] sm:$0xff]  ;;  %v17909_v11 = vor.u32 %v19705_v41, %v17906_v0  ;;  %v11189_v25 = vpop.f32.mrf.mxu3  ;;  %v19789_v41 = vld [vmem:[#allocation9 + $0x1b8] sm:$0xff] }
 0x8da   :  { %12015 = vmatpush.bf16.msra.mxu2 %v19751_v32  ;;  %11990 = vmatpush.bf16.msra.mxu0 %v19734_v53  ;;  %v19697_v28 = vld [vmem:[#allocation6 + $0xedc] sm:$0xf] }
 0x8db   :  { %11394 = vmatmul.bf16.vlgmr.msra.gmra.mxu3 %v20331_v6  ;;  %v8049_v6 = vperm.slane %v20538_v15, 6  ;;  %v17874_v52 = vld [vmem:[#allocation6 + $0xef8] sm:$0xf0] }
 0x8dc   :  { %11438 = vmatpush.bf16.msrb.mxu3 %v18005_v55  ;;  %12003 = vmatpush.bf16.msra.mxu1 %v19742_v36  ;;  %v17877_v38 = vor.u32 %v19697_v28, %v17874_v52  ;;  %v19689_v40 = vld [vmem:[#allocation6 + $0xe9c] sm:$0xf]  ;;  %v11455_v36 = vmax.f32 %v11136_v4, 0.0  ;;  %v11454_v28 = vmax.f32 %v20505_v49, 0.0  ;;  %v19782_v49 = vld [vmem:[#allocation9 + $0x180] sm:$0xff] }
 0x8dd   :  { %11991 = vmatmul.bf16.vlgmr.msra.gmra.mxu0 %v11459_v20  ;;  %v11253_v24 = vadd.f32 %v11252_v16, %v8049_v6  ;;  %v17842_v21 = vld [vmem:[#allocation6 + $0xeb8] sm:$0xf0]  ;;  %v19786_v16 = vld [vmem:[#allocation9 + $0x1a0] sm:$0xff] }
 0x8de   :  { %12016 = vmatpush.bf16.msra.mxu2 %v19750_v60  ;;  %12035 = vmatpush.bf16.msrb.mxu0 %v19773_v18  ;;  %v17845_v37 = vor.u32 %v19689_v40, %v17842_v21  ;;  %v19681_v27 = vld [vmem:[#allocation6 + $0xe5c] sm:$0xf]  ;;  %v11188_v60 = vadd.f32 %v11187_v33, %v20516_v23  ;;  %v19774_v18 = vld [vmem:[#allocation9 + $0x140] sm:$0xff]  ;;  %v11463_v63 = vpack.c.bf16 %v11455_v36, %v11455_v36  ;;  %v19761_v23 = vld [vmem:[#allocation9 + $0xd8] sm:$0xff] }
 0x8df   :  { %12004 = vmatmul.bf16.vlgmr.msra.gmra.mxu1 %v11460_v19  ;;  %v11266_v39 = vadd.f32 %v11265_v9, %v11253_v24  ;;  %v17810_v51 = vld [vmem:[#allocation6 + $0xe78] sm:$0xf0]  ;;  %v11280_v53 = vpop.f32.mrf.mxu2  ;;  %v19785_v24 = vld [vmem:[#allocation9 + $0x198] sm:$0xff]  ;;  %v19783_v40 = vld [vmem:[#allocation9 + $0x188] sm:$0xff] }
 0x8e0   :  { %11439 = vmatpush.bf16.msrb.mxu3 %v17973_v8  ;;  %12048 = vmatpush.bf16.msrb.mxu1 %v19781_v58  ;;  %v19768_v46 = vld [vmem:[#allocation9 + $0x110] sm:$0xff]  ;;  %v17813_v13 = vor.u32 %v19681_v27, %v17810_v51  ;;  %v11201_v50 = vadd.f32 %v20526_v47, %v11188_v60  ;;  %v19762_v8 = vld [vmem:[#allocation9 + $0xe0] sm:$0xff]  ;;  %v19795_v36 = vld [vmem:[#allocation9 + $0x1e8] sm:$0xff] }
 0x8e1   :  { %12017 = vmatmul.bf16.vlgmr.msra.gmra.mxu2 %v11461_v44  ;;  %v20541_v14 = vadd.f32 %v11278_v30, %v11266_v39  ;;  %v19673_v22 = vld [vmem:[#allocation6 + $0xe1c] sm:$0xf]  ;;  %v19793_v60 = vld [vmem:[#allocation9 + $0x1d8] sm:$0xff] }
 0x8e2   :  { %12036 = vmatpush.bf16.msrb.mxu0 %v19772_v5  ;;  %v17778_v2 = vld [vmem:[#allocation6 + $0xe38] sm:$0xf0]  ;;  %v11214_v29 = vadd.f32 %v20528_v56, %v11201_v50  ;;  %12061 = vmatpush.bf16.msrb.mxu2 %v19789_v41  ;;  %v19791_v50 = vld [vmem:[#allocation9 + $0x1c8] sm:$0xff] }
 0x8e3   :  { %v19776_v32 = vld [vmem:[#allocation9 + $0x150] sm:$0xff]  ;;  %v17781_v55 = vor.u32 %v19673_v22, %v17778_v2 }
 0x8e4   :  { %11440 = vmatpush.bf16.msrb.mxu3 %v17941_v42  ;;  %12049 = vmatpush.bf16.msrb.mxu1 %v19780_v7  ;;  %v19764_v17 = vld [vmem:[#allocation9 + $0xf0] sm:$0xff]  ;;  %v11227_v58 = vadd.f32 %v20532_v48, %v11214_v29  ;;  %v19787_v48 = vld [vmem:[#allocation9 + $0x1a8] sm:$0xff] }
 0x8e5   :  { %v19760_v5 = vld [vmem:[#allocation9 + $0xd0] sm:$0xff] }
 0x8e6   :  { %12037 = vmatpush.bf16.msrb.mxu0 %v19771_v10  ;;  %v19759_v10 = vld [vmem:[#allocation9 + $0xc8] sm:$0xff]  ;;  %v19788_v56 = vld [vmem:[#allocation9 + $0x1b0] sm:$0xff] }
 0x8e7   :  { %12062 = vmatpush.bf16.msrb.mxu2 %v19788_v56  ;;  %v19784_v9 = vld [vmem:[#allocation9 + $0x190] sm:$0xff] }
 0x8e8   :  { %11441 = vmatpush.bf16.msrb.mxu3 %v17909_v11  ;;  %12050 = vmatpush.bf16.msrb.mxu1 %v19779_v57  ;;  %v19758_v11 = vld [vmem:[#allocation9 + $0xc0] sm:$0xff]  ;;  %v11462_v57 = vpack.c.bf16 %v11454_v28, %v11454_v28 }
 0x8ea   :  { %12038 = vmatpush.bf16.msrb.mxu0 %v19770_v26  ;;  %v8050_v26 = vperm.slane %v20538_v15, 7 }
 0x8eb   :  { %12063 = vmatpush.bf16.msrb.mxu2 %v19787_v48 }
 0x8ec   :  { %11442 = vmatpush.bf16.msrb.mxu3 %v17877_v38  ;;  %12051 = vmatpush.bf16.msrb.mxu1 %v19778_v3 }
 0x8ee   :  { %12039 = vmatpush.bf16.msrb.mxu0 %v19769_v61 }
 0x8ef   :  { %12064 = vmatpush.bf16.msrb.mxu2 %v19786_v16 }
 0x8f0   :  { %11443 = vmatpush.bf16.msrb.mxu3 %v17845_v37  ;;  %12052 = vmatpush.bf16.msrb.mxu1 %v19777_v12 }
 0x8f1   :  { %v11239_v19 = vpop.f32.mrf.mxu3 }
 0x8f2   :  { %12040 = vmatpush.bf16.msrb.mxu0 %v19768_v46 }
 0x8f3   :  { %v11304_v1 = vpop.f32.mrf.mxu0  ;;  %12065 = vmatpush.bf16.msrb.mxu2 %v19785_v24 }
 0x8f4   :  { %11444 = vmatpush.bf16.msrb.mxu3 %v17813_v13  ;;  %12053 = vmatpush.bf16.msrb.mxu1 %v19776_v32  ;;  %v19797_v32 = vld [vmem:[#allocation9 + $0x1f8] sm:$0xff] }
 0x8f5   :  { %v11317_v20 = vpop.f32.mrf.mxu1 }
 0x8f6   :  { %12041 = vmatpush.bf16.msrb.mxu0 %v19767_v59 }
 0x8f7   :  { %12066 = vmatpush.bf16.msrb.mxu2 %v19784_v9 }
 0x8f8   :  { %11445 = vmatpush.bf16.msrb.mxu3 %v17781_v55  ;;  %12054 = vmatpush.bf16.msrb.mxu1 %v19775_v54  ;;  %v19796_v54 = vld [vmem:[#allocation9 + $0x1f0] sm:$0xff] }
 0x8f9   :  { %v11241_v6 = vpop.f32.mrf.mxu3 }
 0x8fa   :  { %12042 = vmatpush.bf16.msrb.mxu0 %v19766_v43 }
 0x8fb   :  { %11446 = vmatmul.bf16.vlgmr.msrb.gmra.mxu3 %v20391_v62  ;;  %v11240_v62 = vadd.f32 %v11239_v19, %v11227_v58  ;;  %v11306_v0 = vpop.f32.mrf.mxu0  ;;  %12067 = vmatpush.bf16.msrb.mxu2 %v19783_v40 }
 0x8fc   :  { %12022 = vmatpush.bf16.msra.mxu3 %v19765_v45  ;;  %12055 = vmatpush.bf16.msrb.mxu1 %v19774_v18  ;;  %v19792_v18 = vld [vmem:[#allocation9 + $0x1d0] sm:$0xff] }
 0x8fd   :  { %12043 = vmatmul.bf16.vlgmr.msrb.gmra.mxu0 %v11463_v63  ;;  %v11456_v44 = vmax.f32 %v11240_v62, 0.0  ;;  %v11330_v42 = vpop.f32.mrf.mxu2  ;;  %v11319_v7 = vpop.f32.mrf.mxu1  ;;  %v19808_v63 = vld [vmem:[#allocation10] ss:$0 sm:$0xff] }
 0x8ff   :  { %v11464_v47 = vpack.c.bf16 %v11456_v44, %v11456_v44  ;;  %12068 = vmatpush.bf16.msrb.mxu2 %v19782_v49 }
 0x900   :  { %12023 = vmatpush.bf16.msra.mxu3 %v19764_v17  ;;  %v19794_v17 = vld [vmem:[#allocation9 + $0x1e0] sm:$0xff] }
 0x901   :  { %12056 = vmatmul.bf16.vlgmr.msrb.gmra.mxu1 %v11464_v47 }
 0x904   :  { %12024 = vmatpush.bf16.msra.mxu3 %v19763_v31 }
 0x905   :  { %v11332_v52 = vpop.f32.mrf.mxu2 }
 0x908   :  { %12025 = vmatpush.bf16.msra.mxu3 %v19762_v8 }
 0x90c   :  { %12026 = vmatpush.bf16.msra.mxu3 %v19761_v23  ;;  %v19790_v23 = vld [vmem:[#allocation9 + $0x1c0] sm:$0xff] }
 0x910   :  { %12027 = vmatpush.bf16.msra.mxu3 %v19760_v5 }
 0x913   :  { %v11356_v38 = vpop.f32.mrf.mxu0 }
 0x914   :  { %12028 = vmatpush.bf16.msra.mxu3 %v19759_v10  ;;  %v11357_v39 = vadd.f32 %v11356_v38, %v8050_v26 }
 0x915   :  { %v11369_v33 = vpop.f32.mrf.mxu1 }
 0x916   :  { %v11370_v21 = vadd.f32 %v11369_v33, %v11357_v39 }
 0x917   :  { %v11291_v3 = vpop.f32.mrf.mxu3 }
 0x918   :  { %12029 = vmatpush.bf16.msra.mxu3 %v19758_v11  ;;  %v11292_v12 = vadd.f32 %v11291_v3, %v20541_v14 }
 0x91a   :  { %v11305_v34 = vadd.f32 %v11304_v1, %v11292_v12 }
 0x91b   :  { %12030 = vmatmul.bf16.vlgmr.msra.gmra.mxu3 %v11462_v57  ;;  %v11358_v30 = vpop.f32.mrf.mxu0 }
 0x91c   :  { %v11318_v15 = vadd.f32 %v11317_v20, %v11305_v34  ;;  %12074 = vmatpush.bf16.msrb.mxu3 %v19797_v32 }
 0x91d   :  { %v11382_v61 = vpop.f32.mrf.mxu2  ;;  %v11371_v27 = vpop.f32.mrf.mxu1 }
 0x91e   :  { %v11383_v37 = vadd.f32 %v11382_v61, %v11370_v21  ;;  %v11331_v25 = vadd.f32 %v11330_v42, %v11318_v15 }
 0x91f   :  { %v11293_v51 = vpop.f32.mrf.mxu3 }
 0x920   :  { %12075 = vmatpush.bf16.msrb.mxu3 %v19796_v54 }
 0x924   :  { %12076 = vmatpush.bf16.msrb.mxu3 %v19795_v36 }
 0x925   :  { %v11384_v35 = vpop.f32.mrf.mxu2 }
 0x928   :  { %12077 = vmatpush.bf16.msrb.mxu3 %v19794_v17 }
 0x92c   :  { %12078 = vmatpush.bf16.msrb.mxu3 %v19793_v60 }
 0x930   :  { %12079 = vmatpush.bf16.msrb.mxu3 %v19792_v18 }
 0x934   :  { %12080 = vmatpush.bf16.msrb.mxu3 %v19791_v50 }
 0x937   :  { %v11343_v22 = vpop.f32.mrf.mxu3 }
 0x938   :  { %v11344_v2 = vadd.f32 %v11343_v22, %v11331_v25  ;;  %12081 = vmatpush.bf16.msrb.mxu3 %v19790_v23 }
 0x93a   :  { %v11408_v46 = vpop.f32.mrf.mxu0  ;;  %v11457_v59 = vmax.f32 %v11344_v2, 0.0 }
 0x93c   :  { %v11421_v13 = vpop.f32.mrf.mxu1  ;;  %v11465_v55 = vpack.c.bf16 %v11457_v59, %v11457_v59 }
 0x93e   :  { %12069 = vmatmul.bf16.vlgmr.msrb.gmra.mxu2 %v11465_v55 }
 0x93f   :  { %v11345_v43 = vpop.f32.mrf.mxu3 }
 0x942   :  { %v11410_v53 = vpop.f32.mrf.mxu0 }
 0x944   :  { %v11434_v4 = vpop.f32.mrf.mxu2  ;;  %v11423_v45 = vpop.f32.mrf.mxu1 }
 0x94c   :  { %v11436_v14 = vpop.f32.mrf.mxu2 }
 0x95a   :  { %v11992_v31 = vpop.f32.mrf.mxu0 }
 0x95b   :  { %v11993_v8 = vadd.f32 %v19808_v63, %v11992_v31 }
 0x95c   :  { %v12005_v29 = vpop.f32.mrf.mxu1 }
 0x95d   :  { %v12006_v1 = vadd.f32 %v12005_v29, %v11993_v8 }
 0x95e   :  { %v11395_v20 = vpop.f32.mrf.mxu3 }
 0x95f   :  { %v11396_v41 = vadd.f32 %v11395_v20, %v11383_v37 }
 0x961   :  { %v11409_v47 = vadd.f32 %v11408_v46, %v11396_v41 }
 0x962   :  { %v11994_v19 = vpop.f32.mrf.mxu0 }
 0x963   :  { %v11422_v0 = vadd.f32 %v11421_v13, %v11409_v47 }
 0x964   :  { %v12018_v58 = vpop.f32.mrf.mxu2  ;;  %v12007_v5 = vpop.f32.mrf.mxu1 }
 0x965   :  { %v12019_v62 = vadd.f32 %v12018_v58, %v12006_v1  ;;  %v11435_v10 = vadd.f32 %v11434_v4, %v11422_v0 }
 0x966   :  { %v11397_v44 = vpop.f32.mrf.mxu3 }
 0x96c   :  { %v12020_v42 = vpop.f32.mrf.mxu2 }
 0x97a   :  { %v12044_v7 = vpop.f32.mrf.mxu0 }
 0x97e   :  { %v11447_v56 = vpop.f32.mrf.mxu3  ;;  %v12057_v16 = vpop.f32.mrf.mxu1 }
 0x97f   :  { %v11448_v6 = vadd.f32 %v11447_v56, %v11435_v10 }
 0x981   :  { %v11458_v11 = vmax.f32 %v11448_v6, 0.0 }
 0x982   :  { %v12046_v28 = vpop.f32.mrf.mxu0 }
 0x983   :  { %v11466_v48 = vpack.c.bf16 %v11458_v11, %v11458_v11 }
 0x985   :  { %12082 = vmatmul.bf16.vlgmr.msrb.gmra.mxu3 %v11466_v48 }
 0x986   :  { %v11449_v52 = vpop.f32.mrf.mxu3  ;;  %v12059_v57 = vpop.f32.mrf.mxu1 }
 0x99e   :  { %v12031_v24 = vpop.f32.mrf.mxu3 }
 0x99f   :  { %v12032_v9 = vadd.f32 %v12031_v24, %v12019_v62 }
 0x9a1   :  { %v12045_v26 = vadd.f32 %v12044_v7, %v12032_v9 }
 0x9a3   :  { %v12058_v38 = vadd.f32 %v12057_v16, %v12045_v26 }
 0x9a6   :  { %v12033_v39 = vpop.f32.mrf.mxu3 }
 0x9c1   :  { %v12070_v33 = vpop.f32.mrf.mxu2 }
 0x9c2   :  { %v12071_v21 = vadd.f32 %v12070_v33, %v12058_v38 }
 0x9c9   :  { %v12072_v40 = vpop.f32.mrf.mxu2 }
 0xa08   :  { %v12083_v3 = vpop.f32.mrf.mxu3 }
 0xa09   :  { %v12084_v49 = vadd.f32 %v12083_v3, %v12071_v21 }
 0xa0b   :  { %12087 = vmax.xlane.f32.xlu0 %v12084_v49 }
 0xa10   :  { %v12085_v61 = vpop.f32.mrf.mxu3 }
 0xa7e   :  { %v12088_v37 = vpop.xlane.xlu0 %12087 }
 0xa7f   :  { %v12089_v30 = vsub.f32 %v12084_v49, %v12088_v37 }
 0xa81   :  { %v12090_v27 = vmul.f32 1.442695, %v12089_v30 }
 0xa83   :  { %19809 = vpow2.f32 %v12090_v27 }
 0xa89   :  { %v19810_v51 = vpop.eup %19809 }
 0xa8a   :  { %12092 = vadd.xlane.f32.xlu0 %v19810_v51 }
 0xafd   :  { %v12093_v35 = vpop.xlane.xlu0 %12092 }
 0xafe   :  { %19811 = vrcp.f32 %v12093_v35  ;;  %v12105_v46 = vand.u32 2147483648, %v12093_v35  ;;  %v12103_v25 = vand.u32 2147483647, %v12093_v35  ;;  %vm12099_vm1 = vweird.f32 %v12093_v35 }
 0xb00   :  { %v12106_v2 = vor.u32 1.1754944e-38, %v12105_v46  ;;  %vm12104_vm3 = vcmp.eq.f32.partialorder %v12103_v25, 8.507059e+37 }
 0xb04   :  { %v19812_v12 = vpop.eup %19811 }
 0xb05   :  { %v12095_v34 = vmul.f32 %v19812_v12, %v12093_v35  ;;  %vm12100_vm0 = vweird.f32 %v19812_v12 }
 0xb06   :  { %vm12101_vm2 = vmor %vm12099_vm1, %vm12100_vm0 }
 0xb07   :  { %v12096_v15 = vsub.f32 1.0, %v12095_v34 }
 0xb09   :  { %v12097_v13 = vmul.f32 %v19812_v12, %v12096_v15 }
 0xb0b   :  { %v12098_v22 = vadd.f32 %v19812_v12, %v12097_v13 }
 0xb0d   :  { %v12102_v32 = vsel %vm12101_vm2, %v19812_v12, %v12098_v22 }
 0xb0e   :  { %v12107_v59 = vsel %vm12104_vm3, %v12106_v2, %v12102_v32 }
 0xb0f   :  { %v12108_v4 = vmul.f32 %v19810_v51, %v12107_v59 }
 0xb11   :  { %12109 = vst [vmem:[%s20563_s7] sm:$0xff] %v12108_v4 }
 0xb12   :  { %12114 = vsyncpa [#allocation3], 1 }
 0xb13   :  { %12115 = vsyncpa [#allocation5], 1 }
 0xb14   :  { %12116 = vsyncpa [#allocation8], 1 }
 0xb15   :  { %12117 = vsyncpa [#allocation11], 1 }

</bundles_post_ra>
